<compile_context>
chip_gen: v7x
topology: tpu7x:2x2x1
jax: 0.10.0
libtpu: 0.0.40
codegen_flags: <defaults>
</compile_context>

<pallas_src>
import jax
import jax.numpy as jnp
import numpy as np
from jax.experimental import pallas as pl
from jax.experimental.pallas import tpu as pltpu

BN_EPS = 1e-5


# ----------------------------------------------------------------------------
# Fused forward kernel: one grid step == one batch element.
# ----------------------------------------------------------------------------
def _make_fused_kernel(treedef, L):
    def kernel(*refs):
        x_ref = refs[0]              # (1, L, 16)  im2col of the Cin=1 input
        o_ref = refs[-1]             # (1, 1, 1)
        p = jax.tree_util.tree_unflatten(treedef, list(refs[1:-1]))

        # Constant +/-1 row-shift operators, built once and reused by every
        # residual block.  Doing the shift on the MXU avoids unaligned sublane
        # slices entirely, and the boundary rows come out as zeros, which is
        # exactly the 'same' padding of the K=3 convs.
        ri = jax.lax.broadcasted_iota(jnp.int32, (L, L), 0)
        ci = jax.lax.broadcasted_iota(jnp.int32, (L, L), 1)
        shift_prev = (ci == ri - 1).astype(jnp.float32)    # (S @ y)[l] = y[l-1]
        shift_next = (ci == ri + 1).astype(jnp.float32)    # (S @ y)[l] = y[l+1]

        def mm(a, w):
            return jnp.dot(a, w, preferred_element_type=jnp.float32)

        def conv1x1_bn(h, w_ref, s_ref, t_ref, relu):
            y = mm(h, w_ref[...]) * s_ref[...] + t_ref[...]
            return jnp.maximum(y, 0.0) if relu else y

        def conv3_bn_relu(h, w_ref, s_ref, t_ref):
            # 'same' K=3 conv: y[l] = sum_k h[l + k - 1] @ W[k]
            h_prev = mm(shift_prev, h)
            h_next = mm(shift_next, h)
            acc = mm(h_prev, w_ref[0]) + mm(h, w_ref[1]) + mm(h_next, w_ref[2])
            return jnp.maximum(acc * s_ref[...] + t_ref[...], 0.0)

        def res_block(h, r):
            identity = conv1x1_bn(h, r['sc_w'], r['sc_s'], r['sc_t'], relu=False)
            y = conv1x1_bn(h, r['a_w'], r['a_s'], r['a_t'], relu=True)   # dropout(eval)=id
            y = conv3_bn_relu(y, r['b_w'], r['b_s'], r['b_t'])           # dropout(eval)=id
            y = conv1x1_bn(y, r['c_w'], r['c_s'], r['c_t'], relu=False)
            return jnp.maximum(y + identity, 0.0)

        # conv1 + BN + ReLU: single im2col matmul.
        x = x_ref[0]                                                     # (L, 16)
        h = jnp.maximum(mm(x, p['c1_w'][...]) * p['c1_s'][...] + p['c1_t'][...], 0.0)

        h = res_block(h, p['res1'])     # (L, 128)
        h = res_block(h, p['res2'])     # (L, 256)
        h = res_block(h, p['res3'])     # (L, 512)

        # attention: conv1x1(512 -> 1) + sigmoid, done as a lane reduction.
        logit = jnp.sum(h * p['att_w'][...], axis=1, keepdims=True) + p['att_b'][...]
        att = 1.0 / (1.0 + jnp.exp(-logit))                              # (L, 1)
        h = h * att

        # Global average pool over L -> (1, 512)
        g = jnp.sum(h, axis=0, keepdims=True) * (1.0 / L)

        # FC head (Dropout in eval mode == identity)
        z = jnp.maximum(mm(g, p['fc1_w'][...]) + p['fc1_b'][...], 0.0)   # (1, 256)
        z = jnp.maximum(mm(z, p['fc2_w'][...]) + p['fc2_b'][...], 0.0)   # (1, 128)
        out = jnp.sum(z * p['fc3_w'][...], axis=1, keepdims=True) + p['fc3_b'][...]
        o_ref[0, :, :] = out                                             # (1, 1)

    return kernel


def _resident_spec(a):
    # Full-array block whose index never changes across the batch grid, so the
    # weight stays resident in VMEM (no re-DMA per grid step).
    zeros = (0,) * a.ndim
    return pl.BlockSpec(a.shape, lambda b, _z=zeros: _z)


def _fold_bn(conv_b, bn):
    scale = bn['g'] / jnp.sqrt(bn['v'] + BN_EPS)
    shift = bn['b'] + scale * (conv_b - bn['m'])
    return scale.reshape(1, -1), shift.reshape(1, -1)


def _build_kernel_params(p):
    kp = {}
    w1 = p['conv1']['w'].reshape(15, 64)
    kp['c1_w'] = jnp.pad(w1, ((0, 1), (0, 0)))                  # 15 taps -> 16
    kp['c1_s'], kp['c1_t'] = _fold_bn(p['conv1']['b'], p['conv1']['bn'])
    for name in ('res1', 'res2', 'res3'):
        r = p[name]
        blk = {}
        blk['sc_w'] = r['sc']['w']
        blk['sc_s'], blk['sc_t'] = _fold_bn(r['sc']['b'], r['sc']['bn'])
        blk['a_w'] = r['c1']['w']
        blk['a_s'], blk['a_t'] = _fold_bn(r['c1']['b'], r['c1']['bn'])
        blk['b_w'] = r['c2']['w']                               # (3, mid, mid), tap-major
        blk['b_s'], blk['b_t'] = _fold_bn(r['c2']['b'], r['c2']['bn'])
        blk['c_w'] = r['c3']['w']
        blk['c_s'], blk['c_t'] = _fold_bn(r['c3']['b'], r['c3']['bn'])
        kp[name] = blk
    kp['att_w'] = p['att']['w'].reshape(1, -1)
    kp['att_b'] = p['att']['b'].reshape(1, 1)
    kp['fc1_w'] = p['fc1']['w']
    kp['fc1_b'] = p['fc1']['b'].reshape(1, -1)
    kp['fc2_w'] = p['fc2']['w']
    kp['fc2_b'] = p['fc2']['b'].reshape(1, -1)
    kp['fc3_w'] = p['fc3']['w'].reshape(1, -1)
    kp['fc3_b'] = p['fc3']['b'].reshape(1, 1)
    return kp


def ppgnet_forward(p, x_ncl):
    # x_ncl: (B, 1, L)  (PyTorch NCL layout)
    B, _, L = x_ncl.shape
    kp = _build_kernel_params(p)

    # im2col of the raw Cin=1 input for conv1 — the only wrapper-side data
    # movement; everything else stays inside the single fused kernel.
    xb = x_ncl[:, 0, :]                                         # (B, L)
    xp = jnp.pad(xb, ((0, 0), (7, 7)))
    cols = jnp.stack([xp[:, k:k + L] for k in range(15)], axis=-1)   # (B, L, 15)
    cols = jnp.pad(cols, ((0, 0), (0, 0), (0, 1)))                   # (B, L, 16)

    flat, treedef = jax.tree_util.tree_flatten(kp)
    kernel = _make_fused_kernel(treedef, L)

    out = pl.pallas_call(
        kernel,
        grid=(B,),
        in_specs=[pl.BlockSpec((1, L, 16), lambda b: (b, 0, 0))]
                 + [_resident_spec(a) for a in flat],
        out_specs=pl.BlockSpec((1, 1, 1), lambda b: (b, 0, 0)),
        out_shape=jax.ShapeDtypeStruct((B, 1, 1), jnp.float32),
        compiler_params=pltpu.CompilerParams(
            dimension_semantics=("parallel",)),                 # v7x: shard batch over 2 TCs
    )(cols, *flat)
    return out.reshape(B, 1)


# ------------------------------- parameters ---------------------------------
def init_params(key):
    keys = iter(jax.random.split(key, 96))

    def nrm(shape, s):
        return jax.random.normal(next(keys), shape, jnp.float32) * s

    def bn_params(c):
        return dict(g=1.0 + nrm((c,), 0.1), b=nrm((c,), 0.05),
                    m=nrm((c,), 0.02), v=1.0 + jnp.abs(nrm((c,), 0.1)))

    def res_params(cin, cout):
        mid = cout // 2
        return dict(
            sc=dict(w=nrm((cin, cout), 1.0 / np.sqrt(cin)), b=nrm((cout,), 0.05), bn=bn_params(cout)),
            c1=dict(w=nrm((cin, mid), 1.0 / np.sqrt(cin)), b=nrm((mid,), 0.05), bn=bn_params(mid)),
            c2=dict(w=nrm((3, mid, mid), 1.0 / np.sqrt(3 * mid)), b=nrm((mid,), 0.05), bn=bn_params(mid)),
            c3=dict(w=nrm((mid, cout), 1.0 / np.sqrt(mid)), b=nrm((cout,), 0.05), bn=bn_params(cout)),
        )

    p = {}
    p['conv1'] = dict(w=nrm((15, 1, 64), 1.0 / np.sqrt(15)), b=nrm((64,), 0.05), bn=bn_params(64))
    p['res1'] = res_params(64, 128)
    p['res2'] = res_params(128, 256)
    p['res3'] = res_params(256, 512)
    p['att'] = dict(w=nrm((512,), 1.0 / np.sqrt(512)), b=nrm((1,), 0.05))
    p['fc1'] = dict(w=nrm((512, 256), 1.0 / np.sqrt(512)), b=nrm((256,), 0.05))
    p['fc2'] = dict(w=nrm((256, 128), 1.0 / np.sqrt(256)), b=nrm((128,), 0.05))
    p['fc3'] = dict(w=nrm((128,), 1.0 / np.sqrt(128)), b=nrm((1,), 0.05))
    return p


# -------------------------- pure-JAX reference ------------------------------
def ppgnet_reference(p, x_ncl):
    HP = jax.lax.Precision.HIGHEST

    def bn_apply(x, d):
        s = d['g'] / jnp.sqrt(d['v'] + BN_EPS)
        return (x - d['m'][None, :, None]) * s[None, :, None] + d['b'][None, :, None]

    def conv1x1(x, w_io, b):
        return jnp.einsum('bcl,co->bol', x, w_io, precision=HP) + b[None, :, None]

    def conv_k(x, w_kio, b, pad):
        w = jnp.transpose(w_kio, (2, 1, 0))                    # (Cout, Cin, K)
        y = jax.lax.conv_general_dilated(
            x, w, window_strides=(1,), padding=[(pad, pad)],
            dimension_numbers=('NCH', 'OIH', 'NCH'), precision=HP)
        return y + b[None, :, None]

    h = jax.nn.relu(bn_apply(conv_k(x_ncl, p['conv1']['w'], p['conv1']['b'], 7), p['conv1']['bn']))

    def res_block(h, r):
        idn = bn_apply(conv1x1(h, r['sc']['w'], r['sc']['b']), r['sc']['bn'])
        y = jax.nn.relu(bn_apply(conv1x1(h, r['c1']['w'], r['c1']['b']), r['c1']['bn']))
        y = jax.nn.relu(bn_apply(conv_k(y, r['c2']['w'], r['c2']['b'], 1), r['c2']['bn']))
        y = bn_apply(conv1x1(y, r['c3']['w'], r['c3']['b']), r['c3']['bn'])
        return jax.nn.relu(y + idn)

    h = res_block(h, p['res1'])
    h = res_block(h, p['res2'])
    h = res_block(h, p['res3'])

    logit = jnp.einsum('bcl,c->bl', h, p['att']['w'], precision=HP) + p['att']['b'][0]
    att = jax.nn.sigmoid(logit)[:, None, :]                    # (B, 1, L)
    h = h * att
    g = jnp.mean(h, axis=-1)                                   # (B, 512)
    z = jax.nn.relu(jnp.dot(g, p['fc1']['w'], precision=HP) + p['fc1']['b'])
    z = jax.nn.relu(jnp.dot(z, p['fc2']['w'], precision=HP) + p['fc2']['b'])
    return jnp.dot(z, p['fc3']['w'][:, None], precision=HP) + p['fc3']['b']


if __name__ == "__main__":
    key = jax.random.PRNGKey(0)
    pkey, xkey = jax.random.split(key)
    params = init_params(pkey)

    B, L = 2, 64                                               # (B, Cin=1, L) PPG input
    x = jax.random.normal(xkey, (B, 1, L), jnp.float32)

    out = jax.jit(ppgnet_forward)(params, x)
    out = jax.block_until_ready(out)

    ref = ppgnet_reference(params, x)
    assert out.shape == (B, 1)
    assert np.isfinite(np.asarray(out)).all()
    max_err = float(jnp.max(jnp.abs(out - ref)))
    tol = 1e-2 * (1.0 + float(jnp.max(jnp.abs(ref))))
    assert max_err < tol, f"mismatch vs reference: {max_err} (tol {tol})"
    print("KERNEL_OK")
</pallas_src>

<mosaic_0001>
module attributes {stable_mosaic.version = 11 : i64} {
  func.func @kernel(%arg0: i32, %arg1: memref<1x64x16xf32, #tpu.memory_space<vmem>>, %arg2: memref<1x1xf32, #tpu.memory_space<vmem>>, %arg3: memref<1x512xf32, #tpu.memory_space<vmem>>, %arg4: memref<1x64xf32, #tpu.memory_space<vmem>>, %arg5: memref<1x64xf32, #tpu.memory_space<vmem>>, %arg6: memref<16x64xf32, #tpu.memory_space<vmem>>, %arg7: memref<1x256xf32, #tpu.memory_space<vmem>>, %arg8: memref<512x256xf32, #tpu.memory_space<vmem>>, %arg9: memref<1x128xf32, #tpu.memory_space<vmem>>, %arg10: memref<256x128xf32, #tpu.memory_space<vmem>>, %arg11: memref<1x1xf32, #tpu.memory_space<vmem>>, %arg12: memref<1x128xf32, #tpu.memory_space<vmem>>, %arg13: memref<1x64xf32, #tpu.memory_space<vmem>>, %arg14: memref<1x64xf32, #tpu.memory_space<vmem>>, %arg15: memref<64x64xf32, #tpu.memory_space<vmem>>, %arg16: memref<1x64xf32, #tpu.memory_space<vmem>>, %arg17: memref<1x64xf32, #tpu.memory_space<vmem>>, %arg18: memref<3x64x64xf32, #tpu.memory_space<vmem>>, %arg19: memref<1x128xf32, #tpu.memory_space<vmem>>, %arg20: memref<1x128xf32, #tpu.memory_space<vmem>>, %arg21: memref<64x128xf32, #tpu.memory_space<vmem>>, %arg22: memref<1x128xf32, #tpu.memory_space<vmem>>, %arg23: memref<1x128xf32, #tpu.memory_space<vmem>>, %arg24: memref<64x128xf32, #tpu.memory_space<vmem>>, %arg25: memref<1x128xf32, #tpu.memory_space<vmem>>, %arg26: memref<1x128xf32, #tpu.memory_space<vmem>>, %arg27: memref<128x128xf32, #tpu.memory_space<vmem>>, %arg28: memref<1x128xf32, #tpu.memory_space<vmem>>, %arg29: memref<1x128xf32, #tpu.memory_space<vmem>>, %arg30: memref<3x128x128xf32, #tpu.memory_space<vmem>>, %arg31: memref<1x256xf32, #tpu.memory_space<vmem>>, %arg32: memref<1x256xf32, #tpu.memory_space<vmem>>, %arg33: memref<128x256xf32, #tpu.memory_space<vmem>>, %arg34: memref<1x256xf32, #tpu.memory_space<vmem>>, %arg35: memref<1x256xf32, #tpu.memory_space<vmem>>, %arg36: memref<128x256xf32, #tpu.memory_space<vmem>>, %arg37: memref<1x256xf32, #tpu.memory_space<vmem>>, %arg38: memref<1x256xf32, #tpu.memory_space<vmem>>, %arg39: memref<256x256xf32, #tpu.memory_space<vmem>>, %arg40: memref<1x256xf32, #tpu.memory_space<vmem>>, %arg41: memref<1x256xf32, #tpu.memory_space<vmem>>, %arg42: memref<3x256x256xf32, #tpu.memory_space<vmem>>, %arg43: memref<1x512xf32, #tpu.memory_space<vmem>>, %arg44: memref<1x512xf32, #tpu.memory_space<vmem>>, %arg45: memref<256x512xf32, #tpu.memory_space<vmem>>, %arg46: memref<1x512xf32, #tpu.memory_space<vmem>>, %arg47: memref<1x512xf32, #tpu.memory_space<vmem>>, %arg48: memref<256x512xf32, #tpu.memory_space<vmem>>, %arg49: memref<1x1x1xf32, #tpu.memory_space<vmem>>) attributes {dimension_semantics = [#tpu.dimension_semantics<parallel>], iteration_bounds = array<i64: 2>, scalar_prefetch = 0 : i64, scratch_operands = 0 : i64, tpu.core_type = #tpu.core_type<tc>, window_params = [{transform_indices = @transform_0, window_bounds = array<i64: 1, 64, 16>}, {pipeline_mode = #tpu.pipeline_mode<synchronous>, transform_indices = @transform_1, window_bounds = array<i64: 1, 1>}, {pipeline_mode = #tpu.pipeline_mode<synchronous>, transform_indices = @transform_2, window_bounds = array<i64: 1, 512>}, {pipeline_mode = #tpu.pipeline_mode<synchronous>, transform_indices = @transform_3, window_bounds = array<i64: 1, 64>}, {pipeline_mode = #tpu.pipeline_mode<synchronous>, transform_indices = @transform_4, window_bounds = array<i64: 1, 64>}, {pipeline_mode = #tpu.pipeline_mode<synchronous>, transform_indices = @transform_5, window_bounds = array<i64: 16, 64>}, {pipeline_mode = #tpu.pipeline_mode<synchronous>, transform_indices = @transform_6, window_bounds = array<i64: 1, 256>}, {pipeline_mode = #tpu.pipeline_mode<synchronous>, transform_indices = @transform_7, window_bounds = array<i64: 512, 256>}, {pipeline_mode = #tpu.pipeline_mode<synchronous>, transform_indices = @transform_8, window_bounds = array<i64: 1, 128>}, {pipeline_mode = #tpu.pipeline_mode<synchronous>, transform_indices = @transform_9, window_bounds = array<i64: 256, 128>}, {pipeline_mode = #tpu.pipeline_mode<synchronous>, transform_indices = @transform_10, window_bounds = array<i64: 1, 1>}, {pipeline_mode = #tpu.pipeline_mode<synchronous>, transform_indices = @transform_11, window_bounds = array<i64: 1, 128>}, {pipeline_mode = #tpu.pipeline_mode<synchronous>, transform_indices = @transform_12, window_bounds = array<i64: 1, 64>}, {pipeline_mode = #tpu.pipeline_mode<synchronous>, transform_indices = @transform_13, window_bounds = array<i64: 1, 64>}, {pipeline_mode = #tpu.pipeline_mode<synchronous>, transform_indices = @transform_14, window_bounds = array<i64: 64, 64>}, {pipeline_mode = #tpu.pipeline_mode<synchronous>, transform_indices = @transform_15, window_bounds = array<i64: 1, 64>}, {pipeline_mode = #tpu.pipeline_mode<synchronous>, transform_indices = @transform_16, window_bounds = array<i64: 1, 64>}, {pipeline_mode = #tpu.pipeline_mode<synchronous>, transform_indices = @transform_17, window_bounds = array<i64: 3, 64, 64>}, {pipeline_mode = #tpu.pipeline_mode<synchronous>, transform_indices = @transform_18, window_bounds = array<i64: 1, 128>}, {pipeline_mode = #tpu.pipeline_mode<synchronous>, transform_indices = @transform_19, window_bounds = array<i64: 1, 128>}, {pipeline_mode = #tpu.pipeline_mode<synchronous>, transform_indices = @transform_20, window_bounds = array<i64: 64, 128>}, {pipeline_mode = #tpu.pipeline_mode<synchronous>, transform_indices = @transform_21, window_bounds = array<i64: 1, 128>}, {pipeline_mode = #tpu.pipeline_mode<synchronous>, transform_indices = @transform_22, window_bounds = array<i64: 1, 128>}, {pipeline_mode = #tpu.pipeline_mode<synchronous>, transform_indices = @transform_23, window_bounds = array<i64: 64, 128>}, {pipeline_mode = #tpu.pipeline_mode<synchronous>, transform_indices = @transform_24, window_bounds = array<i64: 1, 128>}, {pipeline_mode = #tpu.pipeline_mode<synchronous>, transform_indices = @transform_25, window_bounds = array<i64: 1, 128>}, {pipeline_mode = #tpu.pipeline_mode<synchronous>, transform_indices = @transform_26, window_bounds = array<i64: 128, 128>}, {pipeline_mode = #tpu.pipeline_mode<synchronous>, transform_indices = @transform_27, window_bounds = array<i64: 1, 128>}, {pipeline_mode = #tpu.pipeline_mode<synchronous>, transform_indices = @transform_28, window_bounds = array<i64: 1, 128>}, {pipeline_mode = #tpu.pipeline_mode<synchronous>, transform_indices = @transform_29, window_bounds = array<i64: 3, 128, 128>}, {pipeline_mode = #tpu.pipeline_mode<synchronous>, transform_indices = @transform_30, window_bounds = array<i64: 1, 256>}, {pipeline_mode = #tpu.pipeline_mode<synchronous>, transform_indices = @transform_31, window_bounds = array<i64: 1, 256>}, {pipeline_mode = #tpu.pipeline_mode<synchronous>, transform_indices = @transform_32, window_bounds = array<i64: 128, 256>}, {pipeline_mode = #tpu.pipeline_mode<synchronous>, transform_indices = @transform_33, window_bounds = array<i64: 1, 256>}, {pipeline_mode = #tpu.pipeline_mode<synchronous>, transform_indices = @transform_34, window_bounds = array<i64: 1, 256>}, {pipeline_mode = #tpu.pipeline_mode<synchronous>, transform_indices = @transform_35, window_bounds = array<i64: 128, 256>}, {pipeline_mode = #tpu.pipeline_mode<synchronous>, transform_indices = @transform_36, window_bounds = array<i64: 1, 256>}, {pipeline_mode = #tpu.pipeline_mode<synchronous>, transform_indices = @transform_37, window_bounds = array<i64: 1, 256>}, {pipeline_mode = #tpu.pipeline_mode<synchronous>, transform_indices = @transform_38, window_bounds = array<i64: 256, 256>}, {pipeline_mode = #tpu.pipeline_mode<synchronous>, transform_indices = @transform_39, window_bounds = array<i64: 1, 256>}, {pipeline_mode = #tpu.pipeline_mode<synchronous>, transform_indices = @transform_40, window_bounds = array<i64: 1, 256>}, {pipeline_mode = #tpu.pipeline_mode<synchronous>, transform_indices = @transform_41, window_bounds = array<i64: 3, 256, 256>}, {pipeline_mode = #tpu.pipeline_mode<synchronous>, transform_indices = @transform_42, window_bounds = array<i64: 1, 512>}, {pipeline_mode = #tpu.pipeline_mode<synchronous>, transform_indices = @transform_43, window_bounds = array<i64: 1, 512>}, {pipeline_mode = #tpu.pipeline_mode<synchronous>, transform_indices = @transform_44, window_bounds = array<i64: 256, 512>}, {pipeline_mode = #tpu.pipeline_mode<synchronous>, transform_indices = @transform_45, window_bounds = array<i64: 1, 512>}, {pipeline_mode = #tpu.pipeline_mode<synchronous>, transform_indices = @transform_46, window_bounds = array<i64: 1, 512>}, {pipeline_mode = #tpu.pipeline_mode<synchronous>, transform_indices = @transform_47, window_bounds = array<i64: 256, 512>}, {transform_indices = @transform_48, window_bounds = array<i64: 1, 1, 1>}]} {
    %0 = tpu.iota {dimensions = array<i32: 0>} : vector<64x64xi32>
    %1 = tpu.iota {dimensions = array<i32: 1>} : vector<64x64xi32>
    %c1_i32 = arith.constant 1 : i32
    %2 = vector.broadcast %c1_i32 : i32 to vector<64x64xi32>
    %3 = arith.subi %0, %2 : vector<64x64xi32>
    %4 = arith.cmpi eq, %1, %3 : vector<64x64xi32>
    %5 = arith.extui %4 : vector<64x64xi1> to vector<64x64xi32>
    %6 = arith.sitofp %5 : vector<64x64xi32> to vector<64x64xf32>
    %c1_i32_0 = arith.constant 1 : i32
    %7 = vector.broadcast %c1_i32_0 : i32 to vector<64x64xi32>
    %8 = arith.addi %0, %7 : vector<64x64xi32>
    %9 = arith.cmpi eq, %1, %8 : vector<64x64xi32>
    %10 = arith.extui %9 : vector<64x64xi1> to vector<64x64xi32>
    %11 = arith.sitofp %10 : vector<64x64xi32> to vector<64x64xf32>
    %c0 = arith.constant 0 : index
    %c0_1 = arith.constant 0 : index
    %c0_2 = arith.constant 0 : index
    %12 = vector.load %arg1[%c0, %c0_1, %c0_2] : memref<1x64x16xf32, #tpu.memory_space<vmem>>, vector<1x64x16xf32>
    %13 = vector.shape_cast %12 : vector<1x64x16xf32> to vector<64x16xf32>
    %c0_3 = arith.constant 0 : index
    %c0_4 = arith.constant 0 : index
    %14 = vector.load %arg6[%c0_3, %c0_4] : memref<16x64xf32, #tpu.memory_space<vmem>>, vector<16x64xf32>
    %cst = arith.constant dense<0.000000e+00> : vector<64x64xf32>
    %15 = tpu.matmul %13, %14, %cst {dimension_numbers = #tpu.dot_dimension_numbers<[1], [0], [0], [1], [0, 0, 1, 1], [], []>} : vector<64x16xf32>, vector<16x64xf32>, vector<64x64xf32> -> vector<64x64xf32>
    %c0_5 = arith.constant 0 : index
    %c0_6 = arith.constant 0 : index
    %16 = vector.load %arg4[%c0_5, %c0_6] : memref<1x64xf32, #tpu.memory_space<vmem>>, vector<1x64xf32>
    %17 = vector.broadcast %16 : vector<1x64xf32> to vector<64x64xf32>
    %18 = arith.mulf %15, %17 : vector<64x64xf32>
    %c0_7 = arith.constant 0 : index
    %c0_8 = arith.constant 0 : index
    %19 = vector.load %arg5[%c0_7, %c0_8] : memref<1x64xf32, #tpu.memory_space<vmem>>, vector<1x64xf32>
    %20 = vector.broadcast %19 : vector<1x64xf32> to vector<64x64xf32>
    %21 = arith.addf %18, %20 : vector<64x64xf32>
    %cst_9 = arith.constant 0.000000e+00 : f32
    %22 = vector.broadcast %cst_9 : f32 to vector<64x64xf32>
    %23 = arith.maximumf %21, %22 : vector<64x64xf32>
    %c0_10 = arith.constant 0 : index
    %c0_11 = arith.constant 0 : index
    %24 = vector.load %arg24[%c0_10, %c0_11] : memref<64x128xf32, #tpu.memory_space<vmem>>, vector<64x128xf32>
    %cst_12 = arith.constant dense<0.000000e+00> : vector<64x128xf32>
    %25 = tpu.matmul %23, %24, %cst_12 {dimension_numbers = #tpu.dot_dimension_numbers<[1], [0], [0], [1], [0, 0, 1, 1], [], []>} : vector<64x64xf32>, vector<64x128xf32>, vector<64x128xf32> -> vector<64x128xf32>
    %c0_13 = arith.constant 0 : index
    %c0_14 = arith.constant 0 : index
    %26 = vector.load %arg22[%c0_13, %c0_14] : memref<1x128xf32, #tpu.memory_space<vmem>>, vector<1x128xf32>
    %27 = vector.broadcast %26 : vector<1x128xf32> to vector<64x128xf32>
    %28 = arith.mulf %25, %27 : vector<64x128xf32>
    %c0_15 = arith.constant 0 : index
    %c0_16 = arith.constant 0 : index
    %29 = vector.load %arg23[%c0_15, %c0_16] : memref<1x128xf32, #tpu.memory_space<vmem>>, vector<1x128xf32>
    %30 = vector.broadcast %29 : vector<1x128xf32> to vector<64x128xf32>
    %31 = arith.addf %28, %30 : vector<64x128xf32>
    %c0_17 = arith.constant 0 : index
    %c0_18 = arith.constant 0 : index
    %32 = vector.load %arg15[%c0_17, %c0_18] : memref<64x64xf32, #tpu.memory_space<vmem>>, vector<64x64xf32>
    %cst_19 = arith.constant dense<0.000000e+00> : vector<64x64xf32>
    %33 = tpu.matmul %23, %32, %cst_19 {dimension_numbers = #tpu.dot_dimension_numbers<[1], [0], [0], [1], [0, 0, 1, 1], [], []>} : vector<64x64xf32>, vector<64x64xf32>, vector<64x64xf32> -> vector<64x64xf32>
    %c0_20 = arith.constant 0 : index
    %c0_21 = arith.constant 0 : index
    %34 = vector.load %arg13[%c0_20, %c0_21] : memref<1x64xf32, #tpu.memory_space<vmem>>, vector<1x64xf32>
    %35 = vector.broadcast %34 : vector<1x64xf32> to vector<64x64xf32>
    %36 = arith.mulf %33, %35 : vector<64x64xf32>
    %c0_22 = arith.constant 0 : index
    %c0_23 = arith.constant 0 : index
    %37 = vector.load %arg14[%c0_22, %c0_23] : memref<1x64xf32, #tpu.memory_space<vmem>>, vector<1x64xf32>
    %38 = vector.broadcast %37 : vector<1x64xf32> to vector<64x64xf32>
    %39 = arith.addf %36, %38 : vector<64x64xf32>
    %cst_24 = arith.constant 0.000000e+00 : f32
    %40 = vector.broadcast %cst_24 : f32 to vector<64x64xf32>
    %41 = arith.maximumf %39, %40 : vector<64x64xf32>
    %cst_25 = arith.constant dense<0.000000e+00> : vector<64x64xf32>
    %42 = tpu.matmul %6, %41, %cst_25 {dimension_numbers = #tpu.dot_dimension_numbers<[1], [0], [0], [1], [0, 0, 1, 1], [], []>} : vector<64x64xf32>, vector<64x64xf32>, vector<64x64xf32> -> vector<64x64xf32>
    %cst_26 = arith.constant dense<0.000000e+00> : vector<64x64xf32>
    %43 = tpu.matmul %11, %41, %cst_26 {dimension_numbers = #tpu.dot_dimension_numbers<[1], [0], [0], [1], [0, 0, 1, 1], [], []>} : vector<64x64xf32>, vector<64x64xf32>, vector<64x64xf32> -> vector<64x64xf32>
    %c0_27 = arith.constant 0 : index
    %c0_28 = arith.constant 0 : index
    %c0_29 = arith.constant 0 : index
    %44 = vector.load %arg18[%c0_27, %c0_28, %c0_29] : memref<3x64x64xf32, #tpu.memory_space<vmem>>, vector<1x64x64xf32>
    %45 = vector.shape_cast %44 : vector<1x64x64xf32> to vector<64x64xf32>
    %cst_30 = arith.constant dense<0.000000e+00> : vector<64x64xf32>
    %46 = tpu.matmul %42, %45, %cst_30 {dimension_numbers = #tpu.dot_dimension_numbers<[1], [0], [0], [1], [0, 0, 1, 1], [], []>} : vector<64x64xf32>, vector<64x64xf32>, vector<64x64xf32> -> vector<64x64xf32>
    %c1 = arith.constant 1 : index
    %c0_31 = arith.constant 0 : index
    %c0_32 = arith.constant 0 : index
    %47 = vector.load %arg18[%c1, %c0_31, %c0_32] : memref<3x64x64xf32, #tpu.memory_space<vmem>>, vector<1x64x64xf32>
    %48 = vector.shape_cast %47 : vector<1x64x64xf32> to vector<64x64xf32>
    %cst_33 = arith.constant dense<0.000000e+00> : vector<64x64xf32>
    %49 = tpu.matmul %41, %48, %cst_33 {dimension_numbers = #tpu.dot_dimension_numbers<[1], [0], [0], [1], [0, 0, 1, 1], [], []>} : vector<64x64xf32>, vector<64x64xf32>, vector<64x64xf32> -> vector<64x64xf32>
    %50 = arith.addf %46, %49 : vector<64x64xf32>
    %c2 = arith.constant 2 : index
    %c0_34 = arith.constant 0 : index
    %c0_35 = arith.constant 0 : index
    %51 = vector.load %arg18[%c2, %c0_34, %c0_35] : memref<3x64x64xf32, #tpu.memory_space<vmem>>, vector<1x64x64xf32>
    %52 = vector.shape_cast %51 : vector<1x64x64xf32> to vector<64x64xf32>
    %cst_36 = arith.constant dense<0.000000e+00> : vector<64x64xf32>
    %53 = tpu.matmul %43, %52, %cst_36 {dimension_numbers = #tpu.dot_dimension_numbers<[1], [0], [0], [1], [0, 0, 1, 1], [], []>} : vector<64x64xf32>, vector<64x64xf32>, vector<64x64xf32> -> vector<64x64xf32>
    %54 = arith.addf %50, %53 : vector<64x64xf32>
    %c0_37 = arith.constant 0 : index
    %c0_38 = arith.constant 0 : index
    %55 = vector.load %arg16[%c0_37, %c0_38] : memref<1x64xf32, #tpu.memory_space<vmem>>, vector<1x64xf32>
    %56 = vector.broadcast %55 : vector<1x64xf32> to vector<64x64xf32>
    %57 = arith.mulf %54, %56 : vector<64x64xf32>
    %c0_39 = arith.constant 0 : index
    %c0_40 = arith.constant 0 : index
    %58 = vector.load %arg17[%c0_39, %c0_40] : memref<1x64xf32, #tpu.memory_space<vmem>>, vector<1x64xf32>
    %59 = vector.broadcast %58 : vector<1x64xf32> to vector<64x64xf32>
    %60 = arith.addf %57, %59 : vector<64x64xf32>
    %cst_41 = arith.constant 0.000000e+00 : f32
    %61 = vector.broadcast %cst_41 : f32 to vector<64x64xf32>
    %62 = arith.maximumf %60, %61 : vector<64x64xf32>
    %c0_42 = arith.constant 0 : index
    %c0_43 = arith.constant 0 : index
    %63 = vector.load %arg21[%c0_42, %c0_43] : memref<64x128xf32, #tpu.memory_space<vmem>>, vector<64x128xf32>
    %cst_44 = arith.constant dense<0.000000e+00> : vector<64x128xf32>
    %64 = tpu.matmul %62, %63, %cst_44 {dimension_numbers = #tpu.dot_dimension_numbers<[1], [0], [0], [1], [0, 0, 1, 1], [], []>} : vector<64x64xf32>, vector<64x128xf32>, vector<64x128xf32> -> vector<64x128xf32>
    %c0_45 = arith.constant 0 : index
    %c0_46 = arith.constant 0 : index
    %65 = vector.load %arg19[%c0_45, %c0_46] : memref<1x128xf32, #tpu.memory_space<vmem>>, vector<1x128xf32>
    %66 = vector.broadcast %65 : vector<1x128xf32> to vector<64x128xf32>
    %67 = arith.mulf %64, %66 : vector<64x128xf32>
    %c0_47 = arith.constant 0 : index
    %c0_48 = arith.constant 0 : index
    %68 = vector.load %arg20[%c0_47, %c0_48] : memref<1x128xf32, #tpu.memory_space<vmem>>, vector<1x128xf32>
    %69 = vector.broadcast %68 : vector<1x128xf32> to vector<64x128xf32>
    %70 = arith.addf %67, %69 : vector<64x128xf32>
    %71 = arith.addf %70, %31 : vector<64x128xf32>
    %cst_49 = arith.constant 0.000000e+00 : f32
    %72 = vector.broadcast %cst_49 : f32 to vector<64x128xf32>
    %73 = arith.maximumf %71, %72 : vector<64x128xf32>
    %c0_50 = arith.constant 0 : index
    %c0_51 = arith.constant 0 : index
    %74 = vector.load %arg36[%c0_50, %c0_51] : memref<128x256xf32, #tpu.memory_space<vmem>>, vector<128x256xf32>
    %cst_52 = arith.constant dense<0.000000e+00> : vector<64x256xf32>
    %75 = tpu.matmul %73, %74, %cst_52 {dimension_numbers = #tpu.dot_dimension_numbers<[1], [0], [0], [1], [0, 0, 1, 1], [], []>} : vector<64x128xf32>, vector<128x256xf32>, vector<64x256xf32> -> vector<64x256xf32>
    %c0_53 = arith.constant 0 : index
    %c0_54 = arith.constant 0 : index
    %76 = vector.load %arg34[%c0_53, %c0_54] : memref<1x256xf32, #tpu.memory_space<vmem>>, vector<1x256xf32>
    %77 = vector.broadcast %76 : vector<1x256xf32> to vector<64x256xf32>
    %78 = arith.mulf %75, %77 : vector<64x256xf32>
    %c0_55 = arith.constant 0 : index
    %c0_56 = arith.constant 0 : index
    %79 = vector.load %arg35[%c0_55, %c0_56] : memref<1x256xf32, #tpu.memory_space<vmem>>, vector<1x256xf32>
    %80 = vector.broadcast %79 : vector<1x256xf32> to vector<64x256xf32>
    %81 = arith.addf %78, %80 : vector<64x256xf32>
    %c0_57 = arith.constant 0 : index
    %c0_58 = arith.constant 0 : index
    %82 = vector.load %arg27[%c0_57, %c0_58] : memref<128x128xf32, #tpu.memory_space<vmem>>, vector<128x128xf32>
    %cst_59 = arith.constant dense<0.000000e+00> : vector<64x128xf32>
    %83 = tpu.matmul %73, %82, %cst_59 {dimension_numbers = #tpu.dot_dimension_numbers<[1], [0], [0], [1], [0, 0, 1, 1], [], []>} : vector<64x128xf32>, vector<128x128xf32>, vector<64x128xf32> -> vector<64x128xf32>
    %c0_60 = arith.constant 0 : index
    %c0_61 = arith.constant 0 : index
    %84 = vector.load %arg25[%c0_60, %c0_61] : memref<1x128xf32, #tpu.memory_space<vmem>>, vector<1x128xf32>
    %85 = vector.broadcast %84 : vector<1x128xf32> to vector<64x128xf32>
    %86 = arith.mulf %83, %85 : vector<64x128xf32>
    %c0_62 = arith.constant 0 : index
    %c0_63 = arith.constant 0 : index
    %87 = vector.load %arg26[%c0_62, %c0_63] : memref<1x128xf32, #tpu.memory_space<vmem>>, vector<1x128xf32>
    %88 = vector.broadcast %87 : vector<1x128xf32> to vector<64x128xf32>
    %89 = arith.addf %86, %88 : vector<64x128xf32>
    %cst_64 = arith.constant 0.000000e+00 : f32
    %90 = vector.broadcast %cst_64 : f32 to vector<64x128xf32>
    %91 = arith.maximumf %89, %90 : vector<64x128xf32>
    %cst_65 = arith.constant dense<0.000000e+00> : vector<64x128xf32>
    %92 = tpu.matmul %6, %91, %cst_65 {dimension_numbers = #tpu.dot_dimension_numbers<[1], [0], [0], [1], [0, 0, 1, 1], [], []>} : vector<64x64xf32>, vector<64x128xf32>, vector<64x128xf32> -> vector<64x128xf32>
    %cst_66 = arith.constant dense<0.000000e+00> : vector<64x128xf32>
    %93 = tpu.matmul %11, %91, %cst_66 {dimension_numbers = #tpu.dot_dimension_numbers<[1], [0], [0], [1], [0, 0, 1, 1], [], []>} : vector<64x64xf32>, vector<64x128xf32>, vector<64x128xf32> -> vector<64x128xf32>
    %c0_67 = arith.constant 0 : index
    %c0_68 = arith.constant 0 : index
    %c0_69 = arith.constant 0 : index
    %94 = vector.load %arg30[%c0_67, %c0_68, %c0_69] : memref<3x128x128xf32, #tpu.memory_space<vmem>>, vector<1x128x128xf32>
    %95 = vector.shape_cast %94 : vector<1x128x128xf32> to vector<128x128xf32>
    %cst_70 = arith.constant dense<0.000000e+00> : vector<64x128xf32>
    %96 = tpu.matmul %92, %95, %cst_70 {dimension_numbers = #tpu.dot_dimension_numbers<[1], [0], [0], [1], [0, 0, 1, 1], [], []>} : vector<64x128xf32>, vector<128x128xf32>, vector<64x128xf32> -> vector<64x128xf32>
    %c1_71 = arith.constant 1 : index
    %c0_72 = arith.constant 0 : index
    %c0_73 = arith.constant 0 : index
    %97 = vector.load %arg30[%c1_71, %c0_72, %c0_73] : memref<3x128x128xf32, #tpu.memory_space<vmem>>, vector<1x128x128xf32>
    %98 = vector.shape_cast %97 : vector<1x128x128xf32> to vector<128x128xf32>
    %cst_74 = arith.constant dense<0.000000e+00> : vector<64x128xf32>
    %99 = tpu.matmul %91, %98, %cst_74 {dimension_numbers = #tpu.dot_dimension_numbers<[1], [0], [0], [1], [0, 0, 1, 1], [], []>} : vector<64x128xf32>, vector<128x128xf32>, vector<64x128xf32> -> vector<64x128xf32>
    %100 = arith.addf %96, %99 : vector<64x128xf32>
    %c2_75 = arith.constant 2 : index
    %c0_76 = arith.constant 0 : index
    %c0_77 = arith.constant 0 : index
    %101 = vector.load %arg30[%c2_75, %c0_76, %c0_77] : memref<3x128x128xf32, #tpu.memory_space<vmem>>, vector<1x128x128xf32>
    %102 = vector.shape_cast %101 : vector<1x128x128xf32> to vector<128x128xf32>
    %cst_78 = arith.constant dense<0.000000e+00> : vector<64x128xf32>
    %103 = tpu.matmul %93, %102, %cst_78 {dimension_numbers = #tpu.dot_dimension_numbers<[1], [0], [0], [1], [0, 0, 1, 1], [], []>} : vector<64x128xf32>, vector<128x128xf32>, vector<64x128xf32> -> vector<64x128xf32>
    %104 = arith.addf %100, %103 : vector<64x128xf32>
    %c0_79 = arith.constant 0 : index
    %c0_80 = arith.constant 0 : index
    %105 = vector.load %arg28[%c0_79, %c0_80] : memref<1x128xf32, #tpu.memory_space<vmem>>, vector<1x128xf32>
    %106 = vector.broadcast %105 : vector<1x128xf32> to vector<64x128xf32>
    %107 = arith.mulf %104, %106 : vector<64x128xf32>
    %c0_81 = arith.constant 0 : index
    %c0_82 = arith.constant 0 : index
    %108 = vector.load %arg29[%c0_81, %c0_82] : memref<1x128xf32, #tpu.memory_space<vmem>>, vector<1x128xf32>
    %109 = vector.broadcast %108 : vector<1x128xf32> to vector<64x128xf32>
    %110 = arith.addf %107, %109 : vector<64x128xf32>
    %cst_83 = arith.constant 0.000000e+00 : f32
    %111 = vector.broadcast %cst_83 : f32 to vector<64x128xf32>
    %112 = arith.maximumf %110, %111 : vector<64x128xf32>
    %c0_84 = arith.constant 0 : index
    %c0_85 = arith.constant 0 : index
    %113 = vector.load %arg33[%c0_84, %c0_85] : memref<128x256xf32, #tpu.memory_space<vmem>>, vector<128x256xf32>
    %cst_86 = arith.constant dense<0.000000e+00> : vector<64x256xf32>
    %114 = tpu.matmul %112, %113, %cst_86 {dimension_numbers = #tpu.dot_dimension_numbers<[1], [0], [0], [1], [0, 0, 1, 1], [], []>} : vector<64x128xf32>, vector<128x256xf32>, vector<64x256xf32> -> vector<64x256xf32>
    %c0_87 = arith.constant 0 : index
    %c0_88 = arith.constant 0 : index
    %115 = vector.load %arg31[%c0_87, %c0_88] : memref<1x256xf32, #tpu.memory_space<vmem>>, vector<1x256xf32>
    %116 = vector.broadcast %115 : vector<1x256xf32> to vector<64x256xf32>
    %117 = arith.mulf %114, %116 : vector<64x256xf32>
    %c0_89 = arith.constant 0 : index
    %c0_90 = arith.constant 0 : index
    %118 = vector.load %arg32[%c0_89, %c0_90] : memref<1x256xf32, #tpu.memory_space<vmem>>, vector<1x256xf32>
    %119 = vector.broadcast %118 : vector<1x256xf32> to vector<64x256xf32>
    %120 = arith.addf %117, %119 : vector<64x256xf32>
    %121 = arith.addf %120, %81 : vector<64x256xf32>
    %cst_91 = arith.constant 0.000000e+00 : f32
    %122 = vector.broadcast %cst_91 : f32 to vector<64x256xf32>
    %123 = arith.maximumf %121, %122 : vector<64x256xf32>
    %c0_92 = arith.constant 0 : index
    %c0_93 = arith.constant 0 : index
    %124 = vector.load %arg48[%c0_92, %c0_93] : memref<256x512xf32, #tpu.memory_space<vmem>>, vector<256x512xf32>
    %cst_94 = arith.constant dense<0.000000e+00> : vector<64x512xf32>
    %125 = tpu.matmul %123, %124, %cst_94 {dimension_numbers = #tpu.dot_dimension_numbers<[1], [0], [0], [1], [0, 0, 1, 1], [], []>} : vector<64x256xf32>, vector<256x512xf32>, vector<64x512xf32> -> vector<64x512xf32>
    %c0_95 = arith.constant 0 : index
    %c0_96 = arith.constant 0 : index
    %126 = vector.load %arg46[%c0_95, %c0_96] : memref<1x512xf32, #tpu.memory_space<vmem>>, vector<1x512xf32>
    %127 = vector.broadcast %126 : vector<1x512xf32> to vector<64x512xf32>
    %128 = arith.mulf %125, %127 : vector<64x512xf32>
    %c0_97 = arith.constant 0 : index
    %c0_98 = arith.constant 0 : index
    %129 = vector.load %arg47[%c0_97, %c0_98] : memref<1x512xf32, #tpu.memory_space<vmem>>, vector<1x512xf32>
    %130 = vector.broadcast %129 : vector<1x512xf32> to vector<64x512xf32>
    %131 = arith.addf %128, %130 : vector<64x512xf32>
    %c0_99 = arith.constant 0 : index
    %c0_100 = arith.constant 0 : index
    %132 = vector.load %arg39[%c0_99, %c0_100] : memref<256x256xf32, #tpu.memory_space<vmem>>, vector<256x256xf32>
    %cst_101 = arith.constant dense<0.000000e+00> : vector<64x256xf32>
    %133 = tpu.matmul %123, %132, %cst_101 {dimension_numbers = #tpu.dot_dimension_numbers<[1], [0], [0], [1], [0, 0, 1, 1], [], []>} : vector<64x256xf32>, vector<256x256xf32>, vector<64x256xf32> -> vector<64x256xf32>
    %c0_102 = arith.constant 0 : index
    %c0_103 = arith.constant 0 : index
    %134 = vector.load %arg37[%c0_102, %c0_103] : memref<1x256xf32, #tpu.memory_space<vmem>>, vector<1x256xf32>
    %135 = vector.broadcast %134 : vector<1x256xf32> to vector<64x256xf32>
    %136 = arith.mulf %133, %135 : vector<64x256xf32>
    %c0_104 = arith.constant 0 : index
    %c0_105 = arith.constant 0 : index
    %137 = vector.load %arg38[%c0_104, %c0_105] : memref<1x256xf32, #tpu.memory_space<vmem>>, vector<1x256xf32>
    %138 = vector.broadcast %137 : vector<1x256xf32> to vector<64x256xf32>
    %139 = arith.addf %136, %138 : vector<64x256xf32>
    %cst_106 = arith.constant 0.000000e+00 : f32
    %140 = vector.broadcast %cst_106 : f32 to vector<64x256xf32>
    %141 = arith.maximumf %139, %140 : vector<64x256xf32>
    %cst_107 = arith.constant dense<0.000000e+00> : vector<64x256xf32>
    %142 = tpu.matmul %6, %141, %cst_107 {dimension_numbers = #tpu.dot_dimension_numbers<[1], [0], [0], [1], [0, 0, 1, 1], [], []>} : vector<64x64xf32>, vector<64x256xf32>, vector<64x256xf32> -> vector<64x256xf32>
    %cst_108 = arith.constant dense<0.000000e+00> : vector<64x256xf32>
    %143 = tpu.matmul %11, %141, %cst_108 {dimension_numbers = #tpu.dot_dimension_numbers<[1], [0], [0], [1], [0, 0, 1, 1], [], []>} : vector<64x64xf32>, vector<64x256xf32>, vector<64x256xf32> -> vector<64x256xf32>
    %c0_109 = arith.constant 0 : index
    %c0_110 = arith.constant 0 : index
    %c0_111 = arith.constant 0 : index
    %144 = vector.load %arg42[%c0_109, %c0_110, %c0_111] : memref<3x256x256xf32, #tpu.memory_space<vmem>>, vector<1x256x256xf32>
    %145 = vector.shape_cast %144 : vector<1x256x256xf32> to vector<256x256xf32>
    %cst_112 = arith.constant dense<0.000000e+00> : vector<64x256xf32>
    %146 = tpu.matmul %142, %145, %cst_112 {dimension_numbers = #tpu.dot_dimension_numbers<[1], [0], [0], [1], [0, 0, 1, 1], [], []>} : vector<64x256xf32>, vector<256x256xf32>, vector<64x256xf32> -> vector<64x256xf32>
    %c1_113 = arith.constant 1 : index
    %c0_114 = arith.constant 0 : index
    %c0_115 = arith.constant 0 : index
    %147 = vector.load %arg42[%c1_113, %c0_114, %c0_115] : memref<3x256x256xf32, #tpu.memory_space<vmem>>, vector<1x256x256xf32>
    %148 = vector.shape_cast %147 : vector<1x256x256xf32> to vector<256x256xf32>
    %cst_116 = arith.constant dense<0.000000e+00> : vector<64x256xf32>
    %149 = tpu.matmul %141, %148, %cst_116 {dimension_numbers = #tpu.dot_dimension_numbers<[1], [0], [0], [1], [0, 0, 1, 1], [], []>} : vector<64x256xf32>, vector<256x256xf32>, vector<64x256xf32> -> vector<64x256xf32>
    %150 = arith.addf %146, %149 : vector<64x256xf32>
    %c2_117 = arith.constant 2 : index
    %c0_118 = arith.constant 0 : index
    %c0_119 = arith.constant 0 : index
    %151 = vector.load %arg42[%c2_117, %c0_118, %c0_119] : memref<3x256x256xf32, #tpu.memory_space<vmem>>, vector<1x256x256xf32>
    %152 = vector.shape_cast %151 : vector<1x256x256xf32> to vector<256x256xf32>
    %cst_120 = arith.constant dense<0.000000e+00> : vector<64x256xf32>
    %153 = tpu.matmul %143, %152, %cst_120 {dimension_numbers = #tpu.dot_dimension_numbers<[1], [0], [0], [1], [0, 0, 1, 1], [], []>} : vector<64x256xf32>, vector<256x256xf32>, vector<64x256xf32> -> vector<64x256xf32>
    %154 = arith.addf %150, %153 : vector<64x256xf32>
    %c0_121 = arith.constant 0 : index
    %c0_122 = arith.constant 0 : index
    %155 = vector.load %arg40[%c0_121, %c0_122] : memref<1x256xf32, #tpu.memory_space<vmem>>, vector<1x256xf32>
    %156 = vector.broadcast %155 : vector<1x256xf32> to vector<64x256xf32>
    %157 = arith.mulf %154, %156 : vector<64x256xf32>
    %c0_123 = arith.constant 0 : index
    %c0_124 = arith.constant 0 : index
    %158 = vector.load %arg41[%c0_123, %c0_124] : memref<1x256xf32, #tpu.memory_space<vmem>>, vector<1x256xf32>
    %159 = vector.broadcast %158 : vector<1x256xf32> to vector<64x256xf32>
    %160 = arith.addf %157, %159 : vector<64x256xf32>
    %cst_125 = arith.constant 0.000000e+00 : f32
    %161 = vector.broadcast %cst_125 : f32 to vector<64x256xf32>
    %162 = arith.maximumf %160, %161 : vector<64x256xf32>
    %c0_126 = arith.constant 0 : index
    %c0_127 = arith.constant 0 : index
    %163 = vector.load %arg45[%c0_126, %c0_127] : memref<256x512xf32, #tpu.memory_space<vmem>>, vector<256x512xf32>
    %cst_128 = arith.constant dense<0.000000e+00> : vector<64x512xf32>
    %164 = tpu.matmul %162, %163, %cst_128 {dimension_numbers = #tpu.dot_dimension_numbers<[1], [0], [0], [1], [0, 0, 1, 1], [], []>} : vector<64x256xf32>, vector<256x512xf32>, vector<64x512xf32> -> vector<64x512xf32>
    %c0_129 = arith.constant 0 : index
    %c0_130 = arith.constant 0 : index
    %165 = vector.load %arg43[%c0_129, %c0_130] : memref<1x512xf32, #tpu.memory_space<vmem>>, vector<1x512xf32>
    %166 = vector.broadcast %165 : vector<1x512xf32> to vector<64x512xf32>
    %167 = arith.mulf %164, %166 : vector<64x512xf32>
    %c0_131 = arith.constant 0 : index
    %c0_132 = arith.constant 0 : index
    %168 = vector.load %arg44[%c0_131, %c0_132] : memref<1x512xf32, #tpu.memory_space<vmem>>, vector<1x512xf32>
    %169 = vector.broadcast %168 : vector<1x512xf32> to vector<64x512xf32>
    %170 = arith.addf %167, %169 : vector<64x512xf32>
    %171 = arith.addf %170, %131 : vector<64x512xf32>
    %cst_133 = arith.constant 0.000000e+00 : f32
    %172 = vector.broadcast %cst_133 : f32 to vector<64x512xf32>
    %173 = arith.maximumf %171, %172 : vector<64x512xf32>
    %c0_134 = arith.constant 0 : index
    %c0_135 = arith.constant 0 : index
    %174 = vector.load %arg3[%c0_134, %c0_135] : memref<1x512xf32, #tpu.memory_space<vmem>>, vector<1x512xf32>
    %175 = vector.broadcast %174 : vector<1x512xf32> to vector<64x512xf32>
    %176 = arith.mulf %173, %175 : vector<64x512xf32>
    %cst_136 = arith.constant dense<0.000000e+00> : vector<64xf32>
    %177 = vector.multi_reduction <add>, %176, %cst_136 [1] : vector<64x512xf32> to vector<64xf32>
    %178 = vector.shape_cast %177 : vector<64xf32> to vector<64x1xf32>
    %c0_137 = arith.constant 0 : index
    %c0_138 = arith.constant 0 : index
    %179 = vector.load %arg2[%c0_137, %c0_138] : memref<1x1xf32, #tpu.memory_space<vmem>>, vector<1x1xf32>
    %180 = vector.broadcast %179 : vector<1x1xf32> to vector<64x1xf32>
    %181 = arith.addf %178, %180 : vector<64x1xf32>
    %cst_139 = arith.constant 0.000000e+00 : f32
    %182 = vector.broadcast %cst_139 : f32 to vector<64x1xf32>
    %183 = arith.subf %182, %181 : vector<64x1xf32>
    %184 = math.exp %183 : vector<64x1xf32>
    %cst_140 = arith.constant 1.000000e+00 : f32
    %185 = vector.broadcast %cst_140 : f32 to vector<64x1xf32>
    %186 = arith.addf %185, %184 : vector<64x1xf32>
    %cst_141 = arith.constant 1.000000e+00 : f32
    %187 = vector.broadcast %cst_141 : f32 to vector<64x1xf32>
    %188 = arith.divf %187, %186 : vector<64x1xf32>
    %189 = vector.broadcast %188 : vector<64x1xf32> to vector<64x512xf32>
    %190 = arith.mulf %173, %189 : vector<64x512xf32>
    %cst_142 = arith.constant dense<0.000000e+00> : vector<512xf32>
    %191 = vector.multi_reduction <add>, %190, %cst_142 [0] : vector<64x512xf32> to vector<512xf32>
    %192 = vector.shape_cast %191 : vector<512xf32> to vector<1x512xf32>
    %cst_143 = arith.constant 1.562500e-02 : f32
    %193 = vector.broadcast %cst_143 : f32 to vector<1x512xf32>
    %194 = arith.mulf %192, %193 : vector<1x512xf32>
    %c0_144 = arith.constant 0 : index
    %c0_145 = arith.constant 0 : index
    %195 = vector.load %arg8[%c0_144, %c0_145] : memref<512x256xf32, #tpu.memory_space<vmem>>, vector<512x256xf32>
    %cst_146 = arith.constant dense<0.000000e+00> : vector<1x256xf32>
    %196 = tpu.matmul %194, %195, %cst_146 {dimension_numbers = #tpu.dot_dimension_numbers<[1], [0], [0], [1], [0, 0, 1, 1], [], []>} : vector<1x512xf32>, vector<512x256xf32>, vector<1x256xf32> -> vector<1x256xf32>
    %c0_147 = arith.constant 0 : index
    %c0_148 = arith.constant 0 : index
    %197 = vector.load %arg7[%c0_147, %c0_148] : memref<1x256xf32, #tpu.memory_space<vmem>>, vector<1x256xf32>
    %198 = arith.addf %196, %197 : vector<1x256xf32>
    %cst_149 = arith.constant 0.000000e+00 : f32
    %199 = vector.broadcast %cst_149 : f32 to vector<1x256xf32>
    %200 = arith.maximumf %198, %199 : vector<1x256xf32>
    %c0_150 = arith.constant 0 : index
    %c0_151 = arith.constant 0 : index
    %201 = vector.load %arg10[%c0_150, %c0_151] : memref<256x128xf32, #tpu.memory_space<vmem>>, vector<256x128xf32>
    %cst_152 = arith.constant dense<0.000000e+00> : vector<1x128xf32>
    %202 = tpu.matmul %200, %201, %cst_152 {dimension_numbers = #tpu.dot_dimension_numbers<[1], [0], [0], [1], [0, 0, 1, 1], [], []>} : vector<1x256xf32>, vector<256x128xf32>, vector<1x128xf32> -> vector<1x128xf32>
    %c0_153 = arith.constant 0 : index
    %c0_154 = arith.constant 0 : index
    %203 = vector.load %arg9[%c0_153, %c0_154] : memref<1x128xf32, #tpu.memory_space<vmem>>, vector<1x128xf32>
    %204 = arith.addf %202, %203 : vector<1x128xf32>
    %cst_155 = arith.constant 0.000000e+00 : f32
    %205 = vector.broadcast %cst_155 : f32 to vector<1x128xf32>
    %206 = arith.maximumf %204, %205 : vector<1x128xf32>
    %c0_156 = arith.constant 0 : index
    %c0_157 = arith.constant 0 : index
    %207 = vector.load %arg12[%c0_156, %c0_157] : memref<1x128xf32, #tpu.memory_space<vmem>>, vector<1x128xf32>
    %208 = arith.mulf %206, %207 : vector<1x128xf32>
    %cst_158 = arith.constant dense<0.000000e+00> : vector<1xf32>
    %209 = vector.multi_reduction <add>, %208, %cst_158 [1] : vector<1x128xf32> to vector<1xf32>
    %210 = vector.shape_cast %209 : vector<1xf32> to vector<1x1xf32>
    %c0_159 = arith.constant 0 : index
    %c0_160 = arith.constant 0 : index
    %211 = vector.load %arg11[%c0_159, %c0_160] : memref<1x1xf32, #tpu.memory_space<vmem>>, vector<1x1xf32>
    %212 = arith.addf %210, %211 : vector<1x1xf32>
    %c0_161 = arith.constant 0 : index
    %c0_162 = arith.constant 0 : index
    %c0_163 = arith.constant 0 : index
    %213 = vector.load %arg49[%c0_161, %c0_162, %c0_163] : memref<1x1x1xf32, #tpu.memory_space<vmem>>, vector<1x1x1xf32>
    %214 = vector.shape_cast %213 : vector<1x1x1xf32> to vector<1x1xf32>
    %215 = vector.shape_cast %212 : vector<1x1xf32> to vector<1x1x1xf32>
    tpu.vector_store %arg49[%c0_161, %c0_162, %c0_163], %215 {strides = array<i32>} : memref<1x1x1xf32, #tpu.memory_space<vmem>>, vector<1x1x1xf32>,
    return
  }
  func.func @transform_0(%arg0: i32) -> (i32, i32, i32) {
    %c0_i32 = arith.constant 0 : i32
    %c0_i32_0 = arith.constant 0 : i32
    %c0_i32_1 = arith.constant 0 : i32
    return %arg0, %c0_i32, %c0_i32_0 : i32, i32, i32
  }
  func.func @transform_1(%arg0: i32) -> (i32, i32) {
    %c0_i32 = arith.constant 0 : i32
    %c0_i32_0 = arith.constant 0 : i32
    %c0_i32_1 = arith.constant 0 : i32
    return %c0_i32, %c0_i32_0 : i32, i32
  }
  func.func @transform_2(%arg0: i32) -> (i32, i32) {
    %c0_i32 = arith.constant 0 : i32
    %c0_i32_0 = arith.constant 0 : i32
    %c0_i32_1 = arith.constant 0 : i32
    return %c0_i32, %c0_i32_0 : i32, i32
  }
  func.func @transform_3(%arg0: i32) -> (i32, i32) {
    %c0_i32 = arith.constant 0 : i32
    %c0_i32_0 = arith.constant 0 : i32
    %c0_i32_1 = arith.constant 0 : i32
    return %c0_i32, %c0_i32_0 : i32, i32
  }
  func.func @transform_4(%arg0: i32) -> (i32, i32) {
    %c0_i32 = arith.constant 0 : i32
    %c0_i32_0 = arith.constant 0 : i32
    %c0_i32_1 = arith.constant 0 : i32
    return %c0_i32, %c0_i32_0 : i32, i32
  }
  func.func @transform_5(%arg0: i32) -> (i32, i32) {
    %c0_i32 = arith.constant 0 : i32
    %c0_i32_0 = arith.constant 0 : i32
    %c0_i32_1 = arith.constant 0 : i32
    return %c0_i32, %c0_i32_0 : i32, i32
  }
  func.func @transform_6(%arg0: i32) -> (i32, i32) {
    %c0_i32 = arith.constant 0 : i32
    %c0_i32_0 = arith.constant 0 : i32
    %c0_i32_1 = arith.constant 0 : i32
    return %c0_i32, %c0_i32_0 : i32, i32
  }
  func.func @transform_7(%arg0: i32) -> (i32, i32) {
    %c0_i32 = arith.constant 0 : i32
    %c0_i32_0 = arith.constant 0 : i32
    %c0_i32_1 = arith.constant 0 : i32
    return %c0_i32, %c0_i32_0 : i32, i32
  }
  func.func @transform_8(%arg0: i32) -> (i32, i32) {
    %c0_i32 = arith.constant 0 : i32
    %c0_i32_0 = arith.constant 0 : i32
    %c0_i32_1 = arith.constant 0 : i32
    return %c0_i32, %c0_i32_0 : i32, i32
  }
  func.func @transform_9(%arg0: i32) -> (i32, i32) {
    %c0_i32 = arith.constant 0 : i32
    %c0_i32_0 = arith.constant 0 : i32
    %c0_i32_1 = arith.constant 0 : i32
    return %c0_i32, %c0_i32_0 : i32, i32
  }
  func.func @transform_10(%arg0: i32) -> (i32, i32) {
    %c0_i32 = arith.constant 0 : i32
    %c0_i32_0 = arith.constant 0 : i32
    %c0_i32_1 = arith.constant 0 : i32
    return %c0_i32, %c0_i32_0 : i32, i32
  }
  func.func @transform_11(%arg0: i32) -> (i32, i32) {
    %c0_i32 = arith.constant 0 : i32
    %c0_i32_0 = arith.constant 0 : i32
    %c0_i32_1 = arith.constant 0 : i32
    return %c0_i32, %c0_i32_0 : i32, i32
  }
  func.func @transform_12(%arg0: i32) -> (i32, i32) {
    %c0_i32 = arith.constant 0 : i32
    %c0_i32_0 = arith.constant 0 : i32
    %c0_i32_1 = arith.constant 0 : i32
    return %c0_i32, %c0_i32_0 : i32, i32
  }
  func.func @transform_13(%arg0: i32) -> (i32, i32) {
    %c0_i32 = arith.constant 0 : i32
    %c0_i32_0 = arith.constant 0 : i32
    %c0_i32_1 = arith.constant 0 : i32
    return %c0_i32, %c0_i32_0 : i32, i32
  }
  func.func @transform_14(%arg0: i32) -> (i32, i32) {
    %c0_i32 = arith.constant 0 : i32
    %c0_i32_0 = arith.constant 0 : i32
    %c0_i32_1 = arith.constant 0 : i32
    return %c0_i32, %c0_i32_0 : i32, i32
  }
  func.func @transform_15(%arg0: i32) -> (i32, i32) {
    %c0_i32 = arith.constant 0 : i32
    %c0_i32_0 = arith.constant 0 : i32
    %c0_i32_1 = arith.constant 0 : i32
    return %c0_i32, %c0_i32_0 : i32, i32
  }
  func.func @transform_16(%arg0: i32) -> (i32, i32) {
    %c0_i32 = arith.constant 0 : i32
    %c0_i32_0 = arith.constant 0 : i32
    %c0_i32_1 = arith.constant 0 : i32
    return %c0_i32, %c0_i32_0 : i32, i32
  }
  func.func @transform_17(%arg0: i32) -> (i32, i32, i32) {
    %c0_i32 = arith.constant 0 : i32
    %c0_i32_0 = arith.constant 0 : i32
    %c0_i32_1 = arith.constant 0 : i32
    %c0_i32_2 = arith.constant 0 : i32
    return %c0_i32, %c0_i32_0, %c0_i32_1 : i32, i32, i32
  }
  func.func @transform_18(%arg0: i32) -> (i32, i32) {
    %c0_i32 = arith.constant 0 : i32
    %c0_i32_0 = arith.constant 0 : i32
    %c0_i32_1 = arith.constant 0 : i32
    return %c0_i32, %c0_i32_0 : i32, i32
  }
  func.func @transform_19(%arg0: i32) -> (i32, i32) {
    %c0_i32 = arith.constant 0 : i32
    %c0_i32_0 = arith.constant 0 : i32
    %c0_i32_1 = arith.constant 0 : i32
    return %c0_i32, %c0_i32_0 : i32, i32
  }
  func.func @transform_20(%arg0: i32) -> (i32, i32) {
    %c0_i32 = arith.constant 0 : i32
    %c0_i32_0 = arith.constant 0 : i32
    %c0_i32_1 = arith.constant 0 : i32
    return %c0_i32, %c0_i32_0 : i32, i32
  }
  func.func @transform_21(%arg0: i32) -> (i32, i32) {
    %c0_i32 = arith.constant 0 : i32
    %c0_i32_0 = arith.constant 0 : i32
    %c0_i32_1 = arith.constant 0 : i32
    return %c0_i32, %c0_i32_0 : i32, i32
  }
  func.func @transform_22(%arg0: i32) -> (i32, i32) {
    %c0_i32 = arith.constant 0 : i32
    %c0_i32_0 = arith.constant 0 : i32
    %c0_i32_1 = arith.constant 0 : i32
    return %c0_i32, %c0_i32_0 : i32, i32
  }
  func.func @transform_23(%arg0: i32) -> (i32, i32) {
    %c0_i32 = arith.constant 0 : i32
    %c0_i32_0 = arith.constant 0 : i32
    %c0_i32_1 = arith.constant 0 : i32
    return %c0_i32, %c0_i32_0 : i32, i32
  }
  func.func @transform_24(%arg0: i32) -> (i32, i32) {
    %c0_i32 = arith.constant 0 : i32
    %c0_i32_0 = arith.constant 0 : i32
    %c0_i32_1 = arith.constant 0 : i32
    return %c0_i32, %c0_i32_0 : i32, i32
  }
  func.func @transform_25(%arg0: i32) -> (i32, i32) {
    %c0_i32 = arith.constant 0 : i32
    %c0_i32_0 = arith.constant 0 : i32
    %c0_i32_1 = arith.constant 0 : i32
    return %c0_i32, %c0_i32_0 : i32, i32
  }
  func.func @transform_26(%arg0: i32) -> (i32, i32) {
    %c0_i32 = arith.constant 0 : i32
    %c0_i32_0 = arith.constant 0 : i32
    %c0_i32_1 = arith.constant 0 : i32
    return %c0_i32, %c0_i32_0 : i32, i32
  }
  func.func @transform_27(%arg0: i32) -> (i32, i32) {
    %c0_i32 = arith.constant 0 : i32
    %c0_i32_0 = arith.constant 0 : i32
    %c0_i32_1 = arith.constant 0 : i32
    return %c0_i32, %c0_i32_0 : i32, i32
  }
  func.func @transform_28(%arg0: i32) -> (i32, i32) {
    %c0_i32 = arith.constant 0 : i32
    %c0_i32_0 = arith.constant 0 : i32
    %c0_i32_1 = arith.constant 0 : i32
    return %c0_i32, %c0_i32_0 : i32, i32
  }
  func.func @transform_29(%arg0: i32) -> (i32, i32, i32) {
    %c0_i32 = arith.constant 0 : i32
    %c0_i32_0 = arith.constant 0 : i32
    %c0_i32_1 = arith.constant 0 : i32
    %c0_i32_2 = arith.constant 0 : i32
    return %c0_i32, %c0_i32_0, %c0_i32_1 : i32, i32, i32
  }
  func.func @transform_30(%arg0: i32) -> (i32, i32) {
    %c0_i32 = arith.constant 0 : i32
    %c0_i32_0 = arith.constant 0 : i32
    %c0_i32_1 = arith.constant 0 : i32
    return %c0_i32, %c0_i32_0 : i32, i32
  }
  func.func @transform_31(%arg0: i32) -> (i32, i32) {
    %c0_i32 = arith.constant 0 : i32
    %c0_i32_0 = arith.constant 0 : i32
    %c0_i32_1 = arith.constant 0 : i32
    return %c0_i32, %c0_i32_0 : i32, i32
  }
  func.func @transform_32(%arg0: i32) -> (i32, i32) {
    %c0_i32 = arith.constant 0 : i32
    %c0_i32_0 = arith.constant 0 : i32
    %c0_i32_1 = arith.constant 0 : i32
    return %c0_i32, %c0_i32_0 : i32, i32
  }
  func.func @transform_33(%arg0: i32) -> (i32, i32) {
    %c0_i32 = arith.constant 0 : i32
    %c0_i32_0 = arith.constant 0 : i32
    %c0_i32_1 = arith.constant 0 : i32
    return %c0_i32, %c0_i32_0 : i32, i32
  }
  func.func @transform_34(%arg0: i32) -> (i32, i32) {
    %c0_i32 = arith.constant 0 : i32
    %c0_i32_0 = arith.constant 0 : i32
    %c0_i32_1 = arith.constant 0 : i32
    return %c0_i32, %c0_i32_0 : i32, i32
  }
  func.func @transform_35(%arg0: i32) -> (i32, i32) {
    %c0_i32 = arith.constant 0 : i32
    %c0_i32_0 = arith.constant 0 : i32
    %c0_i32_1 = arith.constant 0 : i32
    return %c0_i32, %c0_i32_0 : i32, i32
  }
  func.func @transform_36(%arg0: i32) -> (i32, i32) {
    %c0_i32 = arith.constant 0 : i32
    %c0_i32_0 = arith.constant 0 : i32
    %c0_i32_1 = arith.constant 0 : i32
    return %c0_i32, %c0_i32_0 : i32, i32
  }
  func.func @transform_37(%arg0: i32) -> (i32, i32) {
    %c0_i32 = arith.constant 0 : i32
    %c0_i32_0 = arith.constant 0 : i32
    %c0_i32_1 = arith.constant 0 : i32
    return %c0_i32, %c0_i32_0 : i32, i32
  }
  func.func @transform_38(%arg0: i32) -> (i32, i32) {
    %c0_i32 = arith.constant 0 : i32
    %c0_i32_0 = arith.constant 0 : i32
    %c0_i32_1 = arith.constant 0 : i32
    return %c0_i32, %c0_i32_0 : i32, i32
  }
  func.func @transform_39(%arg0: i32) -> (i32, i32) {
    %c0_i32 = arith.constant 0 : i32
    %c0_i32_0 = arith.constant 0 : i32
    %c0_i32_1 = arith.constant 0 : i32
    return %c0_i32, %c0_i32_0 : i32, i32
  }
  func.func @transform_40(%arg0: i32) -> (i32, i32) {
    %c0_i32 = arith.constant 0 : i32
    %c0_i32_0 = arith.constant 0 : i32
    %c0_i32_1 = arith.constant 0 : i32
    return %c0_i32, %c0_i32_0 : i32, i32
  }
  func.func @transform_41(%arg0: i32) -> (i32, i32, i32) {
    %c0_i32 = arith.constant 0 : i32
    %c0_i32_0 = arith.constant 0 : i32
    %c0_i32_1 = arith.constant 0 : i32
    %c0_i32_2 = arith.constant 0 : i32
    return %c0_i32, %c0_i32_0, %c0_i32_1 : i32, i32, i32
  }
  func.func @transform_42(%arg0: i32) -> (i32, i32) {
    %c0_i32 = arith.constant 0 : i32
    %c0_i32_0 = arith.constant 0 : i32
    %c0_i32_1 = arith.constant 0 : i32
    return %c0_i32, %c0_i32_0 : i32, i32
  }
  func.func @transform_43(%arg0: i32) -> (i32, i32) {
    %c0_i32 = arith.constant 0 : i32
    %c0_i32_0 = arith.constant 0 : i32
    %c0_i32_1 = arith.constant 0 : i32
    return %c0_i32, %c0_i32_0 : i32, i32
  }
  func.func @transform_44(%arg0: i32) -> (i32, i32) {
    %c0_i32 = arith.constant 0 : i32
    %c0_i32_0 = arith.constant 0 : i32
    %c0_i32_1 = arith.constant 0 : i32
    return %c0_i32, %c0_i32_0 : i32, i32
  }
  func.func @transform_45(%arg0: i32) -> (i32, i32) {
    %c0_i32 = arith.constant 0 : i32
    %c0_i32_0 = arith.constant 0 : i32
    %c0_i32_1 = arith.constant 0 : i32
    return %c0_i32, %c0_i32_0 : i32, i32
  }
  func.func @transform_46(%arg0: i32) -> (i32, i32) {
    %c0_i32 = arith.constant 0 : i32
    %c0_i32_0 = arith.constant 0 : i32
    %c0_i32_1 = arith.constant 0 : i32
    return %c0_i32, %c0_i32_0 : i32, i32
  }
  func.func @transform_47(%arg0: i32) -> (i32, i32) {
    %c0_i32 = arith.constant 0 : i32
    %c0_i32_0 = arith.constant 0 : i32
    %c0_i32_1 = arith.constant 0 : i32
    return %c0_i32, %c0_i32_0 : i32, i32
  }
  func.func @transform_48(%arg0: i32) -> (i32, i32, i32) {
    %c0_i32 = arith.constant 0 : i32
    %c0_i32_0 = arith.constant 0 : i32
    %c0_i32_1 = arith.constant 0 : i32
    return %arg0, %c0_i32, %c0_i32_0 : i32, i32, i32
  }
}

</mosaic_0001>

<bundles_post_ra>
// kernel: ppgnet_forward.1
= control target key start
LH: loop header
LB: loop body
LE: loop exit
PB: predicated region body
PF: predicated region fallthrough
CT: control target
= control target key end

     0   :  { %s9875_s6 = smov 1   ;;  %s9876_s10 = smov 2   ;;  %s12210_s0 = inlined_call_operand.smem [shape: u32[49], index: -1, kind: input, shape index: {}] }
   0x1   :  { %s9950_s5 = sld [smem:[%s12210_s0]]   ;;  %s9877_s14 = smov 3  }
   0x2   :  { %s7202_s9 = sld [smem:[%s12210_s0 + %s9875_s6]]   ;;  %s9878_s18 = smov 4  }
   0x3   :  { %s9958_s13 = sld [smem:[%s12210_s0 + %s9876_s10]]   ;;  %s9879_s22 = smov 5  }
   0x4   :  { %s9963_s17 = sld [smem:[%s12210_s0 + %s9877_s14]]   ;;  %s9880_s26 = smov 6  }
   0x5   :  { %s9968_s21 = sld [smem:[%s12210_s0 + %s9878_s18]]   ;;  %s9881_s30 = smov 7  }
   0x6   :  { %s9973_s25 = sld [smem:[%s12210_s0 + %s9879_s22]]   ;;  %s9882_s4 = smov 8  }
   0x7   :  { %s9978_s29 = sld [smem:[%s12210_s0 + %s9880_s26]]   ;;  %s9883_s10 = smov 9  }
   0x8   :  { %s9983_s3 = sld [smem:[%s12210_s0 + %s9881_s30]]   ;;  %v102_v0 = vstv %s7202_s9  ;;  %s9884_s15 = smov 11  }
   0x9   :  { %12265 = sst [smem:[#allocation27_spill]] %s9958_s13  ;;  %103 = vst [vmem:[#allocation2] sm:$0x1] %v102_v0  ;;  %s9885_s9 = smov 12  }
   0xa   :  { %s9988_s8 = sld [smem:[%s12210_s0 + %s9882_s4]]   ;;  %s9886_s24 = smov 13  }
   0xb   :  { %12266 = sst [smem:[#allocation28_spill]] %s9968_s21  ;;  %s9887_s30 = smov 14  }
   0xc   :  { %s9993_s14 = sld [smem:[%s12210_s0 + %s9883_s10]]   ;;  %s9888_s6 = smov 15  }
   0xd   :  { %12267 = sst [smem:[#allocation29_spill]] %s9978_s29  ;;  %s9889_s12 = smov 16  }
   0xe   :  { %12268 = sst [smem:[#allocation30_spill]] %s9983_s3  ;;  %s9891_s26 = smov 18  }
   0xf   :  { %s9998_s19 = sld [smem:[%s12210_s0 + %s9884_s15]]   ;;  %s9892_s2 = smov 19  }
  0x10   :  { %12269 = sst [smem:[#allocation31_spill]] %s9988_s8 }
  0x11   :  { %s10003_s23 = sld [smem:[%s12210_s0 + %s9885_s9]]   ;;  %s9890_s9 = smov 17  }
  0x12   :  { %12270 = sst [smem:[#allocation32_spill]] %s9993_s14 }
  0x13   :  { %s10008_s28 = sld [smem:[%s12210_s0 + %s9886_s24]]  }
  0x14   :  { %s10013_s4 = sld [smem:[%s12210_s0 + %s9887_s30]]  }
  0x15   :  { %12271 = sst [smem:[#allocation33_spill]] %s9998_s19 }
  0x16   :  { %s10018_s11 = sld [smem:[%s12210_s0 + %s9888_s6]]  }
  0x17   :  { %12272 = sst [smem:[#allocation34_spill]] %s10003_s23 }
  0x18   :  { %s10023_s18 = sld [smem:[%s12210_s0 + %s9889_s12]]   ;;  %s9893_s12 = smov 20  }
  0x19   :  { %12273 = sst [smem:[#allocation35_spill]] %s10008_s28 }
  0x1a   :  { %s10028_s24 = sld [smem:[%s12210_s0 + %s9890_s9]]   ;;  %s9894_s9 = smov 21  }
  0x1b   :  { %s10033_s1 = sld [smem:[%s12210_s0 + %s9891_s26]]   ;;  %s9895_s26 = smov 22  }
  0x1c   :  { %12274 = sst [smem:[#allocation36_spill]] %s10018_s11 }
  0x1d   :  { %s10038_s10 = sld [smem:[%s12210_s0 + %s9892_s2]]   ;;  %s9896_s2 = smov 23  }
  0x1e   :  { %12275 = sst [smem:[#allocation37_spill]] %s10023_s18 }
  0x1f   :  { %s10043_s19 = sld [smem:[%s12210_s0 + %s9893_s12]]   ;;  %s9897_s12 = smov 24  }
  0x20   :  { %s10048_s8 = sld [smem:[%s12210_s0 + %s9894_s9]]   ;;  %s9898_s9 = smov 25  }
  0x21   :  { %12276 = sst [smem:[#allocation38_spill]] %s10033_s1 }
  0x22   :  { %s10053_s29 = sld [smem:[%s12210_s0 + %s9895_s26]]   ;;  %s9899_s26 = smov 26  }
  0x23   :  { %12277 = sst [smem:[#allocation39_spill]] %s10038_s10 }
  0x24   :  { %s10058_s14 = sld [smem:[%s12210_s0 + %s9896_s2]]   ;;  %s9900_s2 = smov 27  }
  0x25   :  { %s10063_s13 = sld [smem:[%s12210_s0 + %s9897_s12]]   ;;  %s9901_s12 = smov 28  }
  0x26   :  { %12278 = sst [smem:[#allocation40_spill]] %s10048_s8 }
  0x27   :  { %s10068_s10 = sld [smem:[%s12210_s0 + %s9898_s9]]   ;;  %s9902_s9 = smov 29  }
  0x28   :  { %12279 = sst [smem:[#allocation41_spill]] %s10053_s29 }
  0x29   :  { %s10073_s29 = sld [smem:[%s12210_s0 + %s9899_s26]]   ;;  %s9903_s26 = smov 30  }
  0x2a   :  { %s10078_s1 = sld [smem:[%s12210_s0 + %s9900_s2]]   ;;  %s9904_s2 = smov 31  }
  0x2b   :  { %12280 = sst [smem:[#allocation42_spill]] %s10063_s13 }
  0x2c   :  { %s10083_s13 = sld [smem:[%s12210_s0 + %s9901_s12]]   ;;  %s9905_s12 = smov 32  }
  0x2d   :  { %12281 = sst [smem:[#allocation43_spill]] %s10068_s10 }
  0x2e   :  { %s10088_s10 = sld [smem:[%s12210_s0 + %s9902_s9]]   ;;  %s9906_s9 = smov 33  }
  0x2f   :  { %s10093_s8 = sld [smem:[%s12210_s0 + %s9903_s26]]   ;;  %s9907_s26 = smov 34  }
  0x30   :  { %12282 = sst [smem:[#allocation44_spill]] %s10078_s1 }
  0x31   :  { %s10098_s1 = sld [smem:[%s12210_s0 + %s9904_s2]]   ;;  %s9908_s2 = smov 35  }
  0x32   :  { %12283 = sst [smem:[#allocation45_spill]] %s10083_s13 }
  0x33   :  { %s10103_s13 = sld [smem:[%s12210_s0 + %s9905_s12]]   ;;  %s9909_s12 = smov 36  }
  0x34   :  { %s10108_s18 = sld [smem:[%s12210_s0 + %s9906_s9]]   ;;  %s9910_s9 = smov 37  }
  0x35   :  { %12284 = sst [smem:[#allocation46_spill]] %s10093_s8 }
  0x36   :  { %s10113_s8 = sld [smem:[%s12210_s0 + %s9907_s26]]   ;;  %s9911_s26 = smov 38  }
  0x37   :  { %12285 = sst [smem:[#allocation47_spill]] %s10098_s1 }
  0x38   :  { %s10118_s1 = sld [smem:[%s12210_s0 + %s9908_s2]]   ;;  %s9912_s2 = smov 39  }
  0x39   :  { %s10123_s11 = sld [smem:[%s12210_s0 + %s9909_s12]]   ;;  %s9913_s12 = smov 40  }
  0x3a   :  { %12286 = sst [smem:[#allocation48_spill]] %s10108_s18 }
  0x3b   :  { %s10128_s18 = sld [smem:[%s12210_s0 + %s9910_s9]]   ;;  %s9914_s9 = smov 41  }
  0x3c   :  { %12287 = sst [smem:[#allocation49_spill]] %s10113_s8 }
  0x3d   :  { %s10133_s8 = sld [smem:[%s12210_s0 + %s9911_s26]]   ;;  %s9915_s26 = smov 42  }
  0x3e   :  { %12288 = sst [smem:[#allocation50_spill]] %s10118_s1 }
  0x3f   :  { %12289 = sst [smem:[#allocation51_spill]] %s10123_s11 }
  0x40   :  { %s10138_s28 = sld [smem:[%s12210_s0 + %s9912_s2]]   ;;  %s9916_s2 = smov 43  }
  0x41   :  { %12290 = sst [smem:[#allocation52_spill]] %s10128_s18 }
  0x42   :  { %s10143_s11 = sld [smem:[%s12210_s0 + %s9913_s12]]   ;;  %s9917_s12 = smov 44  }
  0x43   :  { %12291 = sst [smem:[#allocation53_spill]] %s10133_s8 }
  0x44   :  { %s10148_s18 = sld [smem:[%s12210_s0 + %s9914_s9]]   ;;  %s9918_s9 = smov 45  }
  0x45   :  { %s10153_s8 = sld [smem:[%s12210_s0 + %s9915_s26]]   ;;  %s9919_s26 = smov 46  }
  0x46   :  { %12292 = sst [smem:[#allocation54_spill]] %s10138_s28 }
  0x47   :  { %s10158_s28 = sld [smem:[%s12210_s0 + %s9916_s2]]   ;;  %s9920_s2 = smov 47  }
  0x48   :  { %12293 = sst [smem:[#allocation55_spill]] %s10143_s11 }
  0x49   :  { %s10163_s11 = sld [smem:[%s12210_s0 + %s9917_s12]]   ;;  %s9921_s12 = smov 48  }
  0x4a   :  { %s10168_s23 = sld [smem:[%s12210_s0 + %s9918_s9]]   ;;  %s9922_s9 = smov 10  }
  0x4b   :  { %12294 = sst [smem:[#allocation56_spill]] %s10153_s8 }
  0x4c   :  { %s10173_s8 = sld [smem:[%s12210_s0 + %s9919_s26]]  }
  0x4d   :  { %12295 = sst [smem:[#allocation57_spill]] %s10158_s28 }
  0x4e   :  { %s10178_s28 = sld [smem:[%s12210_s0 + %s9920_s2]]  }
  0x4f   :  { %s10183_s21 = sld [smem:[%s12210_s0 + %s9921_s12]]  }
  0x50   :  { %12296 = sst [smem:[#allocation58_spill]] %s10168_s23 }
  0x51   :  { %s7211_s23 = sld [smem:[%s12210_s0 + %s9922_s9]]  }
  0x57   :  { %v104_v1 = vstv %s7211_s23 }
  0x58   :  { %105 = vst [vmem:[#allocation3] sm:$0x1] %v104_v1 }
  0x59   :  { %106 = vsyncpa [#allocation5], 0 }
  0x5a   :  { %107 = vsyncpa [#allocation7], 0 }
  0x5b   :  { %108 = vsyncpa [#allocation10], 0 }
  0x5c   :  { %109 = vsyncpa [#allocation13], 0 }
  0x5d   :  { %110 = vsyncpa [#allocation16], 0 }
  0x5e   :  { %111 = vsyncpa [#allocation19], 0  ;;  %s10188_s26 = smov 0  }
  0x5f LB: > { %s12297_s3 = sld [smem:[#allocation30_spill]]  ;;  %s12298_s1 = sld [smem:[#allocation50_spill]]  ;;  %s9873_s26 = sphi %s10188_s26, %s117_s26  }
  0x60   : > { %s9923_s27 = smov [#allocation6]   ;;  %s10194_s23 = sadd.s32 4294967295, %s9873_s26  }
  0x61   : > { %s1231_s0 = sshll.u32 %s9923_s27, 4  ;;  %p7252_p0 = scmp.ge.s32.totalorder %s9873_s26, 1  ;;  %s10199_s0 = int_to_ptr.vmem [resolvable:$true] %s1231_s0 }
  0x62   : > { %p1161_p1 = scmp.lt.s32.totalorder %s9873_s26, 3  ;;  %p12213_p2 = scmp.eq.s32.totalorder %s10194_s23, 0 }
  0x63   : > { %s9924_s2 = smov [#allocation9]   ;;  %s9925_s12 = smov [#allocation12]  }
  0x64   : > { %p10201_p3 = pnand %p7252_p0, %p1161_p1  ;;  %s1269_s6 = sshll.u32 %s9924_s2, 4  ;;  %s10207_s6 = int_to_ptr.vmem [resolvable:$true] %s1269_s6 }
  0x65   : > { %s1307_s15 = sshll.u32 %s9925_s12, 4  ;;  %s9535_s16 = scalar_lea.hbm %s10028_s24, 3072  ;;  %s10215_s15 = int_to_ptr.vmem [resolvable:$true] %s1307_s15 }
  0x66   : > { %s12299_s30 = scalar_select %p10201_p3, 1, 0 }
  0x67   : > { %p9370_p4 = pneg %p10201_p3  ;;  %p9536_p6 = scmp.ne.s32.totalorder %s10028_s24, %s9535_s16 }
  0x68   : > { %p9542_p10 = scmp.lt.u32.totalorder %s9535_s16, %s10028_s24 }
  0x69   : > { %p10211_p5 = pnand %p12213_p2, %p9370_p4 }
  0x6b   : > { %p10221_p7 = pneg %p10211_p5 }
  0x6d   : > { %p9538_p8 = pnand %p10221_p7, %p9536_p6 }
  0x6f   : > { %p9539_p9 = pneg %p9538_p8 }
  0x71   : > { %p9544_p11 = pnand %p9542_p10, %p9539_p9 }
  0x73   : > { %9547 = shalt.err (!%p9544_p11)
}
  0x74   : > { %s9548_s20 = scalar_lea.vmem %s10199_s0, 3072  ;;  %p9556_p1 = scmp.lt.s32.totalorder %s10199_s0, %s10199_s0 }
  0x75   : > { %p9549_p12 = scmp.ne.s32.totalorder %s10199_s0, %s9548_s20  ;;  %p9557_p4 = scmp.lt.s32.totalorder %s9548_s20, %s9548_s20 }
  0x77   : > { %p9551_p13 = pnand %p9549_p12, %p10221_p7  ;;  %p9558_p2 = por %p9557_p4, %p9556_p1 }
  0x79   : > { %p9552_p0 = pneg %p9551_p13 }
  0x7b   : > { %p9559_p3 = pnand %p9558_p2, %p9552_p0 }
  0x7d   : > { %9562 = shalt.err (!%p9559_p3)
}
  0x7e   : > { %s12215_s22 = smov 128   ;;  %s12217_s27 = smov 8  }
  0x7f   : > { %9376 = dma.hbm_to_vmem [thread:$0]  (!%p10211_p5), %s10028_s24, 3072, %s10199_s0, [#allocation7], %s12215_s22, %s12215_s22, %s12217_s27  }
  0x80   : > { %s9563_s2 = scalar_lea.hbm %s10058_s14, 1024 }
  0x81   : > { %p9564_p6 = scmp.ne.s32.totalorder %s10058_s14, %s9563_s2  ;;  %p9570_p3 = scmp.lt.u32.totalorder %s9563_s2, %s10058_s14 }
  0x83   : > { %p9566_p8 = pnand %p9564_p6, %p10221_p7 }
  0x85   : > { %p9567_p2 = pneg %p9566_p8 }
  0x87   : > { %p9572_p9 = pnand %p9570_p3, %p9567_p2 }
  0x89   : > { %9575 = shalt.err (!%p9572_p9)
}
  0x8a   : > { %s9576_s12 = scalar_lea.vmem %s10207_s6, 1024  ;;  %p9584_p13 = scmp.lt.s32.totalorder %s10207_s6, %s10207_s6 }
  0x8b   : > { %p9577_p10 = scmp.ne.s32.totalorder %s10207_s6, %s9576_s12  ;;  %p9585_p0 = scmp.lt.s32.totalorder %s9576_s12, %s9576_s12 }
  0x8d   : > { %p9579_p11 = pnand %p9577_p10, %p10221_p7  ;;  %p9586_p1 = por %p9585_p0, %p9584_p13 }
  0x8f   : > { %p9580_p12 = pneg %p9579_p11 }
  0x91   : > { %p9587_p4 = pnand %p9586_p1, %p9580_p12 }
  0x93   : > { %9590 = shalt.err (!%p9587_p4)
}
  0x94   : > { %9382 = dma.hbm_to_vmem [thread:$0]  (!%p10211_p5), %s10058_s14, 1024, %s10207_s6, [#allocation10], %s12215_s22, %s12215_s22, %s12217_s27  }
  0x95   : > { %s9591_s0 = scalar_lea.hbm %s10088_s10, 6144 }
  0x96   : > { %p9592_p6 = scmp.ne.s32.totalorder %s10088_s10, %s9591_s0  ;;  %p9598_p3 = scmp.lt.u32.totalorder %s9591_s0, %s10088_s10 }
  0x98   : > { %p9594_p8 = pnand %p9592_p6, %p10221_p7 }
  0x9a   : > { %p9595_p2 = pneg %p9594_p8 }
  0x9c   : > { %p9600_p9 = pnand %p9598_p3, %p9595_p2 }
  0x9e   : > { %9603 = shalt.err (!%p9600_p9)
}
  0x9f   : > { %s9604_s16 = scalar_lea.vmem %s10215_s15, 6144  ;;  %p9612_p13 = scmp.lt.s32.totalorder %s10215_s15, %s10215_s15 }
  0xa0   : > { %p9605_p10 = scmp.ne.s32.totalorder %s10215_s15, %s9604_s16  ;;  %p9613_p0 = scmp.lt.s32.totalorder %s9604_s16, %s9604_s16 }
  0xa2   : > { %p9607_p11 = pnand %p9605_p10, %p10221_p7  ;;  %p9614_p1 = por %p9613_p0, %p9612_p13 }
  0xa4   : > { %p9608_p12 = pneg %p9607_p11 }
  0xa6   : > { %p9615_p4 = pnand %p9614_p1, %p9608_p12 }
  0xa8   : > { %9618 = shalt.err (!%p9615_p4)
}
  0xa9   : > { %9388 = dma.hbm_to_vmem [thread:$0]  (!%p10211_p5), %s10088_s10, 6144, %s10215_s15, [#allocation13], %s12215_s22, %s12215_s22, %s12217_s27  }
  0xaa   : > { %s9928_s6 = smov [#allocation15]   ;;  %s9929_s2 = smov [#allocation18]  }
  0xab   : > { %s1345_s20 = sshll.u32 %s9928_s6, 4  ;;  %s1392_s12 = sshll.u32 %s9929_s2, 4  ;;  %s1346_s20 = int_to_ptr.vmem [resolvable:$true] %s1345_s20  ;;  %s10277_s12 = int_to_ptr.vmem [resolvable:$true] %s1392_s12 }
  0xac   : > { %s9619_s0 = scalar_lea.hbm %s12298_s1, 4096 }
  0xad   : > { %p9620_p6 = scmp.ne.s32.totalorder %s12298_s1, %s9619_s0  ;;  %p9626_p3 = scmp.lt.u32.totalorder %s9619_s0, %s12298_s1 }
  0xaf   : > { %p9622_p8 = pnand %p9620_p6, %p10221_p7 }
  0xb1   : > { %p9623_p2 = pneg %p9622_p8 }
  0xb3   : > { %p9628_p9 = pnand %p9626_p3, %p9623_p2 }
  0xb5   : > { %9631 = shalt.err (!%p9628_p9)
}
  0xb6   : > { %s9632_s16 = scalar_lea.vmem %s1346_s20, 4096  ;;  %p9640_p13 = scmp.lt.s32.totalorder %s1346_s20, %s1346_s20 }
  0xb7   : > { %p9633_p10 = scmp.ne.s32.totalorder %s1346_s20, %s9632_s16  ;;  %p9641_p0 = scmp.lt.s32.totalorder %s9632_s16, %s9632_s16 }
  0xb9   : > { %p9635_p11 = pnand %p9633_p10, %p10221_p7  ;;  %p9642_p1 = por %p9641_p0, %p9640_p13 }
  0xbb   : > { %p9636_p12 = pneg %p9635_p11 }
  0xbd   : > { %p9643_p4 = pnand %p9642_p1, %p9636_p12 }
  0xbf   : > { %9646 = shalt.err (!%p9643_p4)
}
  0xc0   : > { %s12219_s15 = smov 256   ;;  %s12221_s6 = smov 16  }
  0xc1   : > { %9394 = dma.hbm_to_vmem [thread:$0]  (!%p10211_p5), %s12298_s1, 4096, %s1346_s20, [#allocation16], %s12219_s15, %s12219_s15, %s12221_s6  }
  0xc2   : > { %s9647_s2 = scalar_lea.hbm %s10163_s11, 16384 }
  0xc3   : > { %p9648_p6 = scmp.ne.s32.totalorder %s10163_s11, %s9647_s2  ;;  %p9654_p3 = scmp.lt.u32.totalorder %s9647_s2, %s10163_s11 }
  0xc5   : > { %p9650_p8 = pnand %p9648_p6, %p10221_p7 }
  0xc7   : > { %p9651_p2 = pneg %p9650_p8 }
  0xc9   : > { %p9656_p9 = pnand %p9654_p3, %p9651_p2 }
  0xcb   : > { %9659 = shalt.err (!%p9656_p9)
}
  0xcc   : > { %s9660_s0 = scalar_lea.vmem %s10277_s12, 16384  ;;  %p9668_p13 = scmp.lt.s32.totalorder %s10277_s12, %s10277_s12 }
  0xcd   : > { %p9661_p10 = scmp.ne.s32.totalorder %s10277_s12, %s9660_s0  ;;  %p9669_p0 = scmp.lt.s32.totalorder %s9660_s0, %s9660_s0 }
  0xcf   : > { %p9663_p11 = pnand %p9661_p10, %p10221_p7  ;;  %p9670_p1 = por %p9669_p0, %p9668_p13 }
  0xd1   : > { %p9664_p12 = pneg %p9663_p11 }
  0xd3   : > { %p9671_p4 = pnand %p9670_p1, %p9664_p12 }
  0xd5   : > { %9674 = shalt.err (!%p9671_p4)
}
  0xd6   : > { %s12223_s20 = smov 512   ;;  %s12224_s16 = smov 32  }
  0xd7   : > { %9400 = dma.hbm_to_vmem [thread:$0]  (!%p10211_p5), %s10163_s11, 16384, %s10277_s12, [#allocation19], %s12223_s20, %s12223_s20, %s12224_s16  }
  0xd8   : > { %s9934_s2 = smov [#allocation4]   ;;  %s9935_s0 = smov [#allocation8]  }
  0xd9   : > { %s1191_s22 = sshll.u32 %s9934_s2, 4  ;;  %s1250_s27 = sshll.u32 %s9935_s0, 4  ;;  %s1192_s22 = int_to_ptr.vmem [resolvable:$true] %s1191_s22  ;;  %s10310_s27 = int_to_ptr.vmem [resolvable:$true] %s1250_s27 }
  0xda   : > { %s9675_s15 = scalar_lea.hbm %s12297_s3, 16384 }
  0xdb   : > { %p9676_p6 = scmp.ne.s32.totalorder %s12297_s3, %s9675_s15  ;;  %p9682_p3 = scmp.lt.u32.totalorder %s9675_s15, %s12297_s3 }
  0xdd   : > { %p9678_p8 = pnand %p9676_p6, %p10221_p7 }
  0xdf   : > { %p9679_p2 = pneg %p9678_p8 }
  0xe1   : > { %p9684_p9 = pnand %p9682_p3, %p9679_p2 }
  0xe3   : > { %9687 = shalt.err (!%p9684_p9)
}
  0xe4   : > { %s9688_s6 = scalar_lea.vmem %s1192_s22, 16384  ;;  %p9696_p13 = scmp.lt.s32.totalorder %s1192_s22, %s1192_s22 }
  0xe5   : > { %p9689_p10 = scmp.ne.s32.totalorder %s1192_s22, %s9688_s6  ;;  %p9697_p0 = scmp.lt.s32.totalorder %s9688_s6, %s9688_s6 }
  0xe7   : > { %p9691_p11 = pnand %p9689_p10, %p10221_p7  ;;  %p9698_p1 = por %p9697_p0, %p9696_p13 }
  0xe9   : > { %p9692_p12 = pneg %p9691_p11 }
  0xeb   : > { %p9699_p4 = pnand %p9698_p1, %p9692_p12 }
  0xed   : > { %9702 = shalt.err (!%p9699_p4)
}
  0xee   : > { %s12302_s12 = smov 16   ;;  %s12303_s2 = smov 256  }
  0xef   : > { %9373 = dma.hbm_to_vmem [thread:$0]  (!%p10211_p5), %s12297_s3, 16384, %s1192_s22, [#allocation5], %s12303_s2, %s12303_s2, %s12302_s12  }
  0xf0   : > { %s9703_s15 = scalar_lea.hbm %s10043_s19, 1024 }
  0xf1   : > { %p9704_p6 = scmp.ne.s32.totalorder %s10043_s19, %s9703_s15  ;;  %p9710_p3 = scmp.lt.u32.totalorder %s9703_s15, %s10043_s19 }
  0xf3   : > { %p9706_p8 = pnand %p9704_p6, %p10221_p7 }
  0xf5   : > { %p9707_p2 = pneg %p9706_p8 }
  0xf7   : > { %p9712_p9 = pnand %p9710_p3, %p9707_p2 }
  0xf9   : > { %9715 = shalt.err (!%p9712_p9)
}
  0xfa   : > { %s9716_s6 = scalar_lea.vmem %s10310_s27, 1024  ;;  %p9724_p13 = scmp.lt.s32.totalorder %s10310_s27, %s10310_s27 }
  0xfb   : > { %p9717_p10 = scmp.ne.s32.totalorder %s10310_s27, %s9716_s6  ;;  %p9725_p0 = scmp.lt.s32.totalorder %s9716_s6, %s9716_s6 }
  0xfd   : > { %p9719_p11 = pnand %p9717_p10, %p10221_p7  ;;  %p9726_p1 = por %p9725_p0, %p9724_p13 }
  0xff   : > { %p9720_p12 = pneg %p9719_p11 }
 0x101   : > { %p9727_p4 = pnand %p9726_p1, %p9720_p12 }
 0x103   : > { %9730 = shalt.err (!%p9727_p4)
}
 0x104   : > { %s12304_s22 = smov 8   ;;  %s12305_s0 = smov 128  }
 0x105   : > { %9379 = dma.hbm_to_vmem [thread:$0]  (!%p10211_p5), %s10043_s19, 1024, %s10310_s27, [#allocation7], %s12305_s0, %s12305_s0, %s12304_s22  }
 0x106   : > { %s9936_s15 = smov [#allocation11]   ;;  %s9937_s16 = smov [#allocation14]  }
 0x107   : > { %s1288_s20 = sshll.u32 %s9936_s15, 4  ;;  %s1326_s1 = sshll.u32 %s9937_s16, 4  ;;  %s1289_s20 = int_to_ptr.vmem [resolvable:$true] %s1288_s20  ;;  %s10343_s1 = int_to_ptr.vmem [resolvable:$true] %s1326_s1 }
 0x108   : > { %s9731_s6 = scalar_lea.hbm %s10073_s29, 2048 }
 0x109   : > { %p9732_p6 = scmp.ne.s32.totalorder %s10073_s29, %s9731_s6  ;;  %p9738_p3 = scmp.lt.u32.totalorder %s9731_s6, %s10073_s29 }
 0x10b   : > { %p9734_p8 = pnand %p9732_p6, %p10221_p7 }
 0x10d   : > { %p9735_p2 = pneg %p9734_p8 }
 0x10f   : > { %p9740_p9 = pnand %p9738_p3, %p9735_p2 }
 0x111   : > { %9743 = shalt.err (!%p9740_p9)
}
 0x112   : > { %s9744_s3 = scalar_lea.vmem %s1289_s20, 2048  ;;  %p9752_p13 = scmp.lt.s32.totalorder %s1289_s20, %s1289_s20 }
 0x113   : > { %p9745_p10 = scmp.ne.s32.totalorder %s1289_s20, %s9744_s3  ;;  %p9753_p0 = scmp.lt.s32.totalorder %s9744_s3, %s9744_s3 }
 0x115   : > { %p9747_p11 = pnand %p9745_p10, %p10221_p7  ;;  %p9754_p1 = por %p9753_p0, %p9752_p13 }
 0x117   : > { %p9748_p12 = pneg %p9747_p11 }
 0x119   : > { %p9755_p4 = pnand %p9754_p1, %p9748_p12 }
 0x11b   : > { %9758 = shalt.err (!%p9755_p4)
}
 0x11c   : > { %9385 = dma.hbm_to_vmem [thread:$0]  (!%p10211_p5), %s10073_s29, 2048, %s1289_s20, [#allocation10], %s12305_s0, %s12305_s0, %s12304_s22  }
 0x11d   : > { %s9759_s27 = scalar_lea.hbm %s10103_s13, 4096 }
 0x11e   : > { %p9760_p6 = scmp.ne.s32.totalorder %s10103_s13, %s9759_s27  ;;  %p9766_p3 = scmp.lt.u32.totalorder %s9759_s27, %s10103_s13 }
 0x120   : > { %p9762_p8 = pnand %p9760_p6, %p10221_p7 }
 0x122   : > { %p9763_p2 = pneg %p9762_p8 }
 0x124   : > { %p9768_p9 = pnand %p9766_p3, %p9763_p2 }
 0x126   : > { %9771 = shalt.err (!%p9768_p9)
}
 0x127   : > { %s9772_s3 = scalar_lea.vmem %s10343_s1, 4096  ;;  %p9780_p13 = scmp.lt.s32.totalorder %s10343_s1, %s10343_s1 }
 0x128   : > { %p9773_p10 = scmp.ne.s32.totalorder %s10343_s1, %s9772_s3  ;;  %p9781_p0 = scmp.lt.s32.totalorder %s9772_s3, %s9772_s3 }
 0x12a   : > { %p9775_p11 = pnand %p9773_p10, %p10221_p7  ;;  %p9782_p1 = por %p9781_p0, %p9780_p13 }
 0x12c   : > { %p9776_p12 = pneg %p9775_p11 }
 0x12e   : > { %p9783_p4 = pnand %p9782_p1, %p9776_p12 }
 0x130   : > { %9786 = shalt.err (!%p9783_p4)
}
 0x131   : > { %9391 = dma.hbm_to_vmem [thread:$0]  (!%p10211_p5), %s10103_s13, 4096, %s10343_s1, [#allocation13], %s12303_s2, %s12303_s2, %s12302_s12  }
 0x132   : > { %s9938_s20 = smov [#allocation17]   ;;  %s9939_s22 = smov [#allocation20]  }
 0x133   : > { %s1373_s16 = sshll.u32 %s9938_s20, 4  ;;  %s1411_s0 = sshll.u32 %s9939_s22, 4  ;;  %s1374_s16 = int_to_ptr.vmem [resolvable:$true] %s1373_s16  ;;  %s10376_s0 = int_to_ptr.vmem [resolvable:$true] %s1411_s0 }
 0x134   : > { %s9787_s15 = scalar_lea.hbm %s10148_s18, 24576 }
 0x135   : > { %p9788_p6 = scmp.ne.s32.totalorder %s10148_s18, %s9787_s15  ;;  %p9794_p3 = scmp.lt.u32.totalorder %s9787_s15, %s10148_s18 }
 0x137   : > { %p9790_p8 = pnand %p9788_p6, %p10221_p7 }
 0x139   : > { %p9791_p2 = pneg %p9790_p8 }
 0x13b   : > { %p9796_p9 = pnand %p9794_p3, %p9791_p2 }
 0x13d   : > { %9799 = shalt.err (!%p9796_p9)
}
 0x13e   : > { %s9800_s6 = scalar_lea.vmem %s1374_s16, 24576  ;;  %p9808_p13 = scmp.lt.s32.totalorder %s1374_s16, %s1374_s16 }
 0x13f   : > { %p9801_p10 = scmp.ne.s32.totalorder %s1374_s16, %s9800_s6  ;;  %p9809_p0 = scmp.lt.s32.totalorder %s9800_s6, %s9800_s6 }
 0x141   : > { %p9803_p11 = pnand %p9801_p10, %p10221_p7  ;;  %p9810_p1 = por %p9809_p0, %p9808_p13 }
 0x143   : > { %p9804_p12 = pneg %p9803_p11 }
 0x145   : > { %p9811_p4 = pnand %p9810_p1, %p9804_p12 }
 0x147   : > { %9814 = shalt.err (!%p9811_p4)
}
 0x148   : > { %9397 = dma.hbm_to_vmem [thread:$0]  (!%p10211_p5), %s10148_s18, 24576, %s1374_s16, [#allocation16], %s12303_s2, %s12303_s2, %s12302_s12  }
 0x149   : > { %s9815_s1 = scalar_lea.hbm %s10178_s28, 16384 }
 0x14a   : > { %p9816_p6 = scmp.ne.s32.totalorder %s10178_s28, %s9815_s1  ;;  %p9822_p3 = scmp.lt.u32.totalorder %s9815_s1, %s10178_s28 }
 0x14c   : > { %p9818_p8 = pnand %p9816_p6, %p10221_p7 }
 0x14e   : > { %p9819_p2 = pneg %p9818_p8 }
 0x150   : > { %p9824_p9 = pnand %p9822_p3, %p9819_p2 }
 0x152   : > { %9827 = shalt.err (!%p9824_p9)
}
 0x153   : > { %s9828_s27 = scalar_lea.vmem %s10376_s0, 16384  ;;  %p9836_p13 = scmp.lt.s32.totalorder %s10376_s0, %s10376_s0 }
 0x154   : > { %p9829_p10 = scmp.ne.s32.totalorder %s10376_s0, %s9828_s27  ;;  %p9837_p0 = scmp.lt.s32.totalorder %s9828_s27, %s9828_s27 }
 0x156   : > { %p9831_p11 = pnand %p9829_p10, %p10221_p7  ;;  %p9838_p1 = por %p9837_p0, %p9836_p13 }
 0x158   : > { %p9832_p12 = pneg %p9831_p11 }
 0x15a   : > { %p9839_p4 = pnand %p9838_p1, %p9832_p12 }
 0x15c   : > { %9842 = shalt.err (!%p9839_p4)
}
 0x15d   : > { %s12306_s12 = smov 32   ;;  %s12307_s2 = smov 512  }
 0x15e   : > { %9403 = dma.hbm_to_vmem [thread:$0]  (!%p10211_p5), %s10178_s28, 16384, %s10376_s0, [#allocation19], %s12307_s2, %s12307_s2, %s12306_s12  }
 0x15f   : > { %p12308_p6 = scmp.ne.s32.totalorder %s12299_s30, 0 }
 0x161   : > { %1435 = sbr.rel (%p12308_p6) target bundleno = 4571 (0x11db), region = 212 }
 0x168   : > { %p12309_p7 = scmp.eq.s32.totalorder %s10194_s23, 0 }
 0x16a   : > { %9848 = dma.done.wait (%p12309_p7), [#allocation5], 16384   ;;  %p12310_p8 = pmov %p12309_p7 }
 0x16b   : > { %p12311_p2 = pmov %p12309_p7 }
 0x16c   : > { %9850 = vsyncadd (%p12310_p8), [#allocation5], 4294950912 }
 0x16d   : > { %9852 = dma.done.wait (%p12311_p2), [#allocation7], 4096   ;;  %p12312_p3 = pmov %p12311_p2 }
 0x16e   : > { %p12313_p9 = pmov %p12311_p2 }
 0x16f   : > { %9854 = vsyncadd (%p12312_p3), [#allocation7], 4294963200 }
 0x170   : > { %9856 = dma.done.wait (%p12313_p9), [#allocation10], 3072   ;;  %p12314_p5 = pmov %p12311_p2 }
 0x171   : > { %p12315_p10 = pmov %p12311_p2 }
 0x172   : > { %9858 = vsyncadd (%p12314_p5), [#allocation10], 4294964224 }
 0x173   : > { %9860 = dma.done.wait (%p12315_p10), [#allocation13], 10240   ;;  %p12316_p11 = pmov %p12311_p2 }
 0x174   : > { %p12317_p12 = pmov %p12311_p2 }
 0x175   : > { %9862 = vsyncadd (%p12316_p11), [#allocation13], 4294957056 }
 0x176   : > { %9864 = dma.done.wait (%p12317_p12), [#allocation16], 28672   ;;  %p12318_p13 = pmov %p12311_p2 }
 0x177   : > { %p12319_p0 = pmov %p12311_p2 }
 0x178   : > { %9866 = vsyncadd (%p12318_p13), [#allocation16], 4294938624 }
 0x179   : > { %9868 = dma.done.wait (%p12319_p0), [#allocation19], 32768   ;;  %p12320_p1 = pmov %p12319_p0 }
 0x17a   : > { %p1587_p4 = scmp.lt.s32.totalorder %s10194_s23, 1  ;;  %vm1680_vm0 = vcmask 130048   ;;  %v1678_v2 = vld [vmem:[%s9973_s25] sm:$0xff]  ;;  %v1679_v3 = vld [vmem:[%s9973_s25 + $0x8] sm:$0xff]  ;;  %v1850_v13 = vld [vmem:[#allocation9 + $0x10] sm:$0xff]  ;;  %s12321_s9 = sld [smem:[#allocation28_spill]] }
 0x17b   : > { %9870 = vsyncadd (%p12320_p1), [#allocation19], 4294934528  ;;  %v8198_v5 = vpack.c.bf16 %v1679_v3, %v1678_v2  ;;  %v1848_v8 = vld [vmem:[#allocation9] sm:$0xff]  ;;  %v1849_v9 = vld [vmem:[#allocation9 + $0x8] sm:$0xff]  ;;  %vm1856_vm1 = vcmask 523264   ;;  %s12322_s3 = sld [smem:[#allocation34_spill]] }
 0x17c   : > { %s12441_s23 = smov (!%p1587_p4, %s10194_s23), 1  ;;  %v8202_v10 = vpack.c.bf16 %v1849_v9, %v1848_v8  ;;  %v2016_v11 = vld [vmem:[%s10013_s4] sm:$0xff]  ;;  %v2017_v12 = vld [vmem:[%s10013_s4 + $0x8] sm:$0xff]  ;;  %v2018_v16 = vld [vmem:[%s10013_s4 + $0x10] sm:$0xff]  ;;  %s12323_s20 = sld [smem:[#allocation35_spill]] }
 0x17d   : > { %s7424_s30 = sshll.u32 %s12441_s23, 6  ;;  %8199 = vmatprep.subr.bf16.mxu0 %v8198_v5  ;;  %v8218_v14 = vpack.c.bf16 %v2017_v12, %v2016_v11  ;;  %v1851_v15 = vld [vmem:[#allocation9 + $0x18] sm:$0xff]  ;;  %v1852_v25 = vld [vmem:[#allocation9 + $0x20] sm:$0xff]  ;;  %v1853_v26 = vld [vmem:[#allocation9 + $0x28] sm:$0xff]  ;;  %v12227_v11 = vmov 0.0   ;;  %s12325_s16 = sld [smem:[#allocation36_spill]] }
 0x17e   : > { %s10441_s7 = scalar_lea.vmem %s9950_s5, %s7424_s30  ;;  %8201 = vmatpush3.bf16.msra.mxu0 %v8198_v5  ;;  %v2019_v17 = vld [vmem:[%s10013_s4 + $0x18] sm:$0xff]  ;;  %8203 = vmatprep.subr.bf16.mxu1 %v8202_v10  ;;  %v8206_v18 = vpack.c.bf16 %v1851_v15, %v1850_v13  ;;  %v2020_v27 = vld [vmem:[%s10013_s4 + $0x20] sm:$0xff]  ;;  %v8210_v28 = vpack.c.bf16 %v1853_v26, %v1852_v25  ;;  %v2021_v29 = vld [vmem:[%s10013_s4 + $0x28] sm:$0xff]  ;;  %s12326_s22 = sld [smem:[#allocation37_spill]] }
 0x17f   : > { %v1670_v4 = vld [vmem:[%s10441_s7] sm:$0xff]  ;;  %v1671_v6 = vld [vmem:[%s10441_s7 + $0x8] sm:$0xff]  ;;  %v1672_v7 = vld [vmem:[%s10441_s7 + $0x10] sm:$0xff]  ;;  %v8222_v19 = vpack.c.bf16 %v2019_v17, %v2018_v16  ;;  %8219 = vmatprep.subr.bf16.mxu0 %v8218_v14  ;;  %8205 = vmatpush3.bf16.msra.mxu1 %v8202_v10  ;;  %v8226_v30 = vpack.c.bf16 %v2021_v29, %v2020_v27  ;;  %s12327_s0 = sld [smem:[#allocation40_spill]]  ;;  %s12328_s15 = sld [smem:[#allocation38_spill]] }
 0x180   : > { %7730 = vmatprep.mubr.msk.f32.mxu0 %vm1680_vm0, %v1670_v4  ;;  %v1673_v20 = vld [vmem:[%s10441_s7 + $0x18] sm:$0xff]  ;;  %v1674_v21 = vld [vmem:[%s10441_s7 + $0x20] sm:$0xff]  ;;  %8207 = vmatprep.subr.bf16.mxu1 %v8206_v18  ;;  %v1675_v22 = vld [vmem:[%s10441_s7 + $0x28] sm:$0xff]  ;;  %s12329_s6 = sld [smem:[#allocation41_spill]]  ;;  %s12330_s1 = sld [smem:[#allocation39_spill]] }
 0x181   : > { %7731 = vmatmul.mubr.msk.f32.vlgmr.msra.gmra.mrb[0].mxu0 %vm1680_vm0, %v1671_v6  ;;  %v1676_v23 = vld [vmem:[%s10441_s7 + $0x30] sm:$0xff]  ;;  %v1677_v24 = vld [vmem:[%s10441_s7 + $0x38] sm:$0xff]  ;;  %v7311_v37 = vld [vmem:[%s9963_s17] ss:$0 sm:$0xff]  ;;  %s12331_s27 = sld [smem:[#allocation42_spill]]  ;;  %s12332_s12 = sld [smem:[#allocation43_spill]] }
 0x182   : > { %7733 = vmatprep.mubr.msk.f32.mxu0 %vm1680_vm0, %v1672_v7  ;;  %8221 = vmatpush3.bf16.msra.mxu0 %v8218_v14  ;;  %v1854_v31 = vld [vmem:[#allocation9 + $0x30] sm:$0xff]  ;;  %v1855_v32 = vld [vmem:[#allocation9 + $0x38] sm:$0xff]  ;;  %v1595_v7 = vlaneseq  ;;  %s12333_s2 = sld [smem:[#allocation44_spill]]  ;;  %s12334_s30 = sld [smem:[#allocation45_spill]] }
 0x183   : > { %8223 = vmatprep.subr.bf16.mxu0 %v8222_v19  ;;  %8209 = vmatpush3.bf16.msra.mxu1 %v8206_v18  ;;  %v2022_v33 = vld [vmem:[%s10013_s4 + $0x30] sm:$0xff]  ;;  %v8214_v34 = vpack.c.bf16 %v1855_v32, %v1854_v31  ;;  %v2023_v35 = vld [vmem:[%s10013_s4 + $0x38] sm:$0xff]  ;;  %v7312_v39 = vld [vmem:[%s12321_s9] ss:$0 sm:$0xff]  ;;  %s12335_s7 = sld [smem:[#allocation53_spill]]  ;;  %s12336_s9 = sld [smem:[#allocation48_spill]] }
 0x184   : > { %8211 = vmatprep.subr.bf16.mxu1 %v8210_v28  ;;  %v8230_v36 = vpack.c.bf16 %v2023_v35, %v2022_v33  ;;  %v10487_v8 = vshrl.u32 %v1595_v7, 7  ;;  %v10489_v9 = vand.u32 127, %v1595_v7  ;;  %v7331_v15 = vld [vmem:[%s12322_s3] ss:$0 sm:$0xff]  ;;  %s12337_s3 = sld [smem:[#allocation46_spill]] }
 0x185   : > { %7734 = vmatmul.mubr.msk.f32.gmra.mrb[2].mxu0 %vm1680_vm0, %v1673_v20  ;;  %v7332_v18 = vld [vmem:[%s12323_s20] ss:$0 sm:$0xff]  ;;  %s12338_s20 = sld [smem:[#allocation49_spill]] }
 0x186   : > { %7736 = vmatprep.mubr.msk.f32.mxu0 %vm1680_vm0, %v1674_v21  ;;  %8225 = vmatpush3.bf16.msra.mxu0 %v8222_v19  ;;  %12324 = vst [vmem:[#allocation59_spill] sm:$0xff] %v10487_v8  ;;  %v7279_v10 = vadd.s32 4294967295, %v10487_v8  ;;  %v1638_v13 = vadd.s32 1, %v10487_v8 }
 0x187   : > { %8227 = vmatprep.subr.bf16.mxu0 %v8226_v30  ;;  %8213 = vmatpush3.bf16.msra.mxu1 %v8210_v28 }
 0x188   : > { %8215 = vmatprep.subr.bf16.mxu1 %v8214_v34  ;;  %vm1614_vm2 = vcmp.eq.s32.totalorder %v10489_v9, %v7279_v10  ;;  %vm1646_vm3 = vcmp.eq.s32.totalorder %v10489_v9, %v1638_v13  ;;  %v1601_v10 = vadd.s32 40, %v10487_v8 }
 0x189   : > { %7737 = vmatmul.mubr.msk.f32.gmra.mrb[4].mxu0 %vm1680_vm0, %v1675_v22  ;;  %v10494_v12 = vsel %vm1614_vm2, 1.0, %v12227_v11  ;;  %v10501_v14 = vsel %vm1646_vm3, 1.0, %v12227_v11  ;;  %vm7046_vm3 = vcmask 0  }
 0x18a   : > { %7739 = vmatprep.mubr.msk.f32.mxu0 %vm1680_vm0, %v1676_v23  ;;  %8229 = vmatpush3.bf16.msra.mxu0 %v8226_v30 }
 0x18b   : > { %8231 = vmatprep.subr.bf16.mxu0 %v8230_v36  ;;  %8217 = vmatpush3.bf16.msra.mxu1 %v8214_v34 }
 0x18d   : > { %7740 = vmatmul.mubr.msk.f32.gmra.mrb[6].mxu0 %vm1680_vm0, %v1677_v24 }
 0x18e   : > { %8233 = vmatpush3.bf16.msra.mxu0 %v8230_v36 }
 0x254   : > { %v7732_v38 = vpop.f32.mrb[0].mxu0 }
 0x255   : > { %v1818_v40 = vmul.f32 %v7732_v38, %v7311_v37  ;;  %v1771_v41 = vpop.f32.mrb[1].mxu0 }
 0x256   : > { %v1817_v42 = vmul.f32 %v7311_v37, %v1771_v41 }
 0x257   : > { %v1833_v43 = vadd.f32 %v7312_v39, %v1818_v40 }
 0x258   : > { %v7735_v44 = vpop.f32.mrb[2].mxu0  ;;  %v1832_v45 = vadd.f32 %v7312_v39, %v1817_v42 }
 0x259   : > { %v1820_v46 = vmul.f32 %v7735_v44, %v7311_v37  ;;  %v1781_v47 = vpop.f32.mrb[3].mxu0  ;;  %v1841_v50 = vmax.f32 %v1833_v43, 0.0  ;;  %v1597_v44 = vadd.s32 8, %v10487_v8 }
 0x25a   : > { %v1819_v48 = vmul.f32 %v7311_v37, %v1781_v47  ;;  %v1840_v49 = vmax.f32 %v1832_v45, 0.0 }
 0x25b   : > { %v1835_v51 = vadd.f32 %v7312_v39, %v1820_v46  ;;  %v1598_v46 = vadd.s32 16, %v10487_v8 }
 0x25c   : > { %v1834_v52 = vadd.f32 %v7312_v39, %v1819_v48  ;;  %v7738_v53 = vpop.f32.mrb[4].mxu0  ;;  %7758 = vmatprep.mubr.msk.f32.mxu1 %vm1856_vm1, %v1840_v49  ;;  %7786 = vmatprep.mubr.msk.f32.mxu0 %vm1856_vm1, %v1840_v49 }
 0x25d   : > { %v1822_v54 = vmul.f32 %v7738_v53, %v7311_v37  ;;  %v1791_v55 = vpop.f32.mrb[5].mxu0  ;;  %7759 = vmatmul.mubr.msk.f32.vlgmr.msra.gmra.mrb[0].mxu1 %vm1856_vm1, %v1841_v50  ;;  %7787 = vmatmul.mubr.msk.f32.vlgmr.msra.gmra.mrb[8].mxu0 %vm1856_vm1, %v1841_v50  ;;  %v1843_v58 = vmax.f32 %v1835_v51, 0.0 }
 0x25e   : > { %v1842_v56 = vmax.f32 %v1834_v52, 0.0  ;;  %v1821_v57 = vmul.f32 %v7311_v37, %v1791_v55 }
 0x25f   : > { %v1837_v59 = vadd.f32 %v7312_v39, %v1822_v54 }
 0x260   : > { %v1836_v60 = vadd.f32 %v7312_v39, %v1821_v57  ;;  %v7741_v61 = vpop.f32.mrb[6].mxu0  ;;  %7761 = vmatprep.mubr.msk.f32.mxu1 %vm1856_vm1, %v1842_v56  ;;  %7789 = vmatprep.mubr.msk.f32.mxu0 %vm1856_vm1, %v1842_v56  ;;  %v7280_v57 = vadd.s32 4294967295, %v1597_v44 }
 0x261   : > { %v1824_v62 = vmul.f32 %v7741_v61, %v7311_v37  ;;  %v1801_v63 = vpop.f32.mrb[7].mxu0  ;;  %7762 = vmatmul.mubr.msk.f32.gmra.mrb[2].mxu1 %vm1856_vm1, %v1843_v58  ;;  %7790 = vmatmul.mubr.msk.f32.gmra.mrb[10].mxu0 %vm1856_vm1, %v1843_v58  ;;  %v1845_v2 = vmax.f32 %v1837_v59, 0.0  ;;  %v7281_v59 = vadd.s32 4294967295, %v1598_v46 }
 0x262   : > { %v1844_v0 = vmax.f32 %v1836_v60, 0.0  ;;  %v1823_v1 = vmul.f32 %v7311_v37, %v1801_v63  ;;  %v1599_v60 = vadd.s32 24, %v10487_v8  ;;  %v2434_v63 = vld [vmem:[#allocation6 + $0x40] sm:$0xff]  ;;  %vm1615_vm4 = vcmp.eq.s32.totalorder %v10489_v9, %v7280_v57 }
 0x263   : > { %v1839_v3 = vadd.f32 %v7312_v39, %v1824_v62  ;;  %vm1616_vm5 = vcmp.eq.s32.totalorder %v10489_v9, %v7281_v59 }
 0x264   : > { %v1838_v4 = vadd.f32 %v7312_v39, %v1823_v1  ;;  %7764 = vmatprep.mubr.msk.f32.mxu1 %vm1856_vm1, %v1844_v0  ;;  %7792 = vmatprep.mubr.msk.f32.mxu0 %vm1856_vm1, %v1844_v0  ;;  %v2435_v0 = vld [vmem:[#allocation6 + $0x48] sm:$0xff]  ;;  %v1600_v1 = vadd.s32 32, %v10487_v8  ;;  %v7282_v7 = vadd.s32 4294967295, %v1599_v60 }
 0x265   : > { %7765 = vmatmul.mubr.msk.f32.gmra.mrb[4].mxu1 %vm1856_vm1, %v1845_v2  ;;  %7793 = vmatmul.mubr.msk.f32.gmra.mrb[12].mxu0 %vm1856_vm1, %v1845_v2  ;;  %v1847_v6 = vmax.f32 %v1839_v3, 0.0  ;;  %v1639_v2 = vadd.s32 1, %v1597_v44 }
 0x266   : > { %v1846_v5 = vmax.f32 %v1838_v4, 0.0  ;;  %vm1617_vm8 = vcmp.eq.s32.totalorder %v10489_v9, %v7282_v7  ;;  %v2425_v7 = vld [vmem:[#allocation6] sm:$0xff] }
 0x267   : > { %vm1647_vm6 = vcmp.eq.s32.totalorder %v10489_v9, %v1639_v2 }
 0x268   : > { %7767 = vmatprep.mubr.msk.f32.mxu1 %vm1856_vm1, %v1846_v5  ;;  %7795 = vmatprep.mubr.msk.f32.mxu0 %vm1856_vm1, %v1846_v5  ;;  %v1640_v5 = vadd.s32 1, %v1598_v46 }
 0x269   : > { %7768 = vmatmul.mubr.msk.f32.gmra.mrb[6].mxu1 %vm1856_vm1, %v1847_v6  ;;  %7796 = vmatmul.mubr.msk.f32.gmra.mrb[14].mxu0 %vm1856_vm1, %v1847_v6  ;;  %v8266_v6 = vpack.c.bf16 %v2435_v0, %v2434_v63 }
 0x26a   : > { %7814 = vmatprep.mubr.msk.f32.mxu1 %vm1856_vm1, %v10494_v12  ;;  %7842 = vmatprep.mubr.msk.f32.mxu0 %vm1856_vm1, %v10501_v14  ;;  %vm1648_vm7 = vcmp.eq.s32.totalorder %v10489_v9, %v1640_v5 }
 0x26b   : > { %v10591_v46 = vsel %vm1648_vm7, 1.0, %v12227_v11 }
 0x330   : > { %v10506_v16 = vpop.f32.mrb[0].mxu1  ;;  %v7788_v17 = vpop.f32.mrb[8].mxu0 }
 0x331   : > { %v2137_v19 = vmul.f32 %v7788_v17, %v7331_v15  ;;  %v10509_v20 = vpop.f32.mrb[1].mxu1  ;;  %v2090_v21 = vpop.f32.mrb[9].mxu0  ;;  %v2437_v17 = vld [vmem:[#allocation6 + $0x58] sm:$0xff] }
 0x332   : > { %v2136_v22 = vmul.f32 %v7331_v15, %v2090_v21  ;;  %v1602_v21 = vadd.s32 48, %v10487_v8 }
 0x333   : > { %v10511_v23 = vadd.f32 %v7332_v18, %v2137_v19  ;;  %v1641_v19 = vadd.s32 1, %v1599_v60  ;;  %v2440_v60 = vld [vmem:[#allocation6 + $0x70] sm:$0xff] }
 0x334   : > { %v10513_v24 = vadd.f32 %v7332_v18, %v2136_v22  ;;  %v10515_v25 = vpop.f32.mrb[2].mxu1  ;;  %v7791_v26 = vpop.f32.mrb[10].mxu0  ;;  %v10575_v22 = vsel %vm1615_vm4, 1.0, %v12227_v11  ;;  %v7285_v44 = vadd.s32 4294967295, %v1602_v21 }
 0x335   : > { %v2160_v27 = vmax.f32 %v10511_v23, 0.0  ;;  %v2139_v28 = vmul.f32 %v7791_v26, %v7331_v15  ;;  %v10518_v29 = vpop.f32.mrb[3].mxu1  ;;  %v2100_v30 = vpop.f32.mrb[11].mxu0  ;;  %v10578_v26 = vsel %vm1616_vm5, 1.0, %v12227_v11  ;;  %vm1649_vm10 = vcmp.eq.s32.totalorder %v10489_v9, %v1641_v19 }
 0x336   : > { %v2159_v31 = vmax.f32 %v10513_v24, 0.0  ;;  %v2138_v32 = vmul.f32 %v7331_v15, %v2100_v30  ;;  %vm1620_vm14 = vcmp.eq.s32.totalorder %v10489_v9, %v7285_v44  ;;  %v2701_v24 = vld [vmem:[#allocation6 + $0x80] sm:$0xff] }
 0x337   : > { %v10521_v33 = vadd.f32 %v7332_v18, %v2139_v28  ;;  %v1642_v28 = vadd.s32 1, %v1600_v1  ;;  %v10637_v2 = vsel %vm1620_vm14, 1.0, %v12227_v11 }
 0x338   : > { %v8234_v34 = vpack.c.bf16 %v2160_v27, %v2159_v31  ;;  %v10527_v35 = vadd.f32 %v7332_v18, %v2138_v32  ;;  %v10529_v36 = vpop.f32.mrb[4].mxu1  ;;  %v7794_v37 = vpop.f32.mrb[12].mxu0  ;;  %v7284_v32 = vadd.s32 4294967295, %v1601_v10 }
 0x339   : > { %v2162_v38 = vmax.f32 %v10521_v33, 0.0  ;;  %v2141_v39 = vmul.f32 %v7794_v37, %v7331_v15  ;;  %v10532_v40 = vpop.f32.mrb[5].mxu1  ;;  %v2110_v41 = vpop.f32.mrb[13].mxu0  ;;  %v1603_v37 = vadd.s32 56, %v10487_v8  ;;  %vm1650_vm11 = vcmp.eq.s32.totalorder %v10489_v9, %v1642_v28  ;;  %v2430_v28 = vld [vmem:[#allocation6 + $0x28] sm:$0xff]  ;;  %v2884_v33 = vld [vmem:[#allocation8] sm:$0xff] }
 0x33a   : > { %v2161_v42 = vmax.f32 %v10527_v35, 0.0  ;;  %v2140_v43 = vmul.f32 %v7331_v15, %v2110_v41  ;;  %8235 = vmatprep.subr.bf16.mxu1 %v8234_v34  ;;  %8251 = vmatprep.subr.bf16.mxu0 %v8234_v34  ;;  %v2438_v41 = vld [vmem:[#allocation6 + $0x60] sm:$0xff]  ;;  %vm1619_vm12 = vcmp.eq.s32.totalorder %v10489_v9, %v7284_v32  ;;  %v10619_v63 = vsel %vm1650_vm11, 1.0, %v12227_v11  ;;  %v2431_v32 = vld [vmem:[#allocation6 + $0x30] sm:$0xff]  ;;  %v2885_v35 = vld [vmem:[#allocation8 + $0x8] sm:$0xff] }
 0x33b   : > { %v10536_v45 = vadd.f32 %v7332_v18, %v2141_v39  ;;  %8237 = vmatpush3.bf16.msra.mxu1 %v8234_v34  ;;  %8253 = vmatpush3.bf16.msra.mxu0 %v8234_v34  ;;  %v10583_v34 = vsel %vm1647_vm6, 1.0, %v12227_v11  ;;  %v1643_v39 = vadd.s32 1, %v1601_v10  ;;  %v7286_v57 = vadd.s32 4294967295, %v1603_v37  ;;  %v2426_v10 = vld [vmem:[#allocation6 + $0x8] sm:$0xff] }
 0x33c   : > { %v8238_v47 = vpack.c.bf16 %v2162_v38, %v2161_v42  ;;  %v10543_v48 = vadd.f32 %v7332_v18, %v2140_v43  ;;  %v10545_v49 = vpop.f32.mrb[6].mxu1  ;;  %v7797_v50 = vpop.f32.mrb[14].mxu0  ;;  %v2439_v43 = vld [vmem:[#allocation6 + $0x68] sm:$0xff]  ;;  %v1645_v59 = vadd.s32 1, %v1603_v37  ;;  %v10631_v0 = vsel %vm1619_vm12, 1.0, %v12227_v11  ;;  %v2432_v37 = vld [vmem:[#allocation6 + $0x38] sm:$0xff] }
 0x33d   : > { %v2164_v51 = vmax.f32 %v10536_v45, 0.0  ;;  %v2143_v52 = vmul.f32 %v7797_v50, %v7331_v15  ;;  %v10548_v53 = vpop.f32.mrb[7].mxu1  ;;  %v2120_v54 = vpop.f32.mrb[15].mxu0  ;;  %v10603_v50 = vsel %vm1617_vm8, 1.0, %v12227_v11  ;;  %vm1651_vm13 = vcmp.eq.s32.totalorder %v10489_v9, %v1643_v39  ;;  %v2887_v45 = vld [vmem:[#allocation8 + $0x18] sm:$0xff] }
 0x33e   : > { %v2163_v55 = vmax.f32 %v10543_v48, 0.0  ;;  %v2142_v56 = vmul.f32 %v7331_v15, %v2120_v54  ;;  %8239 = vmatprep.subr.bf16.mxu1 %v8238_v47  ;;  %8255 = vmatprep.subr.bf16.mxu0 %v8238_v47  ;;  %v2436_v15 = vld [vmem:[#allocation6 + $0x50] sm:$0xff]  ;;  %v10610_v54 = vsel %vm1649_vm10, 1.0, %v12227_v11  ;;  %vm1621_vm0 = vcmp.eq.s32.totalorder %v10489_v9, %v7286_v57 }
 0x33f   : > { %v10551_v58 = vadd.f32 %v7332_v18, %v2143_v52  ;;  %8241 = vmatpush3.bf16.msra.mxu1 %v8238_v47  ;;  %8257 = vmatpush3.bf16.msra.mxu0 %v8238_v47  ;;  %v8270_v30 = vpack.c.bf16 %v2437_v17, %v2436_v15  ;;  %v1644_v47 = vadd.s32 1, %v1602_v21  ;;  %vm1653_vm2 = vcmp.eq.s32.totalorder %v10489_v9, %v1645_v59  ;;  %v2427_v17 = vld [vmem:[#allocation6 + $0x10] sm:$0xff]  ;;  %v2429_v21 = vld [vmem:[#allocation6 + $0x20] sm:$0xff] }
 0x340   : > { %v8242_v61 = vpack.c.bf16 %v2164_v51, %v2163_v55  ;;  %v10558_v62 = vadd.f32 %v7332_v18, %v2142_v56  ;;  %v7283_v18 = vadd.s32 4294967295, %v1600_v1  ;;  %v8274_v56 = vpack.c.bf16 %v2439_v43, %v2438_v41  ;;  %v2705_v41 = vld [vmem:[#allocation6 + $0xa0] sm:$0xff]  ;;  %v2706_v43 = vld [vmem:[#allocation6 + $0xa8] sm:$0xff] }
 0x341   : > { %v2166_v3 = vmax.f32 %v10551_v58, 0.0  ;;  %vm1652_vm15 = vcmp.eq.s32.totalorder %v10489_v9, %v1644_v47  ;;  %v10634_v1 = vsel %vm1651_vm13, 1.0, %v12227_v11  ;;  %v8282_v15 = vpack.c.bf16 %v2426_v10, %v2425_v7 }
 0x342   : > { %v2165_v4 = vmax.f32 %v10558_v62, 0.0  ;;  %8243 = vmatprep.subr.bf16.mxu1 %v8242_v61  ;;  %8259 = vmatprep.subr.bf16.mxu0 %v8242_v61  ;;  %vm1618_vm9 = vcmp.eq.s32.totalorder %v10489_v9, %v7283_v18  ;;  %v10656_v9 = vsel %vm1653_vm2, 1.0, %v12227_v11  ;;  %v2428_v18 = vld [vmem:[#allocation6 + $0x18] sm:$0xff]  ;;  %v8294_v23 = vpack.c.bf16 %v2432_v37, %v2431_v32  ;;  %v2889_v32 = vld [vmem:[#allocation8 + $0x28] sm:$0xff] }
 0x343   : > { %8245 = vmatpush3.bf16.msra.mxu1 %v8242_v61  ;;  %8261 = vmatpush3.bf16.msra.mxu0 %v8242_v61  ;;  %v10606_v52 = vsel %vm1618_vm9, 1.0, %v12227_v11  ;;  %v2441_v61 = vld [vmem:[#allocation6 + $0x78] sm:$0xff]  ;;  %v8286_v19 = vpack.c.bf16 %v2428_v18, %v2427_v17  ;;  %v8306_v57 = vpack.c.bf16 %v2706_v43, %v2705_v41  ;;  %v3072_v41 = vld [vmem:[#allocation15 + $0x28] sm:$0xff] }
 0x344   : > { %v8246_v13 = vpack.c.bf16 %v2166_v3, %v2165_v4  ;;  %v8278_v5 = vpack.c.bf16 %v2441_v61, %v2440_v60  ;;  %v2707_v60 = vld [vmem:[#allocation6 + $0xb0] sm:$0xff]  ;;  %v2708_v61 = vld [vmem:[#allocation6 + $0xb8] sm:$0xff] }
 0x345   : > { %v3074_v43 = vld [vmem:[#allocation15 + $0x38] sm:$0xff] }
 0x346   : > { %8247 = vmatprep.subr.bf16.mxu1 %v8246_v13  ;;  %8263 = vmatprep.subr.bf16.mxu0 %v8246_v13 }
 0x347   : > { %8249 = vmatpush3.bf16.msra.mxu1 %v8246_v13  ;;  %8265 = vmatpush3.bf16.msra.mxu0 %v8246_v13  ;;  %v10653_v13 = vsel %vm1621_vm0, 1.0, %v12227_v11 }
 0x348   : > { %8267 = vmatprep.subr.bf16.mxu1 %v8266_v6 }
 0x34a   : > { %7815 = vmatmul.mubr.msk.f32.vlgmr.msra.gmra.mrb[8].mxu1 %vm1856_vm1, %v10575_v22  ;;  %7843 = vmatmul.mubr.msk.f32.vlgmr.msra.gmra.mrb[16].mxu0 %vm1856_vm1, %v10583_v34 }
 0x34b   : > { %8269 = vmatpush3.bf16.msra.mxu1 %v8266_v6  ;;  %7817 = vmatprep.mubr.msk.f32.mxu1 %vm1856_vm1, %v10578_v26  ;;  %v10644_v6 = vsel %vm1652_vm15, 1.0, %v12227_v11 }
 0x34c   : > { %8271 = vmatprep.subr.bf16.mxu1 %v8270_v30  ;;  %7845 = vmatprep.mubr.msk.f32.mxu0 %vm1856_vm1, %v10591_v46 }
 0x34e   : > { %7818 = vmatmul.mubr.msk.f32.gmra.mrb[10].mxu1 %vm1856_vm1, %v10603_v50  ;;  %7846 = vmatmul.mubr.msk.f32.gmra.mrb[18].mxu0 %vm1856_vm1, %v10610_v54 }
 0x34f   : > { %8273 = vmatpush3.bf16.msra.mxu1 %v8270_v30  ;;  %7820 = vmatprep.mubr.msk.f32.mxu1 %vm1856_vm1, %v10606_v52  ;;  %v8290_v30 = vpack.c.bf16 %v2430_v28, %v2429_v21 }
 0x350   : > { %8275 = vmatprep.subr.bf16.mxu1 %v8274_v56  ;;  %7848 = vmatprep.mubr.msk.f32.mxu0 %vm1856_vm1, %v10619_v63 }
 0x352   : > { %7821 = vmatmul.mubr.msk.f32.gmra.mrb[12].mxu1 %vm1856_vm1, %v10631_v0  ;;  %7849 = vmatmul.mubr.msk.f32.gmra.mrb[20].mxu0 %vm1856_vm1, %v10634_v1 }
 0x353   : > { %8277 = vmatpush3.bf16.msra.mxu1 %v8274_v56  ;;  %7823 = vmatprep.mubr.msk.f32.mxu1 %vm1856_vm1, %v10637_v2 }
 0x354   : > { %8279 = vmatprep.subr.bf16.mxu1 %v8278_v5  ;;  %7851 = vmatprep.mubr.msk.f32.mxu0 %vm1856_vm1, %v10644_v6 }
 0x356   : > { %7824 = vmatmul.mubr.msk.f32.gmra.mrb[14].mxu1 %vm1856_vm1, %v10653_v13  ;;  %7852 = vmatmul.mubr.msk.f32.gmra.mrb[22].mxu0 %vm1856_vm1, %v10656_v9 }
 0x357   : > { %8281 = vmatpush3.bf16.msra.mxu1 %v8278_v5  ;;  %7870 = vmatprep.mubr.msk.f32.mxu1 %vm1856_vm1, %v2159_v31 }
 0x358   : > { %8283 = vmatprep.subr.bf16.mxu1 %v8282_v15 }
 0x35a   : > { %7871 = vmatmul.mubr.msk.f32.vlgmr.msra.gmra.mrb[16].mxu1 %vm1856_vm1, %v2160_v27  ;;  %v2702_v27 = vld [vmem:[#allocation6 + $0x88] sm:$0xff] }
 0x35b   : > { %7873 = vmatprep.mubr.msk.f32.mxu1 %vm1856_vm1, %v2161_v42  ;;  %8285 = vmatpush3.bf16.msra.mxu1 %v8282_v15  ;;  %v8298_v31 = vpack.c.bf16 %v2702_v27, %v2701_v24  ;;  %v8314_v42 = vpack.c.bf16 %v2885_v35, %v2884_v33  ;;  %v8310_v15 = vpack.c.bf16 %v2708_v61, %v2707_v60  ;;  %v2891_v24 = vld [vmem:[#allocation8 + $0x38] sm:$0xff] }
 0x35c   : > { %8287 = vmatprep.subr.bf16.mxu1 %v8286_v19  ;;  %v3070_v33 = vld [vmem:[#allocation15 + $0x18] sm:$0xff] }
 0x35d   : > { %8315 = vmatprep.subr.bf16.mxu0 %v8314_v42 }
 0x35e   : > { %7874 = vmatmul.mubr.msk.f32.gmra.mrb[18].mxu1 %vm1856_vm1, %v2162_v38  ;;  %v2886_v38 = vld [vmem:[#allocation8 + $0x10] sm:$0xff]  ;;  %8317 = vmatpush3.bf16.msra.mxu0 %v8314_v42 }
 0x35f   : > { %7876 = vmatprep.mubr.msk.f32.mxu1 %vm1856_vm1, %v2163_v55  ;;  %8289 = vmatpush3.bf16.msra.mxu1 %v8286_v19  ;;  %v8318_v48 = vpack.c.bf16 %v2887_v45, %v2886_v38  ;;  %v2704_v55 = vld [vmem:[#allocation6 + $0x98] sm:$0xff] }
 0x360   : > { %8291 = vmatprep.subr.bf16.mxu1 %v8290_v30  ;;  %v7373_v38 = vld [vmem:[%s12325_s16] ss:$0 sm:$0xff]  ;;  %s12339_s16 = sld [smem:[#allocation47_spill]] }
 0x361   : > { %8319 = vmatprep.subr.bf16.mxu0 %v8318_v48  ;;  %v7374_v45 = vld [vmem:[%s12326_s22] ss:$0 sm:$0xff]  ;;  %s12350_s22 = sld [smem:[#allocation51_spill]] }
 0x362   : > { %7877 = vmatmul.mubr.msk.f32.gmra.mrb[20].mxu1 %vm1856_vm1, %v2164_v51  ;;  %8321 = vmatpush3.bf16.msra.mxu0 %v8318_v48  ;;  %v2703_v51 = vld [vmem:[#allocation6 + $0x90] sm:$0xff] }
 0x363   : > { %7879 = vmatprep.mubr.msk.f32.mxu1 %vm1856_vm1, %v2165_v4  ;;  %8293 = vmatpush3.bf16.msra.mxu1 %v8290_v30  ;;  %v8302_v4 = vpack.c.bf16 %v2704_v55, %v2703_v51  ;;  %v2888_v30 = vld [vmem:[#allocation8 + $0x20] sm:$0xff] }
 0x364   : > { %8295 = vmatprep.subr.bf16.mxu1 %v8294_v23  ;;  %v8322_v37 = vpack.c.bf16 %v2889_v32, %v2888_v30 }
 0x366   : > { %7880 = vmatmul.mubr.msk.f32.gmra.mrb[22].mxu1 %vm1856_vm1, %v2166_v3  ;;  %8323 = vmatprep.subr.bf16.mxu0 %v8322_v37 }
 0x367   : > { %8297 = vmatpush3.bf16.msra.mxu1 %v8294_v23  ;;  %8325 = vmatpush3.bf16.msra.mxu0 %v8322_v37  ;;  %v2890_v23 = vld [vmem:[#allocation8 + $0x30] sm:$0xff] }
 0x368   : > { %8299 = vmatprep.subr.bf16.mxu1 %v8298_v31  ;;  %v8326_v27 = vpack.c.bf16 %v2891_v24, %v2890_v23 }
 0x36a   : > { %8327 = vmatprep.subr.bf16.mxu0 %v8326_v27 }
 0x36b   : > { %8329 = vmatpush3.bf16.msra.mxu0 %v8326_v27 }
 0x41d   : > { %v7816_v58 = vpop.f32.mrb[8].mxu1  ;;  %v7844_v62 = vpop.f32.mrb[16].mxu0 }
 0x41e   : > { %v2257_v3 = vpop.f32.mrb[9].mxu1  ;;  %v2386_v39 = vpop.f32.mrb[17].mxu0 }
 0x41f   : > { %7898 = vmatprep.mubr.msk.f32.mxu1 %vm1856_vm1, %v2257_v3  ;;  %v3069_v3 = vld [vmem:[#allocation15 + $0x10] sm:$0xff] }
 0x420   : > { %7899 = vmatmul.mubr.msk.f32.vlgmr.msra.gmra.mrb[16].mxu1 %vm1856_vm1, %v7816_v58 }
 0x421   : > { %v7819_v44 = vpop.f32.mrb[10].mxu1  ;;  %8301 = vmatpush3.bf16.msra.mxu1 %v8298_v31  ;;  %v7847_v47 = vpop.f32.mrb[18].mxu0  ;;  %v3068_v31 = vld [vmem:[#allocation15 + $0x8] sm:$0xff] }
 0x422   : > { %v2267_v56 = vpop.f32.mrb[11].mxu1  ;;  %8303 = vmatprep.subr.bf16.mxu1 %v8302_v4  ;;  %v2396_v59 = vpop.f32.mrb[19].mxu0  ;;  %v8330_v35 = vpack.c.bf16 %v3070_v33, %v3068_v31  ;;  %v3075_v31 = vld [vmem:[#allocation15 + $0x40] sm:$0xff]  ;;  %v3077_v33 = vld [vmem:[#allocation15 + $0x50] sm:$0xff] }
 0x423   : > { %7901 = vmatprep.mubr.msk.f32.mxu1 %vm1856_vm1, %v2267_v56 }
 0x424   : > { %7902 = vmatmul.mubr.msk.f32.gmra.mrb[18].mxu1 %vm1856_vm1, %v7819_v44  ;;  %8331 = vmatprep.subr.bf16.mxu0 %v8330_v35 }
 0x425   : > { %v7822_v5 = vpop.f32.mrb[12].mxu1  ;;  %8305 = vmatpush3.bf16.msra.mxu1 %v8302_v4  ;;  %v7850_v7 = vpop.f32.mrb[20].mxu0 }
 0x426   : > { %v2277_v10 = vpop.f32.mrb[13].mxu1  ;;  %8307 = vmatprep.subr.bf16.mxu1 %v8306_v57  ;;  %v2406_v17 = vpop.f32.mrb[21].mxu0 }
 0x427   : > { %7904 = vmatprep.mubr.msk.f32.mxu1 %vm1856_vm1, %v2277_v10  ;;  %v3073_v10 = vld [vmem:[#allocation15 + $0x30] sm:$0xff] }
 0x428   : > { %7905 = vmatmul.mubr.msk.f32.gmra.mrb[20].mxu1 %vm1856_vm1, %v7822_v5  ;;  %v8334_v5 = vpack.c.bf16 %v3074_v43, %v3072_v41 }
 0x429   : > { %v7825_v18 = vpop.f32.mrb[14].mxu1  ;;  %8309 = vmatpush3.bf16.msra.mxu1 %v8306_v57  ;;  %v7853_v19 = vpop.f32.mrb[22].mxu0 }
 0x42a   : > { %v2287_v21 = vpop.f32.mrb[15].mxu1  ;;  %8311 = vmatprep.subr.bf16.mxu1 %v8310_v15  ;;  %v2416_v28 = vpop.f32.mrb[23].mxu0 }
 0x42b   : > { %7907 = vmatprep.mubr.msk.f32.mxu1 %vm1856_vm1, %v2287_v21 }
 0x42c   : > { %7908 = vmatmul.mubr.msk.f32.gmra.mrb[22].mxu1 %vm1856_vm1, %v7825_v18  ;;  %v3076_v18 = vld [vmem:[#allocation15 + $0x48] sm:$0xff] }
 0x42d   : > { %8313 = vmatpush3.bf16.msra.mxu1 %v8310_v15  ;;  %7926 = vmatprep.mubr.msk.f32.mxu1 %vm1856_vm1, %v2386_v39 }
 0x430   : > { %7927 = vmatmul.mubr.msk.f32.vlgmr.msra.gmra.mrb[16].mxu1 %vm1856_vm1, %v7844_v62  ;;  %v3067_v62 = vld [vmem:[#allocation15] sm:$0xff] }
 0x431   : > { %7929 = vmatprep.mubr.msk.f32.mxu1 %vm1856_vm1, %v2396_v59  ;;  %v8332_v59 = vpack.c.bf16 %v3069_v3, %v3067_v62 }
 0x434   : > { %7930 = vmatmul.mubr.msk.f32.gmra.mrb[18].mxu1 %vm1856_vm1, %v7847_v47 }
 0x435   : > { %7932 = vmatprep.mubr.msk.f32.mxu1 %vm1856_vm1, %v2406_v17 }
 0x438   : > { %7933 = vmatmul.mubr.msk.f32.gmra.mrb[20].mxu1 %vm1856_vm1, %v7850_v7  ;;  %v3071_v7 = vld [vmem:[#allocation15 + $0x20] sm:$0xff] }
 0x439   : > { %7935 = vmatprep.mubr.msk.f32.mxu1 %vm1856_vm1, %v2416_v28  ;;  %v8336_v37 = vpack.c.bf16 %v3073_v10, %v3071_v7  ;;  %v3083_v7 = vld [vmem:[#allocation15 + $0x80] sm:$0xff]  ;;  %v3085_v10 = vld [vmem:[#allocation15 + $0x90] sm:$0xff] }
 0x43c   : > { %7936 = vmatmul.mubr.msk.f32.gmra.mrb[22].mxu1 %vm1856_vm1, %v7853_v19  ;;  %v3078_v19 = vld [vmem:[#allocation15 + $0x58] sm:$0xff] }
 0x43d   : > { %8054 = vmatprep.mubr.msk.f32.mxu1 %vm1856_vm1, %v10501_v14  ;;  %v8338_v27 = vpack.c.bf16 %v3078_v19, %v3076_v18  ;;  %v3087_v19 = vld [vmem:[#allocation15 + $0xa0] sm:$0xff] }
 0x503   : > { %v7928_v42 = vpop.f32.mrb[16].mxu1 }
 0x504   : > { %v2854_v48 = vmul.f32 %v7928_v42, %v7373_v38  ;;  %v2799_v51 = vpop.f32.mrb[17].mxu1 }
 0x505   : > { %v2853_v55 = vmul.f32 %v7373_v38, %v2799_v51  ;;  %v3082_v51 = vld [vmem:[#allocation15 + $0x78] sm:$0xff] }
 0x506   : > { %v2869_v58 = vadd.f32 %v7374_v45, %v2854_v48  ;;  %v3080_v48 = vld [vmem:[#allocation15 + $0x68] sm:$0xff] }
 0x507   : > { %v2868_v4 = vadd.f32 %v7374_v45, %v2853_v55  ;;  %v7931_v39 = vpop.f32.mrb[18].mxu1  ;;  %v8342_v43 = vpack.c.bf16 %v3082_v51, %v3080_v48  ;;  %v3097_v48 = vld [vmem:[#allocation15 + $0xf0] sm:$0xff] }
 0x508   : > { %v2856_v44 = vmul.f32 %v7931_v39, %v7373_v38  ;;  %v2809_v47 = vpop.f32.mrb[19].mxu1  ;;  %v2877_v60 = vmax.f32 %v2869_v58, 0.0 }
 0x509   : > { %v2876_v56 = vmax.f32 %v2868_v4, 0.0  ;;  %v2855_v57 = vmul.f32 %v7373_v38, %v2809_v47  ;;  %v8340_v4 = vpack.c.bf16 %v3077_v33, %v3075_v31  ;;  %v3081_v47 = vld [vmem:[#allocation15 + $0x70] sm:$0xff]  ;;  %v3096_v31 = vld [vmem:[#allocation15 + $0xe8] sm:$0xff]  ;;  %v3098_v33 = vld [vmem:[#allocation15 + $0xf8] sm:$0xff] }
 0x50a   : > { %v2871_v61 = vadd.f32 %v7374_v45, %v2856_v44  ;;  %v3079_v44 = vld [vmem:[#allocation15 + $0x60] sm:$0xff] }
 0x50b   : > { %v2870_v15 = vadd.f32 %v7374_v45, %v2855_v57  ;;  %v7934_v17 = vpop.f32.mrb[20].mxu1  ;;  %7954 = vmatprep.mubr.msk.f32.mxu0 %vm1856_vm1, %v2876_v56  ;;  %v3084_v57 = vld [vmem:[#allocation15 + $0x88] sm:$0xff] }
 0x50c   : > { %v2858_v21 = vmul.f32 %v7934_v17, %v7373_v38  ;;  %v2819_v28 = vpop.f32.mrb[21].mxu1  ;;  %7955 = vmatmul.mubr.msk.f32.vlgmr.msra.gmra.mrb[24].mxu0 %vm1856_vm1, %v2877_v60  ;;  %v2879_v23 = vmax.f32 %v2871_v61, 0.0  ;;  %v8344_v61 = vpack.c.bf16 %v3081_v47, %v3079_v44  ;;  %v3090_v17 = vld [vmem:[#allocation15 + $0xb8] sm:$0xff] }
 0x50d   : > { %v2878_v30 = vmax.f32 %v2870_v15, 0.0  ;;  %v2857_v32 = vmul.f32 %v7373_v38, %v2819_v28  ;;  %8333 = vmatpush1.bf16.msra.mxu0 %v8332_v59  ;;  %v3086_v59 = vld [vmem:[#allocation15 + $0x98] sm:$0xff]  ;;  %v3088_v15 = vld [vmem:[#allocation15 + $0xa8] sm:$0xff] }
 0x50e   : > { %v2873_v24 = vadd.f32 %v7374_v45, %v2858_v21  ;;  %8335 = vmatprep.subr.bf16.mxu0 %v8334_v5  ;;  %v8350_v18 = vpack.c.bf16 %v3090_v17, %v3088_v15  ;;  %v3089_v21 = vld [vmem:[#allocation15 + $0xb0] sm:$0xff]  ;;  %v7384_v47 = vld [vmem:[%s12330_s1] ss:$0 sm:$0xff]  ;;  %s12380_s1 = sld [smem:[#allocation58_spill]] }
 0x50f   : > { %v2872_v35 = vadd.f32 %v7374_v45, %v2857_v32  ;;  %v7937_v42 = vpop.f32.mrb[22].mxu1  ;;  %7957 = vmatprep.mubr.msk.f32.mxu0 %vm1856_vm1, %v2878_v30  ;;  %v8352_v28 = vpack.c.bf16 %v3089_v21, %v3087_v19  ;;  %v3092_v30 = vld [vmem:[#allocation15 + $0xc8] sm:$0xff]  ;;  %v3094_v32 = vld [vmem:[#allocation15 + $0xd8] sm:$0xff] }
 0x510   : > { %v2860_v55 = vmul.f32 %v7937_v42, %v7373_v38  ;;  %v2829_v58 = vpop.f32.mrb[23].mxu1  ;;  %7958 = vmatmul.mubr.msk.f32.gmra.mrb[26].mxu0 %vm1856_vm1, %v2879_v23  ;;  %v2881_v39 = vmax.f32 %v2873_v24, 0.0  ;;  %v3091_v23 = vld [vmem:[#allocation15 + $0xc0] sm:$0xff]  ;;  %v3093_v24 = vld [vmem:[#allocation15 + $0xd0] sm:$0xff] }
 0x511   : > { %v2880_v62 = vmax.f32 %v2872_v35, 0.0  ;;  %v2859_v3 = vmul.f32 %v7373_v38, %v2829_v58  ;;  %8337 = vmatpush1.bf16.msra.mxu0 %v8336_v37  ;;  %v8346_v38 = vpack.c.bf16 %v3086_v59, %v3084_v57  ;;  %v8354_v37 = vpack.c.bf16 %v3094_v32, %v3092_v30  ;;  %v3095_v42 = vld [vmem:[#allocation15 + $0xe0] sm:$0xff]  ;;  %v3269_v58 = vld [vmem:[#allocation11 + $0x8] sm:$0xff] }
 0x512   : > { %v2875_v41 = vadd.f32 %v7374_v45, %v2860_v55  ;;  %8339 = vmatprep.subr.bf16.mxu0 %v8338_v27  ;;  %v8356_v27 = vpack.c.bf16 %v3093_v24, %v3091_v23  ;;  %v8358_v35 = vpack.c.bf16 %v3098_v33, %v3096_v31  ;;  %v8360_v51 = vpack.c.bf16 %v3097_v48, %v3095_v42  ;;  %v3268_v55 = vld [vmem:[#allocation11] sm:$0xff]  ;;  %v3273_v42 = vld [vmem:[#allocation11 + $0x28] sm:$0xff] }
 0x513   : > { %v2874_v56 = vadd.f32 %v7374_v45, %v2859_v3  ;;  %7960 = vmatprep.mubr.msk.f32.mxu0 %vm1856_vm1, %v2880_v62  ;;  %v8348_v45 = vpack.c.bf16 %v3085_v10, %v3083_v7  ;;  %v8362_v62 = vpack.c.bf16 %v3269_v58, %v3268_v55  ;;  %v7321_v3 = vld [vmem:[%s12327_s0] ss:$0 sm:$0xff]  ;;  %s12353_s0 = sld [smem:[#allocation52_spill]] }
 0x514   : > { %7961 = vmatmul.mubr.msk.f32.gmra.mrb[28].mxu0 %vm1856_vm1, %v2881_v39  ;;  %v2883_v5 = vmax.f32 %v2875_v41, 0.0  ;;  %v1994_v39 = vmul.f32 %v10506_v16, %v7321_v3  ;;  %v7322_v41 = vld [vmem:[%s12329_s6] ss:$0 sm:$0xff]  ;;  %v1995_v7 = vmul.f32 %v7321_v3, %v10518_v29  ;;  %v1998_v19 = vmul.f32 %v10529_v36, %v7321_v3  ;;  %s12379_s6 = sld [smem:[#allocation55_spill]] }
 0x515   : > { %v2882_v60 = vmax.f32 %v2874_v56, 0.0  ;;  %8341 = vmatpush1.bf16.msra.mxu0 %v8340_v4  ;;  %v7383_v4 = vld [vmem:[%s12328_s15] ss:$0 sm:$0xff]  ;;  %v2000_v58 = vmul.f32 %v10545_v49, %v7321_v3  ;;  %s12378_s15 = sld [smem:[#allocation54_spill]] }
 0x516   : > { %8343 = vmatprep.subr.bf16.mxu0 %v8342_v43  ;;  %v1993_v43 = vmul.f32 %v7321_v3, %v10509_v20  ;;  %v3271_v20 = vld [vmem:[#allocation11 + $0x18] sm:$0xff]  ;;  %v2013_v36 = vadd.f32 %v7322_v41, %v1998_v19 }
 0x517   : > { %7963 = vmatprep.mubr.msk.f32.mxu0 %vm1856_vm1, %v2882_v60  ;;  %v2009_v60 = vadd.f32 %v7322_v41, %v1994_v39 }
 0x518   : > { %7964 = vmatmul.mubr.msk.f32.gmra.mrb[30].mxu0 %vm1856_vm1, %v2883_v5 }
 0x519   : > { %8345 = vmatpush1.bf16.msra.mxu0 %v8344_v61  ;;  %3163 = vmatprep.mubr.f32.mxu0 %v12227_v11  ;;  %v1996_v61 = vmul.f32 %v10515_v25, %v7321_v3  ;;  %v1997_v25 = vmul.f32 %v7321_v3, %v10532_v40 }
 0x51a   : > { %8347 = vmatprep.subr.bf16.mxu0 %v8346_v38  ;;  %v2008_v38 = vadd.f32 %v7322_v41, %v1993_v43  ;;  %v1999_v43 = vmul.f32 %v7321_v3, %v10548_v53 }
 0x51b   : > { %v2011_v30 = vadd.f32 %v7322_v41, %v1996_v61  ;;  %v2012_v40 = vadd.f32 %v7322_v41, %v1997_v25  ;;  %v3279_v25 = vld [vmem:[#allocation11 + $0x58] sm:$0xff] }
 0x51c   : > { %v2014_v53 = vadd.f32 %v7322_v41, %v1999_v43 }
 0x51d   : > { %8349 = vmatpush1.bf16.msra.mxu0 %v8348_v45 }
 0x51e   : > { %8351 = vmatprep.subr.bf16.mxu0 %v8350_v18  ;;  %v3270_v18 = vld [vmem:[#allocation11 + $0x10] sm:$0xff] }
 0x521   : > { %8353 = vmatpush1.bf16.msra.mxu0 %v8352_v28 }
 0x522   : > { %8355 = vmatprep.subr.bf16.mxu0 %v8354_v37  ;;  %v2010_v37 = vadd.f32 %v7322_v41, %v1995_v7 }
 0x525   : > { %8357 = vmatpush1.bf16.msra.mxu0 %v8356_v27  ;;  %v8366_v27 = vpack.c.bf16 %v3271_v20, %v3270_v18  ;;  %v3277_v18 = vld [vmem:[#allocation11 + $0x48] sm:$0xff] }
 0x526   : > { %8359 = vmatprep.subr.bf16.mxu0 %v8358_v35  ;;  %v3272_v35 = vld [vmem:[#allocation11 + $0x20] sm:$0xff] }
 0x529   : > { %8361 = vmatpush1.bf16.msra.mxu0 %v8360_v51 }
 0x52a   : > { %8363 = vmatprep.subr.bf16.mxu0 %v8362_v62 }
 0x5df   : > { %v7956_v44 = vpop.f32.mrb[24].mxu0 }
 0x5e0   : > { %v3029_v56 = vmul.f32 %v7956_v44, %v7383_v4  ;;  %v2982_v57 = vpop.f32.mrb[25].mxu0 }
 0x5e1   : > { %v3028_v59 = vmul.f32 %v7383_v4, %v2982_v57 }
 0x5e2   : > { %v3044_v5 = vadd.f32 %v7384_v47, %v3029_v56 }
 0x5e3   : > { %v3043_v10 = vadd.f32 %v7384_v47, %v3028_v59  ;;  %v7959_v15 = vpop.f32.mrb[26].mxu0  ;;  %v8370_v59 = vpack.c.bf16 %v3273_v42, %v3272_v35 }
 0x5e4   : > { %v3031_v17 = vmul.f32 %v7959_v15, %v7383_v4  ;;  %v2992_v45 = vpop.f32.mrb[27].mxu0  ;;  %v10725_v16 = vadd.f32 %v3044_v5, %v2009_v60  ;;  %v3274_v5 = vld [vmem:[#allocation11 + $0x30] sm:$0xff]  ;;  %v2015_v15 = vadd.f32 %v7322_v41, %v2000_v58 }
 0x5e5   : > { %v10728_v21 = vadd.f32 %v3043_v10, %v2008_v38  ;;  %v3030_v28 = vmul.f32 %v7383_v4, %v2992_v45  ;;  %v3275_v38 = vld [vmem:[#allocation11 + $0x38] sm:$0xff] }
 0x5e6   : > { %v3046_v32 = vadd.f32 %v7384_v47, %v3031_v17  ;;  %v3060_v57 = vmax.f32 %v10725_v16, 0.0  ;;  %v8374_v45 = vpack.c.bf16 %v3275_v38, %v3274_v5  ;;  %v3276_v16 = vld [vmem:[#allocation11 + $0x40] sm:$0xff]  ;;  %v7385_v5 = vld [vmem:[%s12331_s27] ss:$0 sm:$0xff]  ;;  %s12381_s27 = sld [smem:[#allocation56_spill]] }
 0x5e7   : > { %v3059_v29 = vmax.f32 %v10728_v21, 0.0  ;;  %v3045_v23 = vadd.f32 %v7384_v47, %v3030_v28  ;;  %v7962_v24 = vpop.f32.mrb[28].mxu0  ;;  %v8378_v28 = vpack.c.bf16 %v3277_v18, %v3276_v16 }
 0x5e8   : > { %v3033_v31 = vmul.f32 %v7962_v24, %v7383_v4  ;;  %v3002_v33 = vpop.f32.mrb[29].mxu0  ;;  %v10732_v48 = vadd.f32 %v3046_v32, %v2011_v30  ;;  %v3278_v30 = vld [vmem:[#allocation11 + $0x50] sm:$0xff]  ;;  %v3280_v32 = vld [vmem:[#allocation11 + $0x60] sm:$0xff] }
 0x5e9   : > { %v3032_v51 = vmul.f32 %v7383_v4, %v3002_v33  ;;  %3164 = vmatmul.mubr.f32.vlgmr.msra.gmra.mrb[32].mxu0 %v3059_v29  ;;  %v10736_v55 = vadd.f32 %v3045_v23, %v2010_v37  ;;  %v3281_v37 = vld [vmem:[#allocation11 + $0x68] sm:$0xff] }
 0x5ea   : > { %v3048_v39 = vadd.f32 %v7384_v47, %v3033_v31  ;;  %8365 = vmatpush3.bf16.msra.mxu0 %v8362_v62  ;;  %3169 = vmatprep.mubr.f32.mxu0 %v12227_v11  ;;  %v8386_v24 = vpack.c.bf16 %v3281_v37, %v3280_v32  ;;  %v3283_v31 = vld [vmem:[#allocation11 + $0x78] sm:$0xff] }
 0x5eb   : > { %v3047_v44 = vadd.f32 %v7384_v47, %v3032_v51  ;;  %v7965_v56 = vpop.f32.mrb[30].mxu0  ;;  %8367 = vmatprep.subr.bf16.mxu0 %v8366_v27  ;;  %v3061_v17 = vmax.f32 %v10736_v55, 0.0 }
 0x5ec   : > { %v3035_v60 = vmul.f32 %v7965_v56, %v7383_v4  ;;  %v3012_v61 = vpop.f32.mrb[31].mxu0  ;;  %v3056_v7 = vadd.f32 %v3048_v39, %v2013_v36 }
 0x5ed   : > { %v3034_v10 = vmul.f32 %v7383_v4, %v3012_v61  ;;  %3170 = vmatmul.mubr.f32.gmra.mrb[34].mxu0 %v3060_v57  ;;  %v3055_v49 = vadd.f32 %v3047_v44, %v2012_v40  ;;  %v3062_v4 = vmax.f32 %v10732_v48, 0.0 }
 0x5ee   : > { %v3050_v62 = vadd.f32 %v7384_v47, %v3035_v60  ;;  %8369 = vmatpush3.bf16.msra.mxu0 %v8366_v27  ;;  %3175 = vmatprep.mubr.f32.mxu0 %v12227_v11  ;;  %v3064_v23 = vmax.f32 %v3056_v7, 0.0  ;;  %v3282_v27 = vld [vmem:[#allocation11 + $0x70] sm:$0xff]  ;;  %v7386_v7 = vld [vmem:[%s12332_s12] ss:$0 sm:$0xff]  ;;  %s12382_s12 = sld [smem:[#allocation57_spill]] }
 0x5ef   : > { %v3049_v3 = vadd.f32 %v7384_v47, %v3034_v10  ;;  %8371 = vmatprep.subr.bf16.mxu0 %v8370_v59  ;;  %v3063_v41 = vmax.f32 %v3055_v49, 0.0  ;;  %v8382_v47 = vpack.c.bf16 %v3279_v25, %v3278_v30  ;;  %v8390_v35 = vpack.c.bf16 %v3283_v31, %v3282_v27 }
 0x5f0   : > { %v3058_v20 = vadd.f32 %v3050_v62, %v2015_v15 }
 0x5f1   : > { %3176 = vmatmul.mubr.f32.gmra.mrb[36].mxu0 %v3061_v17  ;;  %v3057_v19 = vadd.f32 %v3049_v3, %v2014_v53 }
 0x5f2   : > { %8373 = vmatpush3.bf16.msra.mxu0 %v8370_v59  ;;  %3181 = vmatprep.mubr.f32.mxu0 %v12227_v11  ;;  %v3066_v42 = vmax.f32 %v3058_v20, 0.0 }
 0x5f3   : > { %8375 = vmatprep.subr.bf16.mxu0 %v8374_v45  ;;  %v3065_v33 = vmax.f32 %v3057_v19, 0.0 }
 0x5f5   : > { %3182 = vmatmul.mubr.f32.gmra.mrb[38].mxu0 %v3062_v4 }
 0x5f6   : > { %8377 = vmatpush3.bf16.msra.mxu0 %v8374_v45  ;;  %3187 = vmatprep.mubr.f32.mxu0 %v12227_v11 }
 0x5f7   : > { %8379 = vmatprep.subr.bf16.mxu0 %v8378_v28 }
 0x5f9   : > { %3188 = vmatmul.mubr.f32.gmra.mrb[40].mxu0 %v3063_v41 }
 0x5fa   : > { %8381 = vmatpush3.bf16.msra.mxu0 %v8378_v28  ;;  %3193 = vmatprep.mubr.f32.mxu0 %v12227_v11 }
 0x5fb   : > { %8383 = vmatprep.subr.bf16.mxu0 %v8382_v47 }
 0x5fd   : > { %3194 = vmatmul.mubr.f32.gmra.mrb[42].mxu0 %v3064_v23 }
 0x5fe   : > { %8385 = vmatpush3.bf16.msra.mxu0 %v8382_v47  ;;  %3199 = vmatprep.mubr.f32.mxu0 %v12227_v11 }
 0x5ff   : > { %8387 = vmatprep.subr.bf16.mxu0 %v8386_v24 }
 0x601   : > { %3200 = vmatmul.mubr.f32.gmra.mrb[44].mxu0 %v3065_v33 }
 0x602   : > { %8389 = vmatpush3.bf16.msra.mxu0 %v8386_v24  ;;  %3205 = vmatprep.mubr.f32.mxu0 %v12227_v11 }
 0x603   : > { %8391 = vmatprep.subr.bf16.mxu0 %v8390_v35 }
 0x605   : > { %3206 = vmatmul.mubr.f32.gmra.mrb[46].mxu0 %v3066_v42 }
 0x606   : > { %8393 = vmatpush3.bf16.msra.mxu0 %v8390_v35  ;;  %7998 = vmatprep.mubr.f32.mxu0 %v3059_v29 }
 0x609   : > { %7999 = vmatmul.mubr.f32.vlgmr.msra.gmra.mrb[48].mxu0 %v3060_v57 }
 0x60a   : > { %8001 = vmatprep.mubr.f32.mxu0 %v3061_v17 }
 0x60d   : > { %8002 = vmatmul.mubr.f32.gmra.mrb[50].mxu0 %v3062_v4 }
 0x60e   : > { %8004 = vmatprep.mubr.f32.mxu0 %v3063_v41 }
 0x611   : > { %8005 = vmatmul.mubr.f32.gmra.mrb[52].mxu0 %v3064_v23 }
 0x612   : > { %8007 = vmatprep.mubr.f32.mxu0 %v3065_v33 }
 0x615   : > { %8008 = vmatmul.mubr.f32.gmra.mrb[54].mxu0 %v3066_v42 }
 0x616   : > { %8026 = vmatprep.mubr.msk.f32.mxu0 %vm1856_vm1, %v10494_v12 }
 0x6bc   : > { %v10754_v48 = vpop.f32.mrb[32].mxu0 }
 0x6bd   : > { %v10756_v36 = vpop.f32.mrb[33].mxu0 }
 0x6c0   : > { %v10758_v51 = vpop.f32.mrb[34].mxu0 }
 0x6c1   : > { %v10760_v21 = vpop.f32.mrb[35].mxu0 }
 0x6c4   : > { %v10762_v29 = vpop.f32.mrb[36].mxu0 }
 0x6c5   : > { %v10764_v55 = vpop.f32.mrb[37].mxu0 }
 0x6c8   : > { %v10766_v40 = vpop.f32.mrb[38].mxu0 }
 0x6c9   : > { %v10768_v58 = vpop.f32.mrb[39].mxu0 }
 0x6cc   : > { %v10770_v39 = vpop.f32.mrb[40].mxu0 }
 0x6cd   : > { %v10772_v43 = vpop.f32.mrb[41].mxu0 }
 0x6d0   : > { %v10774_v44 = vpop.f32.mrb[42].mxu0 }
 0x6d1   : > { %v10776_v56 = vpop.f32.mrb[43].mxu0 }
 0x6d4   : > { %v10778_v57 = vpop.f32.mrb[44].mxu0 }
 0x6d5   : > { %v10780_v59 = vpop.f32.mrb[45].mxu0 }
 0x6d8   : > { %v10782_v60 = vpop.f32.mrb[46].mxu0 }
 0x6d9   : > { %v10784_v61 = vpop.f32.mrb[47].mxu0 }
 0x6dc   : > { %v8000_v38 = vpop.f32.mrb[48].mxu0 }
 0x6dd   : > { %v3397_v10 = vmul.f32 %v8000_v38, %v7385_v5  ;;  %v3350_v49 = vpop.f32.mrb[49].mxu0 }
 0x6de   : > { %v3396_v15 = vmul.f32 %v7385_v5, %v3350_v49 }
 0x6df   : > { %v10788_v62 = vadd.f32 %v7386_v7, %v3397_v10 }
 0x6e0   : > { %v10790_v53 = vadd.f32 %v7386_v7, %v3396_v15  ;;  %v8003_v3 = vpop.f32.mrb[50].mxu0 }
 0x6e1   : > { %v3420_v17 = vmax.f32 %v10788_v62, 0.0  ;;  %v3399_v45 = vmul.f32 %v8003_v3, %v7385_v5  ;;  %v3360_v16 = vpop.f32.mrb[51].mxu0  ;;  %v3646_v62 = vld [vmem:[#allocation12 + $0x48] sm:$0xff] }
 0x6e2   : > { %v3419_v18 = vmax.f32 %v10790_v53, 0.0  ;;  %v3398_v20 = vmul.f32 %v7385_v5, %v3360_v16  ;;  %v3654_v16 = vld [vmem:[#allocation12 + $0x80] sm:$0xff] }
 0x6e3   : > { %v10794_v19 = vadd.f32 %v7386_v7, %v3399_v45 }
 0x6e4   : > { %v8394_v4 = vpack.c.bf16 %v3420_v17, %v3419_v18  ;;  %v10800_v28 = vadd.f32 %v7386_v7, %v3398_v20  ;;  %v8006_v30 = vpop.f32.mrb[52].mxu0  ;;  %v3655_v20 = vld [vmem:[#allocation12 + $0x88] sm:$0xff] }
 0x6e5   : > { %v3422_v25 = vmax.f32 %v10794_v19, 0.0  ;;  %v3401_v41 = vmul.f32 %v8006_v30, %v7385_v5  ;;  %v3370_v47 = vpop.f32.mrb[53].mxu0  ;;  %v8426_v30 = vpack.c.bf16 %v3655_v20, %v3654_v16  ;;  %v3663_v16 = vld [vmem:[#allocation12 + $0xc8] sm:$0xff]  ;;  %v3648_v19 = vld [vmem:[#allocation12 + $0x58] sm:$0xff] }
 0x6e6   : > { %v3421_v32 = vmax.f32 %v10800_v28, 0.0  ;;  %v3400_v37 = vmul.f32 %v7385_v5, %v3370_v47  ;;  %8395 = vmatprep.subr.bf16.mxu0 %v8394_v4  ;;  %8411 = vmatprep.subr.bf16.mxu1 %v8394_v4  ;;  %v3657_v47 = vld [vmem:[#allocation12 + $0x98] sm:$0xff]  ;;  %v3647_v28 = vld [vmem:[#allocation12 + $0x50] sm:$0xff] }
 0x6e7   : > { %v10804_v23 = vadd.f32 %v7386_v7, %v3401_v41  ;;  %8397 = vmatpush3.bf16.msra.mxu0 %v8394_v4  ;;  %8413 = vmatpush3.bf16.msra.mxu1 %v8394_v4  ;;  %v3656_v41 = vld [vmem:[#allocation12 + $0x90] sm:$0xff] }
 0x6e8   : > { %v8398_v24 = vpack.c.bf16 %v3422_v25, %v3421_v32  ;;  %v10810_v27 = vadd.f32 %v7386_v7, %v3400_v37  ;;  %v8009_v31 = vpop.f32.mrb[54].mxu0  ;;  %v3658_v37 = vld [vmem:[#allocation12 + $0xa0] sm:$0xff] }
 0x6e9   : > { %v3424_v33 = vmax.f32 %v10804_v23, 0.0  ;;  %v3403_v35 = vmul.f32 %v8009_v31, %v7385_v5  ;;  %v3380_v42 = vpop.f32.mrb[55].mxu0 }
 0x6ea   : > { %v3423_v38 = vmax.f32 %v10810_v27, 0.0  ;;  %v3402_v10 = vmul.f32 %v7385_v5, %v3380_v42  ;;  %8399 = vmatprep.subr.bf16.mxu0 %v8398_v24  ;;  %8415 = vmatprep.subr.bf16.mxu1 %v8398_v24  ;;  %v3661_v42 = vld [vmem:[#allocation12 + $0xb8] sm:$0xff]  ;;  %v3650_v27 = vld [vmem:[#allocation12 + $0x68] sm:$0xff] }
 0x6eb   : > { %v10814_v49 = vadd.f32 %v7386_v7, %v3403_v35  ;;  %8401 = vmatpush3.bf16.msra.mxu0 %v8398_v24  ;;  %8417 = vmatpush3.bf16.msra.mxu1 %v8398_v24  ;;  %v3659_v24 = vld [vmem:[#allocation12 + $0xa8] sm:$0xff]  ;;  %v3660_v35 = vld [vmem:[#allocation12 + $0xb0] sm:$0xff] }
 0x6ec   : > { %v8402_v15 = vpack.c.bf16 %v3424_v33, %v3423_v38  ;;  %v10820_v3 = vadd.f32 %v7386_v7, %v3402_v10  ;;  %v8430_v7 = vpack.c.bf16 %v3657_v47, %v3656_v41  ;;  %v8434_v31 = vpack.c.bf16 %v3659_v24, %v3658_v37  ;;  %v3666_v47 = vld [vmem:[#allocation12 + $0xe0] sm:$0xff]  ;;  %v3668_v24 = vld [vmem:[#allocation12 + $0xf0] sm:$0xff] }
 0x6ed   : > { %v3426_v45 = vmax.f32 %v10814_v49, 0.0  ;;  %v8438_v10 = vpack.c.bf16 %v3661_v42, %v3660_v35  ;;  %v3637_v42 = vld [vmem:[#allocation12] sm:$0xff] }
 0x6ee   : > { %v3425_v4 = vmax.f32 %v10820_v3, 0.0  ;;  %8403 = vmatprep.subr.bf16.mxu0 %v8402_v15  ;;  %8419 = vmatprep.subr.bf16.mxu1 %v8402_v15 }
 0x6ef   : > { %8405 = vmatpush3.bf16.msra.mxu0 %v8402_v15  ;;  %8421 = vmatpush3.bf16.msra.mxu1 %v8402_v15  ;;  %v3662_v15 = vld [vmem:[#allocation12 + $0xc0] sm:$0xff] }
 0x6f0   : > { %v8406_v5 = vpack.c.bf16 %v3426_v45, %v3425_v4  ;;  %v8442_v20 = vpack.c.bf16 %v3663_v16, %v3662_v15  ;;  %v3638_v15 = vld [vmem:[#allocation12 + $0x8] sm:$0xff] }
 0x6f1   : > { %v8458_v53 = vpack.c.bf16 %v3638_v15, %v3637_v42  ;;  %v4050_v15 = vld [vmem:[#allocation14 + $0x10] sm:$0xff] }
 0x6f2   : > { %8407 = vmatprep.subr.bf16.mxu0 %v8406_v5  ;;  %8423 = vmatprep.subr.bf16.mxu1 %v8406_v5 }
 0x6f3   : > { %8409 = vmatpush3.bf16.msra.mxu0 %v8406_v5  ;;  %8425 = vmatpush3.bf16.msra.mxu1 %v8406_v5  ;;  %v3664_v5 = vld [vmem:[#allocation12 + $0xd0] sm:$0xff] }
 0x6f4   : > { %8427 = vmatprep.subr.bf16.mxu0 %v8426_v30 }
 0x6f6   : > { %8027 = vmatmul.mubr.msk.f32.vlgmr.msra.gmra.mrb[56].mxu0 %vm1856_vm1, %v10575_v22  ;;  %8055 = vmatmul.mubr.msk.f32.vlgmr.msra.gmra.mrb[24].mxu1 %vm1856_vm1, %v10583_v34 }
 0x6f7   : > { %8429 = vmatpush3.bf16.msra.mxu0 %v8426_v30  ;;  %8029 = vmatprep.mubr.msk.f32.mxu0 %vm1856_vm1, %v10578_v26  ;;  %v3665_v30 = vld [vmem:[#allocation12 + $0xd8] sm:$0xff] }
 0x6f8   : > { %8431 = vmatprep.subr.bf16.mxu0 %v8430_v7  ;;  %8057 = vmatprep.mubr.msk.f32.mxu1 %vm1856_vm1, %v10591_v46  ;;  %v8446_v41 = vpack.c.bf16 %v3665_v30, %v3664_v5  ;;  %v3641_v5 = vld [vmem:[#allocation12 + $0x20] sm:$0xff]  ;;  %v3642_v30 = vld [vmem:[#allocation12 + $0x28] sm:$0xff] }
 0x6fa   : > { %8030 = vmatmul.mubr.msk.f32.gmra.mrb[58].mxu0 %vm1856_vm1, %v10603_v50  ;;  %8058 = vmatmul.mubr.msk.f32.gmra.mrb[26].mxu1 %vm1856_vm1, %v10610_v54 }
 0x6fb   : > { %8433 = vmatpush3.bf16.msra.mxu0 %v8430_v7  ;;  %8032 = vmatprep.mubr.msk.f32.mxu0 %vm1856_vm1, %v10606_v52  ;;  %v3667_v7 = vld [vmem:[#allocation12 + $0xe8] sm:$0xff] }
 0x6fc   : > { %8435 = vmatprep.subr.bf16.mxu0 %v8434_v31  ;;  %8060 = vmatprep.mubr.msk.f32.mxu1 %vm1856_vm1, %v10619_v63  ;;  %v8450_v37 = vpack.c.bf16 %v3667_v7, %v3666_v47  ;;  %v3644_v47 = vld [vmem:[#allocation12 + $0x38] sm:$0xff] }
 0x6fe   : > { %8033 = vmatmul.mubr.msk.f32.gmra.mrb[60].mxu0 %vm1856_vm1, %v10631_v0  ;;  %8061 = vmatmul.mubr.msk.f32.gmra.mrb[28].mxu1 %vm1856_vm1, %v10634_v1 }
 0x6ff   : > { %8437 = vmatpush3.bf16.msra.mxu0 %v8434_v31  ;;  %8035 = vmatprep.mubr.msk.f32.mxu0 %vm1856_vm1, %v10637_v2  ;;  %v3669_v31 = vld [vmem:[#allocation12 + $0xf8] sm:$0xff] }
 0x700   : > { %8439 = vmatprep.subr.bf16.mxu0 %v8438_v10  ;;  %8063 = vmatprep.mubr.msk.f32.mxu1 %vm1856_vm1, %v10644_v6  ;;  %v8454_v35 = vpack.c.bf16 %v3669_v31, %v3668_v24  ;;  %v3882_v24 = vld [vmem:[#allocation12 + $0x108] sm:$0xff]  ;;  %v4051_v31 = vld [vmem:[#allocation14 + $0x18] sm:$0xff] }
 0x702   : > { %8036 = vmatmul.mubr.msk.f32.gmra.mrb[62].mxu0 %vm1856_vm1, %v10653_v13  ;;  %8064 = vmatmul.mubr.msk.f32.gmra.mrb[30].mxu1 %vm1856_vm1, %v10656_v9 }
 0x703   : > { %8441 = vmatpush3.bf16.msra.mxu0 %v8438_v10  ;;  %8098 = vmatprep.mubr.f32.mxu0 %v3419_v18  ;;  %v3639_v18 = vld [vmem:[#allocation12 + $0x10] sm:$0xff]  ;;  %v3640_v10 = vld [vmem:[#allocation12 + $0x18] sm:$0xff] }
 0x704   : > { %8443 = vmatprep.subr.bf16.mxu0 %v8442_v20  ;;  %4144 = vmatprep.mubr.f32.mxu1 %v12227_v11  ;;  %v8462_v16 = vpack.c.bf16 %v3640_v10, %v3639_v18  ;;  %v4055_v18 = vld [vmem:[#allocation14 + $0x38] sm:$0xff] }
 0x707   : > { %8445 = vmatpush3.bf16.msra.mxu0 %v8442_v20  ;;  %v8466_v20 = vpack.c.bf16 %v3642_v30, %v3641_v5  ;;  %v4052_v5 = vld [vmem:[#allocation14 + $0x20] sm:$0xff]  ;;  %v4054_v30 = vld [vmem:[#allocation14 + $0x30] sm:$0xff] }
 0x708   : > { %8447 = vmatprep.subr.bf16.mxu0 %v8446_v41 }
 0x70b   : > { %8449 = vmatpush3.bf16.msra.mxu0 %v8446_v41  ;;  %v3643_v41 = vld [vmem:[#allocation12 + $0x30] sm:$0xff] }
 0x70c   : > { %8451 = vmatprep.subr.bf16.mxu0 %v8450_v37  ;;  %v8470_v7 = vpack.c.bf16 %v3644_v47, %v3643_v41  ;;  %v4059_v41 = vld [vmem:[#allocation14 + $0x58] sm:$0xff]  ;;  %v8528_v47 = vpack.c.bf16 %v4054_v30, %v4052_v5 }
 0x70f   : > { %8453 = vmatpush3.bf16.msra.mxu0 %v8450_v37  ;;  %v3645_v37 = vld [vmem:[#allocation12 + $0x40] sm:$0xff] }
 0x710   : > { %8455 = vmatprep.subr.bf16.mxu0 %v8454_v35 }
 0x713   : > { %8457 = vmatpush3.bf16.msra.mxu0 %v8454_v35  ;;  %v4048_v35 = vld [vmem:[#allocation14] sm:$0xff] }
 0x714   : > { %8459 = vmatprep.subr.bf16.mxu0 %v8458_v53  ;;  %v8524_v10 = vpack.c.bf16 %v4050_v15, %v4048_v35  ;;  %v4068_v15 = vld [vmem:[#allocation14 + $0xa0] sm:$0xff] }
 0x716   : > { %8099 = vmatmul.mubr.f32.vlgmr.msra.gmra.mrb[64].mxu0 %v3420_v17  ;;  %v8474_v17 = vpack.c.bf16 %v3646_v62, %v3645_v37  ;;  %v4056_v37 = vld [vmem:[#allocation14 + $0x40] sm:$0xff]  ;;  %v4058_v62 = vld [vmem:[#allocation14 + $0x50] sm:$0xff] }
 0x717   : > { %8101 = vmatprep.mubr.f32.mxu0 %v3421_v32  ;;  %8461 = vmatpush3.bf16.msra.mxu0 %v8458_v53  ;;  %v3649_v32 = vld [vmem:[#allocation12 + $0x60] sm:$0xff]  ;;  %v4053_v53 = vld [vmem:[#allocation14 + $0x28] sm:$0xff] }
 0x718   : > { %8463 = vmatprep.subr.bf16.mxu0 %v8462_v16  ;;  %v8482_v23 = vpack.c.bf16 %v3650_v27, %v3649_v32  ;;  %v4060_v32 = vld [vmem:[#allocation14 + $0x60] sm:$0xff]  ;;  %v4062_v27 = vld [vmem:[#allocation14 + $0x70] sm:$0xff] }
 0x71a   : > { %8102 = vmatmul.mubr.f32.gmra.mrb[66].mxu0 %v3422_v25  ;;  %v8478_v25 = vpack.c.bf16 %v3648_v19, %v3647_v28  ;;  %v4063_v28 = vld [vmem:[#allocation14 + $0x78] sm:$0xff]  ;;  %v8532_v19 = vpack.c.bf16 %v4058_v62, %v4056_v37  ;;  %v3886_v37 = vld [vmem:[#allocation12 + $0x128] sm:$0xff] }
 0x71b   : > { %8104 = vmatprep.mubr.f32.mxu0 %v3423_v38  ;;  %8465 = vmatpush3.bf16.msra.mxu0 %v8462_v16  ;;  %v3652_v38 = vld [vmem:[#allocation12 + $0x78] sm:$0xff]  ;;  %v8526_v16 = vpack.c.bf16 %v4055_v18, %v4053_v53  ;;  %v4070_v53 = vld [vmem:[#allocation14 + $0xb0] sm:$0xff] }
 0x71c   : > { %8467 = vmatprep.subr.bf16.mxu0 %v8466_v20  ;;  %v8544_v18 = vpack.c.bf16 %v4070_v53, %v4068_v15  ;;  %v3891_v53 = vld [vmem:[#allocation12 + $0x150] sm:$0xff] }
 0x71e   : > { %8105 = vmatmul.mubr.f32.gmra.mrb[68].mxu0 %v3424_v33  ;;  %v3651_v33 = vld [vmem:[#allocation12 + $0x70] sm:$0xff] }
 0x71f   : > { %8107 = vmatprep.mubr.f32.mxu0 %v3425_v4  ;;  %8469 = vmatpush3.bf16.msra.mxu0 %v8466_v20  ;;  %v8486_v3 = vpack.c.bf16 %v3652_v38, %v3651_v33  ;;  %v3881_v4 = vld [vmem:[#allocation12 + $0x100] sm:$0xff]  ;;  %v4057_v20 = vld [vmem:[#allocation14 + $0x48] sm:$0xff]  ;;  %v4067_v33 = vld [vmem:[#allocation14 + $0x98] sm:$0xff]  ;;  %v8536_v38 = vpack.c.bf16 %v4062_v27, %v4060_v32 }
 0x720   : > { %8471 = vmatprep.subr.bf16.mxu0 %v8470_v7  ;;  %v8490_v49 = vpack.c.bf16 %v3882_v24, %v3881_v4  ;;  %v4064_v4 = vld [vmem:[#allocation14 + $0x80] sm:$0xff]  ;;  %v4066_v24 = vld [vmem:[#allocation14 + $0x90] sm:$0xff]  ;;  %v3888_v27 = vld [vmem:[#allocation12 + $0x138] sm:$0xff] }
 0x721   : > { %v8540_v35 = vpack.c.bf16 %v4066_v24, %v4064_v4  ;;  %v3887_v32 = vld [vmem:[#allocation12 + $0x130] sm:$0xff]  ;;  %v3889_v24 = vld [vmem:[#allocation12 + $0x140] sm:$0xff] }
 0x722   : > { %8108 = vmatmul.mubr.f32.gmra.mrb[70].mxu0 %v3426_v45  ;;  %v4049_v45 = vld [vmem:[#allocation14 + $0x8] sm:$0xff] }
 0x723   : > { %8473 = vmatpush3.bf16.msra.mxu0 %v8470_v7  ;;  %v8522_v42 = vpack.c.bf16 %v4051_v31, %v4049_v45  ;;  %v8530_v7 = vpack.c.bf16 %v4059_v41, %v4057_v20  ;;  %v4069_v45 = vld [vmem:[#allocation14 + $0xa8] sm:$0xff]  ;;  %v4071_v31 = vld [vmem:[#allocation14 + $0xb8] sm:$0xff] }
 0x724   : > { %8475 = vmatprep.subr.bf16.mxu0 %v8474_v17 }
 0x725   : > { %8523 = vmatprep.subr.bf16.mxu1 %v8522_v42  ;;  %v8542_v42 = vpack.c.bf16 %v4071_v31, %v4069_v45  ;;  %v3890_v45 = vld [vmem:[#allocation12 + $0x148] sm:$0xff] }
 0x726   : > { %8525 = vmatpush1.bf16.msra.mxu1 %v8524_v10  ;;  %v3883_v10 = vld [vmem:[#allocation12 + $0x110] sm:$0xff] }
 0x727   : > { %8477 = vmatpush3.bf16.msra.mxu0 %v8474_v17  ;;  %8527 = vmatprep.subr.bf16.mxu1 %v8526_v16  ;;  %v4061_v17 = vld [vmem:[#allocation14 + $0x68] sm:$0xff]  ;;  %v3884_v16 = vld [vmem:[#allocation12 + $0x118] sm:$0xff] }
 0x728   : > { %8479 = vmatprep.subr.bf16.mxu0 %v8478_v25  ;;  %v8494_v41 = vpack.c.bf16 %v3884_v16, %v3883_v10  ;;  %v3893_v16 = vld [vmem:[#allocation12 + $0x160] sm:$0xff] }
 0x72a   : > { %8529 = vmatpush1.bf16.msra.mxu1 %v8528_v47 }
 0x72b   : > { %8481 = vmatpush3.bf16.msra.mxu0 %v8478_v25  ;;  %8531 = vmatprep.subr.bf16.mxu1 %v8530_v7  ;;  %v8534_v25 = vpack.c.bf16 %v4063_v28, %v4061_v17  ;;  %v3885_v7 = vld [vmem:[#allocation12 + $0x120] sm:$0xff] }
 0x72c   : > { %8483 = vmatprep.subr.bf16.mxu0 %v8482_v23  ;;  %v8498_v28 = vpack.c.bf16 %v3886_v37, %v3885_v7  ;;  %v3896_v7 = vld [vmem:[#allocation12 + $0x178] sm:$0xff] }
 0x72e   : > { %8533 = vmatpush1.bf16.msra.mxu1 %v8532_v19 }
 0x72f   : > { %8485 = vmatpush3.bf16.msra.mxu0 %v8482_v23  ;;  %v4065_v23 = vld [vmem:[#allocation14 + $0x88] sm:$0xff]  ;;  %8535 = vmatprep.subr.bf16.mxu1 %v8534_v25 }
 0x730   : > { %8487 = vmatprep.subr.bf16.mxu0 %v8486_v3 }
 0x732   : > { %8537 = vmatpush1.bf16.msra.mxu1 %v8536_v38  ;;  %v8502_v38 = vpack.c.bf16 %v3888_v27, %v3887_v32  ;;  %v4074_v32 = vld [vmem:[#allocation14 + $0xd0] sm:$0xff] }
 0x733   : > { %8489 = vmatpush3.bf16.msra.mxu0 %v8486_v3  ;;  %v8538_v3 = vpack.c.bf16 %v4067_v33, %v4065_v23 }
 0x734   : > { %8491 = vmatprep.subr.bf16.mxu0 %v8490_v49 }
 0x735   : > { %8539 = vmatprep.subr.bf16.mxu1 %v8538_v3 }
 0x736   : > { %8541 = vmatpush1.bf16.msra.mxu1 %v8540_v35  ;;  %v8506_v35 = vpack.c.bf16 %v3890_v45, %v3889_v24  ;;  %v4076_v24 = vld [vmem:[#allocation14 + $0xe0] sm:$0xff]  ;;  %v4078_v45 = vld [vmem:[#allocation14 + $0xf0] sm:$0xff] }
 0x737   : > { %8543 = vmatprep.subr.bf16.mxu1 %v8542_v42 }
 0x73a   : > { %8545 = vmatpush1.bf16.msra.mxu1 %v8544_v18  ;;  %v3892_v18 = vld [vmem:[#allocation12 + $0x158] sm:$0xff] }
 0x73b   : > { %v8510_v10 = vpack.c.bf16 %v3892_v18, %v3891_v53  ;;  %v4292_v53 = vld [vmem:[#allocation20 + $0x58] sm:$0xff] }
 0x73c   : > { %v4296_v18 = vld [vmem:[#allocation20 + $0x78] sm:$0xff] }
 0x7c9   : > { %v8028_v5 = vpop.f32.mrb[56].mxu0  ;;  %v8056_v30 = vpop.f32.mrb[24].mxu1 }
 0x7ca   : > { %v3493_v20 = vpop.f32.mrb[57].mxu0  ;;  %v3598_v47 = vpop.f32.mrb[25].mxu1 }
 0x7cb   : > { %8142 = vmatprep.mubr.f32.mxu0 %v3493_v20 }
 0x7cc   : > { %8143 = vmatmul.mubr.f32.vlgmr.msra.gmra.mrb[64].mxu0 %v8028_v5  ;;  %v3894_v5 = vld [vmem:[#allocation12 + $0x168] sm:$0xff] }
 0x7cd   : > { %8493 = vmatpush3.bf16.msra.mxu0 %v8490_v49  ;;  %v8031_v62 = vpop.f32.mrb[58].mxu0  ;;  %v8059_v17 = vpop.f32.mrb[26].mxu1  ;;  %v8514_v20 = vpack.c.bf16 %v3894_v5, %v3893_v16  ;;  %v8622_v16 = vpack.c.bf16 %v4296_v18, %v4292_v53  ;;  %v4295_v5 = vld [vmem:[#allocation20 + $0x70] sm:$0xff]  ;;  %v4336_v53 = vld [vmem:[#allocation20 + $0x1b8] sm:$0xff] }
 0x7ce   : > { %8495 = vmatprep.subr.bf16.mxu0 %v8494_v41  ;;  %v3503_v19 = vpop.f32.mrb[59].mxu0  ;;  %v3608_v25 = vpop.f32.mrb[27].mxu1 }
 0x7cf   : > { %8145 = vmatprep.mubr.f32.mxu0 %v3503_v19  ;;  %v4072_v19 = vld [vmem:[#allocation14 + $0xc0] sm:$0xff] }
 0x7d0   : > { %8146 = vmatmul.mubr.f32.gmra.mrb[66].mxu0 %v8031_v62  ;;  %v4075_v62 = vld [vmem:[#allocation14 + $0xd8] sm:$0xff]  ;;  %v8548_v27 = vpack.c.bf16 %v4074_v32, %v4072_v19 }
 0x7d1   : > { %8497 = vmatpush3.bf16.msra.mxu0 %v8494_v41  ;;  %v8034_v23 = vpop.f32.mrb[60].mxu0  ;;  %v8062_v33 = vpop.f32.mrb[28].mxu1  ;;  %v3895_v41 = vld [vmem:[#allocation12 + $0x170] sm:$0xff]  ;;  %v4308_v19 = vld [vmem:[#allocation20 + $0xd8] sm:$0xff] }
 0x7d2   : > { %8499 = vmatprep.subr.bf16.mxu0 %v8498_v28  ;;  %v3513_v3 = vpop.f32.mrb[61].mxu0  ;;  %v3618_v4 = vpop.f32.mrb[29].mxu1  ;;  %v8518_v37 = vpack.c.bf16 %v3896_v7, %v3895_v41  ;;  %v4300_v41 = vld [vmem:[#allocation20 + $0x98] sm:$0xff] }
 0x7d3   : > { %8148 = vmatprep.mubr.f32.mxu0 %v3513_v3  ;;  %v4304_v7 = vld [vmem:[#allocation20 + $0xb8] sm:$0xff] }
 0x7d4   : > { %8149 = vmatmul.mubr.f32.gmra.mrb[68].mxu0 %v8034_v23  ;;  %v4077_v23 = vld [vmem:[#allocation14 + $0xe8] sm:$0xff]  ;;  %v4312_v32 = vld [vmem:[#allocation20 + $0xf8] sm:$0xff] }
 0x7d5   : > { %8501 = vmatpush3.bf16.msra.mxu0 %v8498_v28  ;;  %v8037_v49 = vpop.f32.mrb[62].mxu0  ;;  %v8065_v31 = vpop.f32.mrb[30].mxu1 }
 0x7d6   : > { %8503 = vmatprep.subr.bf16.mxu0 %v8502_v38  ;;  %v3523_v42 = vpop.f32.mrb[63].mxu0  ;;  %v3628_v15 = vpop.f32.mrb[31].mxu1 }
 0x7d7   : > { %8151 = vmatprep.mubr.f32.mxu0 %v3523_v42  ;;  %v4287_v42 = vld [vmem:[#allocation20 + $0x30] sm:$0xff] }
 0x7d8   : > { %8152 = vmatmul.mubr.f32.gmra.mrb[70].mxu0 %v8037_v49  ;;  %v4288_v49 = vld [vmem:[#allocation20 + $0x38] sm:$0xff] }
 0x7d9   : > { %8505 = vmatpush3.bf16.msra.mxu0 %v8502_v38  ;;  %8186 = vmatprep.mubr.f32.mxu0 %v3598_v47  ;;  %v4073_v47 = vld [vmem:[#allocation14 + $0xc8] sm:$0xff]  ;;  %v4079_v38 = vld [vmem:[#allocation14 + $0xf8] sm:$0xff] }
 0x7da   : > { %8507 = vmatprep.subr.bf16.mxu0 %v8506_v35  ;;  %v8546_v28 = vpack.c.bf16 %v4075_v62, %v4073_v47  ;;  %v8550_v3 = vpack.c.bf16 %v4079_v38, %v4077_v23  ;;  %v4303_v47 = vld [vmem:[#allocation20 + $0xb0] sm:$0xff]  ;;  %v8626_v62 = vpack.c.bf16 %v4304_v7, %v4300_v41  ;;  %v4344_v41 = vld [vmem:[#allocation20 + $0x1f8] sm:$0xff] }
 0x7db   : > { %v4307_v23 = vld [vmem:[#allocation20 + $0xd0] sm:$0xff] }
 0x7dc   : > { %8547 = vmatprep.subr.bf16.mxu1 %v8546_v28  ;;  %v4311_v38 = vld [vmem:[#allocation20 + $0xf0] sm:$0xff] }
 0x7dd   : > { %8509 = vmatpush3.bf16.msra.mxu0 %v8506_v35  ;;  %8549 = vmatpush1.bf16.msra.mxu1 %v8548_v27  ;;  %v4283_v35 = vld [vmem:[#allocation20 + $0x10] sm:$0xff]  ;;  %v8630_v27 = vpack.c.bf16 %v4312_v32, %v4308_v19  ;;  %v4352_v19 = vld [vmem:[#allocation20 + $0x238] sm:$0xff] }
 0x7de   : > { %8511 = vmatprep.subr.bf16.mxu0 %v8510_v10  ;;  %8551 = vmatprep.subr.bf16.mxu1 %v8550_v3  ;;  %v4316_v3 = vld [vmem:[#allocation20 + $0x118] sm:$0xff] }
 0x7e1   : > { %8513 = vmatpush3.bf16.msra.mxu0 %v8510_v10  ;;  %v4291_v10 = vld [vmem:[#allocation20 + $0x50] sm:$0xff] }
 0x7e2   : > { %8515 = vmatprep.subr.bf16.mxu0 %v8514_v20 }
 0x7e5   : > { %8517 = vmatpush3.bf16.msra.mxu0 %v8514_v20  ;;  %v8624_v20 = vpack.c.bf16 %v4295_v5, %v4291_v10  ;;  %v4335_v5 = vld [vmem:[#allocation20 + $0x1b0] sm:$0xff] }
 0x7e6   : > { %8519 = vmatprep.subr.bf16.mxu0 %v8518_v37 }
 0x7e9   : > { %8521 = vmatpush3.bf16.msra.mxu0 %v8518_v37  ;;  %v4299_v37 = vld [vmem:[#allocation20 + $0x90] sm:$0xff] }
 0x7ea   : > { %v8628_v28 = vpack.c.bf16 %v4303_v47, %v4299_v37  ;;  %v4339_v47 = vld [vmem:[#allocation20 + $0x1d0] sm:$0xff] }
 0x7ec   : > { %8187 = vmatmul.mubr.f32.vlgmr.msra.gmra.mrb[64].mxu0 %v8056_v30  ;;  %v8552_v30 = vpack.c.bf16 %v4078_v45, %v4076_v24  ;;  %v4320_v24 = vld [vmem:[#allocation20 + $0x138] sm:$0xff]  ;;  %v8632_v45 = vpack.c.bf16 %v4311_v38, %v4307_v23  ;;  %v4347_v23 = vld [vmem:[#allocation20 + $0x210] sm:$0xff] }
 0x7ed   : > { %8189 = vmatprep.mubr.f32.mxu0 %v3608_v25  ;;  %v4286_v25 = vld [vmem:[#allocation20 + $0x28] sm:$0xff]  ;;  %v4351_v38 = vld [vmem:[#allocation20 + $0x230] sm:$0xff] }
 0x7ee   : > { %8553 = vmatpush1.bf16.msra.mxu1 %v8552_v30  ;;  %v8634_v30 = vpack.c.bf16 %v4320_v24, %v4316_v3  ;;  %v4356_v3 = vld [vmem:[#allocation20 + $0x258] sm:$0xff] }
 0x7ef   : > { %v4360_v24 = vld [vmem:[#allocation20 + $0x278] sm:$0xff] }
 0x7f0   : > { %8190 = vmatmul.mubr.f32.gmra.mrb[66].mxu0 %v8059_v17  ;;  %v4282_v17 = vld [vmem:[#allocation20 + $0x8] sm:$0xff] }
 0x7f1   : > { %8192 = vmatprep.mubr.f32.mxu0 %v3618_v4  ;;  %v4284_v4 = vld [vmem:[#allocation20 + $0x18] sm:$0xff] }
 0x7f4   : > { %8193 = vmatmul.mubr.f32.gmra.mrb[68].mxu0 %v8062_v33  ;;  %v8554_v33 = vpack.c.bf16 %v4286_v25, %v4282_v17  ;;  %v4315_v17 = vld [vmem:[#allocation20 + $0x110] sm:$0xff] }
 0x7f5   : > { %8195 = vmatprep.mubr.f32.mxu0 %v3628_v15  ;;  %v8620_v15 = vpack.c.bf16 %v4287_v42, %v4283_v35  ;;  %v4319_v25 = vld [vmem:[#allocation20 + $0x130] sm:$0xff] }
 0x7f6   : > { %8555 = vmatprep.subr.bf16.mxu1 %v8554_v33  ;;  %v4324_v33 = vld [vmem:[#allocation20 + $0x158] sm:$0xff]  ;;  %v4323_v35 = vld [vmem:[#allocation20 + $0x150] sm:$0xff] }
 0x7f7   : > { %v4327_v42 = vld [vmem:[#allocation20 + $0x170] sm:$0xff] }
 0x7f8   : > { %8196 = vmatmul.mubr.f32.gmra.mrb[70].mxu0 %v8065_v31  ;;  %v8618_v31 = vpack.c.bf16 %v4288_v49, %v4284_v4  ;;  %v4328_v4 = vld [vmem:[#allocation20 + $0x178] sm:$0xff]  ;;  %v8636_v49 = vpack.c.bf16 %v4319_v25, %v4315_v17  ;;  %v8640_v18 = vpack.c.bf16 %v4327_v42, %v4323_v35  ;;  %v4355_v17 = vld [vmem:[#allocation20 + $0x250] sm:$0xff] }
 0x7f9   : > { %v4359_v25 = vld [vmem:[#allocation20 + $0x270] sm:$0xff] }
 0x7fa   : > { %8619 = vmatprep.subr.bf16.mxu0 %v8618_v31  ;;  %v8638_v31 = vpack.c.bf16 %v4328_v4, %v4324_v33  ;;  %v4364_v33 = vld [vmem:[#allocation20 + $0x298] sm:$0xff]  ;;  %v4363_v35 = vld [vmem:[#allocation20 + $0x290] sm:$0xff] }
 0x7fb   : > { %8621 = vmatpush1.bf16.msra.mxu0 %v8620_v15  ;;  %v4332_v15 = vld [vmem:[#allocation20 + $0x198] sm:$0xff]  ;;  %v4367_v42 = vld [vmem:[#allocation20 + $0x2b0] sm:$0xff] }
 0x7fc   : > { %8623 = vmatprep.subr.bf16.mxu0 %v8622_v16  ;;  %v8642_v10 = vpack.c.bf16 %v4336_v53, %v4332_v15  ;;  %v4331_v16 = vld [vmem:[#allocation20 + $0x190] sm:$0xff]  ;;  %v4368_v4 = vld [vmem:[#allocation20 + $0x2b8] sm:$0xff] }
 0x7fd   : > { %v8644_v7 = vpack.c.bf16 %v4335_v5, %v4331_v16  ;;  %v4372_v15 = vld [vmem:[#allocation20 + $0x2d8] sm:$0xff]  ;;  %v4371_v16 = vld [vmem:[#allocation20 + $0x2d0] sm:$0xff] }
 0x7fe   : > { %v4376_v53 = vld [vmem:[#allocation20 + $0x2f8] sm:$0xff]  ;;  %v4375_v5 = vld [vmem:[#allocation20 + $0x2f0] sm:$0xff] }
 0x7ff   : > { %8625 = vmatpush1.bf16.msra.mxu0 %v8624_v20  ;;  %v4340_v20 = vld [vmem:[#allocation20 + $0x1d8] sm:$0xff] }
 0x800   : > { %8627 = vmatprep.subr.bf16.mxu0 %v8626_v62  ;;  %v8646_v37 = vpack.c.bf16 %v4344_v41, %v4340_v20  ;;  %v4343_v62 = vld [vmem:[#allocation20 + $0x1f0] sm:$0xff]  ;;  %v4380_v20 = vld [vmem:[#allocation20 + $0x318] sm:$0xff] }
 0x801   : > { %v8648_v32 = vpack.c.bf16 %v4343_v62, %v4339_v47  ;;  %v4384_v41 = vld [vmem:[#allocation20 + $0x338] sm:$0xff]  ;;  %v4379_v47 = vld [vmem:[#allocation20 + $0x310] sm:$0xff] }
 0x802   : > { %v4383_v62 = vld [vmem:[#allocation20 + $0x330] sm:$0xff] }
 0x803   : > { %8629 = vmatpush1.bf16.msra.mxu0 %v8628_v28  ;;  %v4348_v28 = vld [vmem:[#allocation20 + $0x218] sm:$0xff] }
 0x804   : > { %8631 = vmatprep.subr.bf16.mxu0 %v8630_v27  ;;  %v8650_v27 = vpack.c.bf16 %v4352_v19, %v4348_v28  ;;  %v4388_v28 = vld [vmem:[#allocation20 + $0x358] sm:$0xff] }
 0x805   : > { %v4392_v19 = vld [vmem:[#allocation20 + $0x378] sm:$0xff] }
 0x807   : > { %8633 = vmatpush1.bf16.msra.mxu0 %v8632_v45  ;;  %v8652_v45 = vpack.c.bf16 %v4351_v38, %v4347_v23  ;;  %v10874_v23 = vld [vmem:[%s12333_s2] ss:$0 sm:$0xff]  ;;  %s12389_s2 = sld [smem:[#allocation27_spill]] }
 0x808   : > { %8635 = vmatprep.subr.bf16.mxu0 %v8634_v30  ;;  %v8654_v30 = vpack.c.bf16 %v4360_v24, %v4356_v3  ;;  %v10877_v3 = vld [vmem:[%s12334_s30] ss:$0 sm:$0xff]  ;;  %s12411_s30 = sld [smem:[#allocation32_spill]] }
 0x80b   : > { %8637 = vmatpush1.bf16.msra.mxu0 %v8636_v49  ;;  %v8656_v49 = vpack.c.bf16 %v4359_v25, %v4355_v17  ;;  %v4281_v17 = vld [vmem:[#allocation20] sm:$0xff] }
 0x80c   : > { %8639 = vmatprep.subr.bf16.mxu0 %v8638_v31  ;;  %v8658_v31 = vpack.c.bf16 %v4368_v4, %v4364_v33  ;;  %v4285_v25 = vld [vmem:[#allocation20 + $0x20] sm:$0xff]  ;;  %v4290_v33 = vld [vmem:[#allocation20 + $0x48] sm:$0xff] }
 0x80d   : > { %v4294_v4 = vld [vmem:[#allocation20 + $0x68] sm:$0xff] }
 0x80f   : > { %8641 = vmatpush1.bf16.msra.mxu0 %v8640_v18  ;;  %v8660_v18 = vpack.c.bf16 %v4367_v42, %v4363_v35  ;;  %v8556_v42 = vpack.c.bf16 %v4285_v25, %v4281_v17 }
 0x810   : > { %8643 = vmatprep.subr.bf16.mxu0 %v8642_v10  ;;  %v8662_v10 = vpack.c.bf16 %v4376_v53, %v4372_v15 }
 0x813   : > { %8645 = vmatpush1.bf16.msra.mxu0 %v8644_v7  ;;  %v8664_v7 = vpack.c.bf16 %v4375_v5, %v4371_v16  ;;  %v4289_v16 = vld [vmem:[#allocation20 + $0x40] sm:$0xff] }
 0x814   : > { %8647 = vmatprep.subr.bf16.mxu0 %v8646_v37  ;;  %v8666_v37 = vpack.c.bf16 %v4384_v41, %v4380_v20  ;;  %v4293_v5 = vld [vmem:[#allocation20 + $0x60] sm:$0xff]  ;;  %v4298_v20 = vld [vmem:[#allocation20 + $0x88] sm:$0xff] }
 0x815   : > { %v4302_v41 = vld [vmem:[#allocation20 + $0xa8] sm:$0xff] }
 0x817   : > { %8649 = vmatpush1.bf16.msra.mxu0 %v8648_v32  ;;  %v8668_v32 = vpack.c.bf16 %v4383_v62, %v4379_v47  ;;  %v8560_v47 = vpack.c.bf16 %v4293_v5, %v4289_v16 }
 0x818   : > { %8651 = vmatprep.subr.bf16.mxu0 %v8650_v27  ;;  %v8670_v27 = vpack.c.bf16 %v4392_v19, %v4388_v28 }
 0x81b   : > { %8653 = vmatpush1.bf16.msra.mxu0 %v8652_v45 }
 0x81c   : > { %8655 = vmatprep.subr.bf16.mxu0 %v8654_v30 }
 0x81f   : > { %8657 = vmatpush1.bf16.msra.mxu0 %v8656_v49 }
 0x820   : > { %8659 = vmatprep.subr.bf16.mxu0 %v8658_v31 }
 0x823   : > { %8661 = vmatpush1.bf16.msra.mxu0 %v8660_v18 }
 0x824   : > { %8663 = vmatprep.subr.bf16.mxu0 %v8662_v10  ;;  %v8558_v10 = vpack.c.bf16 %v4294_v4, %v4290_v33 }
 0x827   : > { %8665 = vmatpush1.bf16.msra.mxu0 %v8664_v7 }
 0x828   : > { %8667 = vmatprep.subr.bf16.mxu0 %v8666_v37 }
 0x82b   : > { %8669 = vmatpush1.bf16.msra.mxu0 %v8668_v32  ;;  %v8562_v32 = vpack.c.bf16 %v4302_v41, %v4298_v20  ;;  %v4313_v41 = vld [vmem:[#allocation20 + $0x100] sm:$0xff] }
 0x82c   : > { %8671 = vmatprep.subr.bf16.mxu0 %v8670_v27  ;;  %v4297_v27 = vld [vmem:[#allocation20 + $0x80] sm:$0xff] }
 0x8bf   : > { %v8188_v38 = vpop.f32.mrb[64].mxu0 }
 0x8c0   : > { %v3963_v24 = vpop.f32.mrb[65].mxu0  ;;  %v4018_v45 = vmul.f32 %v8188_v38, %v10874_v23  ;;  %v4301_v38 = vld [vmem:[#allocation20 + $0xa0] sm:$0xff] }
 0x8c1   : > { %v4017_v30 = vmul.f32 %v10874_v23, %v3963_v24  ;;  %v4306_v24 = vld [vmem:[#allocation20 + $0xc8] sm:$0xff]  ;;  %v8564_v25 = vpack.c.bf16 %v4301_v38, %v4297_v27  ;;  %v4321_v38 = vld [vmem:[#allocation20 + $0x140] sm:$0xff] }
 0x8c2   : > { %v4033_v15 = vadd.f32 %v10877_v3, %v4018_v45  ;;  %v4310_v45 = vld [vmem:[#allocation20 + $0xe8] sm:$0xff] }
 0x8c3   : > { %v4032_v49 = vadd.f32 %v10877_v3, %v4017_v30  ;;  %v8191_v31 = vpop.f32.mrb[66].mxu0 }
 0x8c4   : > { %v3973_v35 = vpop.f32.mrb[67].mxu0  ;;  %v4041_v62 = vmax.f32 %v4033_v15, 0.0  ;;  %v4020_v28 = vmul.f32 %v8191_v31, %v10874_v23  ;;  %v8566_v31 = vpack.c.bf16 %v4310_v45, %v4306_v24  ;;  %v4314_v15 = vld [vmem:[#allocation20 + $0x108] sm:$0xff]  ;;  %v4325_v24 = vld [vmem:[#allocation20 + $0x160] sm:$0xff] }
 0x8c5   : > { %v4040_v53 = vmax.f32 %v4032_v49, 0.0  ;;  %v4019_v18 = vmul.f32 %v10874_v23, %v3973_v35  ;;  %v4305_v35 = vld [vmem:[#allocation20 + $0xc0] sm:$0xff]  ;;  %v4330_v45 = vld [vmem:[#allocation20 + $0x188] sm:$0xff] }
 0x8c6   : > { %v4035_v33 = vadd.f32 %v10877_v3, %v4020_v28 }
 0x8c7   : > { %v8194_v7 = vpop.f32.mrb[68].mxu0  ;;  %4145 = vmatmul.mubr.f32.vlgmr.msra.gmra.mrb[32].mxu1 %v4040_v53  ;;  %v4034_v19 = vadd.f32 %v10877_v3, %v4019_v18  ;;  %v4318_v53 = vld [vmem:[#allocation20 + $0x128] sm:$0xff] }
 0x8c8   : > { %v3983_v37 = vpop.f32.mrb[69].mxu0  ;;  %4150 = vmatprep.mubr.f32.mxu1 %v12227_v11  ;;  %8557 = vmatpush1.bf16.msra.mxu1 %v8556_v42  ;;  %v4309_v42 = vld [vmem:[#allocation20 + $0xe0] sm:$0xff]  ;;  %v4022_v16 = vmul.f32 %v8194_v7, %v10874_v23  ;;  %v8570_v20 = vpack.c.bf16 %v4318_v53, %v4314_v15  ;;  %v4338_v15 = vld [vmem:[#allocation20 + $0x1c8] sm:$0xff] }
 0x8c9   : > { %8559 = vmatprep.subr.bf16.mxu1 %v8558_v10  ;;  %v4042_v4 = vmax.f32 %v4034_v19, 0.0  ;;  %v4021_v49 = vmul.f32 %v10874_v23, %v3983_v37  ;;  %v8568_v18 = vpack.c.bf16 %v4309_v42, %v4305_v35  ;;  %v4043_v10 = vmax.f32 %v4035_v33, 0.0  ;;  %v4317_v37 = vld [vmem:[#allocation20 + $0x120] sm:$0xff]  ;;  %v4342_v53 = vld [vmem:[#allocation20 + $0x1e8] sm:$0xff] }
 0x8ca   : > { %v8572_v28 = vpack.c.bf16 %v4317_v37, %v4313_v41  ;;  %v4037_v19 = vadd.f32 %v10877_v3, %v4022_v16  ;;  %v8576_v33 = vpack.c.bf16 %v4325_v24, %v4321_v38  ;;  %v4329_v42 = vld [vmem:[#allocation20 + $0x180] sm:$0xff]  ;;  %v4350_v41 = vld [vmem:[#allocation20 + $0x228] sm:$0xff] }
 0x8cb   : > { %v8197_v30 = vpop.f32.mrb[70].mxu0  ;;  %4151 = vmatmul.mubr.f32.gmra.mrb[34].mxu1 %v4041_v62  ;;  %v4036_v5 = vadd.f32 %v10877_v3, %v4021_v49  ;;  %v4326_v62 = vld [vmem:[#allocation20 + $0x168] sm:$0xff]  ;;  %v4353_v38 = vld [vmem:[#allocation20 + $0x240] sm:$0xff] }
 0x8cc   : > { %v3993_v17 = vpop.f32.mrb[71].mxu0  ;;  %4156 = vmatprep.mubr.f32.mxu1 %v12227_v11  ;;  %8561 = vmatpush1.bf16.msra.mxu1 %v8560_v47  ;;  %v4322_v47 = vld [vmem:[#allocation20 + $0x148] sm:$0xff]  ;;  %v4024_v49 = vmul.f32 %v8197_v30, %v10874_v23  ;;  %v4357_v24 = vld [vmem:[#allocation20 + $0x260] sm:$0xff] }
 0x8cd   : > { %8563 = vmatprep.subr.bf16.mxu1 %v8562_v32  ;;  %v4044_v32 = vmax.f32 %v4036_v5, 0.0  ;;  %v4023_v27 = vmul.f32 %v10874_v23, %v3993_v17  ;;  %v8574_v7 = vpack.c.bf16 %v4326_v62, %v4322_v47  ;;  %v4333_v17 = vld [vmem:[#allocation20 + $0x1a0] sm:$0xff]  ;;  %v8582_v5 = vpack.c.bf16 %v4342_v53, %v4338_v15  ;;  %v4346_v30 = vld [vmem:[#allocation20 + $0x208] sm:$0xff] }
 0x8ce   : > { %v4341_v23 = vld [vmem:[#allocation20 + $0x1e0] sm:$0xff]  ;;  %v8586_v62 = vpack.c.bf16 %v4350_v41, %v4346_v30  ;;  %v4386_v41 = vld [vmem:[#allocation20 + $0x348] sm:$0xff] }
 0x8cf   : > { %4157 = vmatmul.mubr.f32.gmra.mrb[36].mxu1 %v4042_v4  ;;  %v4045_v4 = vmax.f32 %v4037_v19, 0.0  ;;  %v4349_v19 = vld [vmem:[#allocation20 + $0x220] sm:$0xff] }
 0x8d0   : > { %4162 = vmatprep.mubr.f32.mxu1 %v12227_v11  ;;  %8565 = vmatpush1.bf16.msra.mxu1 %v8564_v25  ;;  %v4334_v25 = vld [vmem:[#allocation20 + $0x1a8] sm:$0xff]  ;;  %v4369_v53 = vld [vmem:[#allocation20 + $0x2c0] sm:$0xff] }
 0x8d1   : > { %8567 = vmatprep.subr.bf16.mxu1 %v8566_v31  ;;  %v4038_v31 = vadd.f32 %v10877_v3, %v4023_v27  ;;  %v8578_v35 = vpack.c.bf16 %v4334_v25, %v4330_v45  ;;  %v4358_v27 = vld [vmem:[#allocation20 + $0x268] sm:$0xff]  ;;  %v4381_v30 = vld [vmem:[#allocation20 + $0x320] sm:$0xff] }
 0x8d2   : > { %v4362_v45 = vld [vmem:[#allocation20 + $0x288] sm:$0xff] }
 0x8d3   : > { %4163 = vmatmul.mubr.f32.gmra.mrb[38].mxu1 %v4043_v10  ;;  %v4039_v10 = vadd.f32 %v10877_v3, %v4024_v49  ;;  %v4046_v16 = vmax.f32 %v4038_v31, 0.0  ;;  %v4366_v25 = vld [vmem:[#allocation20 + $0x2a8] sm:$0xff]  ;;  %v4361_v49 = vld [vmem:[#allocation20 + $0x280] sm:$0xff] }
 0x8d4   : > { %4168 = vmatprep.mubr.f32.mxu1 %v12227_v11  ;;  %8569 = vmatpush1.bf16.msra.mxu1 %v8568_v18  ;;  %v8580_v18 = vpack.c.bf16 %v4333_v17, %v4329_v42  ;;  %v4365_v31 = vld [vmem:[#allocation20 + $0x2a0] sm:$0xff]  ;;  %v4374_v42 = vld [vmem:[#allocation20 + $0x2e8] sm:$0xff] }
 0x8d5   : > { %8571 = vmatprep.subr.bf16.mxu1 %v8570_v20  ;;  %v4337_v20 = vld [vmem:[#allocation20 + $0x1c0] sm:$0xff]  ;;  %v4047_v47 = vmax.f32 %v4039_v10, 0.0  ;;  %v8596_v17 = vpack.c.bf16 %v4365_v31, %v4361_v49  ;;  %v4378_v10 = vld [vmem:[#allocation20 + $0x308] sm:$0xff]  ;;  %v4396_v49 = vld [vmem:[#allocation20 + $0x398] sm:$0xff] }
 0x8d6   : > { %v8584_v37 = vpack.c.bf16 %v4341_v23, %v4337_v20  ;;  %v4377_v23 = vld [vmem:[#allocation20 + $0x300] sm:$0xff]  ;;  %v4400_v31 = vld [vmem:[#allocation20 + $0x3b8] sm:$0xff] }
 0x8d7   : > { %4169 = vmatmul.mubr.f32.gmra.mrb[40].mxu1 %v4044_v32  ;;  %v4354_v32 = vld [vmem:[#allocation20 + $0x248] sm:$0xff] }
 0x8d8   : > { %4174 = vmatprep.mubr.f32.mxu1 %v12227_v11  ;;  %8573 = vmatpush1.bf16.msra.mxu1 %v8572_v28  ;;  %v4345_v28 = vld [vmem:[#allocation20 + $0x200] sm:$0xff] }
 0x8d9   : > { %8575 = vmatprep.subr.bf16.mxu1 %v8574_v7  ;;  %v8588_v3 = vpack.c.bf16 %v4349_v19, %v4345_v28  ;;  %v8590_v7 = vpack.c.bf16 %v4358_v27, %v4354_v32  ;;  %v4385_v28 = vld [vmem:[#allocation20 + $0x340] sm:$0xff]  ;;  %v4387_v27 = vld [vmem:[#allocation20 + $0x350] sm:$0xff] }
 0x8da   : > { %v4389_v19 = vld [vmem:[#allocation20 + $0x360] sm:$0xff] }
 0x8db   : > { %4175 = vmatmul.mubr.f32.gmra.mrb[42].mxu1 %v4045_v4  ;;  %v8594_v4 = vpack.c.bf16 %v4366_v25, %v4362_v45  ;;  %v8608_v32 = vpack.c.bf16 %v4389_v19, %v4385_v28  ;;  %v4393_v25 = vld [vmem:[#allocation20 + $0x380] sm:$0xff]  ;;  %v4746_v19 = vld [vmem:[%s12335_s7 + $0x18] sm:$0xff] }
 0x8dc   : > { %4180 = vmatprep.mubr.f32.mxu1 %v12227_v11  ;;  %8577 = vmatpush1.bf16.msra.mxu1 %v8576_v33  ;;  %v8592_v33 = vpack.c.bf16 %v4357_v24, %v4353_v38  ;;  %v4394_v38 = vld [vmem:[#allocation20 + $0x388] sm:$0xff] }
 0x8dd   : > { %8579 = vmatprep.subr.bf16.mxu1 %v8578_v35  ;;  %v4370_v35 = vld [vmem:[#allocation20 + $0x2c8] sm:$0xff] }
 0x8de   : > { %v8598_v15 = vpack.c.bf16 %v4374_v42, %v4370_v35  ;;  %v4398_v24 = vld [vmem:[#allocation20 + $0x3a8] sm:$0xff]  ;;  %v4395_v35 = vld [vmem:[#allocation20 + $0x390] sm:$0xff]  ;;  %v8674_v42 = vpack.c.bf16 %v4400_v31, %v4396_v49 }
 0x8df   : > { %4181 = vmatmul.mubr.f32.gmra.mrb[44].mxu1 %v4046_v16  ;;  %v4382_v16 = vld [vmem:[#allocation20 + $0x328] sm:$0xff]  ;;  %v8610_v45 = vpack.c.bf16 %v4398_v24, %v4394_v38  ;;  %v4193_v38 = vld [vmem:[%s12337_s3] sm:$0x3]  ;;  %s12436_s3 = sld [smem:[#allocation31_spill]] }
 0x8e0   : > { %4186 = vmatprep.mubr.f32.mxu1 %v12227_v11  ;;  %8581 = vmatpush1.bf16.msra.mxu1 %v8580_v18  ;;  %v4373_v18 = vld [vmem:[#allocation20 + $0x2e0] sm:$0xff]  ;;  %v8602_v20 = vpack.c.bf16 %v4382_v16, %v4378_v10 }
 0x8e1   : > { %8583 = vmatprep.subr.bf16.mxu1 %v8582_v5  ;;  %v8600_v5 = vpack.c.bf16 %v4373_v18, %v4369_v53  ;;  %v4402_v53 = vld [vmem:[#allocation20 + $0x3c8] sm:$0xff]  ;;  %v4401_v16 = vld [vmem:[#allocation20 + $0x3c0] sm:$0xff] }
 0x8e2   : > { %v4406_v18 = vld [vmem:[#allocation20 + $0x3e8] sm:$0xff] }
 0x8e3   : > { %4187 = vmatmul.mubr.f32.gmra.mrb[46].mxu1 %v4047_v47  ;;  %v8604_v47 = vpack.c.bf16 %v4381_v30, %v4377_v23  ;;  %v8614_v10 = vpack.c.bf16 %v4406_v18, %v4402_v53  ;;  %v4408_v30 = vld [vmem:[#allocation20 + $0x3f8] sm:$0xff]  ;;  %v4744_v28 = vld [vmem:[%s12335_s7 + $0x8] sm:$0xff] }
 0x8e4   : > { %8585 = vmatpush1.bf16.msra.mxu1 %v8584_v37  ;;  %v4390_v37 = vld [vmem:[#allocation20 + $0x368] sm:$0xff] }
 0x8e5   : > { %8587 = vmatprep.subr.bf16.mxu1 %v8586_v62  ;;  %v8606_v62 = vpack.c.bf16 %v4390_v37, %v4386_v41  ;;  %v4403_v41 = vld [vmem:[#allocation20 + $0x3d0] sm:$0xff] }
 0x8e6   : > { %v4407_v37 = vld [vmem:[#allocation20 + $0x3f0] sm:$0xff] }
 0x8e8   : > { %8589 = vmatpush1.bf16.msra.mxu1 %v8588_v3  ;;  %v4391_v3 = vld [vmem:[#allocation20 + $0x370] sm:$0xff] }
 0x8e9   : > { %8591 = vmatprep.subr.bf16.mxu1 %v8590_v7  ;;  %v8672_v7 = vpack.c.bf16 %v4391_v3, %v4387_v27  ;;  %v10905_v27 = vsub.s32 0, %v10487_v8  ;;  %v3212_v3 = vld [vmem:[%s12336_s9] sm:$0x3]  ;;  %s12435_s9 = sld [smem:[#allocation29_spill]] }
 0x8eb   : > { %8673 = vmatpush1.bf16.msra.mxu0 %v8672_v7  ;;  %12340 = vst [vmem:[#allocation60_spill] sm:$0xff] %v10905_v27  ;;  %v10909_v7 = vsub.s32 1, %v10487_v8  ;;  %v10913_v24 = vrot.slane %v3212_v3, %v10905_v27 }
 0x8ec   : > { %8593 = vmatpush1.bf16.msra.mxu1 %v8592_v33  ;;  %v4397_v33 = vld [vmem:[#allocation20 + $0x3a0] sm:$0xff]  ;;  %8675 = vmatprep.subr.bf16.mxu0 %v8674_v42 }
 0x8ed   : > { %8595 = vmatprep.subr.bf16.mxu1 %v8594_v4  ;;  %v8612_v4 = vpack.c.bf16 %v4397_v33, %v4393_v25  ;;  %12341 = vst [vmem:[#allocation61_spill] sm:$0xff] %v10909_v7  ;;  %v10917_v25 = vrot.slane %v3212_v3, %v10909_v7  ;;  %v4221_v33 = vld [vmem:[%s12339_s16] sm:$0x3]  ;;  %v10924_v49 = vrot.slane %v4193_v38, %v10909_v7  ;;  %s1594_s16 = scalar_lea.vmem %s10183_s21, %s12441_s23 }
 0x8ee   : > { %v3224_v31 = vmul.f32 %v10913_v24, %v10754_v48  ;;  %v10932_v42 = vrot.slane %v4221_v33, %v10905_v27  ;;  %v10940_v18 = vrot.slane %v4221_v33, %v10909_v7  ;;  %v3228_v3 = vmul.f32 %v10913_v24, %v10762_v29  ;;  %v4750_v33 = vld [vmem:[%s12335_s7 + $0x38] sm:$0xff] }
 0x8f0   : > { %8597 = vmatpush1.bf16.msra.mxu1 %v8596_v17  ;;  %v4399_v17 = vld [vmem:[#allocation20 + $0x3b0] sm:$0xff] }
 0x8f1   : > { %8599 = vmatprep.subr.bf16.mxu1 %v8598_v15  ;;  %v8676_v15 = vpack.c.bf16 %v4399_v17, %v4395_v35  ;;  %v3225_v17 = vmul.f32 %v10917_v25, %v10756_v36  ;;  %v3226_v36 = vmul.f32 %v10913_v24, %v10758_v51 }
 0x8f3   : > { %8677 = vmatpush1.bf16.msra.mxu0 %v8676_v15 }
 0x8f4   : > { %8601 = vmatpush1.bf16.msra.mxu1 %v8600_v5  ;;  %v4405_v5 = vld [vmem:[#allocation20 + $0x3e0] sm:$0xff] }
 0x8f5   : > { %8603 = vmatprep.subr.bf16.mxu1 %v8602_v20  ;;  %v4404_v20 = vld [vmem:[#allocation20 + $0x3d8] sm:$0xff]  ;;  %v8616_v23 = vpack.c.bf16 %v4405_v5, %v4401_v16 }
 0x8f8   : > { %8605 = vmatpush1.bf16.msra.mxu1 %v8604_v47  ;;  %v8678_v47 = vpack.c.bf16 %v4408_v30, %v4404_v20  ;;  %v3227_v30 = vmul.f32 %v10917_v25, %v10760_v21 }
 0x8f9   : > { %8607 = vmatprep.subr.bf16.mxu1 %v8606_v62  ;;  %v8680_v62 = vpack.c.bf16 %v4407_v37, %v4403_v41 }
 0x8fa   : > { %8679 = vmatprep.subr.bf16.mxu0 %v8678_v47 }
 0x8fb   : > { %8681 = vmatpush1.bf16.msra.mxu0 %v8680_v62 }
 0x8fc   : > { %8609 = vmatpush1.bf16.msra.mxu1 %v8608_v32  ;;  %v8682_v32 = vpack.c.bf16 %v4746_v19, %v4744_v28  ;;  %v4743_v19 = vld [vmem:[%s12335_s7] sm:$0xff] }
 0x8fd   : > { %8611 = vmatprep.subr.bf16.mxu1 %v8610_v45  ;;  %v3240_v45 = vld [vmem:[%s12338_s20] sm:$0x3]  ;;  %s12438_s20 = sld [smem:[#allocation33_spill]] }
 0x8fe   : > { %v10929_v35 = vrot.slane %v3240_v45, %v10905_v27  ;;  %v10937_v15 = vrot.slane %v3240_v45, %v10909_v7  ;;  %v4748_v45 = vld [vmem:[%s12335_s7 + $0x28] sm:$0xff] }
 0x900   : > { %8613 = vmatpush1.bf16.msra.mxu1 %v8612_v4  ;;  %v10921_v4 = vrot.slane %v4193_v38, %v10905_v27  ;;  %v3252_v5 = vadd.f32 %v10929_v35, %v3224_v31  ;;  %v3254_v21 = vadd.f32 %v10929_v35, %v3226_v36  ;;  %v3229_v31 = vmul.f32 %v10917_v25, %v10764_v55  ;;  %v4747_v55 = vld [vmem:[%s12335_s7 + $0x20] sm:$0xff] }
 0x901   : > { %8615 = vmatprep.subr.bf16.mxu1 %v8614_v10 }
 0x904   : > { %8617 = vmatpush1.bf16.msra.mxu1 %v8616_v23  ;;  %v3253_v23 = vadd.f32 %v10937_v15, %v3225_v17 }
 0x905   : > { %8683 = vmatprep.subr.bf16.mxu1 %v8682_v32  ;;  %v4745_v32 = vld [vmem:[%s12335_s7 + $0x10] sm:$0xff] }
 0x99a   : > { %v4146_v53 = vpop.f32.mrb[32].mxu1 }
 0x99b   : > { %v4205_v48 = vmul.f32 %v10921_v4, %v4146_v53  ;;  %v4148_v10 = vpop.f32.mrb[33].mxu1  ;;  %v3255_v53 = vadd.f32 %v10937_v15, %v3227_v30 }
 0x99c   : > { %v4206_v16 = vmul.f32 %v10924_v49, %v4148_v10 }
 0x99d   : > { %v4233_v20 = vadd.f32 %v10932_v42, %v4205_v48 }
 0x99e   : > { %v4234_v41 = vadd.f32 %v10940_v18, %v4206_v16  ;;  %v4152_v37 = vpop.f32.mrb[34].mxu1  ;;  %v8684_v16 = vpack.c.bf16 %v4745_v32, %v4743_v19  ;;  %v4754_v19 = vld [vmem:[%s12335_s7 + $0x58] sm:$0xff]  ;;  %v3230_v32 = vmul.f32 %v10913_v24, %v10766_v40 }
 0x99f   : > { %v4249_v47 = vadd.f32 %v4233_v20, %v3252_v5  ;;  %v4207_v62 = vmul.f32 %v10921_v4, %v4152_v37  ;;  %v4154_v28 = vpop.f32.mrb[35].mxu1  ;;  %v4749_v37 = vld [vmem:[%s12335_s7 + $0x30] sm:$0xff] }
 0x9a0   : > { %v4208_v51 = vmul.f32 %v10924_v49, %v4154_v28  ;;  %v4250_v38 = vadd.f32 %v4234_v41, %v3253_v23  ;;  %v8686_v23 = vpack.c.bf16 %v4750_v33, %v4748_v45  ;;  %v8688_v40 = vpack.c.bf16 %v4749_v37, %v4747_v55  ;;  %v4756_v37 = vld [vmem:[%s12335_s7 + $0x68] sm:$0xff] }
 0x9a1   : > { %v4235_v17 = vadd.f32 %v10932_v42, %v4207_v62  ;;  %v10968_v5 = vmax.f32 %v4249_v47, 0.0  ;;  %v3256_v62 = vadd.f32 %v10929_v35, %v3228_v3  ;;  %v3257_v47 = vadd.f32 %v10937_v15, %v3229_v31 }
 0x9a2   : > { %v4236_v48 = vadd.f32 %v10940_v18, %v4208_v51  ;;  %v4158_v29 = vpop.f32.mrb[36].mxu1  ;;  %v10966_v10 = vmax.f32 %v4250_v38, 0.0  ;;  %v4752_v51 = vld [vmem:[%s12335_s7 + $0x48] sm:$0xff]  ;;  %v3231_v3 = vmul.f32 %v10917_v25, %v10768_v58  ;;  %v3232_v58 = vmul.f32 %v10913_v24, %v10770_v39 }
 0x9a3   : > { %v4209_v20 = vmul.f32 %v10921_v4, %v4158_v29  ;;  %v4160_v36 = vpop.f32.mrb[37].mxu1  ;;  %v4251_v41 = vadd.f32 %v4235_v17, %v3254_v21 }
 0x9a4   : > { %v4210_v30 = vmul.f32 %v10924_v49, %v4160_v36  ;;  %4473 = vmatprep.mubr.f32.mxu1 %v10966_v10  ;;  %4586 = vmatprep.mubr.f32.mxu0 %v10966_v10  ;;  %v4252_v28 = vadd.f32 %v4236_v48, %v3255_v53  ;;  %v8690_v48 = vpack.c.bf16 %v4754_v19, %v4752_v51  ;;  %v4753_v36 = vld [vmem:[%s12335_s7 + $0x50] sm:$0xff] }
 0x9a5   : > { %v4237_v38 = vadd.f32 %v10932_v42, %v4209_v20  ;;  %4474 = vmatmul.mubr.f32.vlgmr.msra.gmra.mrb[48].mxu1 %v10968_v5  ;;  %4587 = vmatmul.mubr.f32.vlgmr.msra.gmra.mrb[72].mxu0 %v10968_v5  ;;  %v10991_v53 = vmax.f32 %v4251_v41, 0.0  ;;  %v4751_v20 = vld [vmem:[%s12335_s7 + $0x40] sm:$0xff]  ;;  %v3233_v41 = vmul.f32 %v10917_v25, %v10772_v43  ;;  %v3259_v39 = vadd.f32 %v10937_v15, %v3231_v3 }
 0x9a6   : > { %v4238_v45 = vadd.f32 %v10940_v18, %v4210_v30  ;;  %8685 = vmatpush1.bf16.msra.mxu1 %v8684_v16  ;;  %v4164_v33 = vpop.f32.mrb[38].mxu1  ;;  %v10988_v21 = vmax.f32 %v4252_v28, 0.0  ;;  %v4758_v30 = vld [vmem:[%s12335_s7 + $0x78] sm:$0xff]  ;;  %v3260_v3 = vadd.f32 %v10929_v35, %v3232_v58  ;;  %v3235_v58 = vmul.f32 %v10917_v25, %v10776_v56 }
 0x9a7   : > { %v4211_v31 = vmul.f32 %v10921_v4, %v4164_v33  ;;  %v4166_v17 = vpop.f32.mrb[39].mxu1  ;;  %8687 = vmatprep.subr.bf16.mxu1 %v8686_v23  ;;  %v4253_v29 = vadd.f32 %v4237_v38, %v3256_v62  ;;  %v3258_v23 = vadd.f32 %v10929_v35, %v3230_v32  ;;  %v3236_v56 = vmul.f32 %v10913_v24, %v10778_v57 }
 0x9a8   : > { %v4212_v16 = vmul.f32 %v10924_v49, %v4166_v17  ;;  %4479 = vmatprep.mubr.f32.mxu1 %v10988_v21  ;;  %4592 = vmatprep.mubr.f32.mxu0 %v10988_v21  ;;  %v4254_v55 = vadd.f32 %v4238_v45, %v3257_v47  ;;  %v8692_v47 = vpack.c.bf16 %v4753_v36, %v4751_v20  ;;  %v4757_v17 = vld [vmem:[%s12335_s7 + $0x70] sm:$0xff]  ;;  %v4760_v20 = vld [vmem:[%s12335_s7 + $0x88] sm:$0xff]  ;;  %v4762_v36 = vld [vmem:[%s12335_s7 + $0x98] sm:$0xff] }
 0x9a9   : > { %v4239_v62 = vadd.f32 %v10932_v42, %v4211_v31  ;;  %4480 = vmatmul.mubr.f32.gmra.mrb[50].mxu1 %v10991_v53  ;;  %4593 = vmatmul.mubr.f32.gmra.mrb[74].mxu0 %v10991_v53  ;;  %v11013_v38 = vmax.f32 %v4253_v29, 0.0  ;;  %v8694_v45 = vpack.c.bf16 %v4758_v30, %v4756_v37  ;;  %v4755_v31 = vld [vmem:[%s12335_s7 + $0x60] sm:$0xff]  ;;  %v3263_v57 = vadd.f32 %v10937_v15, %v3235_v58 }
 0x9aa   : > { %v4240_v28 = vadd.f32 %v10940_v18, %v4212_v16  ;;  %8689 = vmatpush1.bf16.msra.mxu1 %v8688_v40  ;;  %v4170_v51 = vpop.f32.mrb[40].mxu1  ;;  %v11010_v19 = vmax.f32 %v4254_v55, 0.0  ;;  %v3261_v55 = vadd.f32 %v10937_v15, %v3233_v41  ;;  %v3264_v58 = vadd.f32 %v10929_v35, %v3236_v56 }
 0x9ab   : > { %v4213_v43 = vmul.f32 %v10921_v4, %v4170_v51  ;;  %v4172_v32 = vpop.f32.mrb[41].mxu1  ;;  %8691 = vmatprep.subr.bf16.mxu1 %v8690_v48  ;;  %v4255_v33 = vadd.f32 %v4239_v62, %v3258_v23  ;;  %v3234_v48 = vmul.f32 %v10913_v24, %v10774_v44  ;;  %v8696_v44 = vpack.c.bf16 %v4757_v17, %v4755_v31  ;;  %v4764_v17 = vld [vmem:[%s12335_s7 + $0xa8] sm:$0xff] }
 0x9ac   : > { %v4214_v40 = vmul.f32 %v10924_v49, %v4172_v32  ;;  %4485 = vmatprep.mubr.f32.mxu1 %v11010_v19  ;;  %4598 = vmatprep.mubr.f32.mxu0 %v11010_v19  ;;  %v4256_v16 = vadd.f32 %v4240_v28, %v3259_v39  ;;  %v8698_v28 = vpack.c.bf16 %v4762_v36, %v4760_v20  ;;  %v4761_v32 = vld [vmem:[%s12335_s7 + $0x90] sm:$0xff] }
 0x9ad   : > { %v4241_v29 = vadd.f32 %v10932_v42, %v4213_v43  ;;  %4486 = vmatmul.mubr.f32.gmra.mrb[52].mxu1 %v11013_v38  ;;  %4599 = vmatmul.mubr.f32.gmra.mrb[76].mxu0 %v11013_v38  ;;  %v11035_v39 = vmax.f32 %v4255_v33, 0.0  ;;  %v4759_v43 = vld [vmem:[%s12335_s7 + $0x80] sm:$0xff]  ;;  %v3237_v33 = vmul.f32 %v10917_v25, %v10780_v59  ;;  %v3239_v56 = vmul.f32 %v10917_v25, %v10784_v61 }
 0x9ae   : > { %v4242_v37 = vadd.f32 %v10940_v18, %v4214_v40  ;;  %8693 = vmatpush1.bf16.msra.mxu1 %v8692_v47  ;;  %v4176_v30 = vpop.f32.mrb[42].mxu1  ;;  %v11032_v23 = vmax.f32 %v4256_v16, 0.0  ;;  %v4766_v40 = vld [vmem:[%s12335_s7 + $0xb8] sm:$0xff] }
 0x9af   : > { %v4215_v41 = vmul.f32 %v10921_v4, %v4176_v30  ;;  %v4178_v62 = vpop.f32.mrb[43].mxu1  ;;  %8695 = vmatprep.subr.bf16.mxu1 %v8694_v45  ;;  %v4257_v51 = vadd.f32 %v4241_v29, %v3260_v3  ;;  %v3262_v45 = vadd.f32 %v10929_v35, %v3234_v48 }
 0x9b0   : > { %v4216_v47 = vmul.f32 %v10924_v49, %v4178_v62  ;;  %4491 = vmatprep.mubr.f32.mxu1 %v11032_v23  ;;  %4604 = vmatprep.mubr.f32.mxu0 %v11032_v23  ;;  %v4258_v31 = vadd.f32 %v4242_v37, %v3261_v55  ;;  %v8700_v55 = vpack.c.bf16 %v4761_v32, %v4759_v43  ;;  %v4765_v62 = vld [vmem:[%s12335_s7 + $0xb0] sm:$0xff]  ;;  %v4768_v43 = vld [vmem:[%s12335_s7 + $0xc8] sm:$0xff]  ;;  %v4770_v32 = vld [vmem:[%s12335_s7 + $0xd8] sm:$0xff] }
 0x9b1   : > { %v4243_v3 = vadd.f32 %v10932_v42, %v4215_v41  ;;  %4492 = vmatmul.mubr.f32.gmra.mrb[54].mxu1 %v11035_v39  ;;  %4605 = vmatmul.mubr.f32.gmra.mrb[78].mxu0 %v11035_v39  ;;  %v11057_v29 = vmax.f32 %v4257_v51, 0.0  ;;  %v8702_v37 = vpack.c.bf16 %v4766_v40, %v4764_v17  ;;  %v4763_v41 = vld [vmem:[%s12335_s7 + $0xa0] sm:$0xff] }
 0x9b2   : > { %v4244_v16 = vadd.f32 %v10940_v18, %v4216_v47  ;;  %8697 = vmatpush1.bf16.msra.mxu1 %v8696_v44  ;;  %v4182_v20 = vpop.f32.mrb[44].mxu1  ;;  %v11054_v36 = vmax.f32 %v4258_v31, 0.0  ;;  %v3265_v31 = vadd.f32 %v10937_v15, %v3237_v33 }
 0x9b3   : > { %v4217_v59 = vmul.f32 %v10921_v4, %v4182_v20  ;;  %v4184_v48 = vpop.f32.mrb[45].mxu1  ;;  %8699 = vmatprep.subr.bf16.mxu1 %v8698_v28  ;;  %v4259_v30 = vadd.f32 %v4243_v3, %v3262_v45  ;;  %v3238_v28 = vmul.f32 %v10913_v24, %v10782_v60  ;;  %v8704_v60 = vpack.c.bf16 %v4765_v62, %v4763_v41  ;;  %v4767_v20 = vld [vmem:[%s12335_s7 + $0xc0] sm:$0xff] }
 0x9b4   : > { %v4218_v44 = vmul.f32 %v10924_v49, %v4184_v48  ;;  %4497 = vmatprep.mubr.f32.mxu1 %v11054_v36  ;;  %4610 = vmatprep.mubr.f32.mxu0 %v11054_v36  ;;  %v4260_v47 = vadd.f32 %v4244_v16, %v3263_v57  ;;  %v8706_v57 = vpack.c.bf16 %v4770_v32, %v4768_v43  ;;  %v4774_v48 = vld [vmem:[%s12335_s7 + $0xf8] sm:$0xff] }
 0x9b5   : > { %v4245_v51 = vadd.f32 %v10932_v42, %v4217_v59  ;;  %4498 = vmatmul.mubr.f32.gmra.mrb[56].mxu1 %v11057_v29  ;;  %4611 = vmatmul.mubr.f32.gmra.mrb[80].mxu0 %v11057_v29  ;;  %v11079_v3 = vmax.f32 %v4259_v30, 0.0  ;;  %v4769_v59 = vld [vmem:[%s12335_s7 + $0xd0] sm:$0xff]  ;;  %v4778_v43 = vld [vmem:[%s12335_s7 + $0x118] sm:$0xff] }
 0x9b6   : > { %v4246_v17 = vadd.f32 %v10940_v18, %v4218_v44  ;;  %8701 = vmatpush1.bf16.msra.mxu1 %v8700_v55  ;;  %v4188_v40 = vpop.f32.mrb[46].mxu1  ;;  %v11076_v45 = vmax.f32 %v4260_v47, 0.0  ;;  %v4772_v55 = vld [vmem:[%s12335_s7 + $0xe8] sm:$0xff]  ;;  %v8708_v62 = vpack.c.bf16 %v4769_v59, %v4767_v20  ;;  %v4773_v47 = vld [vmem:[%s12335_s7 + $0xf0] sm:$0xff]  ;;  %v4786_v59 = vld [vmem:[%s12335_s7 + $0x158] sm:$0xff] }
 0x9b7   : > { %v4219_v24 = vmul.f32 %v10921_v4, %v4188_v40  ;;  %v4190_v33 = vpop.f32.mrb[47].mxu1  ;;  %8703 = vmatprep.subr.bf16.mxu1 %v8702_v37  ;;  %v4261_v16 = vadd.f32 %v4245_v51, %v3264_v58  ;;  %v3266_v4 = vadd.f32 %v10929_v35, %v3238_v28  ;;  %v8710_v35 = vpack.c.bf16 %v4774_v48, %v4772_v55  ;;  %v4780_v40 = vld [vmem:[%s12335_s7 + $0x128] sm:$0xff]  ;;  %v4783_v55 = vld [vmem:[%s12335_s7 + $0x140] sm:$0xff] }
 0x9b8   : > { %v4220_v61 = vmul.f32 %v10924_v49, %v4190_v33  ;;  %4503 = vmatprep.mubr.f32.mxu1 %v11076_v45  ;;  %4616 = vmatprep.mubr.f32.mxu0 %v11076_v45  ;;  %v4262_v25 = vadd.f32 %v4246_v17, %v3265_v31  ;;  %v3267_v49 = vadd.f32 %v10937_v15, %v3239_v56  ;;  %v4775_v56 = vld [vmem:[%s12335_s7 + $0x100] sm:$0xff]  ;;  %v4777_v17 = vld [vmem:[%s12335_s7 + $0x110] sm:$0xff]  ;;  %v4784_v20 = vld [vmem:[%s12335_s7 + $0x148] sm:$0xff] }
 0x9b9   : > { %v4247_v37 = vadd.f32 %v10932_v42, %v4219_v24  ;;  %4504 = vmatmul.mubr.f32.gmra.mrb[58].mxu1 %v11079_v3  ;;  %4617 = vmatmul.mubr.f32.gmra.mrb[82].mxu0 %v11079_v3  ;;  %v11096_v58 = vmax.f32 %v4261_v16, 0.0  ;;  %v4771_v42 = vld [vmem:[%s12335_s7 + $0xe0] sm:$0xff]  ;;  %v8716_v24 = vpack.c.bf16 %v4777_v17, %v4775_v56  ;;  %v4781_v16 = vld [vmem:[%s12335_s7 + $0x130] sm:$0xff]  ;;  %v4788_v48 = vld [vmem:[%s12335_s7 + $0x168] sm:$0xff] }
 0x9ba   : > { %v4248_v30 = vadd.f32 %v10940_v18, %v4220_v61  ;;  %8705 = vmatpush1.bf16.msra.mxu1 %v8704_v60  ;;  %v11094_v41 = vmax.f32 %v4262_v25, 0.0  ;;  %v4776_v18 = vld [vmem:[%s12335_s7 + $0x108] sm:$0xff]  ;;  %v8712_v31 = vpack.c.bf16 %v4773_v47, %v4771_v42  ;;  %v4782_v60 = vld [vmem:[%s12335_s7 + $0x138] sm:$0xff]  ;;  %v8722_v25 = vpack.c.bf16 %v4786_v59, %v4784_v20  ;;  %v4795_v17 = vld [vmem:[%s12335_s7 + $0x1a0] sm:$0xff] }
 0x9bb   : > { %8707 = vmatprep.subr.bf16.mxu1 %v8706_v57  ;;  %v4263_v44 = vadd.f32 %v4247_v37, %v3266_v4  ;;  %v8714_v51 = vpack.c.bf16 %v4778_v43, %v4776_v18  ;;  %v8718_v33 = vpack.c.bf16 %v4782_v60, %v4780_v40  ;;  %v4779_v57 = vld [vmem:[%s12335_s7 + $0x120] sm:$0xff]  ;;  %v4790_v4 = vld [vmem:[%s12335_s7 + $0x178] sm:$0xff]  ;;  %v4793_v18 = vld [vmem:[%s12335_s7 + $0x190] sm:$0xff] }
 0x9bc   : > { %4509 = vmatprep.mubr.f32.mxu1 %v11094_v41  ;;  %4622 = vmatprep.mubr.f32.mxu0 %v11094_v41  ;;  %v4264_v15 = vadd.f32 %v4248_v30, %v3267_v49  ;;  %v8720_v61 = vpack.c.bf16 %v4781_v16, %v4779_v57  ;;  %v8726_v49 = vpack.c.bf16 %v4790_v4, %v4788_v48  ;;  %v4787_v30 = vld [vmem:[%s12335_s7 + $0x160] sm:$0xff]  ;;  %v4796_v43 = vld [vmem:[%s12335_s7 + $0x1a8] sm:$0xff]  ;;  %v4797_v40 = vld [vmem:[%s12335_s7 + $0x1b0] sm:$0xff] }
 0x9bd   : > { %4510 = vmatmul.mubr.f32.gmra.mrb[60].mxu1 %v11096_v58  ;;  %4623 = vmatmul.mubr.f32.gmra.mrb[84].mxu0 %v11096_v58  ;;  %v11108_v28 = vmax.f32 %v4263_v44, 0.0  ;;  %v4794_v44 = vld [vmem:[%s12335_s7 + $0x198] sm:$0xff]  ;;  %v4800_v60 = vld [vmem:[%s12335_s7 + $0x1c8] sm:$0xff]  ;;  %v4799_v16 = vld [vmem:[%s12335_s7 + $0x1c0] sm:$0xff] }
 0x9be   : > { %8709 = vmatpush1.bf16.msra.mxu1 %v8708_v62  ;;  %v11106_v32 = vmax.f32 %v4264_v15, 0.0  ;;  %v4789_v62 = vld [vmem:[%s12335_s7 + $0x170] sm:$0xff]  ;;  %v4791_v15 = vld [vmem:[%s12335_s7 + $0x180] sm:$0xff]  ;;  %v4804_v59 = vld [vmem:[%s12335_s7 + $0x1e8] sm:$0xff] }
 0x9bf   : > { %8711 = vmatprep.subr.bf16.mxu1 %v8710_v35  ;;  %v4792_v35 = vld [vmem:[%s12335_s7 + $0x188] sm:$0xff]  ;;  %v8728_v42 = vpack.c.bf16 %v4789_v62, %v4787_v30  ;;  %v4801_v20 = vld [vmem:[%s12335_s7 + $0x1d0] sm:$0xff] }
 0x9c0   : > { %4515 = vmatprep.mubr.f32.mxu1 %v11106_v32  ;;  %4628 = vmatprep.mubr.f32.mxu0 %v11106_v32  ;;  %v8730_v47 = vpack.c.bf16 %v4794_v44, %v4792_v35  ;;  %v4805_v48 = vld [vmem:[%s12335_s7 + $0x1f0] sm:$0xff] }
 0x9c1   : > { %4516 = vmatmul.mubr.f32.gmra.mrb[62].mxu1 %v11108_v28  ;;  %4629 = vmatmul.mubr.f32.gmra.mrb[86].mxu0 %v11108_v28 }
 0x9c2   : > { %8713 = vmatpush1.bf16.msra.mxu1 %v8712_v31  ;;  %4871 = vmatprep.mubr.f32.mxu1 %v10966_v10  ;;  %v4785_v10 = vld [vmem:[%s12335_s7 + $0x150] sm:$0xff]  ;;  %v4798_v31 = vld [vmem:[%s12335_s7 + $0x1b8] sm:$0xff] }
 0x9c3   : > { %8715 = vmatprep.subr.bf16.mxu1 %v8714_v51  ;;  %5056 = vmatprep.mubr.f32.mxu0 %v12227_v11  ;;  %v8724_v37 = vpack.c.bf16 %v4785_v10, %v4783_v55  ;;  %v8732_v51 = vpack.c.bf16 %v4793_v18, %v4791_v15  ;;  %v8734_v56 = vpack.c.bf16 %v4798_v31, %v4796_v43  ;;  %v4803_v10 = vld [vmem:[%s12335_s7 + $0x1e0] sm:$0xff] }
 0x9c4   : > { %v8744_v4 = vpack.c.bf16 %v4805_v48, %v4803_v10 }
 0x9c6   : > { %8717 = vmatpush1.bf16.msra.mxu1 %v8716_v24  ;;  %v4802_v24 = vld [vmem:[%s12335_s7 + $0x1d8] sm:$0xff] }
 0x9c7   : > { %8719 = vmatprep.subr.bf16.mxu1 %v8718_v33  ;;  %v8736_v33 = vpack.c.bf16 %v4797_v40, %v4795_v17  ;;  %v8738_v57 = vpack.c.bf16 %v4802_v24, %v4800_v60  ;;  %v4920_v24 = vld [vmem:[%s12350_s22] sm:$0x3] }
 0x9ca   : > { %8721 = vmatpush1.bf16.msra.mxu1 %v8720_v61  ;;  %v4806_v61 = vld [vmem:[%s12335_s7 + $0x1f8] sm:$0xff] }
 0x9cb   : > { %8723 = vmatprep.subr.bf16.mxu1 %v8722_v25  ;;  %v8740_v25 = vpack.c.bf16 %v4801_v20, %v4799_v16  ;;  %v8742_v55 = vpack.c.bf16 %v4806_v61, %v4804_v59  ;;  %v4948_v16 = vld [vmem:[%s12353_s0] sm:$0x3] }
 0x9cc   : > { %v11240_v10 = vrot.slane %v4948_v16, %v10905_v27 }
 0x9ce   : > { %8725 = vmatpush1.bf16.msra.mxu1 %v8724_v37 }
 0x9cf   : > { %8727 = vmatprep.subr.bf16.mxu1 %v8726_v49 }
 0x9d2   : > { %8729 = vmatpush1.bf16.msra.mxu1 %v8728_v42 }
 0x9d3   : > { %8731 = vmatprep.subr.bf16.mxu1 %v8730_v47 }
 0x9d6   : > { %8733 = vmatpush1.bf16.msra.mxu1 %v8732_v51 }
 0x9d7   : > { %8735 = vmatprep.subr.bf16.mxu1 %v8734_v56 }
 0x9da   : > { %8737 = vmatpush1.bf16.msra.mxu1 %v8736_v33  ;;  %v11228_v33 = vrot.slane %v4920_v24, %v10909_v7 }
 0x9db   : > { %8739 = vmatprep.subr.bf16.mxu1 %v8738_v57  ;;  %v11231_v57 = vrot.slane %v4920_v24, %v10905_v27 }
 0x9de   : > { %8741 = vmatpush1.bf16.msra.mxu1 %v8740_v25  ;;  %v11236_v25 = vrot.slane %v4948_v16, %v10909_v7 }
 0x9df   : > { %8743 = vmatprep.subr.bf16.mxu1 %v8742_v55 }
 0x9e2   : > { %8745 = vmatpush1.bf16.msra.mxu1 %v8744_v4 }
 0x9e5   : > { %4872 = vmatmul.mubr.f32.vlgmr.msra.gmra.mrb[64].mxu1 %v10968_v5 }
 0x9e6   : > { %4877 = vmatprep.mubr.f32.mxu1 %v10988_v21 }
 0x9e9   : > { %4878 = vmatmul.mubr.f32.gmra.mrb[66].mxu1 %v10991_v53 }
 0x9ea   : > { %4883 = vmatprep.mubr.f32.mxu1 %v11010_v19 }
 0x9ed   : > { %4884 = vmatmul.mubr.f32.gmra.mrb[68].mxu1 %v11013_v38 }
 0x9ee   : > { %4889 = vmatprep.mubr.f32.mxu1 %v11032_v23 }
 0x9f1   : > { %4890 = vmatmul.mubr.f32.gmra.mrb[70].mxu1 %v11035_v39 }
 0x9f2   : > { %4895 = vmatprep.mubr.f32.mxu1 %v11054_v36 }
 0x9f5   : > { %4896 = vmatmul.mubr.f32.gmra.mrb[72].mxu1 %v11057_v29 }
 0x9f6   : > { %4901 = vmatprep.mubr.f32.mxu1 %v11076_v45 }
 0x9f9   : > { %4902 = vmatmul.mubr.f32.gmra.mrb[74].mxu1 %v11079_v3 }
 0x9fa   : > { %4907 = vmatprep.mubr.f32.mxu1 %v11094_v41 }
 0x9fd   : > { %4908 = vmatmul.mubr.f32.gmra.mrb[76].mxu1 %v11096_v58 }
 0x9fe   : > { %4913 = vmatprep.mubr.f32.mxu1 %v11106_v32 }
 0xa01   : > { %4914 = vmatmul.mubr.f32.gmra.mrb[78].mxu1 %v11108_v28 }
 0xa02   : > { %5169 = vmatprep.mubr.f32.mxu1 %v12227_v11 }
 0xa78   : > { %v11162_v5 = vpop.f32.mrb[48].mxu1  ;;  %v11164_v21 = vpop.f32.mrb[72].mxu0 }
 0xa79   : > { %12342 = vst [vmem:[#allocation62_spill] sm:$0xff] %v11164_v21  ;;  %v11166_v53 = vpop.f32.mrb[49].mxu1  ;;  %v11168_v19 = vpop.f32.mrb[73].mxu0 }
 0xa7a   : > { %12343 = vst [vmem:[#allocation63_spill] sm:$0xff] %v11168_v19 }
 0xa7c   : > { %v11170_v38 = vpop.f32.mrb[50].mxu1  ;;  %v11172_v23 = vpop.f32.mrb[74].mxu0 }
 0xa7d   : > { %12344 = vst [vmem:[#allocation64_spill] sm:$0xff] %v11172_v23  ;;  %v11174_v39 = vpop.f32.mrb[51].mxu1  ;;  %v11176_v36 = vpop.f32.mrb[75].mxu0 }
 0xa7e   : > { %12345 = vst [vmem:[#allocation65_spill] sm:$0xff] %v11176_v36 }
 0xa80   : > { %v11178_v29 = vpop.f32.mrb[52].mxu1  ;;  %v11180_v45 = vpop.f32.mrb[76].mxu0 }
 0xa81   : > { %12346 = vst [vmem:[#allocation66_spill] sm:$0xff] %v11180_v45  ;;  %v11182_v3 = vpop.f32.mrb[53].mxu1  ;;  %v11184_v41 = vpop.f32.mrb[77].mxu0 }
 0xa82   : > { %12347 = vst [vmem:[#allocation67_spill] sm:$0xff] %v11184_v41 }
 0xa84   : > { %v11186_v58 = vpop.f32.mrb[54].mxu1  ;;  %v11188_v32 = vpop.f32.mrb[78].mxu0 }
 0xa85   : > { %12348 = vst [vmem:[#allocation68_spill] sm:$0xff] %v11188_v32  ;;  %v11190_v28 = vpop.f32.mrb[55].mxu1  ;;  %v11192_v37 = vpop.f32.mrb[79].mxu0 }
 0xa86   : > { %12349 = vst [vmem:[#allocation69_spill] sm:$0xff] %v11192_v37 }
 0xa88   : > { %v11194_v49 = vpop.f32.mrb[56].mxu1  ;;  %v11196_v30 = vpop.f32.mrb[80].mxu0 }
 0xa89   : > { %12351 = vst [vmem:[#allocation70_spill] sm:$0xff] %v11196_v30  ;;  %v11198_v62 = vpop.f32.mrb[57].mxu1  ;;  %v11200_v35 = vpop.f32.mrb[81].mxu0 }
 0xa8a   : > { %12352 = vst [vmem:[#allocation71_spill] sm:$0xff] %v11200_v35 }
 0xa8c   : > { %v11202_v44 = vpop.f32.mrb[58].mxu1  ;;  %v11204_v42 = vpop.f32.mrb[82].mxu0 }
 0xa8d   : > { %12354 = vst [vmem:[#allocation72_spill] sm:$0xff] %v11204_v42  ;;  %v11206_v47 = vpop.f32.mrb[59].mxu1  ;;  %v11208_v15 = vpop.f32.mrb[83].mxu0 }
 0xa8e   : > { %12355 = vst [vmem:[#allocation73_spill] sm:$0xff] %v11208_v15 }
 0xa90   : > { %v11210_v18 = vpop.f32.mrb[60].mxu1  ;;  %v11212_v43 = vpop.f32.mrb[84].mxu0 }
 0xa91   : > { %12356 = vst [vmem:[#allocation74_spill] sm:$0xff] %v11212_v43  ;;  %v11214_v31 = vpop.f32.mrb[61].mxu1  ;;  %v11216_v51 = vpop.f32.mrb[85].mxu0 }
 0xa92   : > { %12357 = vst [vmem:[#allocation75_spill] sm:$0xff] %v11214_v31  ;;  %12358 = vst [vmem:[#allocation76_spill] sm:$0xff] %v11216_v51  ;;  %v5289_v31 = vld [vmem:[#allocation17 + $0x230] sm:$0xff] }
 0xa94   : > { %v11218_v56 = vpop.f32.mrb[62].mxu1  ;;  %v11220_v17 = vpop.f32.mrb[86].mxu0 }
 0xa95   : > { %12359 = vst [vmem:[#allocation77_spill] sm:$0xff] %v11218_v56  ;;  %12360 = vst [vmem:[#allocation78_spill] sm:$0xff] %v11220_v17  ;;  %v11222_v40 = vpop.f32.mrb[63].mxu1  ;;  %v11224_v60 = vpop.f32.mrb[87].mxu0  ;;  %v5287_v56 = vld [vmem:[#allocation17 + $0x220] sm:$0xff] }
 0xa96   : > { %12361 = vst [vmem:[#allocation79_spill] sm:$0xff] %v11222_v40  ;;  %12362 = vst [vmem:[#allocation80_spill] sm:$0xff] %v11224_v60 }
 0xab8   : > { %v4873_v20 = vpop.f32.mrb[64].mxu1 }
 0xab9   : > { %v4875_v59 = vpop.f32.mrb[65].mxu1  ;;  %v4932_v55 = vmul.f32 %v11231_v57, %v4873_v20 }
 0xaba   : > { %v4933_v61 = vmul.f32 %v11228_v33, %v4875_v59 }
 0xabb   : > { %v11248_v17 = vadd.f32 %v11240_v10, %v4932_v55 }
 0xabc   : > { %v4879_v48 = vpop.f32.mrb[66].mxu1  ;;  %v11244_v24 = vadd.f32 %v11236_v25, %v4933_v61 }
 0xabd   : > { %v4934_v4 = vmul.f32 %v11231_v57, %v4879_v48  ;;  %v4881_v11 = vpop.f32.mrb[67].mxu1 }
 0xabe   : > { %v4935_v60 = vmul.f32 %v11228_v33, %v4881_v11  ;;  %v12232_v48 = vmax.f32 %v11244_v24, 0.0  ;;  %v12231_v11 = vmax.f32 %v11248_v17, 0.0 }
 0xabf   : > { %v11251_v59 = vadd.f32 %v11240_v10, %v4934_v4 }
 0xac0   : > { %v11254_v20 = vadd.f32 %v11236_v25, %v4935_v60  ;;  %v4885_v16 = vpop.f32.mrb[68].mxu1 }
 0xac1   : > { %v12230_v51 = vmax.f32 %v11251_v59, 0.0  ;;  %v4887_v43 = vpop.f32.mrb[69].mxu1  ;;  %v4936_v55 = vmul.f32 %v11231_v57, %v4885_v16 }
 0xac2   : > { %v12229_v61 = vmax.f32 %v11254_v20, 0.0  ;;  %v4937_v15 = vmul.f32 %v11228_v33, %v4887_v43 }
 0xac3   : > { %v8748_v4 = vpack.c.bf16 %v12230_v51, %v12231_v11  ;;  %v11276_v16 = vadd.f32 %v11240_v10, %v4936_v55 }
 0xac4   : > { %v4891_v42 = vpop.f32.mrb[70].mxu1  ;;  %v8746_v60 = vpack.c.bf16 %v12229_v61, %v12232_v48  ;;  %v11272_v43 = vadd.f32 %v11236_v25, %v4937_v15 }
 0xac5   : > { %v4938_v35 = vmul.f32 %v11231_v57, %v4891_v42  ;;  %v4893_v30 = vpop.f32.mrb[71].mxu1  ;;  %v12235_v55 = vmax.f32 %v11276_v16, 0.0 }
 0xac6   : > { %v4939_v37 = vmul.f32 %v11228_v33, %v4893_v30  ;;  %8747 = vmatprep.subr.bf16.mxu0 %v8746_v60  ;;  %8763 = vmatprep.subr.bf16.mxu1 %v8746_v60  ;;  %v12236_v48 = vmax.f32 %v11272_v43, 0.0 }
 0xac7   : > { %v11279_v61 = vadd.f32 %v11240_v10, %v4938_v35  ;;  %8749 = vmatpush1.bf16.msra.mxu0 %v8748_v4  ;;  %8765 = vmatpush1.bf16.msra.mxu1 %v8748_v4 }
 0xac8   : > { %v11282_v51 = vadd.f32 %v11236_v25, %v4939_v37  ;;  %v4897_v42 = vpop.f32.mrb[72].mxu1 }
 0xac9   : > { %v12234_v11 = vmax.f32 %v11279_v61, 0.0  ;;  %v4899_v15 = vpop.f32.mrb[73].mxu1  ;;  %v4940_v35 = vmul.f32 %v11231_v57, %v4897_v42 }
 0xaca   : > { %v12233_v30 = vmax.f32 %v11282_v51, 0.0  ;;  %v4941_v60 = vmul.f32 %v11228_v33, %v4899_v15 }
 0xacb   : > { %v8752_v4 = vpack.c.bf16 %v12234_v11, %v12235_v55  ;;  %v11304_v42 = vadd.f32 %v11240_v10, %v4940_v35 }
 0xacc   : > { %v4903_v32 = vpop.f32.mrb[74].mxu1  ;;  %v8750_v37 = vpack.c.bf16 %v12233_v30, %v12236_v48  ;;  %v11300_v15 = vadd.f32 %v11236_v25, %v4941_v60 }
 0xacd   : > { %v4942_v41 = vmul.f32 %v11231_v57, %v4903_v32  ;;  %v4905_v45 = vpop.f32.mrb[75].mxu1  ;;  %v12241_v35 = vmax.f32 %v11304_v42, 0.0 }
 0xace   : > { %v4943_v36 = vmul.f32 %v11228_v33, %v4905_v45  ;;  %8751 = vmatprep.subr.bf16.mxu0 %v8750_v37  ;;  %8767 = vmatprep.subr.bf16.mxu1 %v8750_v37  ;;  %v12242_v48 = vmax.f32 %v11300_v15, 0.0 }
 0xacf   : > { %v11307_v30 = vadd.f32 %v11240_v10, %v4942_v41  ;;  %8753 = vmatpush1.bf16.msra.mxu0 %v8752_v4  ;;  %8769 = vmatpush1.bf16.msra.mxu1 %v8752_v4 }
 0xad0   : > { %v11310_v11 = vadd.f32 %v11236_v25, %v4943_v36  ;;  %v4909_v32 = vpop.f32.mrb[76].mxu1 }
 0xad1   : > { %v12240_v55 = vmax.f32 %v11307_v30, 0.0  ;;  %v4911_v60 = vpop.f32.mrb[77].mxu1  ;;  %v4944_v41 = vmul.f32 %v11231_v57, %v4909_v32 }
 0xad2   : > { %v12239_v45 = vmax.f32 %v11310_v11, 0.0  ;;  %v4945_v37 = vmul.f32 %v11228_v33, %v4911_v60 }
 0xad3   : > { %v8756_v4 = vpack.c.bf16 %v12240_v55, %v12241_v35  ;;  %v11332_v32 = vadd.f32 %v11240_v10, %v4944_v41  ;;  %v5283_v41 = vld [vmem:[#allocation17 + $0x200] sm:$0xff] }
 0xad4   : > { %v4915_v23 = vpop.f32.mrb[78].mxu1  ;;  %v8754_v36 = vpack.c.bf16 %v12239_v45, %v12242_v48  ;;  %v11328_v60 = vadd.f32 %v11236_v25, %v4945_v37  ;;  %v5286_v37 = vld [vmem:[#allocation17 + $0x218] sm:$0xff] }
 0xad5   : > { %v4946_v19 = vmul.f32 %v11231_v57, %v4915_v23  ;;  %v4917_v21 = vpop.f32.mrb[79].mxu1  ;;  %v5284_v57 = vld [vmem:[#allocation17 + $0x208] sm:$0xff] }
 0xad6   : > { %v4947_v8 = vmul.f32 %v11228_v33, %v4917_v21  ;;  %8755 = vmatprep.subr.bf16.mxu0 %v8754_v36  ;;  %8771 = vmatprep.subr.bf16.mxu1 %v8754_v36  ;;  %v4989_v35 = vmax.f32 %v11328_v60, 0.0  ;;  %v4988_v33 = vmax.f32 %v11332_v32, 0.0  ;;  %v5285_v36 = vld [vmem:[#allocation17 + $0x210] sm:$0xff]  ;;  %v5250_v60 = vld [vmem:[#allocation17 + $0x100] sm:$0xff] }
 0xad7   : > { %v11335_v45 = vadd.f32 %v11240_v10, %v4946_v19  ;;  %8757 = vmatpush1.bf16.msra.mxu0 %v8756_v4  ;;  %8773 = vmatpush1.bf16.msra.mxu1 %v8756_v4  ;;  %v8778_v10 = vpack.c.bf16 %v5286_v37, %v5284_v57  ;;  %v5290_v4 = vld [vmem:[#allocation17 + $0x238] sm:$0xff]  ;;  %v8780_v48 = vpack.c.bf16 %v5285_v36, %v5283_v41  ;;  %v12363_v37 = vmov 0.0   ;;  %v5293_v41 = vld [vmem:[#allocation17 + $0x250] sm:$0xff]  ;;  %v5254_v32 = vld [vmem:[#allocation17 + $0x120] sm:$0xff] }
 0xad8   : > { %v11338_v55 = vadd.f32 %v11236_v25, %v4947_v8  ;;  %v5288_v25 = vld [vmem:[#allocation17 + $0x228] sm:$0xff]  ;;  %v5294_v57 = vld [vmem:[#allocation17 + $0x258] sm:$0xff] }
 0xad9   : > { %v12244_v23 = vmax.f32 %v11335_v45, 0.0  ;;  %v8782_v40 = vpack.c.bf16 %v5290_v4, %v5288_v25  ;;  %v5298_v36 = vld [vmem:[#allocation17 + $0x278] sm:$0xff]  ;;  %v5304_v25 = vld [vmem:[#allocation17 + $0x2a8] sm:$0xff] }
 0xada   : > { %v12243_v21 = vmax.f32 %v11338_v55, 0.0  ;;  %v5306_v4 = vld [vmem:[#allocation17 + $0x2b8] sm:$0xff] }
 0xadb   : > { %v8760_v8 = vpack.c.bf16 %v12244_v23, %v4988_v33  ;;  %v8784_v23 = vpack.c.bf16 %v5289_v31, %v5287_v56  ;;  %v5295_v31 = vld [vmem:[#allocation17 + $0x260] sm:$0xff]  ;;  %v5297_v56 = vld [vmem:[#allocation17 + $0x270] sm:$0xff] }
 0xadc   : > { %v8758_v19 = vpack.c.bf16 %v12243_v21, %v4989_v35  ;;  %v5292_v21 = vld [vmem:[#allocation17 + $0x248] sm:$0xff] }
 0xade   : > { %8759 = vmatprep.subr.bf16.mxu0 %v8758_v19  ;;  %8775 = vmatprep.subr.bf16.mxu1 %v8758_v19  ;;  %v8786_v19 = vpack.c.bf16 %v5294_v57, %v5292_v21  ;;  %v5301_v21 = vld [vmem:[#allocation17 + $0x290] sm:$0xff]  ;;  %v5303_v57 = vld [vmem:[#allocation17 + $0x2a0] sm:$0xff] }
 0xadf   : > { %8761 = vmatpush1.bf16.msra.mxu0 %v8760_v8  ;;  %8777 = vmatpush1.bf16.msra.mxu1 %v8760_v8  ;;  %v5291_v8 = vld [vmem:[#allocation17 + $0x240] sm:$0xff] }
 0xae0   : > { %8779 = vmatprep.subr.bf16.mxu0 %v8778_v10  ;;  %v5296_v10 = vld [vmem:[#allocation17 + $0x268] sm:$0xff] }
 0xae2   : > { %7405 = vmatmul.mubr.msk.f32.vlgmr.msra.gmra.mrb[88].mxu0 %vm1856_vm1, %v10494_v12  ;;  %7413 = vmatmul.mubr.msk.f32.vlgmr.msra.gmra.mrb[80].mxu1 %vm1856_vm1, %v10501_v14  ;;  %v8788_v12 = vpack.c.bf16 %v5293_v41, %v5291_v8  ;;  %v8790_v14 = vpack.c.bf16 %v5298_v36, %v5296_v10  ;;  %v5308_v8 = vld [vmem:[#allocation17 + $0x2c8] sm:$0xff]  ;;  %v5310_v41 = vld [vmem:[#allocation17 + $0x2d8] sm:$0xff]  ;;  %v5307_v10 = vld [vmem:[#allocation17 + $0x2c0] sm:$0xff] }
 0xae3   : > { %8781 = vmatpush1.bf16.msra.mxu0 %v8780_v48  ;;  %5062 = vmatprep.mubr.f32.mxu0 %v12363_v37  ;;  %v5302_v48 = vld [vmem:[#allocation17 + $0x298] sm:$0xff]  ;;  %v5309_v36 = vld [vmem:[#allocation17 + $0x2d0] sm:$0xff] }
 0xae4   : > { %8783 = vmatprep.subr.bf16.mxu0 %v8782_v40  ;;  %5175 = vmatprep.mubr.f32.mxu1 %v12363_v37  ;;  %v5300_v40 = vld [vmem:[#allocation17 + $0x288] sm:$0xff] }
 0xae6   : > { %7406 = vmatmul.mubr.msk.f32.gmra.mrb[90].mxu0 %vm1856_vm1, %v10575_v22  ;;  %7414 = vmatmul.mubr.msk.f32.gmra.mrb[82].mxu1 %vm1856_vm1, %v10583_v34  ;;  %v8792_v22 = vpack.c.bf16 %v5297_v56, %v5295_v31  ;;  %v8794_v34 = vpack.c.bf16 %v5302_v48, %v5300_v40  ;;  %v5311_v31 = vld [vmem:[#allocation17 + $0x2e0] sm:$0xff]  ;;  %v5313_v56 = vld [vmem:[#allocation17 + $0x2f0] sm:$0xff]  ;;  %v5316_v40 = vld [vmem:[#allocation17 + $0x308] sm:$0xff] }
 0xae7   : > { %8785 = vmatpush1.bf16.msra.mxu0 %v8784_v23  ;;  %5068 = vmatprep.mubr.f32.mxu0 %v12363_v37  ;;  %v5299_v23 = vld [vmem:[#allocation17 + $0x280] sm:$0xff]  ;;  %v5318_v48 = vld [vmem:[#allocation17 + $0x318] sm:$0xff] }
 0xae8   : > { %8787 = vmatprep.subr.bf16.mxu0 %v8786_v19  ;;  %5181 = vmatprep.mubr.f32.mxu1 %v12363_v37  ;;  %v5305_v19 = vld [vmem:[#allocation17 + $0x2b0] sm:$0xff] }
 0xaea   : > { %7407 = vmatmul.mubr.msk.f32.gmra.mrb[92].mxu0 %vm1856_vm1, %v10578_v26  ;;  %7415 = vmatmul.mubr.msk.f32.gmra.mrb[84].mxu1 %vm1856_vm1, %v10591_v46  ;;  %v8796_v26 = vpack.c.bf16 %v5301_v21, %v5299_v23  ;;  %v8798_v46 = vpack.c.bf16 %v5306_v4, %v5304_v25  ;;  %v5320_v23 = vld [vmem:[#allocation17 + $0x328] sm:$0xff]  ;;  %v5322_v21 = vld [vmem:[#allocation17 + $0x338] sm:$0xff]  ;;  %v5319_v4 = vld [vmem:[#allocation17 + $0x320] sm:$0xff] }
 0xaeb   : > { %8789 = vmatpush1.bf16.msra.mxu0 %v8788_v12  ;;  %5074 = vmatprep.mubr.f32.mxu0 %v12363_v37  ;;  %v5312_v12 = vld [vmem:[#allocation17 + $0x2e8] sm:$0xff]  ;;  %v8814_v25 = vpack.c.bf16 %v5322_v21, %v5320_v23  ;;  %v5342_v23 = vld [vmem:[#allocation17 + $0x3d8] sm:$0xff] }
 0xaec   : > { %8791 = vmatprep.subr.bf16.mxu0 %v8790_v14  ;;  %5187 = vmatprep.mubr.f32.mxu1 %v12363_v37  ;;  %v5314_v14 = vld [vmem:[#allocation17 + $0x2f8] sm:$0xff] }
 0xaee   : > { %7408 = vmatmul.mubr.msk.f32.gmra.mrb[94].mxu0 %vm1856_vm1, %v10603_v50  ;;  %7416 = vmatmul.mubr.msk.f32.gmra.mrb[86].mxu1 %vm1856_vm1, %v10610_v54  ;;  %v8800_v50 = vpack.c.bf16 %v5305_v19, %v5303_v57  ;;  %v8802_v54 = vpack.c.bf16 %v5310_v41, %v5308_v8  ;;  %v5326_v57 = vld [vmem:[#allocation17 + $0x358] sm:$0xff]  ;;  %v5323_v8 = vld [vmem:[#allocation17 + $0x340] sm:$0xff]  ;;  %v5328_v41 = vld [vmem:[#allocation17 + $0x368] sm:$0xff] }
 0xaef   : > { %8793 = vmatpush1.bf16.msra.mxu0 %v8792_v22  ;;  %5080 = vmatprep.mubr.f32.mxu0 %v12363_v37  ;;  %v5315_v22 = vld [vmem:[#allocation17 + $0x300] sm:$0xff] }
 0xaf0   : > { %8795 = vmatprep.subr.bf16.mxu0 %v8794_v34  ;;  %5193 = vmatprep.mubr.f32.mxu1 %v12363_v37  ;;  %v5317_v34 = vld [vmem:[#allocation17 + $0x310] sm:$0xff] }
 0xaf2   : > { %7409 = vmatmul.mubr.msk.f32.gmra.mrb[96].mxu0 %vm1856_vm1, %v10606_v52  ;;  %7417 = vmatmul.mubr.msk.f32.gmra.mrb[88].mxu1 %vm1856_vm1, %v10619_v63  ;;  %v8804_v52 = vpack.c.bf16 %v5309_v36, %v5307_v10  ;;  %v8806_v63 = vpack.c.bf16 %v5314_v14, %v5312_v12  ;;  %v5329_v10 = vld [vmem:[#allocation17 + $0x370] sm:$0xff]  ;;  %v5332_v36 = vld [vmem:[#allocation17 + $0x388] sm:$0xff]  ;;  %v5334_v12 = vld [vmem:[#allocation17 + $0x398] sm:$0xff] }
 0xaf3   : > { %8797 = vmatpush1.bf16.msra.mxu0 %v8796_v26  ;;  %5086 = vmatprep.mubr.f32.mxu0 %v12363_v37  ;;  %v5321_v26 = vld [vmem:[#allocation17 + $0x330] sm:$0xff] }
 0xaf4   : > { %8799 = vmatprep.subr.bf16.mxu0 %v8798_v46  ;;  %5199 = vmatprep.mubr.f32.mxu1 %v12363_v37  ;;  %v5324_v46 = vld [vmem:[#allocation17 + $0x348] sm:$0xff] }
 0xaf5   : > { %v8818_v19 = vpack.c.bf16 %v5326_v57, %v5324_v46 }
 0xaf6   : > { %7410 = vmatmul.mubr.msk.f32.gmra.mrb[98].mxu0 %vm1856_vm1, %v10631_v0  ;;  %7418 = vmatmul.mubr.msk.f32.gmra.mrb[90].mxu1 %vm1856_vm1, %v10634_v1  ;;  %v8808_v0 = vpack.c.bf16 %v5313_v56, %v5311_v31  ;;  %v8810_v1 = vpack.c.bf16 %v5318_v48, %v5316_v40  ;;  %v5333_v31 = vld [vmem:[#allocation17 + $0x390] sm:$0xff]  ;;  %v5336_v56 = vld [vmem:[#allocation17 + $0x3a8] sm:$0xff]  ;;  %v5338_v40 = vld [vmem:[#allocation17 + $0x3b8] sm:$0xff] }
 0xaf7   : > { %8801 = vmatpush1.bf16.msra.mxu0 %v8800_v50  ;;  %5092 = vmatprep.mubr.f32.mxu0 %v12363_v37  ;;  %v5330_v50 = vld [vmem:[#allocation17 + $0x378] sm:$0xff] }
 0xaf8   : > { %8803 = vmatprep.subr.bf16.mxu0 %v8802_v54  ;;  %5205 = vmatprep.mubr.f32.mxu1 %v12363_v37  ;;  %v5327_v54 = vld [vmem:[#allocation17 + $0x360] sm:$0xff] }
 0xaf9   : > { %v8824_v14 = vpack.c.bf16 %v5329_v10, %v5327_v54  ;;  %v5223_v54 = vld [vmem:[#allocation17 + $0x28] sm:$0xff]  ;;  %v5225_v10 = vld [vmem:[#allocation17 + $0x38] sm:$0xff] }
 0xafa   : > { %7411 = vmatmul.mubr.msk.f32.gmra.mrb[100].mxu0 %vm1856_vm1, %v10637_v2  ;;  %7419 = vmatmul.mubr.msk.f32.gmra.mrb[92].mxu1 %vm1856_vm1, %v10644_v6  ;;  %v12364_v2 = vmax.f32 %v11244_v24, 0.0  ;;  %v8812_v6 = vpack.c.bf16 %v5317_v34, %v5315_v22  ;;  %v8822_v24 = vpack.c.bf16 %v5330_v50, %v5328_v41  ;;  %v5337_v22 = vld [vmem:[#allocation17 + $0x3b0] sm:$0xff]  ;;  %v5340_v34 = vld [vmem:[#allocation17 + $0x3c8] sm:$0xff] }
 0xafb   : > { %8805 = vmatpush1.bf16.msra.mxu0 %v8804_v52  ;;  %5098 = vmatprep.mubr.f32.mxu0 %v12363_v37  ;;  %v8826_v52 = vpack.c.bf16 %v5334_v12, %v5332_v36  ;;  %v8846_v12 = vpack.c.bf16 %v5225_v10, %v5223_v54  ;;  %v5243_v54 = vld [vmem:[#allocation17 + $0xc8] sm:$0xff]  ;;  %v5245_v10 = vld [vmem:[#allocation17 + $0xd8] sm:$0xff] }
 0xafc   : > { %8807 = vmatprep.subr.bf16.mxu0 %v8806_v63  ;;  %5211 = vmatprep.mubr.f32.mxu1 %v12363_v37  ;;  %v8816_v37 = vpack.c.bf16 %v5321_v26, %v5319_v4  ;;  %v5331_v63 = vld [vmem:[#allocation17 + $0x380] sm:$0xff]  ;;  %v5344_v4 = vld [vmem:[#allocation17 + $0x3e8] sm:$0xff]  ;;  %v5346_v26 = vld [vmem:[#allocation17 + $0x3f8] sm:$0xff] }
 0xafd   : > { %v8828_v48 = vpack.c.bf16 %v5333_v31, %v5331_v63  ;;  %v8838_v57 = vpack.c.bf16 %v5346_v26, %v5344_v4  ;;  %v5227_v63 = vld [vmem:[#allocation17 + $0x48] sm:$0xff]  ;;  %v5229_v31 = vld [vmem:[#allocation17 + $0x58] sm:$0xff] }
 0xafe   : > { %7412 = vmatmul.mubr.msk.f32.gmra.mrb[102].mxu0 %vm1856_vm1, %v10653_v13  ;;  %7420 = vmatmul.mubr.msk.f32.gmra.mrb[94].mxu1 %vm1856_vm1, %v10656_v9  ;;  %v5325_v13 = vld [vmem:[#allocation17 + $0x350] sm:$0xff]  ;;  %v5235_v4 = vld [vmem:[#allocation17 + $0x88] sm:$0xff]  ;;  %v5237_v26 = vld [vmem:[#allocation17 + $0x98] sm:$0xff]  ;;  %vm7040_vm1 = vcmask 1040384  }
 0xaff   : > { %8809 = vmatpush1.bf16.msra.mxu0 %v8808_v0  ;;  %5411 = vmatprep.mubr.f32.mxu0 %v12364_v2  ;;  %v8820_v9 = vpack.c.bf16 %v5325_v13, %v5323_v8  ;;  %v8830_v0 = vpack.c.bf16 %v5338_v40, %v5336_v56  ;;  %v8834_v2 = vpack.c.bf16 %v5342_v23, %v5340_v34  ;;  %v5219_v8 = vld [vmem:[#allocation17 + $0x8] sm:$0xff]  ;;  %v5221_v13 = vld [vmem:[#allocation17 + $0x18] sm:$0xff]  ;;  %v12365_v56 = vmax.f32 %v11248_v17, 0.0 }
 0xb00   : > { %8811 = vmatprep.subr.bf16.mxu0 %v8810_v1  ;;  %v5335_v1 = vld [vmem:[#allocation17 + $0x3a0] sm:$0xff]  ;;  %v8842_v50 = vpack.c.bf16 %v5221_v13, %v5219_v8  ;;  %v12366_v40 = vmax.f32 %v11254_v20, 0.0  ;;  %v5231_v34 = vld [vmem:[#allocation17 + $0x68] sm:$0xff]  ;;  %v5233_v23 = vld [vmem:[#allocation17 + $0x78] sm:$0xff] }
 0xb01   : > { %v8832_v21 = vpack.c.bf16 %v5337_v22, %v5335_v1  ;;  %v5226_v1 = vld [vmem:[#allocation17 + $0x40] sm:$0xff]  ;;  %v5228_v22 = vld [vmem:[#allocation17 + $0x50] sm:$0xff]  ;;  %v5239_v8 = vld [vmem:[#allocation17 + $0xa8] sm:$0xff] }
 0xb02   : > { %v8852_v17 = vpack.c.bf16 %v5228_v22, %v5226_v1  ;;  %v5230_v20 = vld [vmem:[#allocation17 + $0x60] sm:$0xff]  ;;  %v5241_v13 = vld [vmem:[#allocation17 + $0xb8] sm:$0xff]  ;;  %v12376_v22 = vmax.f32 %v11338_v55, 0.0 }
 0xb03   : > { %8813 = vmatpush1.bf16.msra.mxu0 %v8812_v6  ;;  %v5339_v6 = vld [vmem:[#allocation17 + $0x3c0] sm:$0xff]  ;;  %v5253_v1 = vld [vmem:[#allocation17 + $0x118] sm:$0xff] }
 0xb04   : > { %8815 = vmatprep.subr.bf16.mxu0 %v8814_v25  ;;  %v5341_v25 = vld [vmem:[#allocation17 + $0x3d0] sm:$0xff]  ;;  %v5261_v55 = vld [vmem:[#allocation17 + $0x158] sm:$0xff] }
 0xb05   : > { %v8836_v46 = vpack.c.bf16 %v5341_v25, %v5339_v6  ;;  %v8854_v6 = vpack.c.bf16 %v5233_v23, %v5231_v34  ;;  %v5232_v25 = vld [vmem:[#allocation17 + $0x70] sm:$0xff]  ;;  %v5255_v23 = vld [vmem:[#allocation17 + $0x128] sm:$0xff] }
 0xb07   : > { %8817 = vmatpush1.bf16.msra.mxu0 %v8816_v37  ;;  %v5343_v37 = vld [vmem:[#allocation17 + $0x3e0] sm:$0xff] }
 0xb08   : > { %8819 = vmatprep.subr.bf16.mxu0 %v8818_v19  ;;  %v5345_v19 = vld [vmem:[#allocation17 + $0x3f0] sm:$0xff] }
 0xb09   : > { %v8840_v41 = vpack.c.bf16 %v5345_v19, %v5343_v37  ;;  %v8858_v37 = vpack.c.bf16 %v5237_v26, %v5235_v4  ;;  %v5236_v19 = vld [vmem:[#allocation17 + $0x90] sm:$0xff]  ;;  %v5258_v26 = vld [vmem:[#allocation17 + $0x140] sm:$0xff] }
 0xb0b   : > { %8821 = vmatpush1.bf16.msra.mxu0 %v8820_v9  ;;  %v5218_v9 = vld [vmem:[#allocation17] sm:$0xff] }
 0xb0c   : > { %8823 = vmatprep.subr.bf16.mxu0 %v8822_v24  ;;  %v5220_v24 = vld [vmem:[#allocation17 + $0x10] sm:$0xff] }
 0xb0d   : > { %v8844_v36 = vpack.c.bf16 %v5220_v24, %v5218_v9  ;;  %v8862_v9 = vpack.c.bf16 %v5241_v13, %v5239_v8  ;;  %v5240_v24 = vld [vmem:[#allocation17 + $0xb0] sm:$0xff]  ;;  %v5267_v8 = vld [vmem:[#allocation17 + $0x188] sm:$0xff]  ;;  %v5269_v13 = vld [vmem:[#allocation17 + $0x198] sm:$0xff] }
 0xb0f   : > { %8825 = vmatpush1.bf16.msra.mxu0 %v8824_v14  ;;  %v5222_v14 = vld [vmem:[#allocation17 + $0x20] sm:$0xff] }
 0xb10   : > { %8827 = vmatprep.subr.bf16.mxu0 %v8826_v52  ;;  %v5224_v52 = vld [vmem:[#allocation17 + $0x30] sm:$0xff] }
 0xb13   : > { %8829 = vmatpush1.bf16.msra.mxu0 %v8828_v48  ;;  %v8848_v48 = vpack.c.bf16 %v5224_v52, %v5222_v14  ;;  %v8866_v14 = vpack.c.bf16 %v5245_v10, %v5243_v54  ;;  %v5244_v52 = vld [vmem:[#allocation17 + $0xd0] sm:$0xff] }
 0xb14   : > { %8831 = vmatprep.subr.bf16.mxu0 %v8830_v0  ;;  %v8850_v0 = vpack.c.bf16 %v5229_v31, %v5227_v63  ;;  %v5247_v63 = vld [vmem:[#allocation17 + $0xe8] sm:$0xff]  ;;  %v5249_v31 = vld [vmem:[#allocation17 + $0xf8] sm:$0xff] }
 0xb17   : > { %8833 = vmatpush1.bf16.msra.mxu0 %v8832_v21  ;;  %v12367_v21 = vmax.f32 %v11251_v59, 0.0  ;;  %v8856_v59 = vpack.c.bf16 %v5232_v25, %v5230_v20  ;;  %v5259_v20 = vld [vmem:[#allocation17 + $0x148] sm:$0xff] }
 0xb18   : > { %8835 = vmatprep.subr.bf16.mxu0 %v8834_v2  ;;  %v12368_v2 = vmax.f32 %v11272_v43, 0.0  ;;  %v5234_v43 = vld [vmem:[#allocation17 + $0x80] sm:$0xff]  ;;  %v8882_v4 = vpack.c.bf16 %v5261_v55, %v5259_v20 }
 0xb19   : > { %v5847_v20 = vld [vmem:[#allocation18 + $0x40] sm:$0xff] }
 0xb1a   : > { %v5851_v55 = vld [vmem:[#allocation18 + $0x60] sm:$0xff] }
 0xb1b   : > { %8837 = vmatpush1.bf16.msra.mxu0 %v8836_v46  ;;  %v12369_v46 = vmax.f32 %v11276_v16, 0.0  ;;  %v8860_v16 = vpack.c.bf16 %v5236_v19, %v5234_v43  ;;  %v5262_v43 = vld [vmem:[#allocation17 + $0x160] sm:$0xff]  ;;  %v5264_v19 = vld [vmem:[#allocation17 + $0x170] sm:$0xff] }
 0xb1c   : > { %8839 = vmatprep.subr.bf16.mxu0 %v8838_v57  ;;  %v12370_v57 = vmax.f32 %v11282_v51, 0.0  ;;  %v5238_v51 = vld [vmem:[#allocation17 + $0xa0] sm:$0xff] }
 0xb1f   : > { %8841 = vmatpush1.bf16.msra.mxu0 %v8840_v41  ;;  %v12371_v41 = vmax.f32 %v11279_v61, 0.0  ;;  %v8864_v61 = vpack.c.bf16 %v5240_v24, %v5238_v51  ;;  %v5271_v51 = vld [vmem:[#allocation17 + $0x1a8] sm:$0xff]  ;;  %v5273_v24 = vld [vmem:[#allocation17 + $0x1b8] sm:$0xff] }
 0xb20   : > { %8843 = vmatprep.subr.bf16.mxu0 %v8842_v50  ;;  %v12372_v50 = vmax.f32 %v11300_v15, 0.0  ;;  %v5242_v15 = vld [vmem:[#allocation17 + $0xc0] sm:$0xff]  ;;  %v8894_v10 = vpack.c.bf16 %v5273_v24, %v5271_v51 }
 0xb21   : > { %v5871_v51 = vld [vmem:[#allocation18 + $0x100] sm:$0xff] }
 0xb22   : > { %5412 = vmatmul.mubr.f32.vlgmr.msra.gmra.mrb[104].mxu0 %v12365_v56  ;;  %v12375_v56 = vmax.f32 %v11307_v30, 0.0  ;;  %v5875_v24 = vld [vmem:[#allocation18 + $0x120] sm:$0xff] }
 0xb23   : > { %5417 = vmatprep.mubr.f32.mxu0 %v12366_v40  ;;  %8845 = vmatpush1.bf16.msra.mxu0 %v8844_v36  ;;  %v12373_v36 = vmax.f32 %v11304_v42, 0.0  ;;  %v8868_v42 = vpack.c.bf16 %v5244_v52, %v5242_v15  ;;  %v8870_v40 = vpack.c.bf16 %v5249_v31, %v5247_v63  ;;  %v5274_v63 = vld [vmem:[#allocation17 + $0x1c0] sm:$0xff]  ;;  %v5276_v31 = vld [vmem:[#allocation17 + $0x1d0] sm:$0xff] }
 0xb24   : > { %8847 = vmatprep.subr.bf16.mxu0 %v8846_v12  ;;  %v12374_v12 = vmax.f32 %v11310_v11, 0.0  ;;  %v5246_v11 = vld [vmem:[#allocation17 + $0xe0] sm:$0xff] }
 0xb26   : > { %5418 = vmatmul.mubr.f32.gmra.mrb[106].mxu0 %v12367_v21  ;;  %v5257_v21 = vld [vmem:[#allocation17 + $0x138] sm:$0xff] }
 0xb27   : > { %5423 = vmatprep.mubr.f32.mxu0 %v12368_v2  ;;  %8849 = vmatpush1.bf16.msra.mxu0 %v8848_v48  ;;  %v5248_v48 = vld [vmem:[#allocation17 + $0xf0] sm:$0xff]  ;;  %v12377_v2 = vmax.f32 %v11335_v45, 0.0 }
 0xb28   : > { %8851 = vmatprep.subr.bf16.mxu0 %v8850_v0  ;;  %v5251_v0 = vld [vmem:[#allocation17 + $0x108] sm:$0xff]  ;;  %v8872_v30 = vpack.c.bf16 %v5248_v48, %v5246_v11  ;;  %v5278_v48 = vld [vmem:[#allocation17 + $0x1e0] sm:$0xff] }
 0xb29   : > { %v8874_v34 = vpack.c.bf16 %v5253_v1, %v5251_v0  ;;  %v5280_v0 = vld [vmem:[#allocation17 + $0x1f0] sm:$0xff]  ;;  %v5575_v1 = vld [vmem:[#allocation17 + $0x408] sm:$0xff] }
 0xb2a   : > { %5424 = vmatmul.mubr.f32.gmra.mrb[108].mxu0 %v12369_v46  ;;  %v5260_v46 = vld [vmem:[#allocation17 + $0x150] sm:$0xff] }
 0xb2b   : > { %5429 = vmatprep.mubr.f32.mxu0 %v12370_v57  ;;  %8853 = vmatpush1.bf16.msra.mxu0 %v8852_v17  ;;  %v5263_v57 = vld [vmem:[#allocation17 + $0x168] sm:$0xff] }
 0xb2c   : > { %8855 = vmatprep.subr.bf16.mxu0 %v8854_v6  ;;  %v8878_v6 = vpack.c.bf16 %v5257_v21, %v5255_v23  ;;  %v5839_v23 = vld [vmem:[#allocation18] sm:$0xff] }
 0xb2e   : > { %5430 = vmatmul.mubr.f32.gmra.mrb[110].mxu0 %v12371_v41  ;;  %v8888_v41 = vpack.c.bf16 %v5264_v19, %v5262_v43 }
 0xb2f   : > { %5435 = vmatprep.mubr.f32.mxu0 %v12372_v50  ;;  %8857 = vmatpush1.bf16.msra.mxu0 %v8856_v59  ;;  %v5265_v59 = vld [vmem:[#allocation17 + $0x178] sm:$0xff]  ;;  %v8890_v50 = vpack.c.bf16 %v5269_v13, %v5267_v8  ;;  %v5863_v8 = vld [vmem:[#allocation18 + $0xc0] sm:$0xff] }
 0xb30   : > { %8859 = vmatprep.subr.bf16.mxu0 %v8858_v37  ;;  %v8884_v37 = vpack.c.bf16 %v5260_v46, %v5258_v26  ;;  %v8886_v45 = vpack.c.bf16 %v5265_v59, %v5263_v57  ;;  %v8976_v26 = vpack.c.bf16 %v5851_v55, %v5847_v20  ;;  %v5855_v57 = vld [vmem:[#allocation18 + $0x80] sm:$0xff]  ;;  %v5581_v20 = vld [vmem:[#allocation17 + $0x438] sm:$0xff] }
 0xb31   : > { %v5859_v59 = vld [vmem:[#allocation18 + $0xa0] sm:$0xff] }
 0xb32   : > { %5436 = vmatmul.mubr.f32.gmra.mrb[112].mxu0 %v12373_v36  ;;  %v5270_v36 = vld [vmem:[#allocation17 + $0x1a0] sm:$0xff]  ;;  %v8980_v43 = vpack.c.bf16 %v5859_v59, %v5855_v57 }
 0xb33   : > { %5441 = vmatprep.mubr.f32.mxu0 %v12374_v12  ;;  %8861 = vmatpush1.bf16.msra.mxu0 %v8860_v16  ;;  %v5266_v16 = vld [vmem:[#allocation17 + $0x180] sm:$0xff]  ;;  %v5272_v12 = vld [vmem:[#allocation17 + $0x1b0] sm:$0xff] }
 0xb34   : > { %8863 = vmatprep.subr.bf16.mxu0 %v8862_v9  ;;  %v5268_v9 = vld [vmem:[#allocation17 + $0x190] sm:$0xff]  ;;  %v8896_v15 = vpack.c.bf16 %v5272_v12, %v5270_v36  ;;  %v5867_v13 = vld [vmem:[#allocation18 + $0xe0] sm:$0xff]  ;;  %v8988_v36 = vpack.c.bf16 %v5875_v24, %v5871_v51 }
 0xb35   : > { %v8892_v54 = vpack.c.bf16 %v5268_v9, %v5266_v16  ;;  %v8984_v16 = vpack.c.bf16 %v5867_v13, %v5863_v8  ;;  %v5911_v59 = vld [vmem:[#allocation18 + $0x240] sm:$0xff]  ;;  %v5920_v13 = vld [vmem:[#allocation18 + $0x288] sm:$0xff] }
 0xb36   : > { %5442 = vmatmul.mubr.f32.gmra.mrb[114].mxu0 %v12375_v56  ;;  %v5279_v56 = vld [vmem:[#allocation17 + $0x1e8] sm:$0xff]  ;;  %v5582_v24 = vld [vmem:[#allocation17 + $0x440] sm:$0xff] }
 0xb37   : > { %5447 = vmatprep.mubr.f32.mxu0 %v4989_v35  ;;  %8865 = vmatpush1.bf16.msra.mxu0 %v8864_v61  ;;  %v5252_v35 = vld [vmem:[#allocation17 + $0x110] sm:$0xff]  ;;  %v5275_v61 = vld [vmem:[#allocation17 + $0x1c8] sm:$0xff] }
 0xb38   : > { %8867 = vmatprep.subr.bf16.mxu0 %v8866_v14  ;;  %v8876_v17 = vpack.c.bf16 %v5252_v35, %v5250_v60  ;;  %v5277_v14 = vld [vmem:[#allocation17 + $0x1d8] sm:$0xff]  ;;  %v5840_v60 = vld [vmem:[#allocation18 + $0x8] sm:$0xff] }
 0xb39   : > { %v8898_v52 = vpack.c.bf16 %v5277_v14, %v5275_v61  ;;  %v5844_v35 = vld [vmem:[#allocation18 + $0x28] sm:$0xff]  ;;  %v5879_v61 = vld [vmem:[#allocation18 + $0x140] sm:$0xff] }
 0xb3a   : > { %5448 = vmatmul.mubr.f32.gmra.mrb[116].mxu0 %v4988_v33  ;;  %v5256_v33 = vld [vmem:[#allocation17 + $0x130] sm:$0xff]  ;;  %v8970_v21 = vpack.c.bf16 %v5844_v35, %v5840_v60  ;;  %v5883_v14 = vld [vmem:[#allocation18 + $0x160] sm:$0xff] }
 0xb3b   : > { %5453 = vmatprep.mubr.f32.mxu0 %v12376_v22  ;;  %8869 = vmatpush1.bf16.msra.mxu0 %v8868_v42  ;;  %v8880_v25 = vpack.c.bf16 %v5256_v33, %v5254_v32  ;;  %v5281_v42 = vld [vmem:[#allocation17 + $0x1f8] sm:$0xff]  ;;  %v5574_v35 = vld [vmem:[#allocation17 + $0x400] sm:$0xff] }
 0xb3c   : > { %8871 = vmatprep.subr.bf16.mxu0 %v8870_v40  ;;  %v8900_v40 = vpack.c.bf16 %v5276_v31, %v5274_v63  ;;  %v8902_v11 = vpack.c.bf16 %v5281_v42, %v5279_v56  ;;  %v5577_v22 = vld [vmem:[#allocation17 + $0x418] sm:$0xff]  ;;  %8971 = vmatprep.subr.bf16.mxu1 %v8970_v21  ;;  %v8992_v63 = vpack.c.bf16 %v5883_v14, %v5879_v61  ;;  %v5887_v56 = vld [vmem:[#allocation18 + $0x180] sm:$0xff] }
 0xb3d   : > { %v5891_v42 = vld [vmem:[#allocation18 + $0x1a0] sm:$0xff] }
 0xb3e   : > { %5454 = vmatmul.mubr.f32.gmra.mrb[118].mxu0 %v12377_v2  ;;  %v5843_v2 = vld [vmem:[#allocation18 + $0x20] sm:$0xff] }
 0xb3f   : > { %8873 = vmatpush1.bf16.msra.mxu0 %v8872_v30  ;;  %v8904_v30 = vpack.c.bf16 %v5280_v0, %v5278_v48  ;;  %v8972_v32 = vpack.c.bf16 %v5843_v2, %v5839_v23  ;;  %v8996_v48 = vpack.c.bf16 %v5891_v42, %v5887_v56  ;;  %v5903_v21 = vld [vmem:[#allocation18 + $0x200] sm:$0xff]  ;;  %v5932_v56 = vld [vmem:[#allocation18 + $0x2e8] sm:$0xff] }
 0xb40   : > { %8875 = vmatprep.subr.bf16.mxu0 %v8874_v34  ;;  %v8906_v34 = vpack.c.bf16 %v5577_v22, %v5575_v1  ;;  %v5895_v1 = vld [vmem:[#allocation18 + $0x1c0] sm:$0xff]  ;;  %v5587_v42 = vld [vmem:[#allocation17 + $0x468] sm:$0xff] }
 0xb41   : > { %8973 = vmatpush1.bf16.msra.mxu1 %v8972_v32  ;;  %v5899_v22 = vld [vmem:[#allocation18 + $0x1e0] sm:$0xff]  ;;  %v5916_v32 = vld [vmem:[#allocation18 + $0x268] sm:$0xff] }
 0xb42   : > { %v9000_v60 = vpack.c.bf16 %v5899_v22, %v5895_v1  ;;  %v5907_v2 = vld [vmem:[#allocation18 + $0x220] sm:$0xff] }
 0xb43   : > { %8877 = vmatpush1.bf16.msra.mxu0 %v8876_v17  ;;  %v5848_v17 = vld [vmem:[#allocation18 + $0x48] sm:$0xff]  ;;  %v9004_v55 = vpack.c.bf16 %v5907_v2, %v5903_v21  ;;  %v5923_v61 = vld [vmem:[#allocation18 + $0x2a0] sm:$0xff] }
 0xb44   : > { %8879 = vmatprep.subr.bf16.mxu0 %v8878_v6  ;;  %v5852_v6 = vld [vmem:[#allocation18 + $0x68] sm:$0xff] }
 0xb45   : > { %v8974_v33 = vpack.c.bf16 %v5852_v6, %v5848_v17  ;;  %v5576_v17 = vld [vmem:[#allocation17 + $0x410] sm:$0xff]  ;;  %v5912_v6 = vld [vmem:[#allocation18 + $0x248] sm:$0xff] }
 0xb46   : > { %v9006_v57 = vpack.c.bf16 %v5916_v32, %v5912_v6  ;;  %v5940_v6 = vld [vmem:[#allocation18 + $0x328] sm:$0xff] }
 0xb47   : > { %8881 = vmatpush1.bf16.msra.mxu0 %v8880_v25  ;;  %v5856_v25 = vld [vmem:[#allocation18 + $0x88] sm:$0xff]  ;;  %8975 = vmatprep.subr.bf16.mxu1 %v8974_v33 }
 0xb48   : > { %8883 = vmatprep.subr.bf16.mxu0 %v8882_v4  ;;  %v5860_v4 = vld [vmem:[#allocation18 + $0xa8] sm:$0xff]  ;;  %8977 = vmatpush1.bf16.msra.mxu1 %v8976_v26  ;;  %v5578_v26 = vld [vmem:[#allocation17 + $0x420] sm:$0xff] }
 0xb49   : > { %v8978_v46 = vpack.c.bf16 %v5860_v4, %v5856_v25  ;;  %v5579_v33 = vld [vmem:[#allocation17 + $0x428] sm:$0xff]  ;;  %v8908_v4 = vpack.c.bf16 %v5576_v17, %v5574_v35 }
 0xb4a   : > { %v5936_v17 = vld [vmem:[#allocation18 + $0x308] sm:$0xff] }
 0xb4b   : > { %8885 = vmatpush1.bf16.msra.mxu0 %v8884_v37  ;;  %v5864_v37 = vld [vmem:[#allocation18 + $0xc8] sm:$0xff]  ;;  %8979 = vmatprep.subr.bf16.mxu1 %v8978_v46 }
 0xb4c   : > { %8887 = vmatprep.subr.bf16.mxu0 %v8886_v45  ;;  %v5868_v45 = vld [vmem:[#allocation18 + $0xe8] sm:$0xff]  ;;  %8981 = vmatpush1.bf16.msra.mxu1 %v8980_v43  ;;  %v8910_v43 = vpack.c.bf16 %v5581_v20, %v5579_v33  ;;  %v5593_v33 = vld [vmem:[#allocation17 + $0x498] sm:$0xff] }
 0xb4d   : > { %v8982_v19 = vpack.c.bf16 %v5868_v45, %v5864_v37  ;;  %v5915_v37 = vld [vmem:[#allocation18 + $0x260] sm:$0xff]  ;;  %v5591_v32 = vld [vmem:[#allocation17 + $0x488] sm:$0xff] }
 0xb4f   : > { %8889 = vmatpush1.bf16.msra.mxu0 %v8888_v41  ;;  %v5872_v41 = vld [vmem:[#allocation18 + $0x108] sm:$0xff]  ;;  %8983 = vmatprep.subr.bf16.mxu1 %v8982_v19  ;;  %v5580_v19 = vld [vmem:[#allocation17 + $0x430] sm:$0xff] }
 0xb50   : > { %8891 = vmatprep.subr.bf16.mxu0 %v8890_v50  ;;  %v5876_v50 = vld [vmem:[#allocation18 + $0x128] sm:$0xff]  ;;  %8985 = vmatpush1.bf16.msra.mxu1 %v8984_v16  ;;  %v5585_v16 = vld [vmem:[#allocation17 + $0x458] sm:$0xff]  ;;  %v8912_v51 = vpack.c.bf16 %v5580_v19, %v5578_v26 }
 0xb51   : > { %v8986_v9 = vpack.c.bf16 %v5876_v50, %v5872_v41  ;;  %v5924_v41 = vld [vmem:[#allocation18 + $0x2a8] sm:$0xff] }
 0xb52   : > { %v5583_v50 = vld [vmem:[#allocation17 + $0x448] sm:$0xff] }
 0xb53   : > { %8893 = vmatpush1.bf16.msra.mxu0 %v8892_v54  ;;  %v5880_v54 = vld [vmem:[#allocation18 + $0x148] sm:$0xff]  ;;  %8987 = vmatprep.subr.bf16.mxu1 %v8986_v9  ;;  %v9008_v9 = vpack.c.bf16 %v5915_v37, %v5911_v59  ;;  %v8914_v14 = vpack.c.bf16 %v5585_v16, %v5583_v50  ;;  %v5935_v59 = vld [vmem:[#allocation18 + $0x300] sm:$0xff] }
 0xb54   : > { %8895 = vmatprep.subr.bf16.mxu0 %v8894_v10  ;;  %v5884_v10 = vld [vmem:[#allocation18 + $0x168] sm:$0xff]  ;;  %8989 = vmatpush1.bf16.msra.mxu1 %v8988_v36  ;;  %v9010_v36 = vpack.c.bf16 %v5924_v41, %v5920_v13  ;;  %v5939_v37 = vld [vmem:[#allocation18 + $0x320] sm:$0xff] }
 0xb55   : > { %v8990_v12 = vpack.c.bf16 %v5884_v10, %v5880_v54  ;;  %v5944_v41 = vld [vmem:[#allocation18 + $0x348] sm:$0xff] }
 0xb56   : > { %v5948_v50 = vld [vmem:[#allocation18 + $0x368] sm:$0xff] }
 0xb57   : > { %8897 = vmatpush1.bf16.msra.mxu0 %v8896_v15  ;;  %v5888_v15 = vld [vmem:[#allocation18 + $0x188] sm:$0xff]  ;;  %8991 = vmatprep.subr.bf16.mxu1 %v8990_v12  ;;  %v5919_v12 = vld [vmem:[#allocation18 + $0x280] sm:$0xff] }
 0xb58   : > { %8899 = vmatprep.subr.bf16.mxu0 %v8898_v52  ;;  %v5892_v52 = vld [vmem:[#allocation18 + $0x1a8] sm:$0xff]  ;;  %8993 = vmatpush1.bf16.msra.mxu1 %v8992_v63 }
 0xb59   : > { %v8994_v31 = vpack.c.bf16 %v5892_v52, %v5888_v15  ;;  %v5584_v15 = vld [vmem:[#allocation17 + $0x450] sm:$0xff]  ;;  %v5595_v16 = vld [vmem:[#allocation17 + $0x4a8] sm:$0xff] }
 0xb5b   : > { %8901 = vmatpush1.bf16.msra.mxu0 %v8900_v40  ;;  %v5896_v40 = vld [vmem:[#allocation18 + $0x1c8] sm:$0xff]  ;;  %8995 = vmatprep.subr.bf16.mxu1 %v8994_v31 }
 0xb5c   : > { %8903 = vmatprep.subr.bf16.mxu0 %v8902_v11  ;;  %v5900_v11 = vld [vmem:[#allocation18 + $0x1e8] sm:$0xff]  ;;  %8997 = vmatpush1.bf16.msra.mxu1 %v8996_v48  ;;  %v8916_v48 = vpack.c.bf16 %v5584_v15, %v5582_v24 }
 0xb5d   : > { %v8998_v0 = vpack.c.bf16 %v5900_v11, %v5896_v40  ;;  %v5928_v31 = vld [vmem:[#allocation18 + $0x2c8] sm:$0xff]  ;;  %v5589_v40 = vld [vmem:[#allocation17 + $0x478] sm:$0xff]  ;;  %v9012_v11 = vpack.c.bf16 %v5923_v61, %v5919_v12  ;;  %v9022_v12 = vpack.c.bf16 %v5948_v50, %v5944_v41  ;;  %v5943_v61 = vld [vmem:[#allocation18 + $0x340] sm:$0xff] }
 0xb5e   : > { %v8918_v35 = vpack.c.bf16 %v5589_v40, %v5587_v42  ;;  %v5599_v40 = vld [vmem:[#allocation17 + $0x4c8] sm:$0xff] }
 0xb5f   : > { %8905 = vmatpush1.bf16.msra.mxu0 %v8904_v30  ;;  %v5904_v30 = vld [vmem:[#allocation18 + $0x208] sm:$0xff]  ;;  %8999 = vmatprep.subr.bf16.mxu1 %v8998_v0  ;;  %v5586_v0 = vld [vmem:[#allocation17 + $0x460] sm:$0xff] }
 0xb60   : > { %8907 = vmatprep.subr.bf16.mxu0 %v8906_v34  ;;  %v5908_v34 = vld [vmem:[#allocation18 + $0x228] sm:$0xff]  ;;  %9001 = vmatpush1.bf16.msra.mxu1 %v9000_v60  ;;  %v5931_v60 = vld [vmem:[#allocation18 + $0x2e0] sm:$0xff] }
 0xb61   : > { %v9002_v23 = vpack.c.bf16 %v5908_v34, %v5904_v30  ;;  %v9014_v30 = vpack.c.bf16 %v5932_v56, %v5928_v31  ;;  %v5927_v34 = vld [vmem:[#allocation18 + $0x2c0] sm:$0xff]  ;;  %v5596_v31 = vld [vmem:[#allocation17 + $0x4b0] sm:$0xff] }
 0xb62   : > { %v9016_v20 = vpack.c.bf16 %v5931_v60, %v5927_v34  ;;  %v5598_v60 = vld [vmem:[#allocation17 + $0x4c0] sm:$0xff] }
 0xb63   : > { %9003 = vmatprep.subr.bf16.mxu1 %v9002_v23  ;;  %v5588_v23 = vld [vmem:[#allocation17 + $0x470] sm:$0xff] }
 0xb64   : > { %9005 = vmatpush1.bf16.msra.mxu1 %v9004_v55  ;;  %v8920_v55 = vpack.c.bf16 %v5588_v23, %v5586_v0 }
 0xb65   : > { %9007 = vmatprep.subr.bf16.mxu1 %v9006_v57  ;;  %v9018_v57 = vpack.c.bf16 %v5940_v6, %v5936_v17  ;;  %v5603_v17 = vld [vmem:[#allocation17 + $0x4e8] sm:$0xff]  ;;  %v5605_v6 = vld [vmem:[#allocation17 + $0x4f8] sm:$0xff] }
 0xb68   : > { %9009 = vmatpush1.bf16.msra.mxu1 %v9008_v9  ;;  %v5597_v9 = vld [vmem:[#allocation17 + $0x4b8] sm:$0xff] }
 0xb69   : > { %9011 = vmatprep.subr.bf16.mxu1 %v9010_v36  ;;  %v8926_v15 = vpack.c.bf16 %v5597_v9, %v5595_v16  ;;  %v5606_v16 = vld [vmem:[#allocation17 + $0x500] sm:$0xff]  ;;  %v5608_v9 = vld [vmem:[#allocation17 + $0x510] sm:$0xff] }
 0xb6c   : > { %9013 = vmatpush1.bf16.msra.mxu1 %v9012_v11  ;;  %v5601_v11 = vld [vmem:[#allocation17 + $0x4d8] sm:$0xff] }
 0xb6d   : > { %9015 = vmatprep.subr.bf16.mxu1 %v9014_v30  ;;  %v8930_v34 = vpack.c.bf16 %v5601_v11, %v5599_v40 }
 0xb70   : > { %9017 = vmatpush1.bf16.msra.mxu1 %v9016_v20 }
 0xb71   : > { %9019 = vmatprep.subr.bf16.mxu1 %v9018_v57 }
 0xbb5   : > { %v5058_v25 = vpop.f32.mrb[88].mxu0  ;;  %v11430_v46 = vpop.f32.mrb[80].mxu1 }
 0xbb6   : > { %v5060_v45 = vpop.f32.mrb[89].mxu0  ;;  %v11432_v8 = vpop.f32.mrb[81].mxu1 }
 0xbb7   : > { %5524 = vmatprep.mubr.f32.mxu0 %v5060_v45  ;;  %v8922_v45 = vpack.c.bf16 %v5593_v33, %v5591_v32 }
 0xbb8   : > { %5525 = vmatmul.mubr.f32.vlgmr.msra.gmra.mrb[104].mxu0 %v5058_v25  ;;  %v5590_v25 = vld [vmem:[#allocation17 + $0x480] sm:$0xff] }
 0xbb9   : > { %8909 = vmatpush1.bf16.msra.mxu0 %v8908_v4  ;;  %v5064_v54 = vpop.f32.mrb[90].mxu0  ;;  %v11434_v10 = vpop.f32.mrb[82].mxu1 }
 0xbba   : > { %8911 = vmatprep.subr.bf16.mxu0 %v8910_v43  ;;  %v5066_v52 = vpop.f32.mrb[91].mxu0  ;;  %v11436_v63 = vpop.f32.mrb[83].mxu1  ;;  %v5592_v43 = vld [vmem:[#allocation17 + $0x490] sm:$0xff] }
 0xbbb   : > { %5530 = vmatprep.mubr.f32.mxu0 %v5066_v52  ;;  %v8924_v24 = vpack.c.bf16 %v5592_v43, %v5590_v25  ;;  %v5594_v52 = vld [vmem:[#allocation17 + $0x4a0] sm:$0xff] }
 0xbbc   : > { %5531 = vmatmul.mubr.f32.gmra.mrb[106].mxu0 %v5064_v54  ;;  %v8928_v0 = vpack.c.bf16 %v5596_v31, %v5594_v52  ;;  %v5602_v25 = vld [vmem:[#allocation17 + $0x4e0] sm:$0xff]  ;;  %v5612_v52 = vld [vmem:[#allocation17 + $0x530] sm:$0xff]  ;;  %v5615_v31 = vld [vmem:[#allocation17 + $0x548] sm:$0xff] }
 0xbbd   : > { %8913 = vmatpush1.bf16.msra.mxu0 %v8912_v51  ;;  %v5070_v1 = vpop.f32.mrb[92].mxu0  ;;  %v11438_v22 = vpop.f32.mrb[84].mxu1  ;;  %v9020_v51 = vpack.c.bf16 %v5939_v37, %v5935_v59  ;;  %v5607_v37 = vld [vmem:[#allocation17 + $0x508] sm:$0xff] }
 0xbbe   : > { %8915 = vmatprep.subr.bf16.mxu0 %v8914_v14  ;;  %v5072_v21 = vpop.f32.mrb[93].mxu0  ;;  %v11440_v2 = vpop.f32.mrb[85].mxu1  ;;  %v5947_v14 = vld [vmem:[#allocation18 + $0x360] sm:$0xff] }
 0xbbf   : > { %5536 = vmatprep.mubr.f32.mxu0 %v5072_v21  ;;  %9021 = vmatpush1.bf16.msra.mxu1 %v9020_v51 }
 0xbc0   : > { %5537 = vmatmul.mubr.f32.gmra.mrb[108].mxu0 %v5070_v1  ;;  %9023 = vmatprep.subr.bf16.mxu1 %v9022_v12  ;;  %v5613_v12 = vld [vmem:[#allocation17 + $0x538] sm:$0xff] }
 0xbc1   : > { %8917 = vmatpush1.bf16.msra.mxu0 %v8916_v48  ;;  %v5076_v4 = vpop.f32.mrb[94].mxu0  ;;  %v11442_v26 = vpop.f32.mrb[86].mxu1  ;;  %v9024_v48 = vpack.c.bf16 %v5947_v14, %v5943_v61  ;;  %v8940_v61 = vpack.c.bf16 %v5608_v9, %v5606_v16  ;;  %v5633_v16 = vld [vmem:[#allocation17 + $0x5d8] sm:$0xff] }
 0xbc2   : > { %8919 = vmatprep.subr.bf16.mxu0 %v8918_v35  ;;  %v5078_v19 = vpop.f32.mrb[95].mxu0  ;;  %v11444_v13 = vpop.f32.mrb[87].mxu1  ;;  %v5600_v35 = vld [vmem:[#allocation17 + $0x4d0] sm:$0xff] }
 0xbc3   : > { %5542 = vmatprep.mubr.f32.mxu0 %v5078_v19  ;;  %9025 = vmatpush1.bf16.msra.mxu1 %v9024_v48  ;;  %v8932_v32 = vpack.c.bf16 %v5600_v35, %v5598_v60  ;;  %v5614_v48 = vld [vmem:[#allocation17 + $0x540] sm:$0xff] }
 0xbc4   : > { %5543 = vmatmul.mubr.f32.gmra.mrb[110].mxu0 %v5076_v4  ;;  %v5604_v4 = vld [vmem:[#allocation17 + $0x4f0] sm:$0xff] }
 0xbc5   : > { %8921 = vmatpush1.bf16.msra.mxu0 %v8920_v55  ;;  %v5082_v54 = vpop.f32.mrb[96].mxu0  ;;  %v11446_v36 = vpop.f32.mrb[88].mxu1  ;;  %v8934_v55 = vpack.c.bf16 %v5605_v6, %v5603_v17  ;;  %v8936_v43 = vpack.c.bf16 %v5604_v4, %v5602_v25  ;;  %v5623_v17 = vld [vmem:[#allocation17 + $0x588] sm:$0xff]  ;;  %v5625_v6 = vld [vmem:[#allocation17 + $0x598] sm:$0xff]  ;;  %v5624_v25 = vld [vmem:[#allocation17 + $0x590] sm:$0xff] }
 0xbc6   : > { %8923 = vmatprep.subr.bf16.mxu0 %v8922_v45  ;;  %v5084_v56 = vpop.f32.mrb[97].mxu0  ;;  %v11448_v42 = vpop.f32.mrb[89].mxu1  ;;  %v5609_v45 = vld [vmem:[#allocation17 + $0x518] sm:$0xff]  ;;  %v5627_v4 = vld [vmem:[#allocation17 + $0x5a8] sm:$0xff] }
 0xbc7   : > { %5548 = vmatprep.mubr.f32.mxu0 %v5084_v56  ;;  %v8938_v50 = vpack.c.bf16 %v5609_v45, %v5607_v37  ;;  %v5617_v56 = vld [vmem:[#allocation17 + $0x558] sm:$0xff] }
 0xbc8   : > { %5549 = vmatmul.mubr.f32.gmra.mrb[112].mxu0 %v5082_v54  ;;  %v5611_v54 = vld [vmem:[#allocation17 + $0x528] sm:$0xff]  ;;  %v8946_v11 = vpack.c.bf16 %v5617_v56, %v5615_v31  ;;  %v5634_v31 = vld [vmem:[#allocation17 + $0x5e0] sm:$0xff]  ;;  %v5636_v56 = vld [vmem:[#allocation17 + $0x5f0] sm:$0xff] }
 0xbc9   : > { %8925 = vmatpush1.bf16.msra.mxu0 %v8924_v24  ;;  %v5088_v1 = vpop.f32.mrb[98].mxu0  ;;  %v11450_v30 = vpop.f32.mrb[90].mxu1  ;;  %v8942_v14 = vpack.c.bf16 %v5613_v12, %v5611_v54  ;;  %v5630_v54 = vld [vmem:[#allocation17 + $0x5c0] sm:$0xff]  ;;  %v5632_v12 = vld [vmem:[#allocation17 + $0x5d0] sm:$0xff] }
 0xbca   : > { %8927 = vmatprep.subr.bf16.mxu0 %v8926_v15  ;;  %v5090_v23 = vpop.f32.mrb[99].mxu0  ;;  %v11452_v21 = vpop.f32.mrb[91].mxu1  ;;  %v5610_v15 = vld [vmem:[#allocation17 + $0x520] sm:$0xff] }
 0xbcb   : > { %5554 = vmatprep.mubr.f32.mxu0 %v5090_v23  ;;  %v8944_v40 = vpack.c.bf16 %v5612_v52, %v5610_v15  ;;  %v5618_v23 = vld [vmem:[#allocation17 + $0x560] sm:$0xff]  ;;  %v8964_v15 = vpack.c.bf16 %v5632_v12, %v5630_v54  ;;  %v5849_v54 = vld [vmem:[#allocation18 + $0x50] sm:$0xff] }
 0xbcc   : > { %5555 = vmatmul.mubr.f32.gmra.mrb[114].mxu0 %v5088_v1  ;;  %v5619_v1 = vld [vmem:[#allocation17 + $0x568] sm:$0xff]  ;;  %v5853_v12 = vld [vmem:[#allocation18 + $0x70] sm:$0xff] }
 0xbcd   : > { %8929 = vmatpush1.bf16.msra.mxu0 %v8928_v0  ;;  %v5094_v33 = vpop.f32.mrb[100].mxu0  ;;  %v11454_v20 = vpop.f32.mrb[92].mxu1  ;;  %v5616_v0 = vld [vmem:[#allocation17 + $0x550] sm:$0xff] }
 0xbce   : > { %8931 = vmatprep.subr.bf16.mxu0 %v8930_v34  ;;  %v5096_v57 = vpop.f32.mrb[101].mxu0  ;;  %v11456_v59 = vpop.f32.mrb[93].mxu1  ;;  %v5621_v34 = vld [vmem:[#allocation17 + $0x578] sm:$0xff]  ;;  %v8948_v60 = vpack.c.bf16 %v5616_v0, %v5614_v48 }
 0xbcf   : > { %5560 = vmatprep.mubr.f32.mxu0 %v5096_v57  ;;  %v8950_v35 = vpack.c.bf16 %v5621_v34, %v5619_v1  ;;  %v5629_v57 = vld [vmem:[#allocation17 + $0x5b8] sm:$0xff] }
 0xbd0   : > { %5561 = vmatmul.mubr.f32.gmra.mrb[116].mxu0 %v5094_v33  ;;  %v8954_v33 = vpack.c.bf16 %v5625_v6, %v5623_v17  ;;  %v8958_v45 = vpack.c.bf16 %v5629_v57, %v5627_v4  ;;  %v5795_v48 = vld [vmem:[%s12379_s6] sm:$0x3] }
 0xbd1   : > { %8933 = vmatpush1.bf16.msra.mxu0 %v8932_v32  ;;  %v5100_v19 = vpop.f32.mrb[102].mxu0  ;;  %v11458_v41 = vpop.f32.mrb[94].mxu1  ;;  %v11487_v34 = vrot.slane %v5795_v48, %v10905_v27  ;;  %v5850_v4 = vld [vmem:[#allocation18 + $0x58] sm:$0xff] }
 0xbd2   : > { %8935 = vmatprep.subr.bf16.mxu0 %v8934_v55  ;;  %v5102_v51 = vpop.f32.mrb[103].mxu0  ;;  %v11460_v24 = vpop.f32.mrb[95].mxu1  ;;  %v5622_v55 = vld [vmem:[#allocation17 + $0x580] sm:$0xff]  ;;  %v5854_v57 = vld [vmem:[#allocation18 + $0x78] sm:$0xff] }
 0xbd3   : > { %5566 = vmatprep.mubr.f32.mxu0 %v5102_v51  ;;  %v8956_v37 = vpack.c.bf16 %v5624_v25, %v5622_v55 }
 0xbd4   : > { %5567 = vmatmul.mubr.f32.gmra.mrb[118].mxu0 %v5100_v19  ;;  %v5628_v19 = vld [vmem:[#allocation17 + $0x5b0] sm:$0xff] }
 0xbd5   : > { %8937 = vmatpush1.bf16.msra.mxu0 %v8936_v43  ;;  %5702 = vmatprep.mubr.f32.mxu0 %v11432_v8  ;;  %v5620_v8 = vld [vmem:[#allocation17 + $0x570] sm:$0xff]  ;;  %v5626_v43 = vld [vmem:[#allocation17 + $0x5a0] sm:$0xff] }
 0xbd6   : > { %8939 = vmatprep.subr.bf16.mxu0 %v8938_v50  ;;  %v8952_v32 = vpack.c.bf16 %v5620_v8, %v5618_v23  ;;  %v5631_v50 = vld [vmem:[#allocation17 + $0x5c8] sm:$0xff]  ;;  %v8960_v9 = vpack.c.bf16 %v5628_v19, %v5626_v43 }
 0xbd7   : > { %v8962_v51 = vpack.c.bf16 %v5633_v16, %v5631_v50 }
 0xbd9   : > { %8941 = vmatpush1.bf16.msra.mxu0 %v8940_v61  ;;  %v5635_v61 = vld [vmem:[#allocation17 + $0x5e8] sm:$0xff] }
 0xbda   : > { %8943 = vmatprep.subr.bf16.mxu0 %v8942_v14  ;;  %v5637_v14 = vld [vmem:[#allocation17 + $0x5f8] sm:$0xff] }
 0xbdb   : > { %v8966_v52 = vpack.c.bf16 %v5637_v14, %v5635_v61 }
 0xbdd   : > { %8945 = vmatpush1.bf16.msra.mxu0 %v8944_v40  ;;  %v8968_v40 = vpack.c.bf16 %v5636_v56, %v5634_v31 }
 0xbde   : > { %8947 = vmatprep.subr.bf16.mxu0 %v8946_v11  ;;  %v5767_v11 = vld [vmem:[%s12378_s15] sm:$0x3] }
 0xbdf   : > { %v11481_v0 = vrot.slane %v5767_v11, %v10905_v27  ;;  %v11484_v1 = vrot.slane %v5767_v11, %v10909_v7 }
 0xbe1   : > { %8949 = vmatpush1.bf16.msra.mxu0 %v8948_v60 }
 0xbe2   : > { %8951 = vmatprep.subr.bf16.mxu0 %v8950_v35  ;;  %v11490_v35 = vrot.slane %v5795_v48, %v10909_v7 }
 0xbe5   : > { %8953 = vmatpush1.bf16.msra.mxu0 %v8952_v32  ;;  %v5841_v32 = vld [vmem:[#allocation18 + $0x10] sm:$0xff] }
 0xbe6   : > { %8955 = vmatprep.subr.bf16.mxu0 %v8954_v33  ;;  %v5845_v33 = vld [vmem:[#allocation18 + $0x30] sm:$0xff] }
 0xbe7   : > { %v9036_v50 = vpack.c.bf16 %v5845_v33, %v5841_v32 }
 0xbe9   : > { %8957 = vmatpush1.bf16.msra.mxu0 %v8956_v37 }
 0xbea   : > { %8959 = vmatprep.subr.bf16.mxu0 %v8958_v45 }
 0xbed   : > { %8961 = vmatpush1.bf16.msra.mxu0 %v8960_v9 }
 0xbee   : > { %8963 = vmatprep.subr.bf16.mxu0 %v8962_v51  ;;  %v9038_v51 = vpack.c.bf16 %v5854_v57, %v5850_v4  ;;  %v5878_v4 = vld [vmem:[#allocation18 + $0x138] sm:$0xff] }
 0xbf1   : > { %8965 = vmatpush1.bf16.msra.mxu0 %v8964_v15  ;;  %v5858_v15 = vld [vmem:[#allocation18 + $0x98] sm:$0xff] }
 0xbf2   : > { %8967 = vmatprep.subr.bf16.mxu0 %v8966_v52  ;;  %v5862_v52 = vld [vmem:[#allocation18 + $0xb8] sm:$0xff] }
 0xbf5   : > { %8969 = vmatpush1.bf16.msra.mxu0 %v8968_v40 }
 0xbf8   : > { %5703 = vmatmul.mubr.f32.vlgmr.msra.gmra.mrb[104].mxu0 %v11430_v46  ;;  %v5952_v46 = vld [vmem:[#allocation18 + $0x388] sm:$0xff] }
 0xbf9   : > { %5708 = vmatprep.mubr.f32.mxu0 %v11436_v63 }
 0xbfc   : > { %5709 = vmatmul.mubr.f32.gmra.mrb[106].mxu0 %v11434_v10  ;;  %v5956_v10 = vld [vmem:[#allocation18 + $0x3a8] sm:$0xff] }
 0xbfd   : > { %5714 = vmatprep.mubr.f32.mxu0 %v11440_v2  ;;  %v9026_v63 = vpack.c.bf16 %v5956_v10, %v5952_v46  ;;  %v5955_v2 = vld [vmem:[#allocation18 + $0x3a0] sm:$0xff]  ;;  %v9040_v10 = vpack.c.bf16 %v5853_v12, %v5849_v54 }
 0xbff   : > { %9027 = vmatprep.subr.bf16.mxu1 %v9026_v63 }
 0xc00   : > { %5715 = vmatmul.mubr.f32.gmra.mrb[108].mxu0 %v11438_v22  ;;  %v5951_v22 = vld [vmem:[#allocation18 + $0x380] sm:$0xff] }
 0xc01   : > { %5720 = vmatprep.mubr.f32.mxu0 %v11444_v13  ;;  %v5960_v13 = vld [vmem:[#allocation18 + $0x3c8] sm:$0xff] }
 0xc04   : > { %5721 = vmatmul.mubr.f32.gmra.mrb[110].mxu0 %v11442_v26  ;;  %v9028_v26 = vpack.c.bf16 %v5955_v2, %v5951_v22  ;;  %v9042_v2 = vpack.c.bf16 %v5862_v52, %v5858_v15  ;;  %v5877_v15 = vld [vmem:[#allocation18 + $0x130] sm:$0xff] }
 0xc05   : > { %5726 = vmatprep.mubr.f32.mxu0 %v11448_v42 }
 0xc06   : > { %9029 = vmatpush1.bf16.msra.mxu1 %v9028_v26  ;;  %v5857_v26 = vld [vmem:[#allocation18 + $0x90] sm:$0xff] }
 0xc08   : > { %5727 = vmatmul.mubr.f32.gmra.mrb[112].mxu0 %v11446_v36  ;;  %v5964_v36 = vld [vmem:[#allocation18 + $0x3e8] sm:$0xff] }
 0xc09   : > { %5732 = vmatprep.mubr.f32.mxu0 %v11452_v21  ;;  %v9030_v42 = vpack.c.bf16 %v5964_v36, %v5960_v13  ;;  %v5963_v21 = vld [vmem:[#allocation18 + $0x3e0] sm:$0xff]  ;;  %v5861_v13 = vld [vmem:[#allocation18 + $0xb0] sm:$0xff] }
 0xc0a   : > { %v9044_v11 = vpack.c.bf16 %v5861_v13, %v5857_v26 }
 0xc0b   : > { %9031 = vmatprep.subr.bf16.mxu1 %v9030_v42 }
 0xc0c   : > { %5733 = vmatmul.mubr.f32.gmra.mrb[114].mxu0 %v11450_v30  ;;  %v5959_v30 = vld [vmem:[#allocation18 + $0x3c0] sm:$0xff] }
 0xc0d   : > { %5738 = vmatprep.mubr.f32.mxu0 %v11456_v59  ;;  %v5842_v59 = vld [vmem:[#allocation18 + $0x18] sm:$0xff] }
 0xc10   : > { %5739 = vmatmul.mubr.f32.gmra.mrb[116].mxu0 %v11454_v20  ;;  %v9032_v20 = vpack.c.bf16 %v5963_v21, %v5959_v30  ;;  %v5866_v30 = vld [vmem:[#allocation18 + $0xd8] sm:$0xff] }
 0xc11   : > { %5744 = vmatprep.mubr.f32.mxu0 %v11460_v24  ;;  %v5870_v21 = vld [vmem:[#allocation18 + $0xf8] sm:$0xff] }
 0xc12   : > { %9033 = vmatpush1.bf16.msra.mxu1 %v9032_v20 }
 0xc14   : > { %5745 = vmatmul.mubr.f32.gmra.mrb[118].mxu0 %v11458_v41  ;;  %v5846_v41 = vld [vmem:[#allocation18 + $0x38] sm:$0xff] }
 0xc15   : > { %v9034_v24 = vpack.c.bf16 %v5846_v41, %v5842_v59 }
 0xc17   : > { %9035 = vmatprep.subr.bf16.mxu1 %v9034_v24 }
 0xccb   : > { %v5704_v60 = vpop.f32.mrb[104].mxu0 }
 0xccc   : > { %v5779_v23 = vmul.f32 %v11481_v0, %v5704_v60  ;;  %v5706_v8 = vpop.f32.mrb[105].mxu0 }
 0xccd   : > { %v5780_v17 = vmul.f32 %v11484_v1, %v5706_v8  ;;  %v5865_v8 = vld [vmem:[#allocation18 + $0xd0] sm:$0xff] }
 0xcce   : > { %v11495_v6 = vadd.f32 %v11487_v34, %v5779_v23  ;;  %v9046_v23 = vpack.c.bf16 %v5870_v21, %v5866_v30 }
 0xccf   : > { %v11498_v55 = vadd.f32 %v11490_v35, %v5780_v17  ;;  %v5710_v25 = vpop.f32.mrb[106].mxu0  ;;  %v5869_v17 = vld [vmem:[#allocation18 + $0xf0] sm:$0xff] }
 0xcd0   : > { %v5781_v37 = vmul.f32 %v11481_v0, %v5710_v25  ;;  %v5712_v45 = vpop.f32.mrb[107].mxu0  ;;  %v5823_v16 = vmax.f32 %v11495_v6, 0.0  ;;  %v5874_v25 = vld [vmem:[#allocation18 + $0x118] sm:$0xff] }
 0xcd1   : > { %v5824_v43 = vmax.f32 %v11498_v55, 0.0  ;;  %v5782_v19 = vmul.f32 %v11484_v1, %v5712_v45  ;;  %v9050_v12 = vpack.c.bf16 %v5878_v4, %v5874_v25 }
 0xcd2   : > { %v11505_v9 = vadd.f32 %v11487_v34, %v5781_v37 }
 0xcd3   : > { %v11508_v61 = vadd.f32 %v11490_v35, %v5782_v19  ;;  %v5716_v14 = vpop.f32.mrb[108].mxu0  ;;  %6031 = vmatprep.mubr.f32.mxu1 %v5824_v43 }
 0xcd4   : > { %v5783_v31 = vmul.f32 %v11481_v0, %v5716_v14  ;;  %v5718_v56 = vpop.f32.mrb[109].mxu0  ;;  %6032 = vmatmul.mubr.f32.vlgmr.msra.gmra.mrb[96].mxu1 %v5823_v16  ;;  %v5825_v63 = vmax.f32 %v11505_v9, 0.0  ;;  %v5873_v14 = vld [vmem:[#allocation18 + $0x110] sm:$0xff]  ;;  %v11640_v9 = vld [vmem:[%s12381_s27] sm:$0xf] }
 0xcd5   : > { %v5826_v40 = vmax.f32 %v11508_v61, 0.0  ;;  %v5784_v46 = vmul.f32 %v11484_v1, %v5718_v56  ;;  %9037 = vmatpush1.bf16.msra.mxu1 %v9036_v50  ;;  %v9048_v50 = vpack.c.bf16 %v5869_v17, %v5865_v8  ;;  %v5882_v56 = vld [vmem:[#allocation18 + $0x158] sm:$0xff] }
 0xcd6   : > { %v11519_v22 = vadd.f32 %v11487_v34, %v5783_v31  ;;  %9039 = vmatprep.subr.bf16.mxu1 %v9038_v51  ;;  %v5890_v8 = vld [vmem:[#allocation18 + $0x198] sm:$0xff] }
 0xcd7   : > { %v11522_v36 = vadd.f32 %v11490_v35, %v5784_v46  ;;  %v5722_v42 = vpop.f32.mrb[110].mxu0  ;;  %6037 = vmatprep.mubr.f32.mxu1 %v5826_v40  ;;  %v5886_v46 = vld [vmem:[#allocation18 + $0x178] sm:$0xff] }
 0xcd8   : > { %v5785_v20 = vmul.f32 %v11481_v0, %v5722_v42  ;;  %v5724_v59 = vpop.f32.mrb[111].mxu0  ;;  %6038 = vmatmul.mubr.f32.gmra.mrb[98].mxu1 %v5825_v63  ;;  %v5827_v48 = vmax.f32 %v11519_v22, 0.0  ;;  %v9052_v42 = vpack.c.bf16 %v5877_v15, %v5873_v14  ;;  %v5894_v17 = vld [vmem:[#allocation18 + $0x1b8] sm:$0xff]  ;;  %v5889_v14 = vld [vmem:[#allocation18 + $0x190] sm:$0xff] }
 0xcd9   : > { %v5828_v41 = vmax.f32 %v11522_v36, 0.0  ;;  %v5786_v24 = vmul.f32 %v11484_v1, %v5724_v59  ;;  %9041 = vmatpush1.bf16.msra.mxu1 %v9040_v10  ;;  %v5881_v59 = vld [vmem:[#allocation18 + $0x150] sm:$0xff]  ;;  %v11654_v22 = vld [vmem:[%s12382_s12] sm:$0xf]  ;;  %v11658_v36 = vrot.slane %v11640_v9, %v10905_v27 }
 0xcda   : > { %v11533_v60 = vadd.f32 %v11487_v34, %v5785_v20  ;;  %9043 = vmatprep.subr.bf16.mxu1 %v9042_v2  ;;  %v9054_v20 = vpack.c.bf16 %v5886_v46, %v5882_v56  ;;  %v5893_v15 = vld [vmem:[#allocation18 + $0x1b0] sm:$0xff]  ;;  %v5898_v46 = vld [vmem:[#allocation18 + $0x1d8] sm:$0xff] }
 0xcdb   : > { %v11536_v32 = vadd.f32 %v11490_v35, %v5786_v24  ;;  %v5728_v33 = vpop.f32.mrb[112].mxu0  ;;  %6043 = vmatprep.mubr.f32.mxu1 %v5828_v41  ;;  %v5885_v24 = vld [vmem:[#allocation18 + $0x170] sm:$0xff] }
 0xcdc   : > { %v5787_v57 = vmul.f32 %v11481_v0, %v5728_v33  ;;  %v5730_v37 = vpop.f32.mrb[113].mxu0  ;;  %6044 = vmatmul.mubr.f32.gmra.mrb[100].mxu1 %v5827_v48  ;;  %v5829_v51 = vmax.f32 %v11533_v60, 0.0 }
 0xcdd   : > { %v5830_v45 = vmax.f32 %v11536_v32, 0.0  ;;  %v5788_v19 = vmul.f32 %v11484_v1, %v5730_v37  ;;  %9045 = vmatpush1.bf16.msra.mxu1 %v9044_v11  ;;  %v9056_v37 = vpack.c.bf16 %v5885_v24, %v5881_v59  ;;  %v9060_v59 = vpack.c.bf16 %v5893_v15, %v5889_v14  ;;  %v5905_v14 = vld [vmem:[#allocation18 + $0x210] sm:$0xff] }
 0xcde   : > { %v11547_v54 = vadd.f32 %v11487_v34, %v5787_v57  ;;  %9047 = vmatprep.subr.bf16.mxu1 %v9046_v23  ;;  %v5909_v15 = vld [vmem:[#allocation18 + $0x230] sm:$0xff]  ;;  %v11672_v32 = vrot.slane %v11654_v22, %v10905_v27 }
 0xcdf   : > { %v11550_v52 = vadd.f32 %v11490_v35, %v5788_v19  ;;  %v5734_v31 = vpop.f32.mrb[114].mxu0  ;;  %6049 = vmatprep.mubr.f32.mxu1 %v5830_v45 }
 0xce0   : > { %v5789_v10 = vmul.f32 %v11481_v0, %v5734_v31  ;;  %v5736_v2 = vpop.f32.mrb[115].mxu0  ;;  %6050 = vmatmul.mubr.f32.gmra.mrb[102].mxu1 %v5829_v51  ;;  %v5831_v30 = vmax.f32 %v11547_v54, 0.0 }
 0xce1   : > { %v5832_v26 = vmax.f32 %v11550_v52, 0.0  ;;  %v5790_v13 = vmul.f32 %v11484_v1, %v5736_v2  ;;  %9049 = vmatpush1.bf16.msra.mxu1 %v9048_v50  ;;  %v11682_v52 = vrot.slane %v11654_v22, %v10909_v7 }
 0xce2   : > { %v11561_v21 = vadd.f32 %v11487_v34, %v5789_v10  ;;  %9051 = vmatprep.subr.bf16.mxu1 %v9050_v12  ;;  %v9058_v12 = vpack.c.bf16 %v5894_v17, %v5890_v8  ;;  %v5902_v10 = vld [vmem:[#allocation18 + $0x1f8] sm:$0xff]  ;;  %v5897_v17 = vld [vmem:[#allocation18 + $0x1d0] sm:$0xff] }
 0xce3   : > { %v11564_v11 = vadd.f32 %v11490_v35, %v5790_v13  ;;  %v5740_v23 = vpop.f32.mrb[116].mxu0  ;;  %6055 = vmatprep.mubr.f32.mxu1 %v5832_v26  ;;  %v9062_v8 = vpack.c.bf16 %v5902_v10, %v5898_v46  ;;  %v9068_v46 = vpack.c.bf16 %v5909_v15, %v5905_v14  ;;  %v5933_v14 = vld [vmem:[#allocation18 + $0x2f0] sm:$0xff]  ;;  %v5942_v15 = vld [vmem:[#allocation18 + $0x338] sm:$0xff] }
 0xce4   : > { %v5791_v33 = vmul.f32 %v11481_v0, %v5740_v23  ;;  %v5742_v25 = vpop.f32.mrb[117].mxu0  ;;  %6056 = vmatmul.mubr.f32.gmra.mrb[104].mxu1 %v5831_v30  ;;  %v5833_v19 = vmax.f32 %v11561_v21, 0.0 }
 0xce5   : > { %v5834_v4 = vmax.f32 %v11564_v11, 0.0  ;;  %v5792_v57 = vmul.f32 %v11484_v1, %v5742_v25  ;;  %9053 = vmatpush1.bf16.msra.mxu1 %v9052_v42  ;;  %v5906_v25 = vld [vmem:[#allocation18 + $0x218] sm:$0xff] }
 0xce6   : > { %v11575_v50 = vadd.f32 %v11487_v34, %v5791_v33  ;;  %9055 = vmatprep.subr.bf16.mxu1 %v9054_v20  ;;  %v5901_v33 = vld [vmem:[#allocation18 + $0x1f0] sm:$0xff] }
 0xce7   : > { %v11578_v31 = vadd.f32 %v11490_v35, %v5792_v57  ;;  %v5746_v56 = vpop.f32.mrb[118].mxu0  ;;  %6061 = vmatprep.mubr.f32.mxu1 %v5834_v4  ;;  %v5910_v57 = vld [vmem:[#allocation18 + $0x238] sm:$0xff] }
 0xce8   : > { %v5793_v2 = vmul.f32 %v11481_v0, %v5746_v56  ;;  %v5748_v13 = vpop.f32.mrb[119].mxu0  ;;  %6062 = vmatmul.mubr.f32.gmra.mrb[106].mxu1 %v5833_v19  ;;  %v5835_v24 = vmax.f32 %v11575_v50, 0.0  ;;  %v5918_v56 = vld [vmem:[#allocation18 + $0x278] sm:$0xff] }
 0xce9   : > { %v5836_v42 = vmax.f32 %v11578_v31, 0.0  ;;  %v5794_v20 = vmul.f32 %v11484_v1, %v5748_v13  ;;  %9057 = vmatpush1.bf16.msra.mxu1 %v9056_v37  ;;  %v5917_v13 = vld [vmem:[#allocation18 + $0x270] sm:$0xff] }
 0xcea   : > { %v11589_v23 = vadd.f32 %v11487_v34, %v5793_v2  ;;  %9059 = vmatprep.subr.bf16.mxu1 %v9058_v12  ;;  %v9064_v34 = vpack.c.bf16 %v5901_v33, %v5897_v17  ;;  %v9066_v12 = vpack.c.bf16 %v5910_v57, %v5906_v25  ;;  %v5913_v2 = vld [vmem:[#allocation18 + $0x250] sm:$0xff]  ;;  %v5930_v57 = vld [vmem:[#allocation18 + $0x2d8] sm:$0xff] }
 0xceb   : > { %v11592_v0 = vadd.f32 %v11490_v35, %v5794_v20  ;;  %6067 = vmatprep.mubr.f32.mxu1 %v5836_v42  ;;  %v5914_v35 = vld [vmem:[#allocation18 + $0x258] sm:$0xff]  ;;  %v5921_v33 = vld [vmem:[#allocation18 + $0x290] sm:$0xff] }
 0xcec   : > { %6068 = vmatmul.mubr.f32.gmra.mrb[108].mxu1 %v5835_v24  ;;  %v5837_v37 = vmax.f32 %v11589_v23, 0.0  ;;  %v9070_v10 = vpack.c.bf16 %v5918_v56, %v5914_v35  ;;  %v5922_v20 = vld [vmem:[#allocation18 + $0x298] sm:$0xff]  ;;  %v5925_v25 = vld [vmem:[#allocation18 + $0x2b0] sm:$0xff] }
 0xced   : > { %v12245_v1 = vmax.f32 %v11592_v0, 0.0  ;;  %9061 = vmatpush1.bf16.msra.mxu1 %v9060_v59  ;;  %v5926_v59 = vld [vmem:[#allocation18 + $0x2b8] sm:$0xff]  ;;  %v12383_v6 = vmax.f32 %v11592_v0, 0.0 }
 0xcee   : > { %9063 = vmatprep.subr.bf16.mxu1 %v9062_v8  ;;  %v9072_v8 = vpack.c.bf16 %v5917_v13, %v5913_v2  ;;  %v9074_v17 = vpack.c.bf16 %v5926_v59, %v5922_v20  ;;  %v5941_v2 = vld [vmem:[#allocation18 + $0x330] sm:$0xff]  ;;  %v5950_v13 = vld [vmem:[#allocation18 + $0x378] sm:$0xff] }
 0xcef   : > { %6073 = vmatprep.mubr.f32.mxu1 %v12245_v1  ;;  %v5934_v1 = vld [vmem:[#allocation18 + $0x2f8] sm:$0xff] }
 0xcf0   : > { %6074 = vmatmul.mubr.f32.gmra.mrb[110].mxu1 %v5837_v37  ;;  %v9078_v55 = vpack.c.bf16 %v5934_v1, %v5930_v57  ;;  %v5958_v1 = vld [vmem:[#allocation18 + $0x3b8] sm:$0xff] }
 0xcf1   : > { %9065 = vmatpush1.bf16.msra.mxu1 %v9064_v34  ;;  %6144 = vmatprep.mubr.f32.mxu1 %v5824_v43  ;;  %v9076_v34 = vpack.c.bf16 %v5925_v25, %v5921_v33  ;;  %v5929_v43 = vld [vmem:[#allocation18 + $0x2d0] sm:$0xff] }
 0xcf2   : > { %9067 = vmatprep.subr.bf16.mxu1 %v9066_v12  ;;  %v5938_v12 = vld [vmem:[#allocation18 + $0x318] sm:$0xff]  ;;  %v9080_v35 = vpack.c.bf16 %v5933_v14, %v5929_v43  ;;  %v5949_v33 = vld [vmem:[#allocation18 + $0x370] sm:$0xff] }
 0xcf3   : > { %v9082_v56 = vpack.c.bf16 %v5942_v15, %v5938_v12  ;;  %v5957_v43 = vld [vmem:[#allocation18 + $0x3b0] sm:$0xff]  ;;  %v5966_v14 = vld [vmem:[#allocation18 + $0x3f8] sm:$0xff] }
 0xcf5   : > { %9069 = vmatpush1.bf16.msra.mxu1 %v9068_v46  ;;  %v5937_v46 = vld [vmem:[#allocation18 + $0x310] sm:$0xff] }
 0xcf6   : > { %9071 = vmatprep.subr.bf16.mxu1 %v9070_v10  ;;  %v5946_v10 = vld [vmem:[#allocation18 + $0x358] sm:$0xff]  ;;  %v9084_v20 = vpack.c.bf16 %v5941_v2, %v5937_v46  ;;  %v5965_v46 = vld [vmem:[#allocation18 + $0x3f0] sm:$0xff] }
 0xcf7   : > { %v9086_v59 = vpack.c.bf16 %v5950_v13, %v5946_v10 }
 0xcf9   : > { %9073 = vmatpush1.bf16.msra.mxu1 %v9072_v8  ;;  %v5945_v8 = vld [vmem:[#allocation18 + $0x350] sm:$0xff] }
 0xcfa   : > { %9075 = vmatprep.subr.bf16.mxu1 %v9074_v17  ;;  %v5954_v17 = vld [vmem:[#allocation18 + $0x398] sm:$0xff]  ;;  %v9088_v25 = vpack.c.bf16 %v5949_v33, %v5945_v8 }
 0xcfb   : > { %v9090_v57 = vpack.c.bf16 %v5958_v1, %v5954_v17 }
 0xcfd   : > { %9077 = vmatpush1.bf16.msra.mxu1 %v9076_v34  ;;  %v5953_v34 = vld [vmem:[#allocation18 + $0x390] sm:$0xff] }
 0xcfe   : > { %9079 = vmatprep.subr.bf16.mxu1 %v9078_v55  ;;  %v5962_v55 = vld [vmem:[#allocation18 + $0x3d8] sm:$0xff]  ;;  %v9092_v12 = vpack.c.bf16 %v5957_v43, %v5953_v34 }
 0xcff   : > { %v9094_v15 = vpack.c.bf16 %v5966_v14, %v5962_v55 }
 0xd01   : > { %9081 = vmatpush1.bf16.msra.mxu1 %v9080_v35  ;;  %v5961_v35 = vld [vmem:[#allocation18 + $0x3d0] sm:$0xff] }
 0xd02   : > { %9083 = vmatprep.subr.bf16.mxu1 %v9082_v56  ;;  %v9096_v56 = vpack.c.bf16 %v5965_v46, %v5961_v35 }
 0xd05   : > { %9085 = vmatpush1.bf16.msra.mxu1 %v9084_v20 }
 0xd06   : > { %9087 = vmatprep.subr.bf16.mxu1 %v9086_v59 }
 0xd09   : > { %9089 = vmatpush1.bf16.msra.mxu1 %v9088_v25 }
 0xd0a   : > { %9091 = vmatprep.subr.bf16.mxu1 %v9090_v57 }
 0xd0d   : > { %9093 = vmatpush1.bf16.msra.mxu1 %v9092_v12 }
 0xd0e   : > { %9095 = vmatprep.subr.bf16.mxu1 %v9094_v15 }
 0xd11   : > { %9097 = vmatpush1.bf16.msra.mxu1 %v9096_v56 }
 0xd14   : > { %6145 = vmatmul.mubr.f32.vlgmr.msra.gmra.mrb[112].mxu1 %v5823_v16  ;;  %v11637_v16 = vld [vmem:[%s12380_s1] sm:$0xf] }
 0xd15   : > { %6150 = vmatprep.mubr.f32.mxu1 %v5826_v40  ;;  %v11644_v61 = vrot.slane %v11637_v16, %v10905_v27  ;;  %v11647_v40 = vld [vmem:[%s10173_s8] sm:$0xf] }
 0xd16   : > { %v11668_v60 = vrot.slane %v11647_v40, %v10905_v27 }
 0xd17   : > { %v4661_v11 = vmul.f32 %v11644_v61, %v11170_v38  ;;  %v4665_v2 = vmul.f32 %v11644_v61, %v11178_v29  ;;  %v4669_v57 = vmul.f32 %v11644_v61, %v11186_v58 }
 0xd18   : > { %6151 = vmatmul.mubr.f32.gmra.mrb[114].mxu1 %v5825_v63  ;;  %v11651_v63 = vrot.slane %v11637_v16, %v10909_v7 }
 0xd19   : > { %6156 = vmatprep.mubr.f32.mxu1 %v5828_v41  ;;  %v11662_v41 = vrot.slane %v11640_v9, %v10909_v7  ;;  %v4715_v38 = vadd.f32 %v11668_v60, %v4661_v11  ;;  %v4719_v29 = vadd.f32 %v11668_v60, %v4665_v2  ;;  %v4723_v58 = vadd.f32 %v11668_v60, %v4669_v57 }
 0xd1a   : > { %v4666_v13 = vmul.f32 %v11651_v63, %v11182_v3  ;;  %v4670_v43 = vmul.f32 %v11651_v63, %v11190_v28 }
 0xd1c   : > { %6157 = vmatmul.mubr.f32.gmra.mrb[116].mxu1 %v5827_v48  ;;  %v4657_v48 = vmul.f32 %v11644_v61, %v11162_v5 }
 0xd1d   : > { %6162 = vmatprep.mubr.f32.mxu1 %v5830_v45  ;;  %v4658_v45 = vmul.f32 %v11651_v63, %v11166_v53 }
 0xd1e   : > { %v4711_v21 = vadd.f32 %v11668_v60, %v4657_v48 }
 0xd20   : > { %6163 = vmatmul.mubr.f32.gmra.mrb[118].mxu1 %v5829_v51  ;;  %v11678_v51 = vrot.slane %v11647_v40, %v10909_v7 }
 0xd21   : > { %6168 = vmatprep.mubr.f32.mxu1 %v5832_v26 }
 0xd22   : > { %v4720_v3 = vadd.f32 %v11678_v51, %v4666_v13  ;;  %v4724_v28 = vadd.f32 %v11678_v51, %v4670_v43  ;;  %v12385_v43 = vld [vmem:[#allocation77_spill] sm:$0xff] }
 0xd24   : > { %6169 = vmatmul.mubr.f32.gmra.mrb[120].mxu1 %v5831_v30 }
 0xd25   : > { %6174 = vmatprep.mubr.f32.mxu1 %v5834_v4  ;;  %v4712_v4 = vadd.f32 %v11678_v51, %v4658_v45  ;;  %v4674_v45 = vmul.f32 %v11651_v63, %v11198_v62 }
 0xd27   : > { %v4728_v62 = vadd.f32 %v11678_v51, %v4674_v45 }
 0xd28   : > { %6175 = vmatmul.mubr.f32.gmra.mrb[122].mxu1 %v5833_v19  ;;  %v4662_v19 = vmul.f32 %v11651_v63, %v11174_v39 }
 0xd29   : > { %6180 = vmatprep.mubr.f32.mxu1 %v5836_v42 }
 0xd2a   : > { %v4716_v39 = vadd.f32 %v11678_v51, %v4662_v19 }
 0xd2c   : > { %6181 = vmatmul.mubr.f32.gmra.mrb[124].mxu1 %v5835_v24 }
 0xd2d   : > { %6186 = vmatprep.mubr.f32.mxu1 %v12383_v6  ;;  %v4673_v6 = vmul.f32 %v11644_v61, %v11194_v49 }
 0xd2f   : > { %v4727_v49 = vadd.f32 %v11668_v60, %v4673_v6 }
 0xd30   : > { %6187 = vmatmul.mubr.f32.gmra.mrb[126].mxu1 %v5837_v37 }
 0xda7   : > { %v6033_v54 = vpop.f32.mrb[96].mxu1 }
 0xda8   : > { %v6215_v5 = vmul.f32 %v11658_v36, %v6033_v54  ;;  %v6035_v26 = vpop.f32.mrb[97].mxu1 }
 0xda9   : > { %v6216_v30 = vmul.f32 %v11662_v41, %v6035_v26 }
 0xdaa   : > { %v6269_v53 = vadd.f32 %v11672_v32, %v6215_v5 }
 0xdab   : > { %v6270_v50 = vadd.f32 %v11682_v52, %v6216_v30  ;;  %v6039_v31 = vpop.f32.mrb[98].mxu1 }
 0xdac   : > { %v11694_v42 = vadd.f32 %v6269_v53, %v4711_v21  ;;  %v6219_v24 = vmul.f32 %v11658_v36, %v6039_v31  ;;  %v6041_v23 = vpop.f32.mrb[99].mxu1 }
 0xdad   : > { %v11697_v0 = vadd.f32 %v6270_v50, %v4712_v4  ;;  %v6220_v37 = vmul.f32 %v11662_v41, %v6041_v23  ;;  %v4677_v4 = vmul.f32 %v11644_v61, %v11202_v44  ;;  %v4678_v50 = vmul.f32 %v11651_v63, %v11206_v47 }
 0xdae   : > { %v6273_v10 = vadd.f32 %v11672_v32, %v6219_v24 }
 0xdaf   : > { %v6274_v20 = vadd.f32 %v11682_v52, %v6220_v37  ;;  %v6045_v59 = vpop.f32.mrb[100].mxu1  ;;  %v4731_v44 = vadd.f32 %v11668_v60, %v4677_v4  ;;  %v4732_v47 = vadd.f32 %v11678_v51, %v4678_v50  ;;  %v12387_v4 = vld [vmem:[#allocation59_spill] sm:$0xff] }
 0xdb0   : > { %v11708_v8 = vadd.f32 %v6273_v10, %v4715_v38  ;;  %v6223_v33 = vmul.f32 %v11658_v36, %v6045_v59  ;;  %v6047_v17 = vpop.f32.mrb[101].mxu1  ;;  %v12390_v50 = vld [vmem:[#allocation63_spill] sm:$0xff] }
 0xdb1   : > { %v11711_v1 = vadd.f32 %v6274_v20, %v4716_v39  ;;  %v6224_v25 = vmul.f32 %v11662_v41, %v6047_v17  ;;  %v4681_v39 = vmul.f32 %v11644_v61, %v11210_v18  ;;  %v12384_v20 = vld [vmem:[#allocation75_spill] sm:$0xff] }
 0xdb2   : > { %v6277_v34 = vadd.f32 %v11672_v32, %v6223_v33  ;;  %v4682_v59 = vmul.f32 %v11651_v63, %v12384_v20 }
 0xdb3   : > { %v6278_v55 = vadd.f32 %v11682_v52, %v6224_v25  ;;  %v6051_v14 = vpop.f32.mrb[102].mxu1  ;;  %v4735_v18 = vadd.f32 %v11668_v60, %v4681_v39 }
 0xdb4   : > { %v11722_v12 = vadd.f32 %v6277_v34, %v4719_v29  ;;  %v6227_v15 = vmul.f32 %v11658_v36, %v6051_v14  ;;  %v6053_v35 = vpop.f32.mrb[103].mxu1 }
 0xdb5   : > { %v11725_v46 = vadd.f32 %v6278_v55, %v4720_v3  ;;  %v6228_v56 = vmul.f32 %v11662_v41, %v6053_v35  ;;  %v4685_v55 = vmul.f32 %v11644_v61, %v12385_v43  ;;  %v12386_v35 = vld [vmem:[#allocation79_spill] sm:$0xff] }
 0xdb6   : > { %v6281_v48 = vadd.f32 %v11672_v32, %v6227_v15  ;;  %v4736_v15 = vadd.f32 %v11678_v51, %v4682_v59  ;;  %v12396_v59 = vld [vmem:[#allocation69_spill] sm:$0xff] }
 0xdb7   : > { %v6282_v54 = vadd.f32 %v11682_v52, %v6228_v56  ;;  %v6057_v5 = vpop.f32.mrb[104].mxu1  ;;  %v4686_v56 = vmul.f32 %v11651_v63, %v12386_v35  ;;  %v4739_v61 = vadd.f32 %v11668_v60, %v4685_v55  ;;  %v12388_v60 = vld [vmem:[#allocation62_spill] sm:$0xff] }
 0xdb8   : > { %v11736_v26 = vadd.f32 %v6281_v48, %v4723_v58  ;;  %v6231_v30 = vmul.f32 %v11658_v36, %v6057_v5  ;;  %v6059_v21 = vpop.f32.mrb[105].mxu1  ;;  %v12397_v55 = vld [vmem:[#allocation70_spill] sm:$0xff] }
 0xdb9   : > { %v11739_v11 = vadd.f32 %v6282_v54, %v4724_v28  ;;  %v6232_v53 = vmul.f32 %v11662_v41, %v6059_v21  ;;  %v4740_v21 = vadd.f32 %v11678_v51, %v4686_v56  ;;  %v12399_v56 = vld [vmem:[#allocation72_spill] sm:$0xff] }
 0xdba   : > { %v6285_v19 = vadd.f32 %v11672_v32, %v6231_v30 }
 0xdbb   : > { %v6286_v31 = vadd.f32 %v11682_v52, %v6232_v53  ;;  %v6063_v24 = vpop.f32.mrb[106].mxu1 }
 0xdbc   : > { %v11750_v23 = vadd.f32 %v6285_v19, %v4727_v49  ;;  %v6235_v37 = vmul.f32 %v11658_v36, %v6063_v24  ;;  %v6065_v38 = vpop.f32.mrb[107].mxu1  ;;  %v4647_v19 = vsub.s32 2, %v12387_v4  ;;  %v12391_v24 = vld [vmem:[#allocation64_spill] sm:$0xff] }
 0xdbd   : > { %v11753_v2 = vadd.f32 %v6286_v31, %v4728_v62  ;;  %v6236_v10 = vmul.f32 %v11662_v41, %v6065_v38  ;;  %v12392_v38 = vld [vmem:[#allocation65_spill] sm:$0xff] }
 0xdbe   : > { %v6289_v13 = vadd.f32 %v11672_v32, %v6235_v37  ;;  %v4648_v62 = vrot.slane %v11637_v16, %v4647_v19  ;;  %v11801_v51 = vrot.slane %v11647_v40, %v4647_v19 }
 0xdbf   : > { %v6290_v33 = vadd.f32 %v11682_v52, %v6236_v10  ;;  %v6069_v17 = vpop.f32.mrb[108].mxu1 }
 0xdc0   : > { %v11764_v25 = vadd.f32 %v6289_v13, %v4731_v44  ;;  %v6239_v29 = vmul.f32 %v11658_v36, %v6069_v17  ;;  %v6071_v57 = vpop.f32.mrb[109].mxu1  ;;  %v4663_v37 = vmul.f32 %v4648_v62, %v12391_v24  ;;  %v12393_v44 = vld [vmem:[#allocation66_spill] sm:$0xff]  ;;  %v12394_v13 = vld [vmem:[#allocation67_spill] sm:$0xff] }
 0xdc1   : > { %v11767_v34 = vadd.f32 %v6290_v33, %v4732_v47  ;;  %v6240_v3 = vmul.f32 %v11662_v41, %v6071_v57  ;;  %v4667_v39 = vmul.f32 %v4648_v62, %v12393_v44  ;;  %v12395_v47 = vld [vmem:[#allocation68_spill] sm:$0xff] }
 0xdc2   : > { %v6293_v14 = vadd.f32 %v11672_v32, %v6239_v29  ;;  %v4671_v20 = vmul.f32 %v4648_v62, %v12395_v47  ;;  %v12249_v47 = vmax.f32 %v11711_v1, 0.0 }
 0xdc3   : > { %v6294_v58 = vadd.f32 %v11682_v52, %v6240_v3  ;;  %v6075_v6 = vpop.f32.mrb[110].mxu1  ;;  %v11821_v3 = vadd.f32 %v11801_v51, %v4667_v39 }
 0xdc4   : > { %v11778_v48 = vadd.f32 %v6293_v14, %v4735_v18  ;;  %v6243_v28 = vmul.f32 %v11658_v36, %v6075_v6  ;;  %v6077_v45 = vpop.f32.mrb[111].mxu1  ;;  %v11794_v36 = vsub.s32 3, %v12387_v4  ;;  %v6365_v18 = vld [vmem:[%s12389_s2] sm:$0xf]  ;;  %v4675_v14 = vmul.f32 %v4648_v62, %v12397_v55 }
 0xdc5   : > { %v11781_v54 = vadd.f32 %v6294_v58, %v4736_v15  ;;  %v6244_v5 = vmul.f32 %v11662_v41, %v6077_v45  ;;  %v12398_v15 = vld [vmem:[#allocation71_spill] sm:$0xff]  ;;  %v4679_v58 = vmul.f32 %v4648_v62, %v12399_v56  ;;  %v11831_v6 = vadd.f32 %v11801_v51, %v4671_v20  ;;  %v12400_v45 = vld [vmem:[#allocation73_spill] sm:$0xff] }
 0xdc6   : > { %v6297_v30 = vadd.f32 %v11672_v32, %v6243_v28  ;;  %v4652_v41 = vrot.slane %v11637_v16, %v11794_v36  ;;  %v4659_v32 = vmul.f32 %v4648_v62, %v12388_v60  ;;  %v11843_v60 = vrot.slane %v6365_v18, %v10905_v27 }
 0xdc7   : > { %v6298_v63 = vadd.f32 %v11682_v52, %v6244_v5  ;;  %v11805_v52 = vrot.slane %v11647_v40, %v11794_v36  ;;  %v4717_v40 = vadd.f32 %v11801_v51, %v4663_v37  ;;  %v11852_v24 = vrot.slane %v6365_v18, %v10909_v7 }
 0xdc8   : > { %v11788_v53 = vadd.f32 %v6297_v30, %v4739_v61  ;;  %v4660_v31 = vmul.f32 %v4652_v41, %v12390_v50  ;;  %v4664_v10 = vmul.f32 %v4652_v41, %v12392_v38  ;;  %v4668_v16 = vmul.f32 %v4652_v41, %v12394_v13  ;;  %v12401_v30 = vld [vmem:[#allocation74_spill] sm:$0xff] }
 0xdc9   : > { %v11790_v49 = vadd.f32 %v6298_v63, %v4740_v21  ;;  %v4672_v33 = vmul.f32 %v4652_v41, %v12396_v59  ;;  %v4713_v17 = vadd.f32 %v11801_v51, %v4659_v32  ;;  %v4676_v35 = vmul.f32 %v4652_v41, %v12398_v15  ;;  %v12402_v63 = vld [vmem:[#allocation76_spill] sm:$0xff] }
 0xdca   : > { %v4714_v29 = vadd.f32 %v11805_v52, %v4660_v31  ;;  %v11818_v57 = vadd.f32 %v11805_v52, %v4664_v10  ;;  %v11825_v43 = vadd.f32 %v11805_v52, %v4668_v16  ;;  %v4680_v5 = vmul.f32 %v4652_v41, %v12400_v45 }
 0xdcb   : > { %v11834_v28 = vadd.f32 %v11805_v52, %v4672_v33  ;;  %v11838_v61 = vrot.slane %v11640_v9, %v4647_v19  ;;  %v4683_v21 = vmul.f32 %v4648_v62, %v12401_v30  ;;  %v4684_v4 = vmul.f32 %v4652_v41, %v12402_v63 }
 0xdcc   : > { %v11847_v32 = vrot.slane %v11640_v9, %v11794_v36  ;;  %v12247_v50 = vmax.f32 %v11694_v42, 0.0  ;;  %v12246_v31 = vmax.f32 %v11697_v0, 0.0  ;;  %v11855_v37 = vrot.slane %v11654_v22, %v4647_v19 }
 0xdcd   : > { %v11858_v38 = vadd.f32 %v11801_v51, %v4675_v14  ;;  %v11861_v10 = vadd.f32 %v11805_v52, %v4676_v35  ;;  %v11864_v44 = vadd.f32 %v11801_v51, %v4679_v58  ;;  %v11868_v39 = vrot.slane %v11654_v22, %v11794_v36  ;;  %v12403_v14 = vld [vmem:[#allocation78_spill] sm:$0xff]  ;;  %v12404_v35 = vld [vmem:[#allocation80_spill] sm:$0xff] }
 0xdce   : > { %v11871_v13 = vadd.f32 %v11805_v52, %v4680_v5  ;;  %v12248_v16 = vmax.f32 %v11708_v8, 0.0  ;;  %v11877_v33 = vadd.f32 %v11801_v51, %v4683_v21  ;;  %v11880_v55 = vadd.f32 %v11805_v52, %v4684_v4 }
 0xdcf   : > { %v11883_v15 = vmul.f32 %v4648_v62, %v12403_v14  ;;  %v11887_v56 = vmul.f32 %v4652_v41, %v12404_v35  ;;  %v6387_v45 = vmul.f32 %v11843_v60, %v12247_v50  ;;  %v6388_v5 = vmul.f32 %v11852_v24, %v12246_v31 }
 0xdd0   : > { %v12250_v30 = vmax.f32 %v11722_v12, 0.0  ;;  %v11899_v4 = vrot.slane %v6365_v18, %v4647_v19  ;;  %v6391_v41 = vmul.f32 %v11843_v60, %v12248_v16  ;;  %v12251_v35 = vmax.f32 %v11736_v26, 0.0 }
 0xdd1   : > { %v11915_v19 = vrot.slane %v6365_v18, %v11794_v36 }
 0xde7   : > { %v6146_v9 = vpop.f32.mrb[112].mxu1 }
 0xde8   : > { %v6217_v20 = vmul.f32 %v11838_v61, %v6146_v9  ;;  %v6148_v59 = vpop.f32.mrb[113].mxu1  ;;  %v6392_v9 = vmul.f32 %v11852_v24, %v12249_v47 }
 0xde9   : > { %v6218_v22 = vmul.f32 %v11847_v32, %v6148_v59 }
 0xdea   : > { %v6271_v58 = vadd.f32 %v11855_v37, %v6217_v20 }
 0xdeb   : > { %v6272_v21 = vadd.f32 %v11868_v39, %v6218_v22  ;;  %v6152_v63 = vpop.f32.mrb[114].mxu1 }
 0xdec   : > { %v11907_v20 = vadd.f32 %v6271_v58, %v4713_v17  ;;  %v6221_v59 = vmul.f32 %v11838_v61, %v6152_v63  ;;  %v6154_v14 = vpop.f32.mrb[115].mxu1  ;;  %v6419_v17 = vadd.f32 %v6388_v5, %v6387_v45  ;;  %v6424_v5 = vadd.f32 %v6392_v9, %v6391_v41 }
 0xded   : > { %v6222_v22 = vmul.f32 %v11847_v32, %v6154_v14  ;;  %v11912_v31 = vadd.f32 %v6272_v21, %v4714_v29  ;;  %v6395_v29 = vmul.f32 %v11843_v60, %v12250_v30  ;;  %v12405_v21 = vmax.f32 %v11725_v46, 0.0 }
 0xdee   : > { %v12252_v16 = vmax.f32 %v11907_v20, 0.0  ;;  %v6275_v47 = vadd.f32 %v11855_v37, %v6221_v59  ;;  %v6399_v59 = vmul.f32 %v11843_v60, %v12251_v35 }
 0xdef   : > { %v6276_v58 = vadd.f32 %v11868_v39, %v6222_v22  ;;  %v6158_v63 = vpop.f32.mrb[116].mxu1  ;;  %v12254_v62 = vmax.f32 %v11912_v31, 0.0  ;;  %v6396_v36 = vmul.f32 %v11852_v24, %v12405_v21 }
 0xdf0   : > { %v11928_v18 = vadd.f32 %v6275_v47, %v4717_v40  ;;  %v6225_v14 = vmul.f32 %v11838_v61, %v6158_v63  ;;  %v6160_v50 = vpop.f32.mrb[117].mxu1  ;;  %v6389_v45 = vmul.f32 %v11899_v4, %v12252_v16  ;;  %v12406_v47 = vmax.f32 %v11739_v11, 0.0 }
 0xdf1   : > { %v11938_v22 = vadd.f32 %v6276_v58, %v11818_v57  ;;  %v6226_v30 = vmul.f32 %v11847_v32, %v6160_v50  ;;  %v6390_v40 = vmul.f32 %v11915_v19, %v12254_v62  ;;  %v6429_v16 = vadd.f32 %v6396_v36, %v6395_v29 }
 0xdf2   : > { %v6400_v63 = vmul.f32 %v11852_v24, %v12406_v47  ;;  %v12256_v21 = vmax.f32 %v11928_v18, 0.0  ;;  %v6279_v41 = vadd.f32 %v11855_v37, %v6225_v14  ;;  %v6420_v9 = vadd.f32 %v6419_v17, %v6389_v45 }
 0xdf3   : > { %v12257_v57 = vmax.f32 %v11938_v22, 0.0  ;;  %v6280_v58 = vadd.f32 %v11868_v39, %v6226_v30  ;;  %v6164_v50 = vpop.f32.mrb[118].mxu1 }
 0xdf4   : > { %v11953_v7 = vadd.f32 %v6279_v41, %v11821_v3  ;;  %v6229_v62 = vmul.f32 %v11838_v61, %v6164_v50  ;;  %v6166_v27 = vpop.f32.mrb[119].mxu1  ;;  %v6421_v47 = vadd.f32 %v6420_v9, %v6390_v40  ;;  %v6393_v14 = vmul.f32 %v11899_v4, %v12256_v21 }
 0xdf5   : > { %v6230_v45 = vmul.f32 %v11847_v32, %v6166_v27  ;;  %v6394_v30 = vmul.f32 %v11915_v19, %v12257_v57  ;;  %v11965_v29 = vadd.f32 %v6280_v58, %v11825_v43  ;;  %v6434_v41 = vadd.f32 %v6400_v63, %v6399_v59 }
 0xdf6   : > { %v12262_v3 = vmax.f32 %v11953_v7, 0.0  ;;  %v6283_v36 = vadd.f32 %v11855_v37, %v6229_v62  ;;  %6422 = vadd.xlane.f32.xlu0 %v6421_v47  ;;  %v6425_v40 = vadd.f32 %v6424_v5, %v6393_v14  ;;  %v12258_v9 = vmax.f32 %v11764_v25, 0.0 }
 0xdf7   : > { %v12259_v50 = vmax.f32 %v11767_v34, 0.0  ;;  %v6284_v27 = vadd.f32 %v11868_v39, %v6230_v45  ;;  %v6170_v21 = vpop.f32.mrb[120].mxu1  ;;  %v12260_v17 = vmax.f32 %v11965_v29, 0.0  ;;  %v12407_v5 = vmax.f32 %v11750_v23, 0.0 }
 0xdf8   : > { %v11974_v57 = vadd.f32 %v6283_v36, %v11831_v6  ;;  %v6233_v43 = vmul.f32 %v11838_v61, %v6170_v21  ;;  %v6172_v58 = vpop.f32.mrb[121].mxu1  ;;  %v6426_v35 = vadd.f32 %v6425_v40, %v6394_v30  ;;  %v6397_v62 = vmul.f32 %v11899_v4, %v12262_v3 }
 0xdf9   : > { %v6403_v59 = vmul.f32 %v11843_v60, %v12407_v5  ;;  %v11984_v63 = vadd.f32 %v6284_v27, %v11834_v28  ;;  %v6234_v47 = vmul.f32 %v11847_v32, %v6172_v58  ;;  %v6398_v6 = vmul.f32 %v11915_v19, %v12260_v17 }
 0xdfa   : > { %v12408_v21 = vmax.f32 %v11753_v2, 0.0  ;;  %v12261_v45 = vmax.f32 %v11974_v57, 0.0  ;;  %v6287_v30 = vadd.f32 %v11855_v37, %v6233_v43  ;;  %6427 = vadd.xlane.f32.xlu0 %v6426_v35  ;;  %v6430_v36 = vadd.f32 %v6429_v16, %v6397_v62 }
 0xdfb   : > { %v6407_v28 = vmul.f32 %v11843_v60, %v12258_v9  ;;  %v6408_v40 = vmul.f32 %v11852_v24, %v12259_v50  ;;  %v12263_v27 = vmax.f32 %v11984_v63, 0.0  ;;  %v6288_v58 = vadd.f32 %v11868_v39, %v6234_v47  ;;  %v6176_v5 = vpop.f32.mrb[122].mxu1 }
 0xdfc   : > { %v6404_v14 = vmul.f32 %v11852_v24, %v12408_v21  ;;  %v12004_v21 = vadd.f32 %v6287_v30, %v11858_v38  ;;  %v6237_v43 = vmul.f32 %v11838_v61, %v6176_v5  ;;  %v6178_v35 = vpop.f32.mrb[123].mxu1  ;;  %v6431_v16 = vadd.f32 %v6430_v36, %v6398_v6 }
 0xdfd   : > { %v6401_v62 = vmul.f32 %v11899_v4, %v12261_v45  ;;  %v12012_v50 = vadd.f32 %v6288_v58, %v11861_v10  ;;  %v6238_v17 = vmul.f32 %v11847_v32, %v6178_v35  ;;  %v6402_v38 = vmul.f32 %v11915_v19, %v12263_v27 }
 0xdfe   : > { %v6351_v30 = vmax.f32 %v12004_v21, 0.0  ;;  %v6291_v6 = vadd.f32 %v11855_v37, %v6237_v43  ;;  %6432 = vadd.xlane.f32.xlu1 %v6431_v16  ;;  %v6439_v58 = vadd.f32 %v6404_v14, %v6403_v59  ;;  %v6444_v3 = vadd.f32 %v6408_v40, %v6407_v28 }
 0xdff   : > { %v6435_v36 = vadd.f32 %v6434_v41, %v6401_v62  ;;  %v12264_v5 = vmax.f32 %v12012_v50, 0.0  ;;  %v6292_v45 = vadd.f32 %v11868_v39, %v6238_v17  ;;  %v6182_v10 = vpop.f32.mrb[124].mxu1  ;;  %v12409_v41 = vmax.f32 %v11778_v48, 0.0 }
 0xe00   : > { %v12024_v35 = vadd.f32 %v6291_v6, %v11864_v44  ;;  %v6241_v27 = vmul.f32 %v11838_v61, %v6182_v10  ;;  %v6184_v9 = vpop.f32.mrb[125].mxu1  ;;  %v6405_v43 = vmul.f32 %v11899_v4, %v6351_v30  ;;  %v12410_v14 = vmax.f32 %v11781_v54, 0.0 }
 0xe01   : > { %v6436_v47 = vadd.f32 %v6435_v36, %v6402_v38  ;;  %v6411_v16 = vmul.f32 %v11843_v60, %v12409_v41  ;;  %v12034_v17 = vadd.f32 %v6292_v45, %v11871_v13  ;;  %v6242_v59 = vmul.f32 %v11847_v32, %v6184_v9 }
 0xe02   : > { %v6406_v44 = vmul.f32 %v11915_v19, %v12264_v5  ;;  %v6412_v28 = vmul.f32 %v11852_v24, %v12410_v14  ;;  %v6355_v40 = vmax.f32 %v12024_v35, 0.0  ;;  %v6295_v62 = vadd.f32 %v11855_v37, %v6241_v27 }
 0xe03   : > { %6437 = vadd.xlane.f32.xlu1 %v6436_v47  ;;  %v6440_v38 = vadd.f32 %v6439_v58, %v6405_v43  ;;  %v6361_v6 = vmax.f32 %v11788_v53, 0.0  ;;  %v6362_v13 = vmax.f32 %v11790_v49, 0.0  ;;  %v6356_v9 = vmax.f32 %v12034_v17, 0.0  ;;  %v6188_v36 = vpop.f32.mrb[126].mxu1 }
 0xe04   : > { %v6296_v45 = vadd.f32 %v11868_v39, %v6242_v59  ;;  %v12050_v10 = vadd.f32 %v6295_v62, %v11877_v33  ;;  %v6245_v41 = vmul.f32 %v11838_v61, %v6188_v36  ;;  %v6190_v14 = vpop.f32.mrb[127].mxu1  ;;  %v6409_v27 = vmul.f32 %v11899_v4, %v6355_v40 }
 0xe05   : > { %v6441_v5 = vadd.f32 %v6440_v38, %v6406_v44  ;;  %v4741_v47 = vadd.f32 %v11801_v51, %v11883_v15  ;;  %v6246_v43 = vmul.f32 %v11847_v32, %v6190_v14  ;;  %v6410_v33 = vmul.f32 %v11915_v19, %v6356_v9 }
 0xe06   : > { %v12059_v58 = vadd.f32 %v6296_v45, %v11880_v55  ;;  %v4742_v61 = vadd.f32 %v11805_v52, %v11887_v56  ;;  %v6359_v59 = vmax.f32 %v12050_v10, 0.0  ;;  %v6299_v44 = vadd.f32 %v11855_v37, %v6245_v41 }
 0xe07   : > { %6442 = vadd.xlane.f32.xlu0 %v6441_v5  ;;  %v6445_v62 = vadd.f32 %v6444_v3, %v6409_v27  ;;  %v6415_v51 = vmul.f32 %v11843_v60, %v6361_v6  ;;  %v6300_v32 = vadd.f32 %v11868_v39, %v6246_v43  ;;  %v6449_v15 = vadd.f32 %v6412_v28, %v6411_v16  ;;  %v6653_v43 = vld [vmem:[#allocation4 + $0x18] sm:$0xff] }
 0xe08   : > { %v6360_v55 = vmax.f32 %v12059_v58, 0.0  ;;  %v6416_v38 = vmul.f32 %v11852_v24, %v6362_v13  ;;  %v12077_v52 = vadd.f32 %v6299_v44, %v4741_v47  ;;  %v6413_v37 = vmul.f32 %v11899_v4, %v6359_v59  ;;  %v6651_v47 = vld [vmem:[#allocation4 + $0x8] sm:$0xff]  ;;  %v6652_v44 = vld [vmem:[#allocation4 + $0x10] sm:$0xff] }
 0xe09   : > { %v6446_v56 = vadd.f32 %v6445_v62, %v6410_v33  ;;  %v12082_v3 = vadd.f32 %v6300_v32, %v4742_v61  ;;  %v9941_v27 = vmov 0   ;;  %v6650_v33 = vld [vmem:[#allocation4] sm:$0xff]  ;;  %v9098_v61 = vpack.c.bf16 %v6653_v43, %v6651_v47  ;;  %v6655_v62 = vld [vmem:[#allocation4 + $0x28] sm:$0xff]  ;;  %v6657_v32 = vld [vmem:[#allocation4 + $0x38] sm:$0xff] }
 0xe0a   : > { %v6414_v60 = vmul.f32 %v11915_v19, %v6360_v55  ;;  %v6363_v39 = vmax.f32 %v12077_v52, 0.0  ;;  %v6450_v5 = vadd.f32 %v6449_v15, %v6413_v37  ;;  %v6454_v45 = vadd.f32 %v6416_v38, %v6415_v51  ;;  %9501 = vset.pattern.permute.xlu0 %v9941_v27  ;;  %9502 = vset.pattern.permute.xlu1 %v9941_v27  ;;  %v6654_v15 = vld [vmem:[#allocation4 + $0x20] sm:$0xff]  ;;  %v6656_v38 = vld [vmem:[#allocation4 + $0x30] sm:$0xff]  ;;  %v6667_v47 = vld [vmem:[#allocation4 + $0x88] sm:$0xff] }
 0xe0b   : > { %6447 = vadd.xlane.f32.xlu1 %v6446_v56  ;;  %v6364_v16 = vmax.f32 %v12082_v3, 0.0  ;;  %v9102_v51 = vpack.c.bf16 %v6657_v32, %v6655_v62  ;;  %v6659_v56 = vld [vmem:[#allocation4 + $0x48] sm:$0xff]  ;;  %9099 = vmatprep.subr.bf16.mxu1 %v9098_v61  ;;  %v9104_v37 = vpack.c.bf16 %v6656_v38, %v6654_v15  ;;  %v6664_v27 = vld [vmem:[#allocation4 + $0x70] sm:$0xff]  ;;  %v6669_v43 = vld [vmem:[#allocation4 + $0x98] sm:$0xff]  ;;  %v12430_v21 = vmax.f32 %v12012_v50, 0.0 }
 0xe0c   : > { %v6451_v24 = vadd.f32 %v6450_v5, %v6414_v60  ;;  %v6417_v28 = vmul.f32 %v11899_v4, %v6363_v39  ;;  %v9100_v4 = vpack.c.bf16 %v6652_v44, %v6650_v33  ;;  %v6658_v5 = vld [vmem:[#allocation4 + $0x40] sm:$0xff]  ;;  %v9114_v61 = vpack.c.bf16 %v6669_v43, %v6667_v47  ;;  %v6668_v62 = vld [vmem:[#allocation4 + $0x90] sm:$0xff] }
 0xe0d   : > { %v6418_v36 = vmul.f32 %v11915_v19, %v6364_v16  ;;  %v6661_v19 = vld [vmem:[#allocation4 + $0x58] sm:$0xff]  ;;  %v6666_v44 = vld [vmem:[#allocation4 + $0x80] sm:$0xff] }
 0xe0e   : > { %6452 = vadd.xlane.f32.xlu0 %v6451_v24  ;;  %v6455_v41 = vadd.f32 %v6454_v45, %v6417_v28  ;;  %9101 = vmatpush1.bf16.msra.mxu1 %v9100_v4  ;;  %v9106_v60 = vpack.c.bf16 %v6661_v19, %v6659_v56  ;;  %v6660_v24 = vld [vmem:[#allocation4 + $0x50] sm:$0xff]  ;;  %v6663_v28 = vld [vmem:[#allocation4 + $0x68] sm:$0xff]  ;;  %v6665_v45 = vld [vmem:[#allocation4 + $0x78] sm:$0xff]  ;;  %v9116_v32 = vpack.c.bf16 %v6668_v62, %v6666_v44 }
 0xe0f   : > { %9103 = vmatprep.subr.bf16.mxu1 %v9102_v51  ;;  %v7421_v4 = vld [vmem:[#allocation2] ss:$0 sm:$0xff] }
 0xe10   : > { %v6456_v14 = vadd.f32 %v6455_v41, %v6418_v36  ;;  %v9108_v36 = vpack.c.bf16 %v6660_v24, %v6658_v5  ;;  %v9110_v41 = vpack.c.bf16 %v6665_v45, %v6663_v28 }
 0xe12   : > { %6457 = vadd.xlane.f32.xlu1 %v6456_v14  ;;  %9105 = vmatpush1.bf16.msra.mxu1 %v9104_v37  ;;  %v6662_v14 = vld [vmem:[#allocation4 + $0x60] sm:$0xff] }
 0xe13   : > { %9107 = vmatprep.subr.bf16.mxu1 %v9106_v60  ;;  %v9112_v33 = vpack.c.bf16 %v6664_v27, %v6662_v14 }
 0xe16   : > { %9109 = vmatpush1.bf16.msra.mxu1 %v9108_v36 }
 0xe17   : > { %9111 = vmatprep.subr.bf16.mxu1 %v9110_v41 }
 0xe1a   : > { %9113 = vmatpush1.bf16.msra.mxu1 %v9112_v33 }
 0xe1b   : > { %9115 = vmatprep.subr.bf16.mxu1 %v9114_v61 }
 0xe1e   : > { %9117 = vmatpush1.bf16.msra.mxu1 %v9116_v32 }
 0xe83   : > { %v6423_v51 = vpop.xlane.xlu0 %6422 }
 0xe84   : > { %v6466_v15 = vadd.f32 %v7421_v4, %v6423_v51 }
 0xe86   : > { %v6474_v38 = vsub.f32 0.0, %v6466_v15 }
 0xe87   : > { %v6428_v56 = vpop.xlane.xlu0 %6427 }
 0xe88   : > { %v6482_v19 = vmul.f32 1.442695, %v6474_v38  ;;  %v6467_v37 = vadd.f32 %v7421_v4, %v6428_v56 }
 0xe8a   : > { %9503 = vpow2.f32 %v6482_v19  ;;  %v6475_v60 = vsub.f32 0.0, %v6467_v37 }
 0xe8b   : > { %v6433_v5 = vpop.xlane.xlu1 %6432 }
 0xe8c   : > { %v6484_v24 = vmul.f32 1.442695, %v6475_v60  ;;  %v6468_v28 = vadd.f32 %v7421_v4, %v6433_v5 }
 0xe8e   : > { %9505 = vpow2.f32 %v6484_v24  ;;  %v6476_v45 = vsub.f32 0.0, %v6468_v28 }
 0xe90   : > { %v6438_v36 = vpop.xlane.xlu1 %6437  ;;  %v6486_v41 = vmul.f32 1.442695, %v6476_v45 }
 0xe91   : > { %v6469_v14 = vadd.f32 %v7421_v4, %v6438_v36 }
 0xe92   : > { %9507 = vpow2.f32 %v6486_v41 }
 0xe93   : > { %v6477_v27 = vsub.f32 0.0, %v6469_v14 }
 0xe94   : > { %v6443_v47 = vpop.xlane.xlu0 %6442  ;;  %v9504_v43 = vpop.eup %9503 }
 0xe95   : > { %v6488_v33 = vmul.f32 1.442695, %v6477_v27  ;;  %v6470_v61 = vadd.f32 %v7421_v4, %v6443_v47  ;;  %v6498_v44 = vadd.f32 1.0, %v9504_v43 }
 0xe97   : > { %9509 = vpow2.f32 %v6488_v33  ;;  %v6478_v62 = vsub.f32 0.0, %v6470_v61  ;;  %v6671_v33 = vld [vmem:[#allocation4 + $0xa8] sm:$0xff]  ;;  %v6673_v61 = vld [vmem:[#allocation4 + $0xb8] sm:$0xff] }
 0xe98   : > { %9511 = vrcp.f32 %v6498_v44  ;;  %v6448_v32 = vpop.xlane.xlu1 %6447  ;;  %v9506_v51 = vpop.eup %9505 }
 0xe99   : > { %v6490_v15 = vmul.f32 1.442695, %v6478_v62  ;;  %v6471_v38 = vadd.f32 %v7421_v4, %v6448_v32  ;;  %v6499_v56 = vadd.f32 1.0, %v9506_v51  ;;  %v9118_v62 = vpack.c.bf16 %v6673_v61, %v6671_v33  ;;  %v6670_v32 = vld [vmem:[#allocation4 + $0xa0] sm:$0xff]  ;;  %v6672_v51 = vld [vmem:[#allocation4 + $0xb0] sm:$0xff] }
 0xe9a   : > { %v6678_v33 = vld [vmem:[#allocation4 + $0xe0] sm:$0xff]  ;;  %v6680_v61 = vld [vmem:[#allocation4 + $0xf0] sm:$0xff] }
 0xe9b   : > { %9513 = vpow2.f32 %v6490_v15  ;;  %v6479_v19 = vsub.f32 0.0, %v6471_v38  ;;  %v6453_v37 = vpop.xlane.xlu0 %6452  ;;  %v9120_v15 = vpack.c.bf16 %v6672_v51, %v6670_v32  ;;  %9119 = vmatprep.subr.bf16.mxu1 %v9118_v62 }
 0xe9c   : > { %9515 = vrcp.f32 %v6499_v56  ;;  %v9508_v60 = vpop.eup %9507  ;;  %v6472_v24 = vadd.f32 %v7421_v4, %v6453_v37 }
 0xe9d   : > { %v6492_v5 = vmul.f32 1.442695, %v6479_v19  ;;  %v6500_v28 = vadd.f32 1.0, %v9508_v60  ;;  %9121 = vmatpush1.bf16.msra.mxu1 %v9120_v15  ;;  %v6675_v60 = vld [vmem:[#allocation4 + $0xc8] sm:$0xff] }
 0xe9e   : > { %v6480_v45 = vsub.f32 0.0, %v6472_v24  ;;  %v6674_v24 = vld [vmem:[#allocation4 + $0xc0] sm:$0xff]  ;;  %v6683_v15 = vld [vmem:[#allocation4 + $0x108] sm:$0xff] }
 0xe9f   : > { %9517 = vpow2.f32 %v6492_v5  ;;  %v6458_v36 = vpop.xlane.xlu1 %6457 }
 0xea0   : > { %9519 = vrcp.f32 %v6500_v28  ;;  %v6494_v14 = vmul.f32 1.442695, %v6480_v45  ;;  %v6473_v27 = vadd.f32 %v7421_v4, %v6458_v36  ;;  %v6677_v4 = vld [vmem:[#allocation4 + $0xd8] sm:$0xff]  ;;  %v6676_v28 = vld [vmem:[#allocation4 + $0xd0] sm:$0xff] }
 0xea1   : > { %v9510_v41 = vpop.eup %9509  ;;  %v9122_v5 = vpack.c.bf16 %v6677_v4, %v6675_v60  ;;  %v9124_v45 = vpack.c.bf16 %v6676_v28, %v6674_v24  ;;  %v6687_v28 = vld [vmem:[#allocation4 + $0x128] sm:$0xff] }
 0xea2   : > { %v9512_v47 = vpop.eup %9511  ;;  %v6501_v43 = vadd.f32 1.0, %v9510_v41  ;;  %9521 = vpow2.f32 %v6494_v14  ;;  %v6481_v44 = vsub.f32 0.0, %v6473_v27  ;;  %v6679_v27 = vld [vmem:[#allocation4 + $0xe8] sm:$0xff] }
 0xea3   : > { %6524 = vperm.xlu0 %9501, %v9512_v47   ;;  %9123 = vmatprep.subr.bf16.mxu1 %v9122_v5  ;;  %v6681_v47 = vld [vmem:[#allocation4 + $0xf8] sm:$0xff] }
 0xea4   : > { %9523 = vrcp.f32 %v6501_v43  ;;  %v6496_v56 = vmul.f32 1.442695, %v6481_v44  ;;  %9125 = vmatpush1.bf16.msra.mxu1 %v9124_v45  ;;  %v9126_v43 = vpack.c.bf16 %v6681_v47, %v6679_v27  ;;  %v9128_v44 = vpack.c.bf16 %v6680_v61, %v6678_v33  ;;  %v6689_v45 = vld [vmem:[#allocation4 + $0x138] sm:$0xff] }
 0xea5   : > { %v9514_v38 = vpop.eup %9513  ;;  %v6693_v33 = vld [vmem:[#allocation4 + $0x158] sm:$0xff] }
 0xea6   : > { %v9516_v19 = vpop.eup %9515  ;;  %v6502_v37 = vadd.f32 1.0, %v9514_v38  ;;  %9525 = vpow2.f32 %v6496_v56  ;;  %9127 = vmatprep.subr.bf16.mxu1 %v9126_v43  ;;  %v6685_v38 = vld [vmem:[#allocation4 + $0x118] sm:$0xff]  ;;  %v6691_v43 = vld [vmem:[#allocation4 + $0x148] sm:$0xff] }
 0xea7   : > { %6529 = vperm.xlu1 %9502, %v9516_v19   ;;  %v9130_v56 = vpack.c.bf16 %v6685_v38, %v6683_v15  ;;  %v6682_v19 = vld [vmem:[#allocation4 + $0x100] sm:$0xff]  ;;  %v9138_v61 = vpack.c.bf16 %v6693_v33, %v6691_v43  ;;  %v6695_v15 = vld [vmem:[#allocation4 + $0x168] sm:$0xff]  ;;  %v6697_v38 = vld [vmem:[#allocation4 + $0x178] sm:$0xff] }
 0xea8   : > { %9527 = vrcp.f32 %v6502_v37  ;;  %9129 = vmatpush1.bf16.msra.mxu1 %v9128_v44  ;;  %v6684_v37 = vld [vmem:[#allocation4 + $0x110] sm:$0xff]  ;;  %v6690_v44 = vld [vmem:[#allocation4 + $0x140] sm:$0xff] }
 0xea9   : > { %v9518_v36 = vpop.eup %9517  ;;  %v9132_v60 = vpack.c.bf16 %v6684_v37, %v6682_v19  ;;  %9131 = vmatprep.subr.bf16.mxu1 %v9130_v56  ;;  %v9142_v56 = vpack.c.bf16 %v6697_v38, %v6695_v15  ;;  %v6694_v19 = vld [vmem:[#allocation4 + $0x160] sm:$0xff]  ;;  %v6696_v37 = vld [vmem:[#allocation4 + $0x170] sm:$0xff] }
 0xeaa   : > { %v9520_v41 = vpop.eup %9519  ;;  %v6503_v14 = vadd.f32 1.0, %v9518_v36  ;;  %v9134_v36 = vpack.c.bf16 %v6689_v45, %v6687_v28  ;;  %v6698_v45 = vld [vmem:[#allocation4 + $0x180] sm:$0xff]  ;;  %v6704_v33 = vld [vmem:[#allocation4 + $0x1b0] sm:$0xff] }
 0xeab   : > { %6534 = vperm.xlu1 %9502, %v9520_v41   ;;  %v6686_v41 = vld [vmem:[#allocation4 + $0x120] sm:$0xff]  ;;  %v6708_v15 = vld [vmem:[#allocation4 + $0x1d0] sm:$0xff] }
 0xeac   : > { %9529 = vrcp.f32 %v6503_v14  ;;  %v9522_v62 = vpop.eup %9521  ;;  %9133 = vmatpush1.bf16.msra.mxu1 %v9132_v60  ;;  %v6688_v14 = vld [vmem:[#allocation4 + $0x130] sm:$0xff]  ;;  %v9144_v60 = vpack.c.bf16 %v6696_v37, %v6694_v19  ;;  %v6702_v43 = vld [vmem:[#allocation4 + $0x1a0] sm:$0xff]  ;;  %v6713_v19 = vld [vmem:[#allocation4 + $0x1f8] sm:$0xff] }
 0xead   : > { %v6504_v51 = vadd.f32 1.0, %v9522_v62  ;;  %v9136_v27 = vpack.c.bf16 %v6688_v14, %v6686_v41  ;;  %9135 = vmatprep.subr.bf16.mxu1 %v9134_v36  ;;  %v6692_v62 = vld [vmem:[#allocation4 + $0x150] sm:$0xff]  ;;  %v6703_v14 = vld [vmem:[#allocation4 + $0x1a8] sm:$0xff] }
 0xeae   : > { %v9524_v32 = vpop.eup %9523  ;;  %v6700_v36 = vld [vmem:[#allocation4 + $0x190] sm:$0xff] }
 0xeaf   : > { %6539 = vperm.xlu1 %9502, %v9524_v32   ;;  %9531 = vrcp.f32 %v6504_v51  ;;  %v9140_v32 = vpack.c.bf16 %v6692_v62, %v6690_v44  ;;  %v9148_v41 = vpack.c.bf16 %v6700_v36, %v6698_v45  ;;  %v6707_v44 = vld [vmem:[#allocation4 + $0x1c8] sm:$0xff]  ;;  %v6709_v62 = vld [vmem:[#allocation4 + $0x1d8] sm:$0xff] }
 0xeb0   : > { %v9526_v4 = vpop.eup %9525  ;;  %9137 = vmatpush1.bf16.msra.mxu1 %v9136_v27  ;;  %v6705_v27 = vld [vmem:[#allocation4 + $0x1b8] sm:$0xff] }
 0xeb1   : > { %v6505_v24 = vadd.f32 1.0, %v9526_v4  ;;  %9139 = vmatprep.subr.bf16.mxu1 %v9138_v61  ;;  %v9152_v61 = vpack.c.bf16 %v6704_v33, %v6702_v43  ;;  %v6950_v36 = vld [vmem:[%s12411_s30 + $0x80] sm:$0xff]  ;;  %v6952_v43 = vld [vmem:[%s12411_s30 + $0x90] sm:$0xff]  ;;  %v6953_v33 = vld [vmem:[%s12411_s30 + $0x98] sm:$0xff] }
 0xeb2   : > { %v9528_v5 = vpop.eup %9527 }
 0xeb3   : > { %6544 = vperm.xlu1 %9502, %v9528_v5   ;;  %9533 = vrcp.f32 %v6505_v24  ;;  %v6699_v5 = vld [vmem:[#allocation4 + $0x188] sm:$0xff]  ;;  %v6701_v24 = vld [vmem:[#allocation4 + $0x198] sm:$0xff] }
 0xeb4   : > { %9141 = vmatpush1.bf16.msra.mxu1 %v9140_v32  ;;  %v9146_v28 = vpack.c.bf16 %v6701_v24, %v6699_v5  ;;  %v9154_v32 = vpack.c.bf16 %v6709_v62, %v6707_v44  ;;  %v6715_v24 = vld [vmem:[#allocation4 + $0x208] sm:$0xff]  ;;  %v9230_v44 = vpack.c.bf16 %v6953_v33, %v6952_v43 }
 0xeb5   : > { %9143 = vmatprep.subr.bf16.mxu1 %v9142_v56  ;;  %v6711_v56 = vld [vmem:[#allocation4 + $0x1e8] sm:$0xff] }
 0xeb6   : > { %v9530_v47 = vpop.eup %9529  ;;  %v9158_v37 = vpack.c.bf16 %v6713_v19, %v6711_v56  ;;  %v6936_v62 = vld [vmem:[%s12411_s30 + $0x10] sm:$0xff]  ;;  %v6938_v19 = vld [vmem:[%s12411_s30 + $0x20] sm:$0xff]  ;;  %v6943_v43 = vld [vmem:[%s12411_s30 + $0x48] sm:$0xff] }
 0xeb7   : > { %6549 = vperm.xlu1 %9502, %v9530_v47   ;;  %v9150_v47 = vpack.c.bf16 %v6705_v27, %v6703_v14  ;;  %v6934_v14 = vld [vmem:[%s12411_s30] sm:$0xff]  ;;  %v6960_v33 = vld [vmem:[%s12411_s30 + $0xd0] sm:$0xff] }
 0xeb8   : > { %9145 = vmatpush1.bf16.msra.mxu1 %v9144_v60  ;;  %v6710_v60 = vld [vmem:[#allocation4 + $0x1e0] sm:$0xff] }
 0xeb9   : > { %v9532_v51 = vpop.eup %9531  ;;  %9147 = vmatprep.subr.bf16.mxu1 %v9146_v28  ;;  %v6717_v28 = vld [vmem:[#allocation4 + $0x218] sm:$0xff] }
 0xeba   : > { %v9162_v45 = vpack.c.bf16 %v6717_v28, %v6715_v24  ;;  %v6940_v28 = vld [vmem:[%s12411_s30 + $0x30] sm:$0xff] }
 0xebb   : > { %6554 = vperm.xlu1 %9502, %v9532_v51   ;;  %v6706_v51 = vld [vmem:[#allocation4 + $0x1c0] sm:$0xff] }
 0xebc   : > { %9149 = vmatpush1.bf16.msra.mxu1 %v9148_v41  ;;  %v9156_v38 = vpack.c.bf16 %v6708_v15, %v6706_v51  ;;  %v6951_v41 = vld [vmem:[%s12411_s30 + $0x88] sm:$0xff]  ;;  %v6954_v51 = vld [vmem:[%s12411_s30 + $0xa0] sm:$0xff] }
 0xebd   : > { %v9534_v4 = vpop.eup %9533  ;;  %9151 = vmatprep.subr.bf16.mxu1 %v9150_v47  ;;  %v9226_v27 = vpack.c.bf16 %v6951_v41, %v6950_v36  ;;  %v6935_v47 = vld [vmem:[%s12411_s30 + $0x8] sm:$0xff]  ;;  %v6958_v36 = vld [vmem:[%s12411_s30 + $0xc0] sm:$0xff] }
 0xebe   : > { %v6955_v15 = vld [vmem:[%s12411_s30 + $0xa8] sm:$0xff] }
 0xebf   : > { %6559 = vperm.xlu1 %9502, %v9534_v4   ;;  %v6712_v4 = vld [vmem:[#allocation4 + $0x1f0] sm:$0xff]  ;;  %9227 = vmatprep.subr.bf16.mxu0 %v9226_v27  ;;  %v9234_v56 = vpack.c.bf16 %v6955_v15, %v6954_v51  ;;  %v6959_v41 = vld [vmem:[%s12411_s30 + $0xc8] sm:$0xff] }
 0xec0   : > { %9153 = vmatpush1.bf16.msra.mxu1 %v9152_v61  ;;  %v9160_v5 = vpack.c.bf16 %v6712_v4, %v6710_v60  ;;  %v9228_v61 = vpack.c.bf16 %v6935_v47, %v6934_v14  ;;  %v6956_v60 = vld [vmem:[%s12411_s30 + $0xb0] sm:$0xff]  ;;  %v6957_v4 = vld [vmem:[%s12411_s30 + $0xb8] sm:$0xff]  ;;  %v9242_v27 = vpack.c.bf16 %v6959_v41, %v6958_v36  ;;  %v6942_v47 = vld [vmem:[%s12411_s30 + $0x40] sm:$0xff]  ;;  %v12414_v41 = vmax.f32 %v11953_v7, 0.0 }
 0xec1   : > { %9155 = vmatprep.subr.bf16.mxu1 %v9154_v32  ;;  %v6937_v32 = vld [vmem:[%s12411_s30 + $0x18] sm:$0xff]  ;;  %v9238_v24 = vpack.c.bf16 %v6957_v4, %v6956_v60  ;;  %v12412_v60 = vmax.f32 %v11907_v20, 0.0  ;;  %v12416_v20 = vmax.f32 %v11711_v1, 0.0  ;;  %v12420_v7 = vmax.f32 %v11697_v0, 0.0 }
 0xec2   : > { %9229 = vmatpush3.bf16.msra.mxu0 %v9228_v61  ;;  %v6961_v61 = vld [vmem:[%s12411_s30 + $0xd8] sm:$0xff] }
 0xec3   : > { %9231 = vmatprep.subr.bf16.mxu0 %v9230_v44  ;;  %v9244_v44 = vpack.c.bf16 %v6943_v43, %v6942_v47  ;;  %v6945_v51 = vld [vmem:[%s12411_s30 + $0x58] sm:$0xff]  ;;  %v12415_v43 = vmax.f32 %v11708_v8, 0.0  ;;  %v12422_v8 = vmax.f32 %v11725_v46, 0.0  ;;  %v12426_v46 = vmax.f32 %v11739_v11, 0.0 }
 0xec4   : > { %9157 = vmatpush1.bf16.msra.mxu1 %v9156_v38  ;;  %v9232_v38 = vpack.c.bf16 %v6937_v32, %v6936_v62  ;;  %v9246_v62 = vpack.c.bf16 %v6961_v61, %v6960_v33  ;;  %v6944_v32 = vld [vmem:[%s12411_s30 + $0x50] sm:$0xff] }
 0xec5   : > { %9159 = vmatprep.subr.bf16.mxu1 %v9158_v37  ;;  %v6939_v37 = vld [vmem:[%s12411_s30 + $0x28] sm:$0xff] }
 0xec6   : > { %9233 = vmatpush3.bf16.msra.mxu0 %v9232_v38  ;;  %v6962_v38 = vld [vmem:[%s12411_s30 + $0xe0] sm:$0xff] }
 0xec7   : > { %9235 = vmatprep.subr.bf16.mxu0 %v9234_v56  ;;  %v6963_v56 = vld [vmem:[%s12411_s30 + $0xe8] sm:$0xff] }
 0xec8   : > { %9161 = vmatpush1.bf16.msra.mxu1 %v9160_v5  ;;  %v9236_v5 = vpack.c.bf16 %v6939_v37, %v6938_v19  ;;  %v9248_v37 = vpack.c.bf16 %v6945_v51, %v6944_v32  ;;  %v12419_v51 = vmax.f32 %v11938_v22, 0.0 }
 0xec9   : > { %9163 = vmatprep.subr.bf16.mxu1 %v9162_v45  ;;  %v6941_v45 = vld [vmem:[%s12411_s30 + $0x38] sm:$0xff] }
 0xeca   : > { %9237 = vmatpush3.bf16.msra.mxu0 %v9236_v5  ;;  %v9240_v14 = vpack.c.bf16 %v6941_v45, %v6940_v28  ;;  %v12413_v5 = vmax.f32 %v11928_v18, 0.0  ;;  %v9250_v28 = vpack.c.bf16 %v6963_v56, %v6962_v38  ;;  %v12417_v18 = vmax.f32 %v11974_v57, 0.0 }
 0xecb   : > { %9239 = vmatprep.subr.bf16.mxu0 %v9238_v24 }
 0xece   : > { %9241 = vmatpush3.bf16.msra.mxu0 %v9240_v14 }
 0xecf   : > { %9243 = vmatprep.subr.bf16.mxu0 %v9242_v27 }
 0xed2   : > { %9245 = vmatpush3.bf16.msra.mxu0 %v9244_v44 }
 0xed3   : > { %9247 = vmatprep.subr.bf16.mxu0 %v9246_v62  ;;  %v12418_v62 = vmax.f32 %v11694_v42, 0.0 }
 0xed6   : > { %9249 = vmatpush3.bf16.msra.mxu0 %v9248_v37  ;;  %v12421_v37 = vmax.f32 %v11722_v12, 0.0 }
 0xed7   : > { %9251 = vmatprep.subr.bf16.mxu0 %v9250_v28 }
 0xf22   : > { %v6525_v15 = vpop.permute.xlu0 %6524 }
 0xf23   : > { %v6564_v4 = vmul.f32 %v6525_v15, %v12412_v60  ;;  %v6562_v32 = vmul.f32 %v6525_v15, %v12418_v62  ;;  %v6563_v56 = vmul.f32 %v6525_v15, %v12420_v7  ;;  %v12431_v62 = vmax.f32 %v11764_v25, 0.0 }
 0xf26   : > { %v6530_v19 = vpop.permute.xlu1 %6529 }
 0xf27   : > { %v6568_v24 = vmul.f32 %v6530_v19, %v12413_v5  ;;  %v6566_v33 = vmul.f32 %v6530_v19, %v12415_v43  ;;  %v6567_v61 = vmul.f32 %v6530_v19, %v12416_v20  ;;  %v6569_v38 = vmul.f32 %v6530_v19, %v12419_v51 }
 0xf28   : > { %v12423_v5 = vmax.f32 %v11912_v31, 0.0  ;;  %v12425_v19 = vmax.f32 %v11736_v26, 0.0  ;;  %v12429_v26 = vmax.f32 %v11753_v2, 0.0  ;;  %v12432_v51 = vmax.f32 %v11767_v34, 0.0 }
 0xf29   : > { %v6620_v45 = vadd.f32 %v6568_v24, %v6564_v4  ;;  %v12424_v24 = vmax.f32 %v11965_v29, 0.0  ;;  %v6607_v22 = vadd.f32 %v6567_v61, %v6563_v56 }
 0xf2a   : > { %v6535_v36 = vpop.permute.xlu1 %6534  ;;  %v6565_v57 = vmul.f32 %v6525_v15, %v12423_v5 }
 0xf2b   : > { %v6572_v14 = vmul.f32 %v6535_v36, %v12414_v41  ;;  %v6570_v60 = vmul.f32 %v6535_v36, %v12421_v37  ;;  %v6571_v4 = vmul.f32 %v6535_v36, %v12422_v8  ;;  %v6573_v42 = vmul.f32 %v6535_v36, %v12424_v24 }
 0xf2c   : > { %v6633_v41 = vadd.f32 %v6569_v38, %v6565_v57 }
 0xf2d   : > { %v6621_v27 = vadd.f32 %v6620_v45, %v6572_v14  ;;  %v6594_v45 = vadd.f32 %v6566_v33, %v6562_v32  ;;  %v6608_v43 = vadd.f32 %v6607_v22, %v6571_v4  ;;  %v12428_v33 = vmax.f32 %v11750_v23, 0.0 }
 0xf2e   : > { %v6540_v47 = vpop.permute.xlu1 %6539  ;;  %v6634_v36 = vadd.f32 %v6633_v41, %v6573_v42 }
 0xf2f   : > { %v6576_v44 = vmul.f32 %v6540_v47, %v12417_v18  ;;  %v6574_v0 = vmul.f32 %v6540_v47, %v12425_v19  ;;  %v6575_v14 = vmul.f32 %v6540_v47, %v12426_v46  ;;  %v6595_v15 = vadd.f32 %v6594_v45, %v6570_v60 }
 0xf30   : > { %v12433_v60 = vmax.f32 %v11778_v48, 0.0 }
 0xf31   : > { %v6622_v1 = vadd.f32 %v6621_v27, %v6576_v44  ;;  %v12427_v27 = vmax.f32 %v11984_v63, 0.0  ;;  %v6596_v44 = vadd.f32 %v6595_v15, %v6574_v0  ;;  %v6609_v63 = vadd.f32 %v6608_v43, %v6575_v14 }
 0xf32   : > { %v6545_v28 = vpop.permute.xlu1 %6544 }
 0xf33   : > { %v6580_v12 = vmul.f32 %v6545_v28, %v6351_v30  ;;  %v6577_v31 = vmul.f32 %v6540_v47, %v12427_v27  ;;  %v6578_v20 = vmul.f32 %v6545_v28, %v12428_v33  ;;  %v6579_v61 = vmul.f32 %v6545_v28, %v12429_v26  ;;  %v6721_v33 = vld [vmem:[#allocation4 + $0x238] sm:$0xff] }
 0xf34   : > { %v6581_v30 = vmul.f32 %v6545_v28, %v12430_v21 }
 0xf35   : > { %v6623_v29 = vadd.f32 %v6622_v1, %v6580_v12  ;;  %v6635_v47 = vadd.f32 %v6634_v36, %v6577_v31  ;;  %v6597_v7 = vadd.f32 %v6596_v44, %v6578_v20  ;;  %v6610_v50 = vadd.f32 %v6609_v63, %v6579_v61  ;;  %v6714_v31 = vld [vmem:[#allocation4 + $0x200] sm:$0xff]  ;;  %v6719_v36 = vld [vmem:[#allocation4 + $0x228] sm:$0xff]  ;;  %v6725_v63 = vld [vmem:[#allocation4 + $0x258] sm:$0xff] }
 0xf36   : > { %v6550_v18 = vpop.permute.xlu1 %6549  ;;  %v9166_v21 = vpack.c.bf16 %v6721_v33, %v6719_v36 }
 0xf37   : > { %v6584_v11 = vmul.f32 %v6550_v18, %v6355_v40  ;;  %v6582_v32 = vmul.f32 %v6550_v18, %v12431_v62  ;;  %v6583_v23 = vmul.f32 %v6550_v18, %v12432_v51  ;;  %v6585_v2 = vmul.f32 %v6550_v18, %v6356_v9  ;;  %v6720_v18 = vld [vmem:[#allocation4 + $0x230] sm:$0xff] }
 0xf38   : > { %v6636_v56 = vadd.f32 %v6635_v47, %v6581_v30  ;;  %v12434_v40 = vmax.f32 %v11781_v54, 0.0  ;;  %v6718_v30 = vld [vmem:[#allocation4 + $0x220] sm:$0xff]  ;;  %v6724_v51 = vld [vmem:[#allocation4 + $0x250] sm:$0xff] }
 0xf39   : > { %v6624_v38 = vadd.f32 %v6623_v29, %v6584_v11  ;;  %v6598_v4 = vadd.f32 %v6597_v7, %v6582_v32  ;;  %v6611_v17 = vadd.f32 %v6610_v50, %v6583_v23  ;;  %v6723_v11 = vld [vmem:[#allocation4 + $0x248] sm:$0xff]  ;;  %v9168_v47 = vpack.c.bf16 %v6720_v18, %v6718_v30  ;;  %v6722_v32 = vld [vmem:[#allocation4 + $0x240] sm:$0xff]  ;;  %v6761_v30 = vld [vmem:[#allocation4 + $0x378] sm:$0xff] }
 0xf3a   : > { %v6555_v37 = vpop.permute.xlu1 %6554  ;;  %v6637_v9 = vadd.f32 %v6636_v56, %v6585_v2  ;;  %v9170_v62 = vpack.c.bf16 %v6725_v63, %v6723_v11  ;;  %v6727_v23 = vld [vmem:[#allocation4 + $0x268] sm:$0xff]  ;;  %v6729_v2 = vld [vmem:[#allocation4 + $0x278] sm:$0xff]  ;;  %v6726_v50 = vld [vmem:[#allocation4 + $0x260] sm:$0xff] }
 0xf3b   : > { %v6586_v35 = vmul.f32 %v6555_v37, %v12433_v60  ;;  %v6587_v8 = vmul.f32 %v6555_v37, %v12434_v40  ;;  %v6588_v25 = vmul.f32 %v6555_v37, %v6359_v59  ;;  %v6589_v34 = vmul.f32 %v6555_v37, %v6360_v55  ;;  %v6728_v56 = vld [vmem:[#allocation4 + $0x270] sm:$0xff]  ;;  %v6731_v37 = vld [vmem:[#allocation4 + $0x288] sm:$0xff]  ;;  %v6733_v60 = vld [vmem:[#allocation4 + $0x298] sm:$0xff] }
 0xf3c   : > { %v9174_v7 = vpack.c.bf16 %v6729_v2, %v6727_v23  ;;  %v9178_v40 = vpack.c.bf16 %v6733_v60, %v6731_v37  ;;  %v6763_v11 = vld [vmem:[#allocation4 + $0x388] sm:$0xff]  ;;  %v6765_v63 = vld [vmem:[#allocation4 + $0x398] sm:$0xff]  ;;  %v6768_v37 = vld [vmem:[#allocation4 + $0x3b0] sm:$0xff] }
 0xf3d   : > { %v12177_v1 = vadd.f32 %v6624_v38, %v6588_v25  ;;  %v6599_v5 = vadd.f32 %v6598_v4, %v6586_v35  ;;  %v6612_v57 = vadd.f32 %v6611_v17, %v6587_v8  ;;  %v6638_v48 = vadd.f32 %v6637_v9, %v6589_v34  ;;  %v6730_v8 = vld [vmem:[#allocation4 + $0x280] sm:$0xff]  ;;  %v6732_v25 = vld [vmem:[#allocation4 + $0x290] sm:$0xff]  ;;  %v6735_v34 = vld [vmem:[#allocation4 + $0x2a8] sm:$0xff] }
 0xf3e   : > { %v12179_v24 = vpop.permute.xlu1 %6559  ;;  %v9172_v38 = vpack.c.bf16 %v6724_v51, %v6722_v32  ;;  %v9176_v35 = vpack.c.bf16 %v6728_v56, %v6726_v50  ;;  %v6737_v4 = vld [vmem:[#allocation4 + $0x2b8] sm:$0xff]  ;;  %v9180_v17 = vpack.c.bf16 %v6732_v25, %v6730_v8  ;;  %v6762_v32 = vld [vmem:[#allocation4 + $0x380] sm:$0xff]  ;;  %v6764_v51 = vld [vmem:[#allocation4 + $0x390] sm:$0xff] }
 0xf3f   : > { %v6590_v54 = vmul.f32 %v12179_v24, %v6361_v6  ;;  %v6591_v10 = vmul.f32 %v12179_v24, %v6362_v13  ;;  %v6593_v58 = vmul.f32 %v12179_v24, %v6364_v16  ;;  %v6716_v16 = vld [vmem:[#allocation4 + $0x210] sm:$0xff]  ;;  %v9182_v9 = vpack.c.bf16 %v6737_v4, %v6735_v34  ;;  %v6767_v23 = vld [vmem:[#allocation4 + $0x3a8] sm:$0xff]  ;;  %v6769_v2 = vld [vmem:[#allocation4 + $0x3b8] sm:$0xff] }
 0xf40   : > { %v9164_v61 = vpack.c.bf16 %v6716_v16, %v6714_v31  ;;  %v6750_v16 = vld [vmem:[#allocation4 + $0x320] sm:$0xff]  ;;  %v9214_v50 = vpack.c.bf16 %v6769_v2, %v6767_v23  ;;  %v6771_v60 = vld [vmem:[#allocation4 + $0x3c8] sm:$0xff]  ;;  %v6772_v34 = vld [vmem:[#allocation4 + $0x3d0] sm:$0xff] }
 0xf41   : > { %v6600_v59 = vadd.f32 %v6599_v5, %v6590_v54  ;;  %v6613_v55 = vadd.f32 %v6612_v57, %v6591_v10  ;;  %v6639_v42 = vadd.f32 %v6638_v48, %v6593_v58  ;;  %v6734_v5 = vld [vmem:[#allocation4 + $0x2a0] sm:$0xff]  ;;  %v6736_v57 = vld [vmem:[#allocation4 + $0x2b0] sm:$0xff]  ;;  %v6739_v48 = vld [vmem:[#allocation4 + $0x2c8] sm:$0xff] }
 0xf42   : > { %v6741_v54 = vld [vmem:[#allocation4 + $0x2d8] sm:$0xff]  ;;  %v9184_v10 = vpack.c.bf16 %v6736_v57, %v6734_v5  ;;  %v6766_v56 = vld [vmem:[#allocation4 + $0x3a0] sm:$0xff] }
 0xf43   : > { %v6601_v28 = vrot.slane %v6600_v59, 4  ;;  %v6614_v45 = vrot.slane %v6613_v55, 4  ;;  %v6640_v22 = vrot.slane %v6639_v42, 4  ;;  %v9186_v58 = vpack.c.bf16 %v6741_v54, %v6739_v48  ;;  %v6770_v25 = vld [vmem:[#allocation4 + $0x3c0] sm:$0xff]  ;;  %v6776_v54 = vld [vmem:[#allocation4 + $0x3f0] sm:$0xff] }
 0xf44   : > { %v9220_v5 = vpack.c.bf16 %v6772_v34, %v6770_v25  ;;  %v6774_v48 = vld [vmem:[#allocation4 + $0x3e0] sm:$0xff] }
 0xf45   : > { %v6602_v19 = vadd.f32 %v6601_v28, %v6600_v59  ;;  %v6615_v0 = vadd.f32 %v6614_v45, %v6613_v55  ;;  %v6641_v12 = vadd.f32 %v6640_v22, %v6639_v42  ;;  %v6738_v59 = vld [vmem:[#allocation4 + $0x2c0] sm:$0xff]  ;;  %v6740_v55 = vld [vmem:[#allocation4 + $0x2d0] sm:$0xff]  ;;  %v6743_v42 = vld [vmem:[#allocation4 + $0x2e8] sm:$0xff] }
 0xf46   : > { %v6745_v28 = vld [vmem:[#allocation4 + $0x2f8] sm:$0xff]  ;;  %v9188_v45 = vpack.c.bf16 %v6740_v55, %v6738_v59 }
 0xf47   : > { %v6603_v53 = vrot.slane %v6602_v19, 2  ;;  %v6616_v41 = vrot.slane %v6615_v0, 2  ;;  %v6642_v6 = vrot.slane %v6641_v12, 2  ;;  %v9190_v22 = vpack.c.bf16 %v6745_v28, %v6743_v42  ;;  %v6946_v42 = vld [vmem:[%s12411_s30 + $0x60] sm:$0xff]  ;;  %v6947_v28 = vld [vmem:[%s12411_s30 + $0x68] sm:$0xff] }
 0xf49   : > { %v6604_v46 = vadd.f32 %v6603_v53, %v6602_v19  ;;  %v6617_v49 = vadd.f32 %v6616_v41, %v6615_v0  ;;  %v6643_v14 = vadd.f32 %v6642_v6, %v6641_v12  ;;  %v6742_v19 = vld [vmem:[#allocation4 + $0x2e0] sm:$0xff]  ;;  %v6744_v0 = vld [vmem:[#allocation4 + $0x2f0] sm:$0xff]  ;;  %v6747_v12 = vld [vmem:[#allocation4 + $0x308] sm:$0xff] }
 0xf4a   : > { %v6749_v53 = vld [vmem:[#allocation4 + $0x318] sm:$0xff]  ;;  %v9192_v41 = vpack.c.bf16 %v6744_v0, %v6742_v19 }
 0xf4b   : > { %v6605_v13 = vrot.slane %v6604_v46, 1  ;;  %v6618_v27 = vrot.slane %v6617_v49, 1  ;;  %v6644_v3 = vrot.slane %v6643_v14, 1  ;;  %v9194_v6 = vpack.c.bf16 %v6749_v53, %v6747_v12  ;;  %v6965_v19 = vld [vmem:[%s12411_s30 + $0xf8] sm:$0xff]  ;;  %v6948_v12 = vld [vmem:[%s12411_s30 + $0x70] sm:$0xff] }
 0xf4c   : > { %v6949_v53 = vld [vmem:[%s12411_s30 + $0x78] sm:$0xff] }
 0xf4d   : > { %v6619_v15 = vadd.f32 %v6618_v27, %v6617_v49  ;;  %v6606_v43 = vadd.f32 %v6605_v13, %v6604_v46  ;;  %v6645_v29 = vadd.f32 %v6644_v3, %v6643_v14  ;;  %v6746_v46 = vld [vmem:[#allocation4 + $0x300] sm:$0xff]  ;;  %v6748_v49 = vld [vmem:[#allocation4 + $0x310] sm:$0xff]  ;;  %v6751_v14 = vld [vmem:[#allocation4 + $0x328] sm:$0xff]  ;;  %v6592_v3 = vmul.f32 %v12179_v24, %v6363_v39 }
 0xf4e   : > { %v6753_v13 = vld [vmem:[#allocation4 + $0x338] sm:$0xff]  ;;  %v9196_v27 = vpack.c.bf16 %v6748_v49, %v6746_v46  ;;  %v6758_v24 = vld [vmem:[#allocation4 + $0x360] sm:$0xff]  ;;  %v12437_v46 = vld [vmem:[#allocation60_spill] sm:$0xff] }
 0xf4f   : > { %v6647_v20 = vmul.f32 0.015625, %v6619_v15  ;;  %v6646_v26 = vmul.f32 0.015625, %v6606_v43  ;;  %v6649_v44 = vmul.f32 0.015625, %v6645_v29  ;;  %v9198_v31 = vpack.c.bf16 %v6753_v13, %v6751_v14  ;;  %v6752_v15 = vld [vmem:[#allocation4 + $0x330] sm:$0xff]  ;;  %v6755_v43 = vld [vmem:[#allocation4 + $0x348] sm:$0xff]  ;;  %v6757_v29 = vld [vmem:[#allocation4 + $0x358] sm:$0xff] }
 0xf50   : > { %v9200_v36 = vpack.c.bf16 %v6752_v15, %v6750_v16  ;;  %v6626_v33 = vadd.f32 %v12177_v1, %v6592_v3  ;;  %v9210_v1 = vpack.c.bf16 %v6765_v63, %v6763_v11  ;;  %v12439_v14 = vld [vmem:[#allocation61_spill] sm:$0xff] }
 0xf51   : > { %6854 = vmatprep.mubr.f32.mxu1 %v6647_v20  ;;  %v9202_v20 = vpack.c.bf16 %v6757_v29, %v6755_v43 }
 0xf52   : > { %6855 = vmatmul.mubr.f32.vlgmr.msra.gmra.mrb[128].mxu1 %v6646_v26  ;;  %v6754_v26 = vld [vmem:[#allocation4 + $0x340] sm:$0xff]  ;;  %v6627_v18 = vrot.slane %v6626_v33, 4 }
 0xf53   : > { %9165 = vmatpush1.bf16.msra.mxu1 %v9164_v61  ;;  %6925 = vmatprep.mubr.f32.mxu1 %v6649_v44  ;;  %v6756_v61 = vld [vmem:[#allocation4 + $0x350] sm:$0xff] }
 0xf54   : > { %9167 = vmatprep.subr.bf16.mxu1 %v9166_v21  ;;  %v6759_v21 = vld [vmem:[#allocation4 + $0x368] sm:$0xff]  ;;  %v9204_v52 = vpack.c.bf16 %v6756_v61, %v6754_v26  ;;  %v6760_v44 = vld [vmem:[#allocation4 + $0x370] sm:$0xff]  ;;  %v7038_v61 = vld [vmem:[%s12438_s20] sm:$0x1] }
 0xf55   : > { %v9206_v39 = vpack.c.bf16 %v6761_v30, %v6759_v21 }
 0xf57   : > { %9169 = vmatpush1.bf16.msra.mxu1 %v9168_v47  ;;  %v9208_v47 = vpack.c.bf16 %v6760_v44, %v6758_v24 }
 0xf58   : > { %9171 = vmatprep.subr.bf16.mxu1 %v9170_v62  ;;  %v6628_v62 = vadd.f32 %v6627_v18, %v6626_v33  ;;  %v7044_v18 = vld [vmem:[#allocation3] sm:$0x1] }
 0xf5b   : > { %9173 = vmatpush1.bf16.msra.mxu1 %v9172_v38  ;;  %v9212_v38 = vpack.c.bf16 %v6764_v51, %v6762_v32 }
 0xf5c   : > { %9175 = vmatprep.subr.bf16.mxu1 %v9174_v7  ;;  %v6629_v7 = vrot.slane %v6628_v62, 2 }
 0xf5e   : > { %v6630_v4 = vadd.f32 %v6629_v7, %v6628_v62 }
 0xf5f   : > { %9177 = vmatpush1.bf16.msra.mxu1 %v9176_v35  ;;  %v6773_v35 = vld [vmem:[#allocation4 + $0x3d8] sm:$0xff] }
 0xf60   : > { %9179 = vmatprep.subr.bf16.mxu1 %v9178_v40  ;;  %v9216_v40 = vpack.c.bf16 %v6768_v37, %v6766_v56  ;;  %v9218_v8 = vpack.c.bf16 %v6773_v35, %v6771_v60 }
 0xf63   : > { %9181 = vmatpush1.bf16.msra.mxu1 %v9180_v17  ;;  %v6775_v17 = vld [vmem:[#allocation4 + $0x3e8] sm:$0xff] }
 0xf64   : > { %9183 = vmatprep.subr.bf16.mxu1 %v9182_v9  ;;  %v6777_v9 = vld [vmem:[#allocation4 + $0x3f8] sm:$0xff] }
 0xf65   : > { %v9222_v57 = vpack.c.bf16 %v6777_v9, %v6775_v17 }
 0xf67   : > { %9185 = vmatpush1.bf16.msra.mxu1 %v9184_v10  ;;  %v6631_v10 = vrot.slane %v6630_v4, 1 }
 0xf68   : > { %9187 = vmatprep.subr.bf16.mxu1 %v9186_v58  ;;  %v9224_v58 = vpack.c.bf16 %v6776_v54, %v6774_v48 }
 0xf69   : > { %v6632_v59 = vadd.f32 %v6631_v10, %v6630_v4 }
 0xf6b   : > { %9189 = vmatpush1.bf16.msra.mxu1 %v9188_v45  ;;  %v6648_v55 = vmul.f32 0.015625, %v6632_v59  ;;  %v9252_v45 = vpack.c.bf16 %v6947_v28, %v6946_v42 }
 0xf6c   : > { %9191 = vmatprep.subr.bf16.mxu1 %v9190_v22  ;;  %v6964_v22 = vld [vmem:[%s12411_s30 + $0xf0] sm:$0xff] }
 0xf6d   : > { %9253 = vmatpush3.bf16.msra.mxu0 %v9252_v45  ;;  %v9254_v0 = vpack.c.bf16 %v6965_v19, %v6964_v22 }
 0xf6f   : > { %9193 = vmatpush1.bf16.msra.mxu1 %v9192_v41  ;;  %v9256_v41 = vpack.c.bf16 %v6949_v53, %v6948_v12  ;;  %9255 = vmatprep.subr.bf16.mxu0 %v9254_v0 }
 0xf70   : > { %9195 = vmatprep.subr.bf16.mxu1 %v9194_v6  ;;  %v6778_v6 = vld [vmem:[%s12435_s9] sm:$0x3] }
 0xf71   : > { %9257 = vmatpush3.bf16.msra.mxu0 %v9256_v41  ;;  %v6783_v49 = vrot.slane %v6778_v6, %v12437_v46  ;;  %v6787_v13 = vrot.slane %v6778_v6, %v12439_v14 }
 0xf73   : > { %9197 = vmatpush1.bf16.msra.mxu1 %v9196_v27 }
 0xf74   : > { %9199 = vmatprep.subr.bf16.mxu1 %v9198_v31 }
 0xf77   : > { %9201 = vmatpush1.bf16.msra.mxu1 %v9200_v36  ;;  %v6966_v36 = vld [vmem:[%s12436_s3] sm:$0x1] }
 0xf78   : > { %9203 = vmatprep.subr.bf16.mxu1 %v9202_v20 }
 0xf7b   : > { %9205 = vmatpush1.bf16.msra.mxu1 %v9204_v52 }
 0xf7c   : > { %9207 = vmatprep.subr.bf16.mxu1 %v9206_v39 }
 0xf7f   : > { %9209 = vmatpush1.bf16.msra.mxu1 %v9208_v47 }
 0xf80   : > { %9211 = vmatprep.subr.bf16.mxu1 %v9210_v1 }
 0xf83   : > { %9213 = vmatpush1.bf16.msra.mxu1 %v9212_v38 }
 0xf84   : > { %9215 = vmatprep.subr.bf16.mxu1 %v9214_v50 }
 0xf87   : > { %9217 = vmatpush1.bf16.msra.mxu1 %v9216_v40 }
 0xf88   : > { %9219 = vmatprep.subr.bf16.mxu1 %v9218_v8 }
 0xf8b   : > { %9221 = vmatpush1.bf16.msra.mxu1 %v9220_v5 }
 0xf8c   : > { %9223 = vmatprep.subr.bf16.mxu1 %v9222_v57 }
 0xf8f   : > { %9225 = vmatpush1.bf16.msra.mxu1 %v9224_v58 }
 0xf92   : > { %6926 = vmatmul.mubr.f32.vlgmr.msra.gmra.mrb[128].mxu1 %v6648_v55 }
0x1065   : > { %v6927_v27 = vpop.f32.mrb[128].mxu1 }
0x1066   : > { %v9258_v3 = vadd.f32 %v6927_v27, %v6783_v49  ;;  %v6929_v31 = vpop.f32.mrb[129].mxu1 }
0x1067   : > { %v9259_v16 = vadd.f32 %v6929_v31, %v6787_v13 }
0x1068   : > { %v6932_v43 = vmax.f32 %v9258_v3, 0.0 }
0x1069   : > { %v6933_v15 = vmax.f32 %v9259_v16, 0.0 }
0x106b   : > { %7031 = vmatprep.mubr.f32.mxu0 %v6933_v15 }
0x106c   : > { %7032 = vmatmul.mubr.f32.vlgmr.msra.gmra.mrb[120].mxu0 %v6932_v43 }
0x113f   : > { %v7723_v29 = vpop.f32.mrb[120].mxu0 }
0x1140   : > { %v7724_v33 = vpop.f32.mrb[121].mxu0 }
0x1141   : > { %v7725_v20 = vadd.f32 %v7724_v33, %v7723_v29 }
0x1143   : > { %v7034_v26 = vadd.f32 %v7725_v20, %v6966_v36 }
0x1145   : > { %v7037_v21 = vmax.f32 %v7034_v26, 0.0 }
0x1147   : > { %v7039_v30 = vmul.f32 %v7038_v61, %v7037_v21 }
0x1149   : > { %v7041_v52 = vsel %vm7040_vm1, %v7039_v30, 0.0 }
0x114a   : > { %7042 = vadd.xlane.f32.xlu1 %v7041_v52 }
0x11d7   : > { %v7043_v39 = vpop.xlane.xlu1 %7042 }
0x11d8   : > { %v7045_v24 = vadd.f32 %v7044_v18, %v7043_v39 }
0x11da   : > { %7047 = vst.msk [vmem:[%s1594_s16] sm:$0x1] %vm7046_vm3, %v7045_v24 }
0x11db PF: > { %s117_s26 = sadd.s32 1, %s9873_s26  }
0x11dc   : > { %p114_p6 = scmp.ge.s32.totalorder %s117_s26, 4  }
0x11de   :  { %116 = sbr.rel (!%p114_p6) target bundleno = 95 (0x5f), region = 341 }
0x11e5   :  { %7065 = vsyncpa [#allocation5], 1 }
0x11e6   :  { %7067 = vsyncpa [#allocation5 + $0x1], 1 }
0x11e7   :  { %7068 = vsyncpa [#allocation7], 1 }
0x11e8   :  { %7069 = vsyncpa [#allocation10], 1 }
0x11e9   :  { %7070 = vsyncpa [#allocation13], 1 }
0x11ea   :  { %7071 = vsyncpa [#allocation16], 1 }
0x11eb   :  { %7072 = vsyncpa [#allocation19], 1 }

</bundles_post_ra>
